<compile_context>
chip_gen: v6e
topology: v6e:2x2x1
jax: 0.10.0
libtpu: 0.0.40
codegen_flags: <defaults>
</compile_context>

<pallas_src>
import numpy as np
import jax
import jax.numpy as jnp
from jax.experimental import pallas as pl
from jax.experimental.pallas import tpu as pltpu

EPS = 1e-3
LANE = 128
RB = 512                        # row block for the tiled stats reductions
VMEM_LIMIT = 32 * 1024 * 1024   # explicit scoped-VMEM limit (safe on v5e/v6e/v7x)


def _ceil_to(x, m):
    return ((x + m - 1) // m) * m


# ----------------------- BatchNorm statistics (tiled, two-pass) -----------------------

def _sum_rows_kernel(x_ref, o_ref):
    @pl.when(pl.program_id(0) == 0)
    def _init():
        o_ref[...] = jnp.zeros_like(o_ref)

    o_ref[...] += jnp.sum(x_ref[...].astype(jnp.float32), axis=0, keepdims=True)


def _make_centered_sq_kernel(rows_per_block, m_true):
    def kernel(x_ref, mu_ref, o_ref):
        i = pl.program_id(0)

        @pl.when(i == 0)
        def _init():
            o_ref[...] = jnp.zeros_like(o_ref)

        rid = i * rows_per_block + jax.lax.broadcasted_iota(
            jnp.int32, (rows_per_block, 1), 0)
        d = x_ref[...].astype(jnp.float32) - mu_ref[...]
        d = jnp.where(rid < m_true, d, 0.0)          # ignore zero-padded tail rows
        o_ref[...] += jnp.sum(d * d, axis=0, keepdims=True)

    return kernel


def _row_sum(x2d):
    M, C = x2d.shape
    Mp = _ceil_to(M, RB)
    if Mp != M:
        x2d = jnp.pad(x2d, ((0, Mp - M), (0, 0)))
    return pl.pallas_call(
        _sum_rows_kernel,
        out_shape=jax.ShapeDtypeStruct((1, C), jnp.float32),
        grid=(Mp // RB,),
        in_specs=[pl.BlockSpec((RB, C), lambda i: (i, 0))],
        out_specs=pl.BlockSpec((1, C), lambda i: (0, 0)),
        compiler_params=pltpu.CompilerParams(
            dimension_semantics=("arbitrary",), vmem_limit_bytes=VMEM_LIMIT),
    )(x2d)


def _centered_sq_sum(x2d, mean_row):
    """Sum over rows of (x - mean)^2; mean_row: (1, C) f32.  Returns (1, C) f32."""
    M, C = x2d.shape
    Mp = _ceil_to(M, RB)
    if Mp != M:
        x2d = jnp.pad(x2d, ((0, Mp - M), (0, 0)))
    return pl.pallas_call(
        _make_centered_sq_kernel(RB, M),
        out_shape=jax.ShapeDtypeStruct((1, C), jnp.float32),
        grid=(Mp // RB,),
        in_specs=[pl.BlockSpec((RB, C), lambda i: (i, 0)),
                  pl.BlockSpec((1, C), lambda i: (0, 0))],
        out_specs=pl.BlockSpec((1, C), lambda i: (0, 0)),
        compiler_params=pltpu.CompilerParams(
            dimension_semantics=("arbitrary",), vmem_limit_bytes=VMEM_LIMIT),
    )(x2d, mean_row)


def batch_norm_stats(x2d):
    """x2d: (M, C) any float dtype.  Returns (mean, biased var), each (C,) f32."""
    M, _ = x2d.shape
    mean = _row_sum(x2d) / M
    var = _centered_sq_sum(x2d, mean)[0] / M
    return mean[0], var


# --------------------- activation re-blocking for the tap-matmul conv ---------------------
# component[dw*stride+ph][r * Wo + j, c] = x_pad[ph + stride*r, dw + stride*j, c]
# => for tap (dh, dw) the (Ho*Wo, Cp) matmul operand is a CONTIGUOUS row window of
#    component dw*stride + (dh % stride) starting at row (dh // stride) * Wo.

def _build_tap_components(x, kh, kw, stride, padding):
    """x: (B, H, W, C) -> (xs bf16 (B, kw*stride, Hs*Wo, Cp), sched, (Ho, Wo, Cp)).

    sched[t] = (component, row_start) for tap t in (dh, dw) row-major order (matches
    the fold order of _fold_weights)."""
    B, H, W, C = x.shape
    if padding:
        x = jnp.pad(x, ((0, 0), (padding, padding), (padding, padding), (0, 0)))
    Hp, Wp = H + 2 * padding, W + 2 * padding
    Ho = (Hp - kh) // stride + 1
    Wo = (Wp - kw) // stride + 1
    Hs = -(-Hp // stride)
    Cp = _ceil_to(C, LANE)

    comps = []
    for dw in range(kw):
        xcol = x[:, :, dw:dw + stride * (Wo - 1) + 1:stride, :]      # (B, Hp, Wo, C)
        for ph in range(stride):
            rows = xcol[:, ph::stride, :, :]                          # (B, <=Hs, Wo, C)
            if rows.shape[1] < Hs:
                rows = jnp.pad(rows, ((0, 0), (0, Hs - rows.shape[1]), (0, 0), (0, 0)))
            comps.append(rows)
    xs = jnp.stack(comps, axis=1).reshape(B, kw * stride, Hs * Wo, C)
    if Cp != C:
        xs = jnp.pad(xs, ((0, 0), (0, 0), (0, 0), (0, Cp - C)))
    xs = xs.astype(jnp.bfloat16)

    sched = [(dw * stride + dh % stride, (dh // stride) * Wo)
             for dh in range(kh) for dw in range(kw)]
    return xs, sched, (Ho, Wo, Cp)


def _fold_weights(w_hwio, in_scale, cinp, coutp):
    """Fold per-input-channel BN scale into the weights; tap-major, padded, bf16."""
    kh, kw, cin, cout = w_hwio.shape
    wt = (w_hwio * in_scale[None, None, :, None]).reshape(kh * kw, cin, cout)
    wt = jnp.pad(wt, ((0, 0), (0, cinp - cin), (0, coutp - cout)))
    return wt.astype(jnp.bfloat16)


def _fold_bias_uniform(w_hwio, in_shift, coutp):
    """BN shift folded into a per-channel bias (valid when the conv has no padding)."""
    b = jnp.einsum("c,hwcd->d", in_shift, w_hwio)
    return jnp.pad(b, (0, coutp - b.shape[0]))[None, :].astype(jnp.float32)


def _fold_bias_map(w_hwio, in_shift, Ho, Wo, stride, padding, Hin, Win, coutp):
    """Per-output-position bias; taps falling into the conv's zero padding are masked
    (the PyTorch conv zero-pads the *post*-BN activation)."""
    kh, kw, _, cout = w_hwio.shape
    S = jnp.einsum("c,hwcd->hwd", in_shift, w_hwio)                   # (kh, kw, cout)
    hpos = np.arange(Ho)[:, None] * stride + np.arange(kh)[None, :] - padding
    wpos = np.arange(Wo)[:, None] * stride + np.arange(kw)[None, :] - padding
    vh = ((hpos >= 0) & (hpos < Hin)).astype(np.float32)              # (Ho, kh)
    vw = ((wpos >= 0) & (wpos < Win)).astype(np.float32)              # (Wo, kw)
    bm = jnp.einsum("hd,we,dec->hwc", jnp.asarray(vh), jnp.asarray(vw), S)
    return jnp.pad(bm.reshape(Ho * Wo, cout),
                   ((0, 0), (0, coutp - cout))).astype(jnp.float32)


# ------------------------------ fused conv (+ pool / stats) kernel ------------------------------

def _conv_tap_matmul(xs, w_taps, bias, sched, howo, *,
                     out_dtype=jnp.float32, with_pool=False, with_sum=False):
    """BN+conv as a sum of per-tap MXU matmuls, all taps statically unrolled in-kernel.

    xs:     (B, ncomp, HSWO, Cp) bf16 column-tap / row-parity components
    w_taps: (T, Cp, Coutp)       bf16 BN-folded weights, tap-major
    bias:   (1 | howo, Coutp)    f32  BN shift folded per channel / per position
    sched:  static list of (component, row_start) per tap
    Optionally fuses the 3x3/s2 max-pool of the raw input and/or the per-batch row-sum
    of the conv output (first BN-stats pass) as extra outputs.
    """
    B, NC, HSWO, CP = xs.shape
    T, _, COUTP = w_taps.shape
    assert T == len(sched)
    bias_rows = bias.shape[0]

    def kernel(xs_ref, w_ref, b_ref, *out_refs):
        acc = None
        pmax = None
        for t, (c, r0) in enumerate(sched):
            win = xs_ref[c, pl.ds(r0, howo), :]
            part = jnp.dot(win, w_ref[t], preferred_element_type=jnp.float32)
            acc = part if acc is None else acc + part
            if with_pool:
                pmax = win if pmax is None else jnp.maximum(pmax, win)
        acc = acc + b_ref[...]
        out_refs[0][...] = acc.astype(out_refs[0].dtype)
        k = 1
        if with_pool:
            out_refs[k][...] = pmax.astype(jnp.float32)
            k += 1
        if with_sum:
            out_refs[k][...] = jnp.sum(acc, axis=0, keepdims=True)

    out_shape = [jax.ShapeDtypeStruct((B, howo, COUTP), out_dtype)]
    out_specs = [pl.BlockSpec((None, howo, COUTP), lambda b: (b, 0, 0))]
    if with_pool:
        out_shape.append(jax.ShapeDtypeStruct((B, howo, CP), jnp.float32))
        out_specs.append(pl.BlockSpec((None, howo, CP), lambda b: (b, 0, 0)))
    if with_sum:
        out_shape.append(jax.ShapeDtypeStruct((B, 1, COUTP), jnp.float32))
        out_specs.append(pl.BlockSpec((None, 1, COUTP), lambda b: (b, 0, 0)))
    multi = len(out_shape) > 1

    return pl.pallas_call(
        kernel,
        out_shape=tuple(out_shape) if multi else out_shape[0],
        grid_spec=pltpu.PrefetchScalarGridSpec(
            num_scalar_prefetch=0,
            grid=(B,),
            in_specs=[
                pl.BlockSpec((None, NC, HSWO, CP), lambda b: (b, 0, 0, 0)),
                pl.BlockSpec((T, CP, COUTP), lambda b: (0, 0, 0)),
                pl.BlockSpec((bias_rows, COUTP), lambda b: (0, 0)),
            ],
            out_specs=tuple(out_specs) if multi else out_specs[0],
        ),
        compiler_params=pltpu.CompilerParams(
            dimension_semantics=("parallel",), vmem_limit_bytes=VMEM_LIMIT),
    )(xs, w_taps, bias)


# ----------------------------------- InceptionB module -----------------------------------

def init_params(key, in_channels):
    ks = jax.random.split(key, 10)

    def w(k, shape, scale=0.05):
        return scale * jax.random.normal(k, shape, jnp.float32)

    return {
        "bn_gamma": 1.0 + 0.1 * jax.random.normal(ks[0], (in_channels,), jnp.float32),
        "bn_beta": 0.1 * jax.random.normal(ks[1], (in_channels,), jnp.float32),
        "w_3x3": w(ks[2], (3, 3, in_channels, 384)),
        "w_d1": w(ks[3], (1, 1, in_channels, 64)),
        "bn2_gamma": 1.0 + 0.1 * jax.random.normal(ks[4], (64,), jnp.float32),
        "bn2_beta": 0.1 * jax.random.normal(ks[5], (64,), jnp.float32),
        "w_d2": w(ks[6], (3, 3, 64, 96)),
        "bn3_gamma": 1.0 + 0.1 * jax.random.normal(ks[7], (96,), jnp.float32),
        "bn3_beta": 0.1 * jax.random.normal(ks[8], (96,), jnp.float32),
        "w_d3": w(ks[9], (3, 3, 96, 96)),
    }


def inception_b_forward(params, x_nchw):
    x = jnp.transpose(x_nchw, (0, 2, 3, 1)).astype(jnp.float32)     # NCHW -> NHWC
    B, H, W, C = x.shape
    Cp = _ceil_to(C, LANE)

    # One channel-padded bf16 copy of the input: feeds the top-level BN stats, the
    # 1x1 conv directly, and the shared 3x3/pool tap components.
    x_cp = jnp.pad(x, ((0, 0), (0, 0), (0, 0), (0, Cp - C))).astype(jnp.bfloat16)

    # ---- top-level BN statistics (lane-dense tiled two-pass Pallas reduction) ----
    mean0, var0 = batch_norm_stats(x_cp.reshape(B * H * W, Cp))
    s0 = params["bn_gamma"] * jax.lax.rsqrt(var0[:C] + EPS)
    t0 = params["bn_beta"] - mean0[:C] * s0

    # ---- branch3x3 (3x3, s2) + branch_pool (maxpool 3x3, s2) fused on shared taps ----
    # Note: the pool max runs on the shared bf16 components (bf16-rounded raw input).
    xs2, sched2, (Ho2, Wo2, _) = _build_tap_components(x_cp, 3, 3, 2, 0)
    w3 = _fold_weights(params["w_3x3"], s0, Cp, 384)
    b3 = _fold_bias_uniform(params["w_3x3"], t0, 384)
    br3_f, pool_f = _conv_tap_matmul(xs2, w3, b3, sched2, Ho2 * Wo2, with_pool=True)
    branch3x3 = br3_f.reshape(B, Ho2, Wo2, 384)
    branch_pool = pool_f[..., :C].reshape(B, Ho2, Wo2, C)

    # ---- branch3x3dbl_1: 1x1 conv (no component build; per-channel bias),
    #      bf16 output, mean pass fused into the conv epilogue ----
    w1 = _fold_weights(params["w_d1"], s0, Cp, 128)
    b1 = _fold_bias_uniform(params["w_d1"], t0, 128)
    d1, d1_sums = _conv_tap_matmul(
        x_cp.reshape(B, 1, H * W, Cp), w1, b1, [(0, 0)], H * W,
        out_dtype=jnp.bfloat16, with_sum=True)
    n1 = B * H * W
    mean1 = jnp.sum(d1_sums, axis=0) / n1                            # (1, 128)
    var1 = _centered_sq_sum(d1.reshape(n1, 128), mean1)[0] / n1
    s2 = params["bn2_gamma"] * jax.lax.rsqrt(var1[:64] + EPS)
    t2 = params["bn2_beta"] - mean1[0, :64] * s2

    # ---- branch3x3dbl_2: 3x3, pad=1, bn2 folded; bf16 output + fused mean pass ----
    d1_img = d1.reshape(B, H, W, 128)            # channels 64..128 are exactly zero
    xs_d2, sched_d2, (Hod, Wod, _) = _build_tap_components(d1_img, 3, 3, 1, 1)
    w2 = _fold_weights(params["w_d2"], s2, 128, 128)
    b2 = _fold_bias_map(params["w_d2"], t2, Hod, Wod, 1, 1, H, W, 128)
    d2, d2_sums = _conv_tap_matmul(xs_d2, w2, b2, sched_d2, Hod * Wod,
                                   out_dtype=jnp.bfloat16, with_sum=True)
    n2 = B * Hod * Wod
    mean2 = jnp.sum(d2_sums, axis=0) / n2
    var2 = _centered_sq_sum(d2.reshape(n2, 128), mean2)[0] / n2
    s3 = params["bn3_gamma"] * jax.lax.rsqrt(var2[:96] + EPS)
    t3 = params["bn3_beta"] - mean2[0, :96] * s3

    # ---- branch3x3dbl_3: 3x3, s2, bn3 folded ----
    d2_img = d2.reshape(B, Hod, Wod, 128)        # channels 96..128 are exactly zero
    xs_d3, sched_d3, (Ho3, Wo3, _) = _build_tap_components(d2_img, 3, 3, 2, 0)
    w3d = _fold_weights(params["w_d3"], s3, 128, 128)
    b3d = _fold_bias_uniform(params["w_d3"], t3, 128)
    d3 = _conv_tap_matmul(xs_d3, w3d, b3d, sched_d3, Ho3 * Wo3)
    branch_dbl = d3[..., :96].reshape(B, Ho3, Wo3, 96)

    out = jnp.concatenate([branch3x3, branch_dbl, branch_pool], axis=-1)
    return jnp.transpose(out, (0, 3, 1, 2))                          # back to NCHW


# ----------------------------------- plain-JAX reference -----------------------------------

def _reference_forward(params, x_nchw):
    x = jnp.transpose(x_nchw, (0, 2, 3, 1)).astype(jnp.float32)

    def bn(v, g, b):
        m = jnp.mean(v, axis=(0, 1, 2))
        var = jnp.mean(jnp.square(v - m), axis=(0, 1, 2))
        return (v - m) * jax.lax.rsqrt(var + EPS) * g + b

    def conv(v, w, stride, padding):
        return jax.lax.conv_general_dilated(
            v, w, window_strides=(stride, stride),
            padding=((padding, padding), (padding, padding)),
            dimension_numbers=("NHWC", "HWIO", "NHWC"),
            precision=jax.lax.Precision.HIGHEST)

    pool = jax.lax.reduce_window(x, -jnp.inf, jax.lax.max,
                                 (1, 3, 3, 1), (1, 2, 2, 1), "VALID")
    xb = bn(x, params["bn_gamma"], params["bn_beta"])
    b3 = conv(xb, params["w_3x3"], 2, 0)
    d = conv(xb, params["w_d1"], 1, 0)
    d = bn(d, params["bn2_gamma"], params["bn2_beta"])
    d = conv(d, params["w_d2"], 1, 1)
    d = bn(d, params["bn3_gamma"], params["bn3_beta"])
    d = conv(d, params["w_d3"], 2, 0)
    out = jnp.concatenate([b3, d, pool], axis=-1)
    return jnp.transpose(out, (0, 3, 1, 2))


if __name__ == "__main__":
    key = jax.random.PRNGKey(0)
    kx, kp = jax.random.split(key)

    B, C, H, W = 2, 4, 16, 16
    x = jax.random.normal(kx, (B, C, H, W), jnp.float32)
    params = init_params(kp, C)

    fwd = jax.jit(inception_b_forward)
    out = fwd(params, x)
    jax.block_until_ready(out)

    Ho = (H - 3) // 2 + 1
    assert out.shape == (B, 384 + 96 + C, Ho, Ho), out.shape
    assert bool(jnp.all(jnp.isfinite(out)))

    # Loose structural check vs. f32 reference (kernel path uses bf16 matmuls).
    ref = _reference_forward(params, x)
    max_err = float(jnp.max(jnp.abs(out - ref)))
    assert max_err < 0.25, max_err

    print("KERNEL_OK")
</pallas_src>

<mosaic_0001>
module attributes {stable_mosaic.version = 11 : i64} {
  func.func @_sum_rows_kernel(%arg0: i32, %arg1: memref<512x128xbf16, #tpu.memory_space<vmem>>, %arg2: memref<1x128xf32, #tpu.memory_space<vmem>>) attributes {dimension_semantics = [#tpu.dimension_semantics<arbitrary>], iteration_bounds = array<i64: 1>, scalar_prefetch = 0 : i64, scratch_operands = 0 : i64, tpu.core_type = #tpu.core_type<tc>, window_params = [{transform_indices = @transform_0, window_bounds = array<i64: 512, 128>}, {pipeline_mode = #tpu.pipeline_mode<synchronous>, transform_indices = @transform_1, window_bounds = array<i64: 1, 128>}]} {
    %c0_i32 = arith.constant 0 : i32
    %0 = arith.cmpi eq, %arg0, %c0_i32 : i32
    %1 = arith.extui %0 : i1 to i32
    %c0_i32_0 = arith.constant 0 : i32
    %2 = arith.cmpi ne, %1, %c0_i32_0 : i32
    scf.if %2 {
      %cst_6 = arith.constant 0.000000e+00 : f32
      %10 = vector.broadcast %cst_6 : f32 to vector<1x128xf32>
      %c0_7 = arith.constant 0 : index
      %c0_8 = arith.constant 0 : index
      %11 = vector.load %arg2[%c0_7, %c0_8] : memref<1x128xf32, #tpu.memory_space<vmem>>, vector<1x128xf32>
      tpu.vector_store %arg2[%c0_7, %c0_8], %10 {strides = array<i32>} : memref<1x128xf32, #tpu.memory_space<vmem>>, vector<1x128xf32>,
    } else {
    }
    %c0 = arith.constant 0 : index
    %c0_1 = arith.constant 0 : index
    %3 = vector.load %arg2[%c0, %c0_1] : memref<1x128xf32, #tpu.memory_space<vmem>>, vector<1x128xf32>
    %c0_2 = arith.constant 0 : index
    %c0_3 = arith.constant 0 : index
    %4 = vector.load %arg1[%c0_2, %c0_3] : memref<512x128xbf16, #tpu.memory_space<vmem>>, vector<512x128xbf16>
    %5 = arith.extf %4 : vector<512x128xbf16> to vector<512x128xf32>
    %cst = arith.constant dense<0.000000e+00> : vector<128xf32>
    %6 = vector.multi_reduction <add>, %5, %cst [0] : vector<512x128xf32> to vector<128xf32>
    %7 = vector.shape_cast %6 : vector<128xf32> to vector<1x128xf32>
    %8 = arith.addf %3, %7 : vector<1x128xf32>
    %c0_4 = arith.constant 0 : index
    %c0_5 = arith.constant 0 : index
    %9 = vector.load %arg2[%c0_4, %c0_5] : memref<1x128xf32, #tpu.memory_space<vmem>>, vector<1x128xf32>
    tpu.vector_store %arg2[%c0_4, %c0_5], %8 {strides = array<i32>} : memref<1x128xf32, #tpu.memory_space<vmem>>, vector<1x128xf32>,
    return
  }
  func.func @transform_0(%arg0: i32) -> (i32, i32) {
    %c0_i32 = arith.constant 0 : i32
    %c0_i32_0 = arith.constant 0 : i32
    return %arg0, %c0_i32 : i32, i32
  }
  func.func @transform_1(%arg0: i32) -> (i32, i32) {
    %c0_i32 = arith.constant 0 : i32
    %c0_i32_0 = arith.constant 0 : i32
    %c0_i32_1 = arith.constant 0 : i32
    return %c0_i32, %c0_i32_0 : i32, i32
  }
}

module attributes {stable_mosaic.version = 11 : i64} {
  func.func @kernel(%arg0: i32, %arg1: memref<512x128xbf16, #tpu.memory_space<vmem>>, %arg2: memref<1x128xf32, #tpu.memory_space<vmem>>, %arg3: memref<1x128xf32, #tpu.memory_space<vmem>>) attributes {dimension_semantics = [#tpu.dimension_semantics<arbitrary>], iteration_bounds = array<i64: 1>, scalar_prefetch = 0 : i64, scratch_operands = 0 : i64, tpu.core_type = #tpu.core_type<tc>, window_params = [{transform_indices = @transform_0, window_bounds = array<i64: 512, 128>}, {pipeline_mode = #tpu.pipeline_mode<synchronous>, transform_indices = @transform_1, window_bounds = array<i64: 1, 128>}, {pipeline_mode = #tpu.pipeline_mode<synchronous>, transform_indices = @transform_2, window_bounds = array<i64: 1, 128>}]} {
    %c0_i32 = arith.constant 0 : i32
    %0 = arith.cmpi eq, %arg0, %c0_i32 : i32
    %1 = arith.extui %0 : i1 to i32
    %c0_i32_0 = arith.constant 0 : i32
    %2 = arith.cmpi ne, %1, %c0_i32_0 : i32
    scf.if %2 {
      %cst_10 = arith.constant 0.000000e+00 : f32
      %24 = vector.broadcast %cst_10 : f32 to vector<1x128xf32>
      %c0_11 = arith.constant 0 : index
      %c0_12 = arith.constant 0 : index
      %25 = vector.load %arg3[%c0_11, %c0_12] : memref<1x128xf32, #tpu.memory_space<vmem>>, vector<1x128xf32>
      tpu.vector_store %arg3[%c0_11, %c0_12], %24 {strides = array<i32>} : memref<1x128xf32, #tpu.memory_space<vmem>>, vector<1x128xf32>,
    } else {
    }
    %c512_i32 = arith.constant 512 : i32
    %3 = arith.muli %arg0, %c512_i32 : i32
    %4 = tpu.iota {dimensions = array<i32: 0>} : vector<512x1xi32>
    %5 = vector.broadcast %3 : i32 to vector<512x1xi32>
    %6 = arith.addi %5, %4 : vector<512x1xi32>
    %c0 = arith.constant 0 : index
    %c0_1 = arith.constant 0 : index
    %7 = vector.load %arg1[%c0, %c0_1] : memref<512x128xbf16, #tpu.memory_space<vmem>>, vector<512x128xbf16>
    %8 = arith.extf %7 : vector<512x128xbf16> to vector<512x128xf32>
    %c0_2 = arith.constant 0 : index
    %c0_3 = arith.constant 0 : index
    %9 = vector.load %arg2[%c0_2, %c0_3] : memref<1x128xf32, #tpu.memory_space<vmem>>, vector<1x128xf32>
    %10 = vector.broadcast %9 : vector<1x128xf32> to vector<512x128xf32>
    %11 = arith.subf %8, %10 : vector<512x128xf32>
    %c512_i32_4 = arith.constant 512 : i32
    %12 = vector.broadcast %c512_i32_4 : i32 to vector<512x1xi32>
    %13 = arith.cmpi slt, %6, %12 : vector<512x1xi32>
    %cst = arith.constant 0.000000e+00 : f32
    %14 = vector.shape_cast %13 : vector<512x1xi1> to vector<512x1xi1>
    %15 = vector.broadcast %14 : vector<512x1xi1> to vector<512x128xi1>
    %16 = vector.broadcast %cst : f32 to vector<512x128xf32>
    %17 = arith.select %15, %11, %16 : vector<512x128xi1>, vector<512x128xf32>
    %c0_5 = arith.constant 0 : index
    %c0_6 = arith.constant 0 : index
    %18 = vector.load %arg3[%c0_5, %c0_6] : memref<1x128xf32, #tpu.memory_space<vmem>>, vector<1x128xf32>
    %19 = arith.mulf %17, %17 : vector<512x128xf32>
    %cst_7 = arith.constant dense<0.000000e+00> : vector<128xf32>
    %20 = vector.multi_reduction <add>, %19, %cst_7 [0] : vector<512x128xf32> to vector<128xf32>
    %21 = vector.shape_cast %20 : vector<128xf32> to vector<1x128xf32>
    %22 = arith.addf %18, %21 : vector<1x128xf32>
    %c0_8 = arith.constant 0 : index
    %c0_9 = arith.constant 0 : index
    %23 = vector.load %arg3[%c0_8, %c0_9] : memref<1x128xf32, #tpu.memory_space<vmem>>, vector<1x128xf32>
    tpu.vector_store %arg3[%c0_8, %c0_9], %22 {strides = array<i32>} : memref<1x128xf32, #tpu.memory_space<vmem>>, vector<1x128xf32>,
    return
  }
  func.func @transform_0(%arg0: i32) -> (i32, i32) {
    %c0_i32 = arith.constant 0 : i32
    %c0_i32_0 = arith.constant 0 : i32
    return %arg0, %c0_i32 : i32, i32
  }
  func.func @transform_1(%arg0: i32) -> (i32, i32) {
    %c0_i32 = arith.constant 0 : i32
    %c0_i32_0 = arith.constant 0 : i32
    %c0_i32_1 = arith.constant 0 : i32
    return %c0_i32, %c0_i32_0 : i32, i32
  }
  func.func @transform_2(%arg0: i32) -> (i32, i32) {
    %c0_i32 = arith.constant 0 : i32
    %c0_i32_0 = arith.constant 0 : i32
    %c0_i32_1 = arith.constant 0 : i32
    return %c0_i32, %c0_i32_0 : i32, i32
  }
}

module attributes {stable_mosaic.version = 11 : i64} {
  func.func @kernel(%arg0: i32, %arg1: memref<1x6x56x128xbf16, #tpu.memory_space<vmem>>, %arg2: memref<9x128x384xbf16, #tpu.memory_space<vmem>>, %arg3: memref<1x384xf32, #tpu.memory_space<vmem>>, %arg4: memref<1x49x384xf32, #tpu.memory_space<vmem>>, %arg5: memref<1x49x128xf32, #tpu.memory_space<vmem>>) attributes {dimension_semantics = [#tpu.dimension_semantics<parallel>], iteration_bounds = array<i64: 2>, scalar_prefetch = 0 : i64, scratch_operands = 0 : i64, tpu.core_type = #tpu.core_type<tc>, window_params = [{transform_indices = @transform_0, window_bounds = array<i64: 1, 6, 56, 128>}, {pipeline_mode = #tpu.pipeline_mode<synchronous>, transform_indices = @transform_1, window_bounds = array<i64: 9, 128, 384>}, {pipeline_mode = #tpu.pipeline_mode<synchronous>, transform_indices = @transform_2, window_bounds = array<i64: 1, 384>}, {transform_indices = @transform_3, window_bounds = array<i64: 1, 49, 384>}, {transform_indices = @transform_4, window_bounds = array<i64: 1, 49, 128>}]} {
    %c0 = arith.constant 0 : index
    %c0_0 = arith.constant 0 : index
    %c0_1 = arith.constant 0 : index
    %c0_2 = arith.constant 0 : index
    %0 = vector.load %arg1[%c0, %c0_0, %c0_1, %c0_2] : memref<1x6x56x128xbf16, #tpu.memory_space<vmem>>, vector<1x1x49x128xbf16>
    %1 = vector.shape_cast %0 : vector<1x1x49x128xbf16> to vector<49x128xbf16>
    %c0_3 = arith.constant 0 : index
    %c0_4 = arith.constant 0 : index
    %c0_5 = arith.constant 0 : index
    %2 = vector.load %arg2[%c0_3, %c0_4, %c0_5] : memref<9x128x384xbf16, #tpu.memory_space<vmem>>, vector<1x128x384xbf16>
    %3 = vector.shape_cast %2 : vector<1x128x384xbf16> to vector<128x384xbf16>
    %cst = arith.constant dense<0.000000e+00> : vector<49x384xf32>
    %4 = tpu.matmul %1, %3, %cst {dimension_numbers = #tpu.dot_dimension_numbers<[1], [0], [0], [1], [0, 0, 1, 1], [], []>} : vector<49x128xbf16>, vector<128x384xbf16>, vector<49x384xf32> -> vector<49x384xf32>
    %c0_6 = arith.constant 0 : index
    %c2 = arith.constant 2 : index
    %c0_7 = arith.constant 0 : index
    %c0_8 = arith.constant 0 : index
    %5 = vector.load %arg1[%c0_6, %c2, %c0_7, %c0_8] : memref<1x6x56x128xbf16, #tpu.memory_space<vmem>>, vector<1x1x49x128xbf16>
    %6 = vector.shape_cast %5 : vector<1x1x49x128xbf16> to vector<49x128xbf16>
    %c1 = arith.constant 1 : index
    %c0_9 = arith.constant 0 : index
    %c0_10 = arith.constant 0 : index
    %7 = vector.load %arg2[%c1, %c0_9, %c0_10] : memref<9x128x384xbf16, #tpu.memory_space<vmem>>, vector<1x128x384xbf16>
    %8 = vector.shape_cast %7 : vector<1x128x384xbf16> to vector<128x384xbf16>
    %cst_11 = arith.constant dense<0.000000e+00> : vector<49x384xf32>
    %9 = tpu.matmul %6, %8, %cst_11 {dimension_numbers = #tpu.dot_dimension_numbers<[1], [0], [0], [1], [0, 0, 1, 1], [], []>} : vector<49x128xbf16>, vector<128x384xbf16>, vector<49x384xf32> -> vector<49x384xf32>
    %10 = arith.addf %4, %9 : vector<49x384xf32>
    %11 = arith.maximumf %1, %6 : vector<49x128xbf16>
    %c0_12 = arith.constant 0 : index
    %c4 = arith.constant 4 : index
    %c0_13 = arith.constant 0 : index
    %c0_14 = arith.constant 0 : index
    %12 = vector.load %arg1[%c0_12, %c4, %c0_13, %c0_14] : memref<1x6x56x128xbf16, #tpu.memory_space<vmem>>, vector<1x1x49x128xbf16>
    %13 = vector.shape_cast %12 : vector<1x1x49x128xbf16> to vector<49x128xbf16>
    %c2_15 = arith.constant 2 : index
    %c0_16 = arith.constant 0 : index
    %c0_17 = arith.constant 0 : index
    %14 = vector.load %arg2[%c2_15, %c0_16, %c0_17] : memref<9x128x384xbf16, #tpu.memory_space<vmem>>, vector<1x128x384xbf16>
    %15 = vector.shape_cast %14 : vector<1x128x384xbf16> to vector<128x384xbf16>
    %cst_18 = arith.constant dense<0.000000e+00> : vector<49x384xf32>
    %16 = tpu.matmul %13, %15, %cst_18 {dimension_numbers = #tpu.dot_dimension_numbers<[1], [0], [0], [1], [0, 0, 1, 1], [], []>} : vector<49x128xbf16>, vector<128x384xbf16>, vector<49x384xf32> -> vector<49x384xf32>
    %17 = arith.addf %10, %16 : vector<49x384xf32>
    %18 = arith.maximumf %11, %13 : vector<49x128xbf16>
    %c0_19 = arith.constant 0 : index
    %c1_20 = arith.constant 1 : index
    %c0_21 = arith.constant 0 : index
    %c0_22 = arith.constant 0 : index
    %19 = vector.load %arg1[%c0_19, %c1_20, %c0_21, %c0_22] : memref<1x6x56x128xbf16, #tpu.memory_space<vmem>>, vector<1x1x49x128xbf16>
    %20 = vector.shape_cast %19 : vector<1x1x49x128xbf16> to vector<49x128xbf16>
    %c3 = arith.constant 3 : index
    %c0_23 = arith.constant 0 : index
    %c0_24 = arith.constant 0 : index
    %21 = vector.load %arg2[%c3, %c0_23, %c0_24] : memref<9x128x384xbf16, #tpu.memory_space<vmem>>, vector<1x128x384xbf16>
    %22 = vector.shape_cast %21 : vector<1x128x384xbf16> to vector<128x384xbf16>
    %cst_25 = arith.constant dense<0.000000e+00> : vector<49x384xf32>
    %23 = tpu.matmul %20, %22, %cst_25 {dimension_numbers = #tpu.dot_dimension_numbers<[1], [0], [0], [1], [0, 0, 1, 1], [], []>} : vector<49x128xbf16>, vector<128x384xbf16>, vector<49x384xf32> -> vector<49x384xf32>
    %24 = arith.addf %17, %23 : vector<49x384xf32>
    %25 = arith.maximumf %18, %20 : vector<49x128xbf16>
    %c0_26 = arith.constant 0 : index
    %c3_27 = arith.constant 3 : index
    %c0_28 = arith.constant 0 : index
    %c0_29 = arith.constant 0 : index
    %26 = vector.load %arg1[%c0_26, %c3_27, %c0_28, %c0_29] : memref<1x6x56x128xbf16, #tpu.memory_space<vmem>>, vector<1x1x49x128xbf16>
    %27 = vector.shape_cast %26 : vector<1x1x49x128xbf16> to vector<49x128xbf16>
    %c4_30 = arith.constant 4 : index
    %c0_31 = arith.constant 0 : index
    %c0_32 = arith.constant 0 : index
    %28 = vector.load %arg2[%c4_30, %c0_31, %c0_32] : memref<9x128x384xbf16, #tpu.memory_space<vmem>>, vector<1x128x384xbf16>
    %29 = vector.shape_cast %28 : vector<1x128x384xbf16> to vector<128x384xbf16>
    %cst_33 = arith.constant dense<0.000000e+00> : vector<49x384xf32>
    %30 = tpu.matmul %27, %29, %cst_33 {dimension_numbers = #tpu.dot_dimension_numbers<[1], [0], [0], [1], [0, 0, 1, 1], [], []>} : vector<49x128xbf16>, vector<128x384xbf16>, vector<49x384xf32> -> vector<49x384xf32>
    %31 = arith.addf %24, %30 : vector<49x384xf32>
    %32 = arith.maximumf %25, %27 : vector<49x128xbf16>
    %c0_34 = arith.constant 0 : index
    %c5 = arith.constant 5 : index
    %c0_35 = arith.constant 0 : index
    %c0_36 = arith.constant 0 : index
    %33 = vector.load %arg1[%c0_34, %c5, %c0_35, %c0_36] : memref<1x6x56x128xbf16, #tpu.memory_space<vmem>>, vector<1x1x49x128xbf16>
    %34 = vector.shape_cast %33 : vector<1x1x49x128xbf16> to vector<49x128xbf16>
    %c5_37 = arith.constant 5 : index
    %c0_38 = arith.constant 0 : index
    %c0_39 = arith.constant 0 : index
    %35 = vector.load %arg2[%c5_37, %c0_38, %c0_39] : memref<9x128x384xbf16, #tpu.memory_space<vmem>>, vector<1x128x384xbf16>
    %36 = vector.shape_cast %35 : vector<1x128x384xbf16> to vector<128x384xbf16>
    %cst_40 = arith.constant dense<0.000000e+00> : vector<49x384xf32>
    %37 = tpu.matmul %34, %36, %cst_40 {dimension_numbers = #tpu.dot_dimension_numbers<[1], [0], [0], [1], [0, 0, 1, 1], [], []>} : vector<49x128xbf16>, vector<128x384xbf16>, vector<49x384xf32> -> vector<49x384xf32>
    %38 = arith.addf %31, %37 : vector<49x384xf32>
    %39 = arith.maximumf %32, %34 : vector<49x128xbf16>
    %c0_41 = arith.constant 0 : index
    %c0_42 = arith.constant 0 : index
    %c7 = arith.constant 7 : index
    %c0_43 = arith.constant 0 : index
    %40 = vector.load %arg1[%c0_41, %c0_42, %c7, %c0_43] : memref<1x6x56x128xbf16, #tpu.memory_space<vmem>>, vector<1x1x49x128xbf16>
    %41 = vector.shape_cast %40 : vector<1x1x49x128xbf16> to vector<49x128xbf16>
    %c6 = arith.constant 6 : index
    %c0_44 = arith.constant 0 : index
    %c0_45 = arith.constant 0 : index
    %42 = vector.load %arg2[%c6, %c0_44, %c0_45] : memref<9x128x384xbf16, #tpu.memory_space<vmem>>, vector<1x128x384xbf16>
    %43 = vector.shape_cast %42 : vector<1x128x384xbf16> to vector<128x384xbf16>
    %cst_46 = arith.constant dense<0.000000e+00> : vector<49x384xf32>
    %44 = tpu.matmul %41, %43, %cst_46 {dimension_numbers = #tpu.dot_dimension_numbers<[1], [0], [0], [1], [0, 0, 1, 1], [], []>} : vector<49x128xbf16>, vector<128x384xbf16>, vector<49x384xf32> -> vector<49x384xf32>
    %45 = arith.addf %38, %44 : vector<49x384xf32>
    %46 = arith.maximumf %39, %41 : vector<49x128xbf16>
    %c0_47 = arith.constant 0 : index
    %c2_48 = arith.constant 2 : index
    %c7_49 = arith.constant 7 : index
    %c0_50 = arith.constant 0 : index
    %47 = vector.load %arg1[%c0_47, %c2_48, %c7_49, %c0_50] : memref<1x6x56x128xbf16, #tpu.memory_space<vmem>>, vector<1x1x49x128xbf16>
    %48 = vector.shape_cast %47 : vector<1x1x49x128xbf16> to vector<49x128xbf16>
    %c7_51 = arith.constant 7 : index
    %c0_52 = arith.constant 0 : index
    %c0_53 = arith.constant 0 : index
    %49 = vector.load %arg2[%c7_51, %c0_52, %c0_53] : memref<9x128x384xbf16, #tpu.memory_space<vmem>>, vector<1x128x384xbf16>
    %50 = vector.shape_cast %49 : vector<1x128x384xbf16> to vector<128x384xbf16>
    %cst_54 = arith.constant dense<0.000000e+00> : vector<49x384xf32>
    %51 = tpu.matmul %48, %50, %cst_54 {dimension_numbers = #tpu.dot_dimension_numbers<[1], [0], [0], [1], [0, 0, 1, 1], [], []>} : vector<49x128xbf16>, vector<128x384xbf16>, vector<49x384xf32> -> vector<49x384xf32>
    %52 = arith.addf %45, %51 : vector<49x384xf32>
    %53 = arith.maximumf %46, %48 : vector<49x128xbf16>
    %c0_55 = arith.constant 0 : index
    %c4_56 = arith.constant 4 : index
    %c7_57 = arith.constant 7 : index
    %c0_58 = arith.constant 0 : index
    %54 = vector.load %arg1[%c0_55, %c4_56, %c7_57, %c0_58] : memref<1x6x56x128xbf16, #tpu.memory_space<vmem>>, vector<1x1x49x128xbf16>
    %55 = vector.shape_cast %54 : vector<1x1x49x128xbf16> to vector<49x128xbf16>
    %c8 = arith.constant 8 : index
    %c0_59 = arith.constant 0 : index
    %c0_60 = arith.constant 0 : index
    %56 = vector.load %arg2[%c8, %c0_59, %c0_60] : memref<9x128x384xbf16, #tpu.memory_space<vmem>>, vector<1x128x384xbf16>
    %57 = vector.shape_cast %56 : vector<1x128x384xbf16> to vector<128x384xbf16>
    %cst_61 = arith.constant dense<0.000000e+00> : vector<49x384xf32>
    %58 = tpu.matmul %55, %57, %cst_61 {dimension_numbers = #tpu.dot_dimension_numbers<[1], [0], [0], [1], [0, 0, 1, 1], [], []>} : vector<49x128xbf16>, vector<128x384xbf16>, vector<49x384xf32> -> vector<49x384xf32>
    %59 = arith.addf %52, %58 : vector<49x384xf32>
    %60 = arith.maximumf %53, %55 : vector<49x128xbf16>
    %c0_62 = arith.constant 0 : index
    %c0_63 = arith.constant 0 : index
    %61 = vector.load %arg3[%c0_62, %c0_63] : memref<1x384xf32, #tpu.memory_space<vmem>>, vector<1x384xf32>
    %62 = vector.broadcast %61 : vector<1x384xf32> to vector<49x384xf32>
    %63 = arith.addf %59, %62 : vector<49x384xf32>
    %c0_64 = arith.constant 0 : index
    %c0_65 = arith.constant 0 : index
    %c0_66 = arith.constant 0 : index
    %64 = vector.load %arg4[%c0_64, %c0_65, %c0_66] : memref<1x49x384xf32, #tpu.memory_space<vmem>>, vector<1x49x384xf32>
    %65 = vector.shape_cast %64 : vector<1x49x384xf32> to vector<49x384xf32>
    %66 = vector.shape_cast %63 : vector<49x384xf32> to vector<1x49x384xf32>
    tpu.vector_store %arg4[%c0_64, %c0_65, %c0_66], %66 {strides = array<i32>} : memref<1x49x384xf32, #tpu.memory_space<vmem>>, vector<1x49x384xf32>,
    %67 = arith.extf %60 : vector<49x128xbf16> to vector<49x128xf32>
    %c0_67 = arith.constant 0 : index
    %c0_68 = arith.constant 0 : index
    %c0_69 = arith.constant 0 : index
    %68 = vector.load %arg5[%c0_67, %c0_68, %c0_69] : memref<1x49x128xf32, #tpu.memory_space<vmem>>, vector<1x49x128xf32>
    %69 = vector.shape_cast %68 : vector<1x49x128xf32> to vector<49x128xf32>
    %70 = vector.shape_cast %67 : vector<49x128xf32> to vector<1x49x128xf32>
    tpu.vector_store %arg5[%c0_67, %c0_68, %c0_69], %70 {strides = array<i32>} : memref<1x49x128xf32, #tpu.memory_space<vmem>>, vector<1x49x128xf32>,
    return
  }
  func.func @transform_0(%arg0: i32) -> (i32, i32, i32, i32) {
    %c0_i32 = arith.constant 0 : i32
    %c0_i32_0 = arith.constant 0 : i32
    %c0_i32_1 = arith.constant 0 : i32
    %c0_i32_2 = arith.constant 0 : i32
    return %arg0, %c0_i32, %c0_i32_0, %c0_i32_1 : i32, i32, i32, i32
  }
  func.func @transform_1(%arg0: i32) -> (i32, i32, i32) {
    %c0_i32 = arith.constant 0 : i32
    %c0_i32_0 = arith.constant 0 : i32
    %c0_i32_1 = arith.constant 0 : i32
    %c0_i32_2 = arith.constant 0 : i32
    return %c0_i32, %c0_i32_0, %c0_i32_1 : i32, i32, i32
  }
  func.func @transform_2(%arg0: i32) -> (i32, i32) {
    %c0_i32 = arith.constant 0 : i32
    %c0_i32_0 = arith.constant 0 : i32
    %c0_i32_1 = arith.constant 0 : i32
    return %c0_i32, %c0_i32_0 : i32, i32
  }
  func.func @transform_3(%arg0: i32) -> (i32, i32, i32) {
    %c0_i32 = arith.constant 0 : i32
    %c0_i32_0 = arith.constant 0 : i32
    %c0_i32_1 = arith.constant 0 : i32
    return %arg0, %c0_i32, %c0_i32_0 : i32, i32, i32
  }
  func.func @transform_4(%arg0: i32) -> (i32, i32, i32) {
    %c0_i32 = arith.constant 0 : i32
    %c0_i32_0 = arith.constant 0 : i32
    %c0_i32_1 = arith.constant 0 : i32
    return %arg0, %c0_i32, %c0_i32_0 : i32, i32, i32
  }
}

module attributes {stable_mosaic.version = 11 : i64} {
  func.func @kernel(%arg0: i32, %arg1: memref<1x1x256x128xbf16, #tpu.memory_space<vmem>>, %arg2: memref<1x128x128xbf16, #tpu.memory_space<vmem>>, %arg3: memref<1x128xf32, #tpu.memory_space<vmem>>, %arg4: memref<1x256x128xbf16, #tpu.memory_space<vmem>>, %arg5: memref<1x1x128xf32, #tpu.memory_space<vmem>>) attributes {dimension_semantics = [#tpu.dimension_semantics<parallel>], iteration_bounds = array<i64: 2>, scalar_prefetch = 0 : i64, scratch_operands = 0 : i64, tpu.core_type = #tpu.core_type<tc>, window_params = [{transform_indices = @transform_0, window_bounds = array<i64: 1, 1, 256, 128>}, {pipeline_mode = #tpu.pipeline_mode<synchronous>, transform_indices = @transform_1, window_bounds = array<i64: 1, 128, 128>}, {pipeline_mode = #tpu.pipeline_mode<synchronous>, transform_indices = @transform_2, window_bounds = array<i64: 1, 128>}, {transform_indices = @transform_3, window_bounds = array<i64: 1, 256, 128>}, {transform_indices = @transform_4, window_bounds = array<i64: 1, 1, 128>}]} {
    %c0 = arith.constant 0 : index
    %c0_0 = arith.constant 0 : index
    %c0_1 = arith.constant 0 : index
    %c0_2 = arith.constant 0 : index
    %0 = vector.load %arg1[%c0, %c0_0, %c0_1, %c0_2] : memref<1x1x256x128xbf16, #tpu.memory_space<vmem>>, vector<1x1x256x128xbf16>
    %1 = vector.shape_cast %0 : vector<1x1x256x128xbf16> to vector<256x128xbf16>
    %c0_3 = arith.constant 0 : index
    %c0_4 = arith.constant 0 : index
    %c0_5 = arith.constant 0 : index
    %2 = vector.load %arg2[%c0_3, %c0_4, %c0_5] : memref<1x128x128xbf16, #tpu.memory_space<vmem>>, vector<1x128x128xbf16>
    %3 = vector.shape_cast %2 : vector<1x128x128xbf16> to vector<128x128xbf16>
    %cst = arith.constant dense<0.000000e+00> : vector<256x128xf32>
    %4 = tpu.matmul %1, %3, %cst {dimension_numbers = #tpu.dot_dimension_numbers<[1], [0], [0], [1], [0, 0, 1, 1], [], []>} : vector<256x128xbf16>, vector<128x128xbf16>, vector<256x128xf32> -> vector<256x128xf32>
    %c0_6 = arith.constant 0 : index
    %c0_7 = arith.constant 0 : index
    %5 = vector.load %arg3[%c0_6, %c0_7] : memref<1x128xf32, #tpu.memory_space<vmem>>, vector<1x128xf32>
    %6 = vector.broadcast %5 : vector<1x128xf32> to vector<256x128xf32>
    %7 = arith.addf %4, %6 : vector<256x128xf32>
    %8 = arith.truncf %7 : vector<256x128xf32> to vector<256x128xbf16>
    %c0_8 = arith.constant 0 : index
    %c0_9 = arith.constant 0 : index
    %c0_10 = arith.constant 0 : index
    %9 = vector.load %arg4[%c0_8, %c0_9, %c0_10] : memref<1x256x128xbf16, #tpu.memory_space<vmem>>, vector<1x256x128xbf16>
    %10 = vector.shape_cast %9 : vector<1x256x128xbf16> to vector<256x128xbf16>
    %11 = vector.shape_cast %8 : vector<256x128xbf16> to vector<1x256x128xbf16>
    tpu.vector_store %arg4[%c0_8, %c0_9, %c0_10], %11 {strides = array<i32>} : memref<1x256x128xbf16, #tpu.memory_space<vmem>>, vector<1x256x128xbf16>,
    %cst_11 = arith.constant dense<0.000000e+00> : vector<128xf32>
    %12 = vector.multi_reduction <add>, %7, %cst_11 [0] : vector<256x128xf32> to vector<128xf32>
    %13 = vector.shape_cast %12 : vector<128xf32> to vector<1x128xf32>
    %c0_12 = arith.constant 0 : index
    %c0_13 = arith.constant 0 : index
    %c0_14 = arith.constant 0 : index
    %14 = vector.load %arg5[%c0_12, %c0_13, %c0_14] : memref<1x1x128xf32, #tpu.memory_space<vmem>>, vector<1x1x128xf32>
    %15 = vector.shape_cast %14 : vector<1x1x128xf32> to vector<1x128xf32>
    %16 = vector.shape_cast %13 : vector<1x128xf32> to vector<1x1x128xf32>
    tpu.vector_store %arg5[%c0_12, %c0_13, %c0_14], %16 {strides = array<i32>} : memref<1x1x128xf32, #tpu.memory_space<vmem>>, vector<1x1x128xf32>,
    return
  }
  func.func @transform_0(%arg0: i32) -> (i32, i32, i32, i32) {
    %c0_i32 = arith.constant 0 : i32
    %c0_i32_0 = arith.constant 0 : i32
    %c0_i32_1 = arith.constant 0 : i32
    %c0_i32_2 = arith.constant 0 : i32
    return %arg0, %c0_i32, %c0_i32_0, %c0_i32_1 : i32, i32, i32, i32
  }
  func.func @transform_1(%arg0: i32) -> (i32, i32, i32) {
    %c0_i32 = arith.constant 0 : i32
    %c0_i32_0 = arith.constant 0 : i32
    %c0_i32_1 = arith.constant 0 : i32
    %c0_i32_2 = arith.constant 0 : i32
    return %c0_i32, %c0_i32_0, %c0_i32_1 : i32, i32, i32
  }
  func.func @transform_2(%arg0: i32) -> (i32, i32) {
    %c0_i32 = arith.constant 0 : i32
    %c0_i32_0 = arith.constant 0 : i32
    %c0_i32_1 = arith.constant 0 : i32
    return %c0_i32, %c0_i32_0 : i32, i32
  }
  func.func @transform_3(%arg0: i32) -> (i32, i32, i32) {
    %c0_i32 = arith.constant 0 : i32
    %c0_i32_0 = arith.constant 0 : i32
    %c0_i32_1 = arith.constant 0 : i32
    return %arg0, %c0_i32, %c0_i32_0 : i32, i32, i32
  }
  func.func @transform_4(%arg0: i32) -> (i32, i32, i32) {
    %c0_i32 = arith.constant 0 : i32
    %c0_i32_0 = arith.constant 0 : i32
    %c0_i32_1 = arith.constant 0 : i32
    return %arg0, %c0_i32, %c0_i32_0 : i32, i32, i32
  }
}

module attributes {stable_mosaic.version = 11 : i64} {
  func.func @kernel(%arg0: i32, %arg1: memref<1x3x288x128xbf16, #tpu.memory_space<vmem>>, %arg2: memref<9x128x128xbf16, #tpu.memory_space<vmem>>, %arg3: memref<256x128xf32, #tpu.memory_space<vmem>>, %arg4: memref<1x256x128xbf16, #tpu.memory_space<vmem>>, %arg5: memref<1x1x128xf32, #tpu.memory_space<vmem>>) attributes {dimension_semantics = [#tpu.dimension_semantics<parallel>], iteration_bounds = array<i64: 2>, scalar_prefetch = 0 : i64, scratch_operands = 0 : i64, tpu.core_type = #tpu.core_type<tc>, window_params = [{transform_indices = @transform_0, window_bounds = array<i64: 1, 3, 288, 128>}, {pipeline_mode = #tpu.pipeline_mode<synchronous>, transform_indices = @transform_1, window_bounds = array<i64: 9, 128, 128>}, {pipeline_mode = #tpu.pipeline_mode<synchronous>, transform_indices = @transform_2, window_bounds = array<i64: 256, 128>}, {transform_indices = @transform_3, window_bounds = array<i64: 1, 256, 128>}, {transform_indices = @transform_4, window_bounds = array<i64: 1, 1, 128>}]} {
    %c0 = arith.constant 0 : index
    %c0_0 = arith.constant 0 : index
    %c0_1 = arith.constant 0 : index
    %c0_2 = arith.constant 0 : index
    %0 = vector.load %arg1[%c0, %c0_0, %c0_1, %c0_2] : memref<1x3x288x128xbf16, #tpu.memory_space<vmem>>, vector<1x1x256x128xbf16>
    %1 = vector.shape_cast %0 : vector<1x1x256x128xbf16> to vector<256x128xbf16>
    %c0_3 = arith.constant 0 : index
    %c0_4 = arith.constant 0 : index
    %c0_5 = arith.constant 0 : index
    %2 = vector.load %arg2[%c0_3, %c0_4, %c0_5] : memref<9x128x128xbf16, #tpu.memory_space<vmem>>, vector<1x128x128xbf16>
    %3 = vector.shape_cast %2 : vector<1x128x128xbf16> to vector<128x128xbf16>
    %cst = arith.constant dense<0.000000e+00> : vector<256x128xf32>
    %4 = tpu.matmul %1, %3, %cst {dimension_numbers = #tpu.dot_dimension_numbers<[1], [0], [0], [1], [0, 0, 1, 1], [], []>} : vector<256x128xbf16>, vector<128x128xbf16>, vector<256x128xf32> -> vector<256x128xf32>
    %c0_6 = arith.constant 0 : index
    %c1 = arith.constant 1 : index
    %c0_7 = arith.constant 0 : index
    %c0_8 = arith.constant 0 : index
    %5 = vector.load %arg1[%c0_6, %c1, %c0_7, %c0_8] : memref<1x3x288x128xbf16, #tpu.memory_space<vmem>>, vector<1x1x256x128xbf16>
    %6 = vector.shape_cast %5 : vector<1x1x256x128xbf16> to vector<256x128xbf16>
    %c1_9 = arith.constant 1 : index
    %c0_10 = arith.constant 0 : index
    %c0_11 = arith.constant 0 : index
    %7 = vector.load %arg2[%c1_9, %c0_10, %c0_11] : memref<9x128x128xbf16, #tpu.memory_space<vmem>>, vector<1x128x128xbf16>
    %8 = vector.shape_cast %7 : vector<1x128x128xbf16> to vector<128x128xbf16>
    %cst_12 = arith.constant dense<0.000000e+00> : vector<256x128xf32>
    %9 = tpu.matmul %6, %8, %cst_12 {dimension_numbers = #tpu.dot_dimension_numbers<[1], [0], [0], [1], [0, 0, 1, 1], [], []>} : vector<256x128xbf16>, vector<128x128xbf16>, vector<256x128xf32> -> vector<256x128xf32>
    %10 = arith.addf %4, %9 : vector<256x128xf32>
    %c0_13 = arith.constant 0 : index
    %c2 = arith.constant 2 : index
    %c0_14 = arith.constant 0 : index
    %c0_15 = arith.constant 0 : index
    %11 = vector.load %arg1[%c0_13, %c2, %c0_14, %c0_15] : memref<1x3x288x128xbf16, #tpu.memory_space<vmem>>, vector<1x1x256x128xbf16>
    %12 = vector.shape_cast %11 : vector<1x1x256x128xbf16> to vector<256x128xbf16>
    %c2_16 = arith.constant 2 : index
    %c0_17 = arith.constant 0 : index
    %c0_18 = arith.constant 0 : index
    %13 = vector.load %arg2[%c2_16, %c0_17, %c0_18] : memref<9x128x128xbf16, #tpu.memory_space<vmem>>, vector<1x128x128xbf16>
    %14 = vector.shape_cast %13 : vector<1x128x128xbf16> to vector<128x128xbf16>
    %cst_19 = arith.constant dense<0.000000e+00> : vector<256x128xf32>
    %15 = tpu.matmul %12, %14, %cst_19 {dimension_numbers = #tpu.dot_dimension_numbers<[1], [0], [0], [1], [0, 0, 1, 1], [], []>} : vector<256x128xbf16>, vector<128x128xbf16>, vector<256x128xf32> -> vector<256x128xf32>
    %16 = arith.addf %10, %15 : vector<256x128xf32>
    %c0_20 = arith.constant 0 : index
    %c0_21 = arith.constant 0 : index
    %c16 = arith.constant 16 : index
    %c0_22 = arith.constant 0 : index
    %17 = vector.load %arg1[%c0_20, %c0_21, %c16, %c0_22] : memref<1x3x288x128xbf16, #tpu.memory_space<vmem>>, vector<1x1x256x128xbf16>
    %18 = vector.shape_cast %17 : vector<1x1x256x128xbf16> to vector<256x128xbf16>
    %c3 = arith.constant 3 : index
    %c0_23 = arith.constant 0 : index
    %c0_24 = arith.constant 0 : index
    %19 = vector.load %arg2[%c3, %c0_23, %c0_24] : memref<9x128x128xbf16, #tpu.memory_space<vmem>>, vector<1x128x128xbf16>
    %20 = vector.shape_cast %19 : vector<1x128x128xbf16> to vector<128x128xbf16>
    %cst_25 = arith.constant dense<0.000000e+00> : vector<256x128xf32>
    %21 = tpu.matmul %18, %20, %cst_25 {dimension_numbers = #tpu.dot_dimension_numbers<[1], [0], [0], [1], [0, 0, 1, 1], [], []>} : vector<256x128xbf16>, vector<128x128xbf16>, vector<256x128xf32> -> vector<256x128xf32>
    %22 = arith.addf %16, %21 : vector<256x128xf32>
    %c0_26 = arith.constant 0 : index
    %c1_27 = arith.constant 1 : index
    %c16_28 = arith.constant 16 : index
    %c0_29 = arith.constant 0 : index
    %23 = vector.load %arg1[%c0_26, %c1_27, %c16_28, %c0_29] : memref<1x3x288x128xbf16, #tpu.memory_space<vmem>>, vector<1x1x256x128xbf16>
    %24 = vector.shape_cast %23 : vector<1x1x256x128xbf16> to vector<256x128xbf16>
    %c4 = arith.constant 4 : index
    %c0_30 = arith.constant 0 : index
    %c0_31 = arith.constant 0 : index
    %25 = vector.load %arg2[%c4, %c0_30, %c0_31] : memref<9x128x128xbf16, #tpu.memory_space<vmem>>, vector<1x128x128xbf16>
    %26 = vector.shape_cast %25 : vector<1x128x128xbf16> to vector<128x128xbf16>
    %cst_32 = arith.constant dense<0.000000e+00> : vector<256x128xf32>
    %27 = tpu.matmul %24, %26, %cst_32 {dimension_numbers = #tpu.dot_dimension_numbers<[1], [0], [0], [1], [0, 0, 1, 1], [], []>} : vector<256x128xbf16>, vector<128x128xbf16>, vector<256x128xf32> -> vector<256x128xf32>
    %28 = arith.addf %22, %27 : vector<256x128xf32>
    %c0_33 = arith.constant 0 : index
    %c2_34 = arith.constant 2 : index
    %c16_35 = arith.constant 16 : index
    %c0_36 = arith.constant 0 : index
    %29 = vector.load %arg1[%c0_33, %c2_34, %c16_35, %c0_36] : memref<1x3x288x128xbf16, #tpu.memory_space<vmem>>, vector<1x1x256x128xbf16>
    %30 = vector.shape_cast %29 : vector<1x1x256x128xbf16> to vector<256x128xbf16>
    %c5 = arith.constant 5 : index
    %c0_37 = arith.constant 0 : index
    %c0_38 = arith.constant 0 : index
    %31 = vector.load %arg2[%c5, %c0_37, %c0_38] : memref<9x128x128xbf16, #tpu.memory_space<vmem>>, vector<1x128x128xbf16>
    %32 = vector.shape_cast %31 : vector<1x128x128xbf16> to vector<128x128xbf16>
    %cst_39 = arith.constant dense<0.000000e+00> : vector<256x128xf32>
    %33 = tpu.matmul %30, %32, %cst_39 {dimension_numbers = #tpu.dot_dimension_numbers<[1], [0], [0], [1], [0, 0, 1, 1], [], []>} : vector<256x128xbf16>, vector<128x128xbf16>, vector<256x128xf32> -> vector<256x128xf32>
    %34 = arith.addf %28, %33 : vector<256x128xf32>
    %c0_40 = arith.constant 0 : index
    %c0_41 = arith.constant 0 : index
    %c32 = arith.constant 32 : index
    %c0_42 = arith.constant 0 : index
    %35 = vector.load %arg1[%c0_40, %c0_41, %c32, %c0_42] : memref<1x3x288x128xbf16, #tpu.memory_space<vmem>>, vector<1x1x256x128xbf16>
    %36 = vector.shape_cast %35 : vector<1x1x256x128xbf16> to vector<256x128xbf16>
    %c6 = arith.constant 6 : index
    %c0_43 = arith.constant 0 : index
    %c0_44 = arith.constant 0 : index
    %37 = vector.load %arg2[%c6, %c0_43, %c0_44] : memref<9x128x128xbf16, #tpu.memory_space<vmem>>, vector<1x128x128xbf16>
    %38 = vector.shape_cast %37 : vector<1x128x128xbf16> to vector<128x128xbf16>
    %cst_45 = arith.constant dense<0.000000e+00> : vector<256x128xf32>
    %39 = tpu.matmul %36, %38, %cst_45 {dimension_numbers = #tpu.dot_dimension_numbers<[1], [0], [0], [1], [0, 0, 1, 1], [], []>} : vector<256x128xbf16>, vector<128x128xbf16>, vector<256x128xf32> -> vector<256x128xf32>
    %40 = arith.addf %34, %39 : vector<256x128xf32>
    %c0_46 = arith.constant 0 : index
    %c1_47 = arith.constant 1 : index
    %c32_48 = arith.constant 32 : index
    %c0_49 = arith.constant 0 : index
    %41 = vector.load %arg1[%c0_46, %c1_47, %c32_48, %c0_49] : memref<1x3x288x128xbf16, #tpu.memory_space<vmem>>, vector<1x1x256x128xbf16>
    %42 = vector.shape_cast %41 : vector<1x1x256x128xbf16> to vector<256x128xbf16>
    %c7 = arith.constant 7 : index
    %c0_50 = arith.constant 0 : index
    %c0_51 = arith.constant 0 : index
    %43 = vector.load %arg2[%c7, %c0_50, %c0_51] : memref<9x128x128xbf16, #tpu.memory_space<vmem>>, vector<1x128x128xbf16>
    %44 = vector.shape_cast %43 : vector<1x128x128xbf16> to vector<128x128xbf16>
    %cst_52 = arith.constant dense<0.000000e+00> : vector<256x128xf32>
    %45 = tpu.matmul %42, %44, %cst_52 {dimension_numbers = #tpu.dot_dimension_numbers<[1], [0], [0], [1], [0, 0, 1, 1], [], []>} : vector<256x128xbf16>, vector<128x128xbf16>, vector<256x128xf32> -> vector<256x128xf32>
    %46 = arith.addf %40, %45 : vector<256x128xf32>
    %c0_53 = arith.constant 0 : index
    %c2_54 = arith.constant 2 : index
    %c32_55 = arith.constant 32 : index
    %c0_56 = arith.constant 0 : index
    %47 = vector.load %arg1[%c0_53, %c2_54, %c32_55, %c0_56] : memref<1x3x288x128xbf16, #tpu.memory_space<vmem>>, vector<1x1x256x128xbf16>
    %48 = vector.shape_cast %47 : vector<1x1x256x128xbf16> to vector<256x128xbf16>
    %c8 = arith.constant 8 : index
    %c0_57 = arith.constant 0 : index
    %c0_58 = arith.constant 0 : index
    %49 = vector.load %arg2[%c8, %c0_57, %c0_58] : memref<9x128x128xbf16, #tpu.memory_space<vmem>>, vector<1x128x128xbf16>
    %50 = vector.shape_cast %49 : vector<1x128x128xbf16> to vector<128x128xbf16>
    %cst_59 = arith.constant dense<0.000000e+00> : vector<256x128xf32>
    %51 = tpu.matmul %48, %50, %cst_59 {dimension_numbers = #tpu.dot_dimension_numbers<[1], [0], [0], [1], [0, 0, 1, 1], [], []>} : vector<256x128xbf16>, vector<128x128xbf16>, vector<256x128xf32> -> vector<256x128xf32>
    %52 = arith.addf %46, %51 : vector<256x128xf32>
    %c0_60 = arith.constant 0 : index
    %c0_61 = arith.constant 0 : index
    %53 = vector.load %arg3[%c0_60, %c0_61] : memref<256x128xf32, #tpu.memory_space<vmem>>, vector<256x128xf32>
    %54 = arith.addf %52, %53 : vector<256x128xf32>
    %55 = arith.truncf %54 : vector<256x128xf32> to vector<256x128xbf16>
    %c0_62 = arith.constant 0 : index
    %c0_63 = arith.constant 0 : index
    %c0_64 = arith.constant 0 : index
    %56 = vector.load %arg4[%c0_62, %c0_63, %c0_64] : memref<1x256x128xbf16, #tpu.memory_space<vmem>>, vector<1x256x128xbf16>
    %57 = vector.shape_cast %56 : vector<1x256x128xbf16> to vector<256x128xbf16>
    %58 = vector.shape_cast %55 : vector<256x128xbf16> to vector<1x256x128xbf16>
    tpu.vector_store %arg4[%c0_62, %c0_63, %c0_64], %58 {strides = array<i32>} : memref<1x256x128xbf16, #tpu.memory_space<vmem>>, vector<1x256x128xbf16>,
    %cst_65 = arith.constant dense<0.000000e+00> : vector<128xf32>
    %59 = vector.multi_reduction <add>, %54, %cst_65 [0] : vector<256x128xf32> to vector<128xf32>
    %60 = vector.shape_cast %59 : vector<128xf32> to vector<1x128xf32>
    %c0_66 = arith.constant 0 : index
    %c0_67 = arith.constant 0 : index
    %c0_68 = arith.constant 0 : index
    %61 = vector.load %arg5[%c0_66, %c0_67, %c0_68] : memref<1x1x128xf32, #tpu.memory_space<vmem>>, vector<1x1x128xf32>
    %62 = vector.shape_cast %61 : vector<1x1x128xf32> to vector<1x128xf32>
    %63 = vector.shape_cast %60 : vector<1x128xf32> to vector<1x1x128xf32>
    tpu.vector_store %arg5[%c0_66, %c0_67, %c0_68], %63 {strides = array<i32>} : memref<1x1x128xf32, #tpu.memory_space<vmem>>, vector<1x1x128xf32>,
    return
  }
  func.func @transform_0(%arg0: i32) -> (i32, i32, i32, i32) {
    %c0_i32 = arith.constant 0 : i32
    %c0_i32_0 = arith.constant 0 : i32
    %c0_i32_1 = arith.constant 0 : i32
    %c0_i32_2 = arith.constant 0 : i32
    return %arg0, %c0_i32, %c0_i32_0, %c0_i32_1 : i32, i32, i32, i32
  }
  func.func @transform_1(%arg0: i32) -> (i32, i32, i32) {
    %c0_i32 = arith.constant 0 : i32
    %c0_i32_0 = arith.constant 0 : i32
    %c0_i32_1 = arith.constant 0 : i32
    %c0_i32_2 = arith.constant 0 : i32
    return %c0_i32, %c0_i32_0, %c0_i32_1 : i32, i32, i32
  }
  func.func @transform_2(%arg0: i32) -> (i32, i32) {
    %c0_i32 = arith.constant 0 : i32
    %c0_i32_0 = arith.constant 0 : i32
    %c0_i32_1 = arith.constant 0 : i32
    return %c0_i32, %c0_i32_0 : i32, i32
  }
  func.func @transform_3(%arg0: i32) -> (i32, i32, i32) {
    %c0_i32 = arith.constant 0 : i32
    %c0_i32_0 = arith.constant 0 : i32
    %c0_i32_1 = arith.constant 0 : i32
    return %arg0, %c0_i32, %c0_i32_0 : i32, i32, i32
  }
  func.func @transform_4(%arg0: i32) -> (i32, i32, i32) {
    %c0_i32 = arith.constant 0 : i32
    %c0_i32_0 = arith.constant 0 : i32
    %c0_i32_1 = arith.constant 0 : i32
    return %arg0, %c0_i32, %c0_i32_0 : i32, i32, i32
  }
}

module attributes {stable_mosaic.version = 11 : i64} {
  func.func @kernel(%arg0: i32, %arg1: memref<1x6x56x128xbf16, #tpu.memory_space<vmem>>, %arg2: memref<9x128x128xbf16, #tpu.memory_space<vmem>>, %arg3: memref<1x128xf32, #tpu.memory_space<vmem>>, %arg4: memref<1x49x128xf32, #tpu.memory_space<vmem>>) attributes {dimension_semantics = [#tpu.dimension_semantics<parallel>], iteration_bounds = array<i64: 2>, scalar_prefetch = 0 : i64, scratch_operands = 0 : i64, tpu.core_type = #tpu.core_type<tc>, window_params = [{transform_indices = @transform_0, window_bounds = array<i64: 1, 6, 56, 128>}, {pipeline_mode = #tpu.pipeline_mode<synchronous>, transform_indices = @transform_1, window_bounds = array<i64: 9, 128, 128>}, {pipeline_mode = #tpu.pipeline_mode<synchronous>, transform_indices = @transform_2, window_bounds = array<i64: 1, 128>}, {transform_indices = @transform_3, window_bounds = array<i64: 1, 49, 128>}]} {
    %c0 = arith.constant 0 : index
    %c0_0 = arith.constant 0 : index
    %c0_1 = arith.constant 0 : index
    %c0_2 = arith.constant 0 : index
    %0 = vector.load %arg1[%c0, %c0_0, %c0_1, %c0_2] : memref<1x6x56x128xbf16, #tpu.memory_space<vmem>>, vector<1x1x49x128xbf16>
    %1 = vector.shape_cast %0 : vector<1x1x49x128xbf16> to vector<49x128xbf16>
    %c0_3 = arith.constant 0 : index
    %c0_4 = arith.constant 0 : index
    %c0_5 = arith.constant 0 : index
    %2 = vector.load %arg2[%c0_3, %c0_4, %c0_5] : memref<9x128x128xbf16, #tpu.memory_space<vmem>>, vector<1x128x128xbf16>
    %3 = vector.shape_cast %2 : vector<1x128x128xbf16> to vector<128x128xbf16>
    %cst = arith.constant dense<0.000000e+00> : vector<49x128xf32>
    %4 = tpu.matmul %1, %3, %cst {dimension_numbers = #tpu.dot_dimension_numbers<[1], [0], [0], [1], [0, 0, 1, 1], [], []>} : vector<49x128xbf16>, vector<128x128xbf16>, vector<49x128xf32> -> vector<49x128xf32>
    %c0_6 = arith.constant 0 : index
    %c2 = arith.constant 2 : index
    %c0_7 = arith.constant 0 : index
    %c0_8 = arith.constant 0 : index
    %5 = vector.load %arg1[%c0_6, %c2, %c0_7, %c0_8] : memref<1x6x56x128xbf16, #tpu.memory_space<vmem>>, vector<1x1x49x128xbf16>
    %6 = vector.shape_cast %5 : vector<1x1x49x128xbf16> to vector<49x128xbf16>
    %c1 = arith.constant 1 : index
    %c0_9 = arith.constant 0 : index
    %c0_10 = arith.constant 0 : index
    %7 = vector.load %arg2[%c1, %c0_9, %c0_10] : memref<9x128x128xbf16, #tpu.memory_space<vmem>>, vector<1x128x128xbf16>
    %8 = vector.shape_cast %7 : vector<1x128x128xbf16> to vector<128x128xbf16>
    %cst_11 = arith.constant dense<0.000000e+00> : vector<49x128xf32>
    %9 = tpu.matmul %6, %8, %cst_11 {dimension_numbers = #tpu.dot_dimension_numbers<[1], [0], [0], [1], [0, 0, 1, 1], [], []>} : vector<49x128xbf16>, vector<128x128xbf16>, vector<49x128xf32> -> vector<49x128xf32>
    %10 = arith.addf %4, %9 : vector<49x128xf32>
    %c0_12 = arith.constant 0 : index
    %c4 = arith.constant 4 : index
    %c0_13 = arith.constant 0 : index
    %c0_14 = arith.constant 0 : index
    %11 = vector.load %arg1[%c0_12, %c4, %c0_13, %c0_14] : memref<1x6x56x128xbf16, #tpu.memory_space<vmem>>, vector<1x1x49x128xbf16>
    %12 = vector.shape_cast %11 : vector<1x1x49x128xbf16> to vector<49x128xbf16>
    %c2_15 = arith.constant 2 : index
    %c0_16 = arith.constant 0 : index
    %c0_17 = arith.constant 0 : index
    %13 = vector.load %arg2[%c2_15, %c0_16, %c0_17] : memref<9x128x128xbf16, #tpu.memory_space<vmem>>, vector<1x128x128xbf16>
    %14 = vector.shape_cast %13 : vector<1x128x128xbf16> to vector<128x128xbf16>
    %cst_18 = arith.constant dense<0.000000e+00> : vector<49x128xf32>
    %15 = tpu.matmul %12, %14, %cst_18 {dimension_numbers = #tpu.dot_dimension_numbers<[1], [0], [0], [1], [0, 0, 1, 1], [], []>} : vector<49x128xbf16>, vector<128x128xbf16>, vector<49x128xf32> -> vector<49x128xf32>
    %16 = arith.addf %10, %15 : vector<49x128xf32>
    %c0_19 = arith.constant 0 : index
    %c1_20 = arith.constant 1 : index
    %c0_21 = arith.constant 0 : index
    %c0_22 = arith.constant 0 : index
    %17 = vector.load %arg1[%c0_19, %c1_20, %c0_21, %c0_22] : memref<1x6x56x128xbf16, #tpu.memory_space<vmem>>, vector<1x1x49x128xbf16>
    %18 = vector.shape_cast %17 : vector<1x1x49x128xbf16> to vector<49x128xbf16>
    %c3 = arith.constant 3 : index
    %c0_23 = arith.constant 0 : index
    %c0_24 = arith.constant 0 : index
    %19 = vector.load %arg2[%c3, %c0_23, %c0_24] : memref<9x128x128xbf16, #tpu.memory_space<vmem>>, vector<1x128x128xbf16>
    %20 = vector.shape_cast %19 : vector<1x128x128xbf16> to vector<128x128xbf16>
    %cst_25 = arith.constant dense<0.000000e+00> : vector<49x128xf32>
    %21 = tpu.matmul %18, %20, %cst_25 {dimension_numbers = #tpu.dot_dimension_numbers<[1], [0], [0], [1], [0, 0, 1, 1], [], []>} : vector<49x128xbf16>, vector<128x128xbf16>, vector<49x128xf32> -> vector<49x128xf32>
    %22 = arith.addf %16, %21 : vector<49x128xf32>
    %c0_26 = arith.constant 0 : index
    %c3_27 = arith.constant 3 : index
    %c0_28 = arith.constant 0 : index
    %c0_29 = arith.constant 0 : index
    %23 = vector.load %arg1[%c0_26, %c3_27, %c0_28, %c0_29] : memref<1x6x56x128xbf16, #tpu.memory_space<vmem>>, vector<1x1x49x128xbf16>
    %24 = vector.shape_cast %23 : vector<1x1x49x128xbf16> to vector<49x128xbf16>
    %c4_30 = arith.constant 4 : index
    %c0_31 = arith.constant 0 : index
    %c0_32 = arith.constant 0 : index
    %25 = vector.load %arg2[%c4_30, %c0_31, %c0_32] : memref<9x128x128xbf16, #tpu.memory_space<vmem>>, vector<1x128x128xbf16>
    %26 = vector.shape_cast %25 : vector<1x128x128xbf16> to vector<128x128xbf16>
    %cst_33 = arith.constant dense<0.000000e+00> : vector<49x128xf32>
    %27 = tpu.matmul %24, %26, %cst_33 {dimension_numbers = #tpu.dot_dimension_numbers<[1], [0], [0], [1], [0, 0, 1, 1], [], []>} : vector<49x128xbf16>, vector<128x128xbf16>, vector<49x128xf32> -> vector<49x128xf32>
    %28 = arith.addf %22, %27 : vector<49x128xf32>
    %c0_34 = arith.constant 0 : index
    %c5 = arith.constant 5 : index
    %c0_35 = arith.constant 0 : index
    %c0_36 = arith.constant 0 : index
    %29 = vector.load %arg1[%c0_34, %c5, %c0_35, %c0_36] : memref<1x6x56x128xbf16, #tpu.memory_space<vmem>>, vector<1x1x49x128xbf16>
    %30 = vector.shape_cast %29 : vector<1x1x49x128xbf16> to vector<49x128xbf16>
    %c5_37 = arith.constant 5 : index
    %c0_38 = arith.constant 0 : index
    %c0_39 = arith.constant 0 : index
    %31 = vector.load %arg2[%c5_37, %c0_38, %c0_39] : memref<9x128x128xbf16, #tpu.memory_space<vmem>>, vector<1x128x128xbf16>
    %32 = vector.shape_cast %31 : vector<1x128x128xbf16> to vector<128x128xbf16>
    %cst_40 = arith.constant dense<0.000000e+00> : vector<49x128xf32>
    %33 = tpu.matmul %30, %32, %cst_40 {dimension_numbers = #tpu.dot_dimension_numbers<[1], [0], [0], [1], [0, 0, 1, 1], [], []>} : vector<49x128xbf16>, vector<128x128xbf16>, vector<49x128xf32> -> vector<49x128xf32>
    %34 = arith.addf %28, %33 : vector<49x128xf32>
    %c0_41 = arith.constant 0 : index
    %c0_42 = arith.constant 0 : index
    %c7 = arith.constant 7 : index
    %c0_43 = arith.constant 0 : index
    %35 = vector.load %arg1[%c0_41, %c0_42, %c7, %c0_43] : memref<1x6x56x128xbf16, #tpu.memory_space<vmem>>, vector<1x1x49x128xbf16>
    %36 = vector.shape_cast %35 : vector<1x1x49x128xbf16> to vector<49x128xbf16>
    %c6 = arith.constant 6 : index
    %c0_44 = arith.constant 0 : index
    %c0_45 = arith.constant 0 : index
    %37 = vector.load %arg2[%c6, %c0_44, %c0_45] : memref<9x128x128xbf16, #tpu.memory_space<vmem>>, vector<1x128x128xbf16>
    %38 = vector.shape_cast %37 : vector<1x128x128xbf16> to vector<128x128xbf16>
    %cst_46 = arith.constant dense<0.000000e+00> : vector<49x128xf32>
    %39 = tpu.matmul %36, %38, %cst_46 {dimension_numbers = #tpu.dot_dimension_numbers<[1], [0], [0], [1], [0, 0, 1, 1], [], []>} : vector<49x128xbf16>, vector<128x128xbf16>, vector<49x128xf32> -> vector<49x128xf32>
    %40 = arith.addf %34, %39 : vector<49x128xf32>
    %c0_47 = arith.constant 0 : index
    %c2_48 = arith.constant 2 : index
    %c7_49 = arith.constant 7 : index
    %c0_50 = arith.constant 0 : index
    %41 = vector.load %arg1[%c0_47, %c2_48, %c7_49, %c0_50] : memref<1x6x56x128xbf16, #tpu.memory_space<vmem>>, vector<1x1x49x128xbf16>
    %42 = vector.shape_cast %41 : vector<1x1x49x128xbf16> to vector<49x128xbf16>
    %c7_51 = arith.constant 7 : index
    %c0_52 = arith.constant 0 : index
    %c0_53 = arith.constant 0 : index
    %43 = vector.load %arg2[%c7_51, %c0_52, %c0_53] : memref<9x128x128xbf16, #tpu.memory_space<vmem>>, vector<1x128x128xbf16>
    %44 = vector.shape_cast %43 : vector<1x128x128xbf16> to vector<128x128xbf16>
    %cst_54 = arith.constant dense<0.000000e+00> : vector<49x128xf32>
    %45 = tpu.matmul %42, %44, %cst_54 {dimension_numbers = #tpu.dot_dimension_numbers<[1], [0], [0], [1], [0, 0, 1, 1], [], []>} : vector<49x128xbf16>, vector<128x128xbf16>, vector<49x128xf32> -> vector<49x128xf32>
    %46 = arith.addf %40, %45 : vector<49x128xf32>
    %c0_55 = arith.constant 0 : index
    %c4_56 = arith.constant 4 : index
    %c7_57 = arith.constant 7 : index
    %c0_58 = arith.constant 0 : index
    %47 = vector.load %arg1[%c0_55, %c4_56, %c7_57, %c0_58] : memref<1x6x56x128xbf16, #tpu.memory_space<vmem>>, vector<1x1x49x128xbf16>
    %48 = vector.shape_cast %47 : vector<1x1x49x128xbf16> to vector<49x128xbf16>
    %c8 = arith.constant 8 : index
    %c0_59 = arith.constant 0 : index
    %c0_60 = arith.constant 0 : index
    %49 = vector.load %arg2[%c8, %c0_59, %c0_60] : memref<9x128x128xbf16, #tpu.memory_space<vmem>>, vector<1x128x128xbf16>
    %50 = vector.shape_cast %49 : vector<1x128x128xbf16> to vector<128x128xbf16>
    %cst_61 = arith.constant dense<0.000000e+00> : vector<49x128xf32>
    %51 = tpu.matmul %48, %50, %cst_61 {dimension_numbers = #tpu.dot_dimension_numbers<[1], [0], [0], [1], [0, 0, 1, 1], [], []>} : vector<49x128xbf16>, vector<128x128xbf16>, vector<49x128xf32> -> vector<49x128xf32>
    %52 = arith.addf %46, %51 : vector<49x128xf32>
    %c0_62 = arith.constant 0 : index
    %c0_63 = arith.constant 0 : index
    %53 = vector.load %arg3[%c0_62, %c0_63] : memref<1x128xf32, #tpu.memory_space<vmem>>, vector<1x128xf32>
    %54 = vector.broadcast %53 : vector<1x128xf32> to vector<49x128xf32>
    %55 = arith.addf %52, %54 : vector<49x128xf32>
    %c0_64 = arith.constant 0 : index
    %c0_65 = arith.constant 0 : index
    %c0_66 = arith.constant 0 : index
    %56 = vector.load %arg4[%c0_64, %c0_65, %c0_66] : memref<1x49x128xf32, #tpu.memory_space<vmem>>, vector<1x49x128xf32>
    %57 = vector.shape_cast %56 : vector<1x49x128xf32> to vector<49x128xf32>
    %58 = vector.shape_cast %55 : vector<49x128xf32> to vector<1x49x128xf32>
    tpu.vector_store %arg4[%c0_64, %c0_65, %c0_66], %58 {strides = array<i32>} : memref<1x49x128xf32, #tpu.memory_space<vmem>>, vector<1x49x128xf32>,
    return
  }
  func.func @transform_0(%arg0: i32) -> (i32, i32, i32, i32) {
    %c0_i32 = arith.constant 0 : i32
    %c0_i32_0 = arith.constant 0 : i32
    %c0_i32_1 = arith.constant 0 : i32
    %c0_i32_2 = arith.constant 0 : i32
    return %arg0, %c0_i32, %c0_i32_0, %c0_i32_1 : i32, i32, i32, i32
  }
  func.func @transform_1(%arg0: i32) -> (i32, i32, i32) {
    %c0_i32 = arith.constant 0 : i32
    %c0_i32_0 = arith.constant 0 : i32
    %c0_i32_1 = arith.constant 0 : i32
    %c0_i32_2 = arith.constant 0 : i32
    return %c0_i32, %c0_i32_0, %c0_i32_1 : i32, i32, i32
  }
  func.func @transform_2(%arg0: i32) -> (i32, i32) {
    %c0_i32 = arith.constant 0 : i32
    %c0_i32_0 = arith.constant 0 : i32
    %c0_i32_1 = arith.constant 0 : i32
    return %c0_i32, %c0_i32_0 : i32, i32
  }
  func.func @transform_3(%arg0: i32) -> (i32, i32, i32) {
    %c0_i32 = arith.constant 0 : i32
    %c0_i32_0 = arith.constant 0 : i32
    %c0_i32_1 = arith.constant 0 : i32
    return %arg0, %c0_i32, %c0_i32_0 : i32, i32, i32
  }
}

</mosaic_0001>

<bundles_post_ra>
// kernel: inception_b_forward.8
= control target key start
LH: loop header
LB: loop body
LE: loop exit
PB: predicated region body
PF: predicated region fallthrough
CT: control target
= control target key end

     0   :  { %v377_v0 = vmov 0.0   ;;  %s493_s1 = inlined_call_operand.vmem [shape: f32[1,128], index: 1, kind: output, shape index: {}]   ;;  %s494_s0 = inlined_call_operand.vmem [shape: bf16[512,128], index: 0, kind: input, shape index: {}]  }
   0x1   :  { %12 = vst [vmem:[%s493_s1] sm:$0x1] %v377_v0  ;;  %v218_v1 = vld [vmem:[%s494_s0] sm:$0xff]   ;;  %v345_v2 = vld [vmem:[%s494_s0 + $0x8] sm:$0xff]   ;;  %v346_v6 = vld [vmem:[%s494_s0 + $0x10] sm:$0xff]  }
   0x2   :  { %v219_v3 = vunpack.c.l.bf16 %v218_v1  ;;  %v220_v4 = vunpack.c.h.bf16 %v218_v1  ;;  %v223_v5 = vunpack.c.l.bf16 %v345_v2  ;;  %v224_v7 = vunpack.c.h.bf16 %v345_v2  ;;  %v347_v11 = vld [vmem:[%s494_s0 + $0x18] sm:$0xff]   ;;  %v348_v16 = vld [vmem:[%s494_s0 + $0x20] sm:$0xff]   ;;  %v349_v21 = vld [vmem:[%s494_s0 + $0x28] sm:$0xff]  }
   0x3   :  { %v227_v9 = vunpack.c.l.bf16 %v346_v6  ;;  %v228_v12 = vunpack.c.h.bf16 %v346_v6  ;;  %v231_v14 = vunpack.c.l.bf16 %v347_v11  ;;  %v232_v17 = vunpack.c.h.bf16 %v347_v11  ;;  %v350_v26 = vld [vmem:[%s494_s0 + $0x30] sm:$0xff]   ;;  %v351_v31 = vld [vmem:[%s494_s0 + $0x38] sm:$0xff]   ;;  %v352_v36 = vld [vmem:[%s494_s0 + $0x40] sm:$0xff]  }
   0x4   :  { %v142_v8 = vadd.f32 %v220_v4, %v219_v3  ;;  %v235_v19 = vunpack.c.l.bf16 %v348_v16  ;;  %v236_v22 = vunpack.c.h.bf16 %v348_v16  ;;  %v239_v24 = vunpack.c.l.bf16 %v349_v21  ;;  %v353_v41 = vld [vmem:[%s494_s0 + $0x48] sm:$0xff]   ;;  %v354_v46 = vld [vmem:[%s494_s0 + $0x50] sm:$0xff]   ;;  %v355_v51 = vld [vmem:[%s494_s0 + $0x58] sm:$0xff]  }
   0x5   :  { %v240_v27 = vunpack.c.h.bf16 %v349_v21  ;;  %v243_v29 = vunpack.c.l.bf16 %v350_v26  ;;  %v244_v32 = vunpack.c.h.bf16 %v350_v26  ;;  %v247_v34 = vunpack.c.l.bf16 %v351_v31  ;;  %v356_v56 = vld [vmem:[%s494_s0 + $0x60] sm:$0xff]   ;;  %v357_v61 = vld [vmem:[%s494_s0 + $0x68] sm:$0xff]   ;;  %v358_v2 = vld [vmem:[%s494_s0 + $0x70] sm:$0xff]  }
   0x6   :  { %v143_v10 = vadd.f32 %v223_v5, %v142_v8  ;;  %v248_v37 = vunpack.c.h.bf16 %v351_v31  ;;  %v251_v39 = vunpack.c.l.bf16 %v352_v36  ;;  %v252_v42 = vunpack.c.h.bf16 %v352_v36 }
   0x7   :  { %v255_v44 = vunpack.c.l.bf16 %v353_v41  ;;  %v256_v47 = vunpack.c.h.bf16 %v353_v41  ;;  %v259_v49 = vunpack.c.l.bf16 %v354_v46  ;;  %v260_v52 = vunpack.c.h.bf16 %v354_v46 }
   0x8   :  { %v144_v13 = vadd.f32 %v224_v7, %v143_v10  ;;  %v263_v54 = vunpack.c.l.bf16 %v355_v51  ;;  %v264_v57 = vunpack.c.h.bf16 %v355_v51  ;;  %v267_v59 = vunpack.c.l.bf16 %v356_v56  ;;  %v359_v7 = vld [vmem:[%s494_s0 + $0x78] sm:$0xff]  }
   0x9   :  { %v268_v62 = vunpack.c.h.bf16 %v356_v56  ;;  %v271_v0 = vunpack.c.l.bf16 %v357_v61  ;;  %v272_v3 = vunpack.c.h.bf16 %v357_v61  ;;  %v275_v5 = vunpack.c.l.bf16 %v358_v2 }
   0xa   :  { %v145_v15 = vadd.f32 %v227_v9, %v144_v13  ;;  %v276_v8 = vunpack.c.h.bf16 %v358_v2  ;;  %v279_v10 = vunpack.c.l.bf16 %v359_v7  ;;  %v280_v13 = vunpack.c.h.bf16 %v359_v7 }
   0xc   :  { %v146_v18 = vadd.f32 %v228_v12, %v145_v15  ;;  %v360_v12 = vld [vmem:[%s494_s0 + $0x80] sm:$0xff]  }
   0xd   :  { %v283_v15 = vunpack.c.l.bf16 %v360_v12 }
   0xe   :  { %v147_v20 = vadd.f32 %v231_v14, %v146_v18  ;;  %v284_v18 = vunpack.c.h.bf16 %v360_v12 }
  0x10   :  { %v148_v23 = vadd.f32 %v232_v17, %v147_v20  ;;  %v361_v17 = vld [vmem:[%s494_s0 + $0x88] sm:$0xff]  }
  0x11   :  { %v287_v20 = vunpack.c.l.bf16 %v361_v17 }
  0x12   :  { %v149_v25 = vadd.f32 %v235_v19, %v148_v23  ;;  %v288_v23 = vunpack.c.h.bf16 %v361_v17 }
  0x14   :  { %v150_v28 = vadd.f32 %v236_v22, %v149_v25  ;;  %v362_v22 = vld [vmem:[%s494_s0 + $0x90] sm:$0xff]  }
  0x15   :  { %v291_v25 = vunpack.c.l.bf16 %v362_v22 }
  0x16   :  { %v151_v30 = vadd.f32 %v239_v24, %v150_v28  ;;  %v292_v28 = vunpack.c.h.bf16 %v362_v22 }
  0x18   :  { %v152_v33 = vadd.f32 %v240_v27, %v151_v30  ;;  %v363_v27 = vld [vmem:[%s494_s0 + $0x98] sm:$0xff]  }
  0x19   :  { %v295_v30 = vunpack.c.l.bf16 %v363_v27 }
  0x1a   :  { %v153_v35 = vadd.f32 %v243_v29, %v152_v33  ;;  %v296_v33 = vunpack.c.h.bf16 %v363_v27 }
  0x1c   :  { %v154_v38 = vadd.f32 %v244_v32, %v153_v35  ;;  %v364_v32 = vld [vmem:[%s494_s0 + $0xa0] sm:$0xff]  }
  0x1d   :  { %v299_v35 = vunpack.c.l.bf16 %v364_v32 }
  0x1e   :  { %v155_v40 = vadd.f32 %v247_v34, %v154_v38  ;;  %v300_v38 = vunpack.c.h.bf16 %v364_v32 }
  0x20   :  { %v156_v43 = vadd.f32 %v248_v37, %v155_v40  ;;  %v365_v37 = vld [vmem:[%s494_s0 + $0xa8] sm:$0xff]  }
  0x21   :  { %v303_v40 = vunpack.c.l.bf16 %v365_v37 }
  0x22   :  { %v157_v45 = vadd.f32 %v251_v39, %v156_v43  ;;  %v304_v43 = vunpack.c.h.bf16 %v365_v37  ;;  %v13_v37 = vld [vmem:[%s493_s1] sm:$0x1] }
  0x24   :  { %v158_v48 = vadd.f32 %v252_v42, %v157_v45  ;;  %v366_v42 = vld [vmem:[%s494_s0 + $0xb0] sm:$0xff]  }
  0x25   :  { %v307_v45 = vunpack.c.l.bf16 %v366_v42 }
  0x26   :  { %v159_v50 = vadd.f32 %v255_v44, %v158_v48  ;;  %v308_v48 = vunpack.c.h.bf16 %v366_v42 }
  0x28   :  { %v160_v53 = vadd.f32 %v256_v47, %v159_v50  ;;  %v367_v47 = vld [vmem:[%s494_s0 + $0xb8] sm:$0xff]  }
  0x29   :  { %v311_v50 = vunpack.c.l.bf16 %v367_v47 }
  0x2a   :  { %v161_v55 = vadd.f32 %v259_v49, %v160_v53  ;;  %v312_v53 = vunpack.c.h.bf16 %v367_v47 }
  0x2c   :  { %v162_v58 = vadd.f32 %v260_v52, %v161_v55  ;;  %v368_v52 = vld [vmem:[%s494_s0 + $0xc0] sm:$0xff]  }
  0x2d   :  { %v315_v55 = vunpack.c.l.bf16 %v368_v52 }
  0x2e   :  { %v163_v60 = vadd.f32 %v263_v54, %v162_v58  ;;  %v316_v58 = vunpack.c.h.bf16 %v368_v52 }
  0x30   :  { %v164_v63 = vadd.f32 %v264_v57, %v163_v60  ;;  %v369_v57 = vld [vmem:[%s494_s0 + $0xc8] sm:$0xff]  }
  0x31   :  { %v319_v60 = vunpack.c.l.bf16 %v369_v57 }
  0x32   :  { %v165_v1 = vadd.f32 %v267_v59, %v164_v63  ;;  %v320_v63 = vunpack.c.h.bf16 %v369_v57 }
  0x34   :  { %v166_v4 = vadd.f32 %v268_v62, %v165_v1  ;;  %v370_v62 = vld [vmem:[%s494_s0 + $0xd0] sm:$0xff]  }
  0x35   :  { %v323_v1 = vunpack.c.l.bf16 %v370_v62 }
  0x36   :  { %v167_v6 = vadd.f32 %v271_v0, %v166_v4  ;;  %v324_v4 = vunpack.c.h.bf16 %v370_v62 }
  0x38   :  { %v168_v9 = vadd.f32 %v272_v3, %v167_v6  ;;  %v371_v3 = vld [vmem:[%s494_s0 + $0xd8] sm:$0xff]  }
  0x39   :  { %v327_v6 = vunpack.c.l.bf16 %v371_v3 }
  0x3a   :  { %v169_v11 = vadd.f32 %v275_v5, %v168_v9  ;;  %v328_v9 = vunpack.c.h.bf16 %v371_v3 }
  0x3c   :  { %v170_v14 = vadd.f32 %v276_v8, %v169_v11  ;;  %v372_v8 = vld [vmem:[%s494_s0 + $0xe0] sm:$0xff]  }
  0x3d   :  { %v331_v11 = vunpack.c.l.bf16 %v372_v8 }
  0x3e   :  { %v171_v16 = vadd.f32 %v279_v10, %v170_v14  ;;  %v332_v14 = vunpack.c.h.bf16 %v372_v8 }
  0x40   :  { %v172_v19 = vadd.f32 %v280_v13, %v171_v16  ;;  %v373_v13 = vld [vmem:[%s494_s0 + $0xe8] sm:$0xff]  }
  0x41   :  { %v335_v16 = vunpack.c.l.bf16 %v373_v13 }
  0x42   :  { %v173_v21 = vadd.f32 %v283_v15, %v172_v19  ;;  %v336_v19 = vunpack.c.h.bf16 %v373_v13 }
  0x44   :  { %v174_v24 = vadd.f32 %v284_v18, %v173_v21  ;;  %v374_v18 = vld [vmem:[%s494_s0 + $0xf0] sm:$0xff]  }
  0x45   :  { %v339_v21 = vunpack.c.l.bf16 %v374_v18 }
  0x46   :  { %v175_v26 = vadd.f32 %v287_v20, %v174_v24  ;;  %v340_v24 = vunpack.c.h.bf16 %v374_v18 }
  0x48   :  { %v176_v29 = vadd.f32 %v288_v23, %v175_v26  ;;  %v375_v23 = vld [vmem:[%s494_s0 + $0xf8] sm:$0xff]  }
  0x49   :  { %v343_v26 = vunpack.c.l.bf16 %v375_v23 }
  0x4a   :  { %v177_v31 = vadd.f32 %v291_v25, %v176_v29 }
  0x4c   :  { %v178_v34 = vadd.f32 %v292_v28, %v177_v31  ;;  %v344_v28 = vunpack.c.h.bf16 %v375_v23 }
  0x4e   :  { %v179_v36 = vadd.f32 %v295_v30, %v178_v34 }
  0x50   :  { %v180_v39 = vadd.f32 %v296_v33, %v179_v36 }
  0x52   :  { %v181_v41 = vadd.f32 %v299_v35, %v180_v39 }
  0x54   :  { %v182_v44 = vadd.f32 %v300_v38, %v181_v41 }
  0x56   :  { %v183_v46 = vadd.f32 %v303_v40, %v182_v44 }
  0x58   :  { %v184_v49 = vadd.f32 %v304_v43, %v183_v46 }
  0x5a   :  { %v185_v51 = vadd.f32 %v307_v45, %v184_v49 }
  0x5c   :  { %v186_v54 = vadd.f32 %v308_v48, %v185_v51 }
  0x5e   :  { %v187_v56 = vadd.f32 %v311_v50, %v186_v54 }
  0x60   :  { %v188_v59 = vadd.f32 %v312_v53, %v187_v56 }
  0x62   :  { %v189_v61 = vadd.f32 %v315_v55, %v188_v59 }
  0x64   :  { %v190_v0 = vadd.f32 %v316_v58, %v189_v61 }
  0x66   :  { %v191_v2 = vadd.f32 %v319_v60, %v190_v0 }
  0x68   :  { %v192_v5 = vadd.f32 %v320_v63, %v191_v2 }
  0x6a   :  { %v193_v7 = vadd.f32 %v323_v1, %v192_v5 }
  0x6c   :  { %v194_v10 = vadd.f32 %v324_v4, %v193_v7 }
  0x6e   :  { %v195_v12 = vadd.f32 %v327_v6, %v194_v10 }
  0x70   :  { %v196_v15 = vadd.f32 %v328_v9, %v195_v12 }
  0x72   :  { %v197_v17 = vadd.f32 %v331_v11, %v196_v15 }
  0x74   :  { %v198_v20 = vadd.f32 %v332_v14, %v197_v17 }
  0x76   :  { %v199_v22 = vadd.f32 %v335_v16, %v198_v20 }
  0x78   :  { %v200_v25 = vadd.f32 %v336_v19, %v199_v22 }
  0x7a   :  { %v201_v27 = vadd.f32 %v339_v21, %v200_v25 }
  0x7c   :  { %v202_v29 = vadd.f32 %v340_v24, %v201_v27 }
  0x7e   :  { %v203_v30 = vadd.f32 %v343_v26, %v202_v29 }
  0x80   :  { %v204_v31 = vadd.f32 %v344_v28, %v203_v30 }
  0x82   :  { %v205_v32 = vrot.slane %v204_v31, 4 }
  0x84   :  { %v206_v33 = vadd.f32 %v205_v32, %v204_v31 }
  0x86   :  { %v207_v34 = vrot.slane %v206_v33, 2 }
  0x88   :  { %v208_v35 = vadd.f32 %v207_v34, %v206_v33 }
  0x8a   :  { %v209_v36 = vrot.slane %v208_v35, 1 }
  0x8c   :  { %v210_v38 = vadd.f32 %v209_v36, %v208_v35 }
  0x8e   :  { %v211_v39 = vadd.f32 %v210_v38, %v13_v37 }
  0x90   :  { %212 = vst [vmem:[%s493_s1] sm:$0x1] %v211_v39 }

// kernel: inception_b_forward.9
= control target key start
LH: loop header
LB: loop body
LE: loop exit
PB: predicated region body
PF: predicated region fallthrough
CT: control target
= control target key end

     0   :  { %v903_v0 = vmov 0.0   ;;  %s1213_s2 = inlined_call_operand.vmem [shape: f32[1,128], index: 2, kind: output, shape index: {}]   ;;  %s1214_s0 = inlined_call_operand.vmem [shape: bf16[512,128], index: 0, kind: input, shape index: {}]   ;;  %s1215_s1 = inlined_call_operand.vmem [shape: f32[1,128], index: 1, kind: input, shape index: {}]  }
   0x1   :  { %15 = vst [vmem:[%s1213_s2] sm:$0x1] %v903_v0  ;;  %v887_v1 = vld [vmem:[%s1214_s0 + $0x88] sm:$0xff]   ;;  %v888_v2 = vld [vmem:[%s1214_s0 + $0x90] sm:$0xff]   ;;  %v889_v3 = vld [vmem:[%s1214_s0 + $0x98] sm:$0xff]  }
   0x2   :  { %v890_v4 = vld [vmem:[%s1214_s0 + $0xa0] sm:$0xff]   ;;  %v891_v5 = vld [vmem:[%s1214_s0 + $0xa8] sm:$0xff]   ;;  %v892_v6 = vld [vmem:[%s1214_s0 + $0xb0] sm:$0xff]   ;;  %v813_v7 = vunpack.c.l.bf16 %v887_v1  ;;  %v814_v8 = vunpack.c.h.bf16 %v887_v1  ;;  %v817_v9 = vunpack.c.l.bf16 %v888_v2  ;;  %v818_v10 = vunpack.c.h.bf16 %v888_v2 }
   0x3   :  { %v893_v11 = vld [vmem:[%s1214_s0 + $0xb8] sm:$0xff]   ;;  %v894_v12 = vld [vmem:[%s1214_s0 + $0xc0] sm:$0xff]   ;;  %v821_v13 = vunpack.c.l.bf16 %v889_v3  ;;  %v822_v14 = vunpack.c.h.bf16 %v889_v3  ;;  %v825_v15 = vunpack.c.l.bf16 %v890_v4  ;;  %v826_v16 = vunpack.c.h.bf16 %v890_v4  ;;  %v895_v17 = vld [vmem:[%s1214_s0 + $0xc8] sm:$0xff]  }
   0x4   :  { %v896_v18 = vld [vmem:[%s1214_s0 + $0xd0] sm:$0xff]   ;;  %v829_v19 = vunpack.c.l.bf16 %v891_v5  ;;  %v830_v20 = vunpack.c.h.bf16 %v891_v5  ;;  %v833_v21 = vunpack.c.l.bf16 %v892_v6  ;;  %v834_v22 = vunpack.c.h.bf16 %v892_v6  ;;  %v897_v23 = vld [vmem:[%s1214_s0 + $0xd8] sm:$0xff]   ;;  %v898_v24 = vld [vmem:[%s1214_s0 + $0xe0] sm:$0xff]  }
   0x5   :  { %v837_v25 = vunpack.c.l.bf16 %v893_v11  ;;  %v838_v26 = vunpack.c.h.bf16 %v893_v11  ;;  %v841_v27 = vunpack.c.l.bf16 %v894_v12  ;;  %v842_v28 = vunpack.c.h.bf16 %v894_v12  ;;  %v899_v29 = vld [vmem:[%s1214_s0 + $0xe8] sm:$0xff]   ;;  %v900_v30 = vld [vmem:[%s1214_s0 + $0xf0] sm:$0xff]   ;;  %v901_v35 = vld [vmem:[%s1214_s0 + $0xf8] sm:$0xff]  }
   0x6   :  { %v845_v31 = vunpack.c.l.bf16 %v895_v17  ;;  %v846_v32 = vunpack.c.h.bf16 %v895_v17  ;;  %v849_v33 = vunpack.c.l.bf16 %v896_v18  ;;  %v850_v34 = vunpack.c.h.bf16 %v896_v18  ;;  %v970_v44 = vld [vmem:[%s1215_s1] ss:$0 sm:$0xff]  ;;  %v872_v18 = vld [vmem:[%s1214_s0 + $0x10] sm:$0xff]  }
   0x7   :  { %v853_v36 = vunpack.c.l.bf16 %v897_v23  ;;  %v854_v37 = vunpack.c.h.bf16 %v897_v23  ;;  %v857_v38 = vunpack.c.l.bf16 %v898_v24  ;;  %v858_v39 = vunpack.c.h.bf16 %v898_v24  ;;  %v873_v24 = vld [vmem:[%s1214_s0 + $0x18] sm:$0xff]  }
   0x8   :  { %v861_v40 = vunpack.c.l.bf16 %v899_v29  ;;  %v862_v41 = vunpack.c.h.bf16 %v899_v29  ;;  %v865_v42 = vunpack.c.l.bf16 %v900_v30  ;;  %v866_v43 = vunpack.c.h.bf16 %v900_v30 }
   0x9   :  { %v869_v45 = vunpack.c.l.bf16 %v901_v35  ;;  %v870_v46 = vunpack.c.h.bf16 %v901_v35  ;;  %v973_v47 = vsub.f32 %v813_v7, %v970_v44  ;;  %v976_v48 = vsub.f32 %v814_v8, %v970_v44 }
   0xa   :  { %v979_v49 = vsub.f32 %v817_v9, %v970_v44  ;;  %v982_v50 = vsub.f32 %v818_v10, %v970_v44  ;;  %v985_v51 = vsub.f32 %v821_v13, %v970_v44  ;;  %v988_v52 = vsub.f32 %v822_v14, %v970_v44  ;;  %v744_v13 = vld [vmem:[%s1214_s0] sm:$0xff]   ;;  %v871_v14 = vld [vmem:[%s1214_s0 + $0x8] sm:$0xff]  }
   0xb   :  { %v991_v53 = vsub.f32 %v825_v15, %v970_v44  ;;  %v994_v54 = vsub.f32 %v826_v16, %v970_v44  ;;  %v997_v55 = vsub.f32 %v829_v19, %v970_v44  ;;  %v1000_v56 = vsub.f32 %v830_v20, %v970_v44 }
   0xc   :  { %v1003_v57 = vsub.f32 %v833_v21, %v970_v44  ;;  %v1006_v58 = vsub.f32 %v834_v22, %v970_v44  ;;  %v1009_v59 = vsub.f32 %v837_v25, %v970_v44  ;;  %v1012_v60 = vsub.f32 %v838_v26, %v970_v44 }
   0xd   :  { %v1015_v61 = vsub.f32 %v841_v27, %v970_v44  ;;  %v1018_v62 = vsub.f32 %v842_v28, %v970_v44  ;;  %v1021_v63 = vsub.f32 %v845_v31, %v970_v44  ;;  %v1024_v0 = vsub.f32 %v846_v32, %v970_v44  ;;  %v874_v32 = vld [vmem:[%s1214_s0 + $0x20] sm:$0xff]  }
   0xe   :  { %v1027_v1 = vsub.f32 %v849_v33, %v970_v44  ;;  %v1030_v2 = vsub.f32 %v850_v34, %v970_v44  ;;  %v1033_v3 = vsub.f32 %v853_v36, %v970_v44  ;;  %v1036_v4 = vsub.f32 %v854_v37, %v970_v44 }
   0xf   :  { %v1039_v5 = vsub.f32 %v857_v38, %v970_v44  ;;  %v1042_v6 = vsub.f32 %v858_v39, %v970_v44  ;;  %v1045_v7 = vsub.f32 %v861_v40, %v970_v44  ;;  %v1048_v8 = vsub.f32 %v862_v41, %v970_v44  ;;  %v875_v41 = vld [vmem:[%s1214_s0 + $0x28] sm:$0xff]  }
  0x10   :  { %v1051_v9 = vsub.f32 %v865_v42, %v970_v44  ;;  %v1054_v10 = vsub.f32 %v866_v43, %v970_v44  ;;  %v1057_v11 = vsub.f32 %v869_v45, %v970_v44  ;;  %v1060_v12 = vsub.f32 %v870_v46, %v970_v44 }
  0x11   :  { %v745_v15 = vunpack.c.l.bf16 %v744_v13  ;;  %v746_v16 = vunpack.c.h.bf16 %v744_v13  ;;  %v749_v17 = vunpack.c.l.bf16 %v871_v14  ;;  %v750_v19 = vunpack.c.h.bf16 %v871_v14 }
  0x12   :  { %v753_v22 = vunpack.c.l.bf16 %v872_v18  ;;  %v754_v25 = vunpack.c.h.bf16 %v872_v18  ;;  %v757_v29 = vunpack.c.l.bf16 %v873_v24  ;;  %v758_v33 = vunpack.c.h.bf16 %v873_v24 }
  0x13   :  { %v282_v20 = vsub.f32 %v745_v15, %v970_v44  ;;  %v283_v21 = vsub.f32 %v746_v16, %v970_v44  ;;  %v284_v23 = vsub.f32 %v749_v17, %v970_v44  ;;  %v285_v26 = vsub.f32 %v750_v19, %v970_v44  ;;  %v876_v17 = vld [vmem:[%s1214_s0 + $0x30] sm:$0xff]  }
  0x14   :  { %v286_v30 = vsub.f32 %v753_v22, %v970_v44  ;;  %v287_v34 = vsub.f32 %v754_v25, %v970_v44  ;;  %v761_v37 = vunpack.c.l.bf16 %v874_v32  ;;  %v288_v38 = vsub.f32 %v757_v29, %v970_v44 }
  0x15   :  { %v603_v27 = vmul.f32 %v282_v20, %v282_v20  ;;  %v604_v28 = vmul.f32 %v283_v21, %v283_v21  ;;  %v605_v31 = vmul.f32 %v284_v23, %v284_v23  ;;  %v606_v35 = vmul.f32 %v285_v26, %v285_v26  ;;  %v877_v26 = vld [vmem:[%s1214_s0 + $0x38] sm:$0xff]  }
  0x16   :  { %v607_v39 = vmul.f32 %v286_v30, %v286_v30  ;;  %v762_v42 = vunpack.c.h.bf16 %v874_v32  ;;  %v289_v43 = vsub.f32 %v758_v33, %v970_v44  ;;  %v608_v45 = vmul.f32 %v287_v34, %v287_v34 }
  0x17   :  { %v667_v36 = vadd.f32 %v604_v28, %v603_v27  ;;  %v765_v13 = vunpack.c.l.bf16 %v875_v41  ;;  %v290_v14 = vsub.f32 %v761_v37, %v970_v44  ;;  %v609_v15 = vmul.f32 %v288_v38, %v288_v38 }
  0x18   :  { %v766_v18 = vunpack.c.h.bf16 %v875_v41  ;;  %v291_v19 = vsub.f32 %v762_v42, %v970_v44  ;;  %v610_v20 = vmul.f32 %v289_v43, %v289_v43  ;;  %v769_v22 = vunpack.c.l.bf16 %v876_v17 }
  0x19   :  { %v668_v40 = vadd.f32 %v667_v36, %v605_v31  ;;  %v292_v23 = vsub.f32 %v765_v13, %v970_v44  ;;  %v611_v24 = vmul.f32 %v290_v14, %v290_v14  ;;  %v770_v27 = vunpack.c.h.bf16 %v876_v17 }
  0x1a   :  { %v293_v28 = vsub.f32 %v766_v18, %v970_v44  ;;  %v612_v29 = vmul.f32 %v291_v19, %v291_v19  ;;  %v773_v31 = vunpack.c.l.bf16 %v877_v26  ;;  %v294_v32 = vsub.f32 %v769_v22, %v970_v44 }
  0x1b   :  { %v669_v46 = vadd.f32 %v668_v40, %v606_v35  ;;  %v613_v33 = vmul.f32 %v292_v23, %v292_v23  ;;  %v878_v35 = vld [vmem:[%s1214_s0 + $0x40] sm:$0xff]   ;;  %v774_v36 = vunpack.c.h.bf16 %v877_v26  ;;  %v295_v37 = vsub.f32 %v770_v27, %v970_v44 }
  0x1c   :  { %v614_v38 = vmul.f32 %v293_v28, %v293_v28  ;;  %v777_v40 = vunpack.c.l.bf16 %v878_v35  ;;  %v296_v41 = vsub.f32 %v773_v31, %v970_v44  ;;  %v615_v42 = vmul.f32 %v294_v32, %v294_v32 }
  0x1d   :  { %v670_v16 = vadd.f32 %v669_v46, %v607_v39  ;;  %v778_v46 = vunpack.c.h.bf16 %v878_v35  ;;  %v297_v13 = vsub.f32 %v774_v36, %v970_v44  ;;  %v616_v14 = vmul.f32 %v295_v37, %v295_v37 }
  0x1e   :  { %v298_v17 = vsub.f32 %v777_v40, %v970_v44  ;;  %v617_v18 = vmul.f32 %v296_v41, %v296_v41 }
  0x1f   :  { %v671_v21 = vadd.f32 %v670_v16, %v608_v45  ;;  %v879_v45 = vld [vmem:[%s1214_s0 + $0x48] sm:$0xff]   ;;  %v299_v22 = vsub.f32 %v778_v46, %v970_v44  ;;  %v618_v23 = vmul.f32 %v297_v13, %v297_v13 }
  0x20   :  { %v781_v16 = vunpack.c.l.bf16 %v879_v45  ;;  %v619_v27 = vmul.f32 %v298_v17, %v298_v17 }
  0x21   :  { %v672_v25 = vadd.f32 %v671_v21, %v609_v15  ;;  %v782_v21 = vunpack.c.h.bf16 %v879_v45  ;;  %v620_v32 = vmul.f32 %v299_v22, %v299_v22 }
  0x22   :  { %v300_v26 = vsub.f32 %v781_v16, %v970_v44 }
  0x23   :  { %v673_v30 = vadd.f32 %v672_v25, %v610_v20  ;;  %v880_v20 = vld [vmem:[%s1214_s0 + $0x50] sm:$0xff]   ;;  %v301_v31 = vsub.f32 %v782_v21, %v970_v44 }
  0x24   :  { %v785_v25 = vunpack.c.l.bf16 %v880_v20  ;;  %v621_v36 = vmul.f32 %v300_v26, %v300_v26 }
  0x25   :  { %v674_v34 = vadd.f32 %v673_v30, %v611_v24  ;;  %v786_v30 = vunpack.c.h.bf16 %v880_v20  ;;  %v622_v41 = vmul.f32 %v301_v31, %v301_v31 }
  0x26   :  { %v302_v35 = vsub.f32 %v785_v25, %v970_v44 }
  0x27   :  { %v675_v39 = vadd.f32 %v674_v34, %v612_v29  ;;  %v881_v29 = vld [vmem:[%s1214_s0 + $0x58] sm:$0xff]   ;;  %v303_v40 = vsub.f32 %v786_v30, %v970_v44 }
  0x28   :  { %v789_v34 = vunpack.c.l.bf16 %v881_v29  ;;  %v623_v46 = vmul.f32 %v302_v35, %v302_v35 }
  0x29   :  { %v676_v43 = vadd.f32 %v675_v39, %v613_v33  ;;  %v790_v39 = vunpack.c.h.bf16 %v881_v29  ;;  %v624_v17 = vmul.f32 %v303_v40, %v303_v40 }
  0x2a   :  { %v304_v45 = vsub.f32 %v789_v34, %v970_v44 }
  0x2b   :  { %v677_v15 = vadd.f32 %v676_v43, %v614_v38  ;;  %v882_v38 = vld [vmem:[%s1214_s0 + $0x60] sm:$0xff]   ;;  %v305_v16 = vsub.f32 %v790_v39, %v970_v44 }
  0x2c   :  { %v793_v43 = vunpack.c.l.bf16 %v882_v38  ;;  %v625_v21 = vmul.f32 %v304_v45, %v304_v45 }
  0x2d   :  { %v678_v19 = vadd.f32 %v677_v15, %v615_v42  ;;  %v794_v15 = vunpack.c.h.bf16 %v882_v38  ;;  %v626_v26 = vmul.f32 %v305_v16, %v305_v16 }
  0x2e   :  { %v306_v20 = vsub.f32 %v793_v43, %v970_v44 }
  0x2f   :  { %v679_v24 = vadd.f32 %v678_v19, %v616_v14  ;;  %v883_v14 = vld [vmem:[%s1214_s0 + $0x68] sm:$0xff]   ;;  %v307_v25 = vsub.f32 %v794_v15, %v970_v44 }
  0x30   :  { %v797_v19 = vunpack.c.l.bf16 %v883_v14  ;;  %v627_v30 = vmul.f32 %v306_v20, %v306_v20 }
  0x31   :  { %v680_v28 = vadd.f32 %v679_v24, %v617_v18  ;;  %v798_v24 = vunpack.c.h.bf16 %v883_v14  ;;  %v628_v35 = vmul.f32 %v307_v25, %v307_v25 }
  0x32   :  { %v308_v29 = vsub.f32 %v797_v19, %v970_v44 }
  0x33   :  { %v681_v33 = vadd.f32 %v680_v28, %v618_v23  ;;  %v884_v23 = vld [vmem:[%s1214_s0 + $0x70] sm:$0xff]   ;;  %v309_v34 = vsub.f32 %v798_v24, %v970_v44 }
  0x34   :  { %v801_v28 = vunpack.c.l.bf16 %v884_v23  ;;  %v629_v39 = vmul.f32 %v308_v29, %v308_v29 }
  0x35   :  { %v682_v37 = vadd.f32 %v681_v33, %v619_v27  ;;  %v802_v33 = vunpack.c.h.bf16 %v884_v23  ;;  %v630_v45 = vmul.f32 %v309_v34, %v309_v34 }
  0x36   :  { %v310_v38 = vsub.f32 %v801_v28, %v970_v44 }
  0x37   :  { %v683_v42 = vadd.f32 %v682_v37, %v620_v32  ;;  %v885_v32 = vld [vmem:[%s1214_s0 + $0x78] sm:$0xff]   ;;  %v311_v43 = vsub.f32 %v802_v33, %v970_v44  ;;  %v638_v33 = vmul.f32 %v976_v48, %v976_v48  ;;  %v643_v48 = vmul.f32 %v991_v53, %v991_v53 }
  0x38   :  { %v805_v37 = vunpack.c.l.bf16 %v885_v32  ;;  %v631_v15 = vmul.f32 %v310_v38, %v310_v38  ;;  %v641_v38 = vmul.f32 %v985_v51, %v985_v51  ;;  %v646_v51 = vmul.f32 %v1000_v56, %v1000_v56 }
  0x39   :  { %v684_v13 = vadd.f32 %v683_v42, %v621_v36  ;;  %v806_v42 = vunpack.c.h.bf16 %v885_v32  ;;  %v632_v19 = vmul.f32 %v311_v43, %v311_v43  ;;  %v648_v53 = vmul.f32 %v1006_v58, %v1006_v58 }
  0x3a   :  { %v312_v14 = vsub.f32 %v805_v37, %v970_v44  ;;  %v651_v56 = vmul.f32 %v1015_v61, %v1015_v61  ;;  %v653_v58 = vmul.f32 %v1021_v63, %v1021_v63  ;;  %v656_v61 = vmul.f32 %v1030_v2, %v1030_v2 }
  0x3b   :  { %v685_v18 = vadd.f32 %v684_v13, %v622_v41  ;;  %v886_v41 = vld [vmem:[%s1214_s0 + $0x80] sm:$0xff]   ;;  %v658_v63 = vmul.f32 %v1036_v4, %v1036_v4  ;;  %v661_v2 = vmul.f32 %v1045_v7, %v1045_v7  ;;  %v663_v4 = vmul.f32 %v1051_v9, %v1051_v9 }
  0x3c   :  { %v809_v13 = vunpack.c.l.bf16 %v886_v41  ;;  %v666_v7 = vmul.f32 %v1060_v12, %v1060_v12 }
  0x3d   :  { %v686_v22 = vadd.f32 %v685_v18, %v623_v46  ;;  %v313_v18 = vsub.f32 %v806_v42, %v970_v44 }
  0x3f   :  { %v687_v27 = vadd.f32 %v686_v22, %v624_v17  ;;  %v810_v17 = vunpack.c.h.bf16 %v886_v41  ;;  %v633_v22 = vmul.f32 %v312_v14, %v312_v14  ;;  %v634_v25 = vmul.f32 %v313_v18, %v313_v18 }
  0x41   :  { %v688_v31 = vadd.f32 %v687_v27, %v625_v21  ;;  %v314_v21 = vsub.f32 %v809_v13, %v970_v44  ;;  %v315_v24 = vsub.f32 %v810_v17, %v970_v44  ;;  %v640_v44 = vmul.f32 %v982_v50, %v982_v50 }
  0x42   :  { %v645_v50 = vmul.f32 %v997_v55, %v997_v55  ;;  %v650_v55 = vmul.f32 %v1012_v60, %v1012_v60  ;;  %v655_v60 = vmul.f32 %v1027_v1, %v1027_v1  ;;  %v660_v1 = vmul.f32 %v1042_v6, %v1042_v6 }
  0x43   :  { %v689_v36 = vadd.f32 %v688_v31, %v626_v26  ;;  %v635_v27 = vmul.f32 %v314_v21, %v314_v21  ;;  %v636_v29 = vmul.f32 %v315_v24, %v315_v24  ;;  %v637_v31 = vmul.f32 %v973_v47, %v973_v47 }
  0x44   :  { %v642_v47 = vmul.f32 %v988_v52, %v988_v52  ;;  %v647_v52 = vmul.f32 %v1003_v57, %v1003_v57  ;;  %v652_v57 = vmul.f32 %v1018_v62, %v1018_v62  ;;  %v657_v62 = vmul.f32 %v1033_v3, %v1033_v3 }
  0x45   :  { %v690_v40 = vadd.f32 %v689_v36, %v627_v30  ;;  %v662_v3 = vmul.f32 %v1048_v8, %v1048_v8  ;;  %v665_v6 = vmul.f32 %v1057_v11, %v1057_v11 }
  0x47   :  { %v691_v46 = vadd.f32 %v690_v40, %v628_v35  ;;  %v639_v35 = vmul.f32 %v979_v49, %v979_v49  ;;  %v644_v49 = vmul.f32 %v994_v54, %v994_v54  ;;  %v649_v54 = vmul.f32 %v1009_v59, %v1009_v59 }
  0x48   :  { %v654_v59 = vmul.f32 %v1024_v0, %v1024_v0  ;;  %v659_v0 = vmul.f32 %v1039_v5, %v1039_v5  ;;  %v664_v5 = vmul.f32 %v1054_v10, %v1054_v10  ;;  %v602_v10 = vld [vmem:[%s1213_s2] sm:$0x1] }
  0x49   :  { %v692_v16 = vadd.f32 %v691_v46, %v629_v39 }
  0x4b   :  { %v693_v20 = vadd.f32 %v692_v16, %v630_v45 }
  0x4d   :  { %v694_v23 = vadd.f32 %v693_v20, %v631_v15 }
  0x4f   :  { %v695_v26 = vadd.f32 %v694_v23, %v632_v19 }
  0x51   :  { %v696_v28 = vadd.f32 %v695_v26, %v633_v22 }
  0x53   :  { %v697_v30 = vadd.f32 %v696_v28, %v634_v25 }
  0x55   :  { %v698_v32 = vadd.f32 %v697_v30, %v635_v27 }
  0x57   :  { %v699_v34 = vadd.f32 %v698_v32, %v636_v29 }
  0x59   :  { %v700_v36 = vadd.f32 %v699_v34, %v637_v31 }
  0x5b   :  { %v701_v37 = vadd.f32 %v700_v36, %v638_v33 }
  0x5d   :  { %v702_v39 = vadd.f32 %v701_v37, %v639_v35 }
  0x5f   :  { %v703_v40 = vadd.f32 %v702_v39, %v640_v44 }
  0x61   :  { %v704_v41 = vadd.f32 %v703_v40, %v641_v38 }
  0x63   :  { %v705_v42 = vadd.f32 %v704_v41, %v642_v47 }
  0x65   :  { %v706_v43 = vadd.f32 %v705_v42, %v643_v48 }
  0x67   :  { %v707_v45 = vadd.f32 %v706_v43, %v644_v49 }
  0x69   :  { %v708_v46 = vadd.f32 %v707_v45, %v645_v50 }
  0x6b   :  { %v709_v13 = vadd.f32 %v708_v46, %v646_v51 }
  0x6d   :  { %v710_v14 = vadd.f32 %v709_v13, %v647_v52 }
  0x6f   :  { %v711_v15 = vadd.f32 %v710_v14, %v648_v53 }
  0x71   :  { %v712_v16 = vadd.f32 %v711_v15, %v649_v54 }
  0x73   :  { %v713_v17 = vadd.f32 %v712_v16, %v650_v55 }
  0x75   :  { %v714_v18 = vadd.f32 %v713_v17, %v651_v56 }
  0x77   :  { %v715_v19 = vadd.f32 %v714_v18, %v652_v57 }
  0x79   :  { %v716_v20 = vadd.f32 %v715_v19, %v653_v58 }
  0x7b   :  { %v717_v21 = vadd.f32 %v716_v20, %v654_v59 }
  0x7d   :  { %v718_v22 = vadd.f32 %v717_v21, %v655_v60 }
  0x7f   :  { %v719_v23 = vadd.f32 %v718_v22, %v656_v61 }
  0x81   :  { %v720_v24 = vadd.f32 %v719_v23, %v657_v62 }
  0x83   :  { %v721_v25 = vadd.f32 %v720_v24, %v658_v63 }
  0x85   :  { %v722_v26 = vadd.f32 %v721_v25, %v659_v0 }
  0x87   :  { %v723_v27 = vadd.f32 %v722_v26, %v660_v1 }
  0x89   :  { %v724_v28 = vadd.f32 %v723_v27, %v661_v2 }
  0x8b   :  { %v725_v29 = vadd.f32 %v724_v28, %v662_v3 }
  0x8d   :  { %v726_v30 = vadd.f32 %v725_v29, %v663_v4 }
  0x8f   :  { %v727_v31 = vadd.f32 %v726_v30, %v664_v5 }
  0x91   :  { %v728_v32 = vadd.f32 %v727_v31, %v665_v6 }
  0x93   :  { %v729_v33 = vadd.f32 %v728_v32, %v666_v7 }
  0x95   :  { %v730_v8 = vrot.slane %v729_v33, 4 }
  0x97   :  { %v731_v34 = vadd.f32 %v730_v8, %v729_v33 }
  0x99   :  { %v732_v35 = vrot.slane %v731_v34, 2 }
  0x9b   :  { %v733_v36 = vadd.f32 %v732_v35, %v731_v34 }
  0x9d   :  { %v734_v9 = vrot.slane %v733_v36, 1 }
  0x9f   :  { %v735_v44 = vadd.f32 %v734_v9, %v733_v36 }
  0xa1   :  { %v736_v37 = vadd.f32 %v735_v44, %v602_v10 }
  0xa3   :  { %737 = vst [vmem:[%s1213_s2] sm:$0x1] %v736_v37 }

// kernel: inception_b_forward.11
= control target key start
LH: loop header
LB: loop body
LE: loop exit
PB: predicated region body
PF: predicated region fallthrough
CT: control target
= control target key end

     0   :  { %s1196_s15 = smov 0   ;;  %s1357_s0 = inlined_call_operand.vmem [shape: bf16[2,1,256,128], index: 0, kind: input, shape index: {}]   ;;  %s1358_s1 = inlined_call_operand.vmem [shape: bf16[1,128,128], index: 1, kind: input, shape index: {}]   ;;  %s1359_s2 = inlined_call_operand.vmem [shape: f32[1,128], index: 2, kind: input, shape index: {}]   ;;  %s1360_s3 = inlined_call_operand.vmem [shape: bf16[2,256,128], index: 3, kind: output, shape index: {0}]   ;;  %s1361_s4 = inlined_call_operand.vmem [shape: f32[2,1,128], index: 4, kind: output, shape index: {1}]  }
   0x1 LB: > { %s846_s16 = sadd.s32 4294967295, %s1169_s15   ;;  %p850_p0 = scmp.ge.s32.totalorder %s1169_s15, 1  ;;  %s1169_s15 = sphi %s1196_s15, %s15_s15  }
   0x2   : > { %p165_p1 = scmp.lt.s32.totalorder %s1169_s15, 3 }
   0x4   : > { %p166_p2 = pnand %p850_p0, %p165_p1 }
   0x5   : > { %p194_p3 = scmp.lt.s32.totalorder (!%p166_p2), %s846_s16, 1 }
   0x6   : > { %169 = sbr.rel (%p166_p2) target bundleno = 320 (0x140), region = 32 }
   0xb   : > { %v1139_v0 = vld [vmem:[%s1358_s1 + $0x38] sm:$0xff]   ;;  %v1140_v1 = vld [vmem:[%s1358_s1 + $0x30] sm:$0xff]   ;;  %s1363_s16 = smov (!%p194_p3, %s846_s16), 1  ;;  %v1141_v2 = vld [vmem:[%s1358_s1 + $0x28] sm:$0xff]  }
   0xc   : > { %1067 = vmatprep.subr.bf16.mxu0 %v1139_v0  ;;  %1115 = vmatprep.subr.bf16.mxu1 %v1139_v0  ;;  %s914_s23 = sshll.u32 %s1363_s16, 7  ;;  %v1142_v3 = vld [vmem:[%s1358_s1 + $0x20] sm:$0xff]   ;;  %v1143_v5 = vld [vmem:[%s1358_s1 + $0x18] sm:$0xff]   ;;  %v1144_v6 = vld [vmem:[%s1358_s1 + $0x10] sm:$0xff]   ;;  %s206_s20 = scalar_lea.vmem %s1361_s4, %s1363_s16 }
   0xd   : > { %1068 = vmatpush3.bf16.msra.mxu0 %v1139_v0  ;;  %1123 = vmatpush3.bf16.msra.mxu1 %v1139_v0  ;;  %s1221_s26 = scalar_lea.vmem %s1357_s0, %s914_s23  ;;  %v1145_v8 = vld [vmem:[%s1358_s1 + $0x8] sm:$0xff]   ;;  %v1146_v9 = vld [vmem:[%s1358_s1] sm:$0xff]   ;;  %s1276_s17 = scalar_lea.vmem %s1360_s3, %s914_s23 }
   0xe   : > { %1069 = vmatprep.subr.bf16.mxu0 %v1140_v1  ;;  %1116 = vmatprep.subr.bf16.mxu1 %v1140_v1  ;;  %v1147_v4 = vld [vmem:[%s1221_s26] sm:$0xff]   ;;  %v1148_v10 = vld [vmem:[%s1221_s26 + $0x8] sm:$0xff]   ;;  %v1149_v12 = vld [vmem:[%s1221_s26 + $0x10] sm:$0xff]  }
   0xf   : > { %1083 = vmatprep.mubr.bf16.mxu0 %v1147_v4  ;;  %v1155_v7 = vld [vmem:[%s1221_s26 + $0x40] sm:$0xff]   ;;  %v1156_v11 = vld [vmem:[%s1221_s26 + $0x48] sm:$0xff]   ;;  %v1157_v13 = vld [vmem:[%s1221_s26 + $0x50] sm:$0xff]  }
  0x10   : > { %1099 = vmatprep.mubr.bf16.mxu1 %v1155_v7  ;;  %v1150_v14 = vld [vmem:[%s1221_s26 + $0x18] sm:$0xff]   ;;  %v1151_v16 = vld [vmem:[%s1221_s26 + $0x20] sm:$0xff]   ;;  %v1152_v18 = vld [vmem:[%s1221_s26 + $0x28] sm:$0xff]  }
  0x11   : > { %1070 = vmatpush3.bf16.msra.mxu0 %v1140_v1  ;;  %1124 = vmatpush3.bf16.msra.mxu1 %v1140_v1  ;;  %v1158_v15 = vld [vmem:[%s1221_s26 + $0x58] sm:$0xff]   ;;  %v1159_v17 = vld [vmem:[%s1221_s26 + $0x60] sm:$0xff]   ;;  %v1160_v19 = vld [vmem:[%s1221_s26 + $0x68] sm:$0xff]  }
  0x12   : > { %1071 = vmatprep.subr.bf16.mxu0 %v1141_v2  ;;  %1117 = vmatprep.subr.bf16.mxu1 %v1141_v2  ;;  %v1153_v20 = vld [vmem:[%s1221_s26 + $0x30] sm:$0xff]   ;;  %v1154_v22 = vld [vmem:[%s1221_s26 + $0x38] sm:$0xff]   ;;  %v1257_v26 = vld [vmem:[%s1359_s2] ss:$0 sm:$0xff] }
  0x13   : > { %v1161_v21 = vld [vmem:[%s1221_s26 + $0x70] sm:$0xff]   ;;  %v1162_v23 = vld [vmem:[%s1221_s26 + $0x78] sm:$0xff]  }
  0x15   : > { %1072 = vmatpush3.bf16.msra.mxu0 %v1141_v2  ;;  %1125 = vmatpush3.bf16.msra.mxu1 %v1141_v2 }
  0x16   : > { %1073 = vmatprep.subr.bf16.mxu0 %v1142_v3  ;;  %1118 = vmatprep.subr.bf16.mxu1 %v1142_v3 }
  0x19   : > { %1074 = vmatpush3.bf16.msra.mxu0 %v1142_v3  ;;  %1126 = vmatpush3.bf16.msra.mxu1 %v1142_v3 }
  0x1a   : > { %1075 = vmatprep.subr.bf16.mxu0 %v1143_v5  ;;  %1119 = vmatprep.subr.bf16.mxu1 %v1143_v5 }
  0x1d   : > { %1076 = vmatpush3.bf16.msra.mxu0 %v1143_v5  ;;  %1127 = vmatpush3.bf16.msra.mxu1 %v1143_v5 }
  0x1e   : > { %1077 = vmatprep.subr.bf16.mxu0 %v1144_v6  ;;  %1120 = vmatprep.subr.bf16.mxu1 %v1144_v6 }
  0x21   : > { %1078 = vmatpush3.bf16.msra.mxu0 %v1144_v6  ;;  %1128 = vmatpush3.bf16.msra.mxu1 %v1144_v6 }
  0x22   : > { %1079 = vmatprep.subr.bf16.mxu0 %v1145_v8  ;;  %1121 = vmatprep.subr.bf16.mxu1 %v1145_v8 }
  0x25   : > { %1080 = vmatpush3.bf16.msra.mxu0 %v1145_v8  ;;  %1129 = vmatpush3.bf16.msra.mxu1 %v1145_v8 }
  0x26   : > { %1081 = vmatprep.subr.bf16.mxu0 %v1146_v9  ;;  %1122 = vmatprep.subr.bf16.mxu1 %v1146_v9 }
  0x29   : > { %1082 = vmatpush3.bf16.msra.mxu0 %v1146_v9  ;;  %1130 = vmatpush3.bf16.msra.mxu1 %v1146_v9 }
  0x2c   : > { %1084 = vmatmul.mubr.bf16.vlgmr.msra.gmra.mxu0 %v1148_v10  ;;  %1100 = vmatmul.mubr.bf16.vlgmr.msra.gmra.mxu1 %v1156_v11 }
  0x2d   : > { %1087 = vmatprep.mubr.bf16.mxu0 %v1149_v12  ;;  %1103 = vmatprep.mubr.bf16.mxu1 %v1157_v13 }
  0x34   : > { %1088 = vmatmul.mubr.bf16.gmra.mxu0 %v1150_v14  ;;  %1104 = vmatmul.mubr.bf16.gmra.mxu1 %v1158_v15 }
  0x35   : > { %1091 = vmatprep.mubr.bf16.mxu0 %v1151_v16  ;;  %1107 = vmatprep.mubr.bf16.mxu1 %v1159_v17 }
  0x3c   : > { %1092 = vmatmul.mubr.bf16.gmra.mxu0 %v1152_v18  ;;  %1108 = vmatmul.mubr.bf16.gmra.mxu1 %v1160_v19 }
  0x3d   : > { %1095 = vmatprep.mubr.bf16.mxu0 %v1153_v20  ;;  %1111 = vmatprep.mubr.bf16.mxu1 %v1161_v21 }
  0x44   : > { %1096 = vmatmul.mubr.bf16.gmra.mxu0 %v1154_v22  ;;  %1112 = vmatmul.mubr.bf16.gmra.mxu1 %v1162_v23 }
  0xec   : > { %v1085_v24 = vpop.f32.mrf.mxu0  ;;  %v1101_v25 = vpop.f32.mrf.mxu1 }
  0xed   : > { %v1260_v29 = vadd.f32 %v1101_v25, %v1257_v26  ;;  %v450_v32 = vadd.f32 %v1085_v24, %v1257_v26 }
  0xee   : > { %v441_v27 = vpop.f32.mrf.mxu0  ;;  %v505_v28 = vpop.f32.mrf.mxu1 }
  0xef   : > { %v1265_v34 = vadd.f32 %v1257_v26, %v505_v28  ;;  %v442_v36 = vadd.f32 %v1257_v26, %v441_v27 }
  0xf0   : > { %v1086_v30 = vpop.f32.mrf.mxu0  ;;  %v1102_v31 = vpop.f32.mrf.mxu1 }
  0xf1   : > { %v453_v33 = vadd.f32 %v1086_v30, %v1257_v26  ;;  %v1268_v35 = vadd.f32 %v1102_v31, %v1257_v26 }
  0xf2   : > { %v444_v37 = vpop.f32.mrf.mxu0  ;;  %v508_v38 = vpop.f32.mrf.mxu1 }
  0xf3   : > { %v956_v39 = vpack.c.bf16 %v453_v33, %v450_v32  ;;  %v445_v40 = vadd.f32 %v1257_v26, %v444_v37  ;;  %v996_v41 = vpack.c.bf16 %v1268_v35, %v1260_v29  ;;  %v1282_v42 = vadd.f32 %v1257_v26, %v508_v38 }
  0xf4   : > { %v1089_v43 = vpop.f32.mrf.mxu0  ;;  %v1105_v44 = vpop.f32.mrf.mxu1 }
  0xf5   : > { %1028 = vst [vmem:[%s1276_s17 + $0x8] sm:$0xff] %v956_v39   ;;  %v951_v45 = vpack.c.bf16 %v445_v40, %v442_v36  ;;  %v728_v46 = vadd.f32 %v445_v40, %v442_v36  ;;  %1036 = vst [vmem:[%s1276_s17 + $0x48] sm:$0xff] %v996_v41   ;;  %v991_v47 = vpack.c.bf16 %v1282_v42, %v1265_v34 }
  0xf6   : > { %v457_v48 = vpop.f32.mrf.mxu0  ;;  %v521_v49 = vpop.f32.mrf.mxu1  ;;  %v1291_v51 = vadd.f32 %v1105_v44, %v1257_v26  ;;  %v466_v52 = vadd.f32 %v1089_v43, %v1257_v26 }
  0xf7   : > { %952 = vst [vmem:[%s1276_s17] sm:$0xff] %v951_v45   ;;  %v729_v50 = vadd.f32 %v728_v46, %v450_v32  ;;  %1035 = vst [vmem:[%s1276_s17 + $0x40] sm:$0xff] %v991_v47   ;;  %v458_v55 = vadd.f32 %v1257_v26, %v457_v48  ;;  %v1300_v60 = vadd.f32 %v1257_v26, %v521_v49 }
  0xf8   : > { %v1090_v53 = vpop.f32.mrf.mxu0  ;;  %v1106_v54 = vpop.f32.mrf.mxu1 }
  0xf9   : > { %v730_v56 = vadd.f32 %v729_v50, %v453_v33  ;;  %v469_v57 = vadd.f32 %v1090_v53, %v1257_v26  ;;  %v1297_v58 = vadd.f32 %v1106_v54, %v1257_v26 }
  0xfa   : > { %v460_v59 = vpop.f32.mrf.mxu0  ;;  %v524_v61 = vpop.f32.mrf.mxu1 }
  0xfb   : > { %v731_v62 = vadd.f32 %v730_v56, %v458_v55  ;;  %v966_v63 = vpack.c.bf16 %v469_v57, %v466_v52  ;;  %v461_v0 = vadd.f32 %v1257_v26, %v460_v59  ;;  %v1006_v1 = vpack.c.bf16 %v1297_v58, %v1291_v51 }
  0xfc   : > { %v1093_v2 = vpop.f32.mrf.mxu0  ;;  %v1306_v3 = vadd.f32 %v1257_v26, %v524_v61  ;;  %v1109_v4 = vpop.f32.mrf.mxu1 }
  0xfd   : > { %1030 = vst [vmem:[%s1276_s17 + $0x18] sm:$0xff] %v966_v63   ;;  %v961_v5 = vpack.c.bf16 %v461_v0, %v458_v55  ;;  %v732_v6 = vadd.f32 %v731_v62, %v461_v0  ;;  %1038 = vst [vmem:[%s1276_s17 + $0x58] sm:$0xff] %v1006_v1   ;;  %v1314_v11 = vadd.f32 %v1109_v4, %v1257_v26 }
  0xfe   : > { %v473_v7 = vpop.f32.mrf.mxu0  ;;  %v1001_v8 = vpack.c.bf16 %v1306_v3, %v1300_v60  ;;  %v537_v9 = vpop.f32.mrf.mxu1  ;;  %v482_v12 = vadd.f32 %v1093_v2, %v1257_v26 }
  0xff   : > { %1029 = vst [vmem:[%s1276_s17 + $0x10] sm:$0xff] %v961_v5   ;;  %v733_v10 = vadd.f32 %v732_v6, %v466_v52  ;;  %v474_v15 = vadd.f32 %v1257_v26, %v473_v7  ;;  %v538_v20 = vadd.f32 %v1257_v26, %v537_v9 }
 0x100   : > { %v1094_v13 = vpop.f32.mrf.mxu0  ;;  %1037 = vst [vmem:[%s1276_s17 + $0x50] sm:$0xff] %v1001_v8   ;;  %v1110_v14 = vpop.f32.mrf.mxu1 }
 0x101   : > { %v734_v16 = vadd.f32 %v733_v10, %v469_v57  ;;  %v485_v17 = vadd.f32 %v1094_v13, %v1257_v26  ;;  %v549_v18 = vadd.f32 %v1110_v14, %v1257_v26 }
 0x102   : > { %v476_v19 = vpop.f32.mrf.mxu0  ;;  %v540_v21 = vpop.f32.mrf.mxu1 }
 0x103   : > { %v735_v22 = vadd.f32 %v734_v16, %v474_v15  ;;  %v976_v23 = vpack.c.bf16 %v485_v17, %v482_v12  ;;  %v477_v24 = vadd.f32 %v1257_v26, %v476_v19  ;;  %v1016_v25 = vpack.c.bf16 %v549_v18, %v1314_v11 }
 0x104   : > { %v1097_v27 = vpop.f32.mrf.mxu0  ;;  %v541_v28 = vadd.f32 %v1257_v26, %v540_v21  ;;  %v1113_v30 = vpop.f32.mrf.mxu1 }
 0x105   : > { %1032 = vst [vmem:[%s1276_s17 + $0x28] sm:$0xff] %v976_v23   ;;  %v971_v31 = vpack.c.bf16 %v477_v24, %v474_v15  ;;  %v736_v32 = vadd.f32 %v735_v22, %v477_v24  ;;  %1040 = vst [vmem:[%s1276_s17 + $0x68] sm:$0xff] %v1016_v25   ;;  %v562_v39 = vadd.f32 %v1113_v30, %v1257_v26 }
 0x106   : > { %v489_v33 = vpop.f32.mrf.mxu0  ;;  %v1011_v36 = vpack.c.bf16 %v541_v28, %v538_v20  ;;  %v553_v37 = vpop.f32.mrf.mxu1  ;;  %v498_v40 = vadd.f32 %v1097_v27, %v1257_v26 }
 0x107   : > { %1031 = vst [vmem:[%s1276_s17 + $0x20] sm:$0xff] %v971_v31   ;;  %v737_v38 = vadd.f32 %v736_v32, %v482_v12  ;;  %v490_v44 = vadd.f32 %v1257_v26, %v489_v33  ;;  %v554_v49 = vadd.f32 %v1257_v26, %v553_v37 }
 0x108   : > { %v1098_v41 = vpop.f32.mrf.mxu0  ;;  %1039 = vst [vmem:[%s1276_s17 + $0x60] sm:$0xff] %v1011_v36   ;;  %v1114_v43 = vpop.f32.mrf.mxu1 }
 0x109   : > { %v738_v45 = vadd.f32 %v737_v38, %v485_v17  ;;  %v501_v46 = vadd.f32 %v1098_v41, %v1257_v26  ;;  %v565_v47 = vadd.f32 %v1114_v43, %v1257_v26 }
 0x10a   : > { %v492_v48 = vpop.f32.mrf.mxu0  ;;  %v556_v50 = vpop.f32.mrf.mxu1 }
 0x10b   : > { %v739_v52 = vadd.f32 %v738_v45, %v490_v44  ;;  %v986_v53 = vpack.c.bf16 %v501_v46, %v498_v40  ;;  %v493_v54 = vadd.f32 %v1257_v26, %v492_v48  ;;  %v1026_v55 = vpack.c.bf16 %v565_v47, %v562_v39 }
 0x10c   : > { %v557_v56 = vadd.f32 %v1257_v26, %v556_v50 }
 0x10d   : > { %1034 = vst [vmem:[%s1276_s17 + $0x38] sm:$0xff] %v986_v53   ;;  %v981_v57 = vpack.c.bf16 %v493_v54, %v490_v44  ;;  %v740_v59 = vadd.f32 %v739_v52, %v493_v54  ;;  %1042 = vst [vmem:[%s1276_s17 + $0x78] sm:$0xff] %v1026_v55  }
 0x10e   : > { %v1021_v61 = vpack.c.bf16 %v557_v56, %v554_v49 }
 0x10f   : > { %1033 = vst [vmem:[%s1276_s17 + $0x30] sm:$0xff] %v981_v57   ;;  %v741_v62 = vadd.f32 %v740_v59, %v498_v40 }
 0x110   : > { %1041 = vst [vmem:[%s1276_s17 + $0x70] sm:$0xff] %v1021_v61  }
 0x111   : > { %v742_v63 = vadd.f32 %v741_v62, %v501_v46 }
 0x113   : > { %v743_v0 = vadd.f32 %v742_v63, %v1265_v34 }
 0x115   : > { %v744_v1 = vadd.f32 %v743_v0, %v1282_v42 }
 0x117   : > { %v745_v2 = vadd.f32 %v744_v1, %v1260_v29 }
 0x119   : > { %v746_v4 = vadd.f32 %v745_v2, %v1268_v35 }
 0x11b   : > { %v747_v5 = vadd.f32 %v746_v4, %v1300_v60 }
 0x11d   : > { %v748_v26 = vadd.f32 %v747_v5, %v1306_v3 }
 0x11f   : > { %v749_v6 = vadd.f32 %v748_v26, %v1291_v51 }
 0x121   : > { %v750_v7 = vadd.f32 %v749_v6, %v1297_v58 }
 0x123   : > { %v751_v8 = vadd.f32 %v750_v7, %v538_v20 }
 0x125   : > { %v752_v9 = vadd.f32 %v751_v8, %v541_v28 }
 0x127   : > { %v753_v10 = vadd.f32 %v752_v9, %v1314_v11 }
 0x129   : > { %v754_v34 = vadd.f32 %v753_v10, %v549_v18 }
 0x12b   : > { %v755_v12 = vadd.f32 %v754_v34, %v554_v49 }
 0x12d   : > { %v756_v42 = vadd.f32 %v755_v12, %v557_v56 }
 0x12f   : > { %v757_v13 = vadd.f32 %v756_v42, %v562_v39 }
 0x131   : > { %v758_v29 = vadd.f32 %v757_v13, %v565_v47 }
 0x133   : > { %v759_v14 = vrot.slane %v758_v29, 4 }
 0x135   : > { %v760_v35 = vadd.f32 %v759_v14, %v758_v29 }
 0x137   : > { %v761_v15 = vrot.slane %v760_v35, 2 }
 0x139   : > { %v762_v60 = vadd.f32 %v761_v15, %v760_v35 }
 0x13b   : > { %v763_v16 = vrot.slane %v762_v60, 1 }
 0x13d   : > { %v764_v51 = vadd.f32 %v763_v16, %v762_v60 }
 0x13f   : > { %765 = vst [vmem:[%s206_s20] sm:$0x1] %v764_v51 }
 0x140 PF: > { %s15_s15 = sadd.s32 1, %s1169_s15  }
 0x141   : > { %p12_p4 = scmp.ge.s32.totalorder %s15_s15, 4  }
 0x143   :  { %14 = sbr.rel (!%p12_p4) target bundleno = 1 (0x1), region = 74 }

// kernel: inception_b_forward.10
= control target key start
LH: loop header
LB: loop body
LE: loop exit
PB: predicated region body
PF: predicated region fallthrough
CT: control target
= control target key end

     0   :  { %s5005_s15 = smov 0   ;;  %s6610_s0 = inlined_call_operand.vmem [shape: bf16[2,6,56,128], index: 0, kind: input, shape index: {}]   ;;  %s6611_s1 = inlined_call_operand.vmem [shape: bf16[9,128,384], index: 1, kind: input, shape index: {}]   ;;  %s6612_s2 = inlined_call_operand.vmem [shape: f32[1,384], index: 2, kind: input, shape index: {}]   ;;  %s6613_s3 = inlined_call_operand.vmem [shape: f32[2,49,384], index: 3, kind: output, shape index: {0}]   ;;  %s6614_s4 = inlined_call_operand.vmem [shape: f32[2,49,128], index: 4, kind: output, shape index: {1}]  }
   0x1 LB: > { %s3761_s16 = sadd.s32 4294967295, %s4977_s15   ;;  %p3765_p0 = scmp.ge.s32.totalorder %s4977_s15, 1  ;;  %s4977_s15 = sphi %s5005_s15, %s15_s15  }
   0x2   : > { %p165_p1 = scmp.lt.s32.totalorder %s4977_s15, 3 }
   0x4   : > { %p166_p2 = pnand %p3765_p0, %p165_p1 }
   0x6   : > { %169 = sbr.rel (%p166_p2) target bundleno = 524 (0x20c), region = 32 }
   0xb   : > { %v4650_v0 = vld [vmem:[%s6611_s1 + $0x16c] ss:$12 sps:$4 sm:$0xff]   ;;  %v4652_v1 = vld [vmem:[%s6611_s1 + $0x170] ss:$12 sps:$4 sm:$0xff]   ;;  %v6615_v2 = vmov 0   ;;  %p196_p3 = scmp.lt.s32.totalorder %s3761_s16, 1 }
   0xc   : > { %474 = vmatprep.mubr.bf16.mxu0 %v6615_v2  ;;  %442 = vmatprep.subr.bf16.mxu0 %v4650_v0  ;;  %v4653_v3 = vld [vmem:[%s6611_s1 + $0x168] ss:$12 sps:$4 sm:$0xff]   ;;  %v4656_v5 = vld [vmem:[%s6611_s1 + $0x158] ss:$12 sps:$4 sm:$0xff]   ;;  %v4657_v6 = vld [vmem:[%s6611_s1 + $0x150] ss:$12 sps:$4 sm:$0xff]  }
   0xd   : > { %4423 = vmatprep.subr.bf16.mxu1 %v4652_v1  ;;  %v4654_v4 = vld [vmem:[%s6611_s1 + $0x154] ss:$12 sps:$4 sm:$0xff]   ;;  %443 = vmatpush1.bf16.msra.mxu0 %v4653_v3  ;;  %v4658_v7 = vld [vmem:[%s6611_s1 + $0x13c] ss:$12 sps:$4 sm:$0xff]   ;;  %v4661_v9 = vld [vmem:[%s6611_s1 + $0x138] ss:$12 sps:$4 sm:$0xff]  }
   0xe   : > { %4424 = vmatpush3.bf16.msra.mxu1 %v4652_v1  ;;  %444 = vmatprep.subr.bf16.mxu0 %v4654_v4  ;;  %v4660_v8 = vld [vmem:[%s6611_s1 + $0x140] ss:$12 sps:$4 sm:$0xff]   ;;  %s6665_s16 = smov (!%p196_p3, %s3761_s16), 1  ;;  %v4662_v10 = vld [vmem:[%s6611_s1 + $0x124] ss:$12 sps:$4 sm:$0xff]  }
   0xf   : > { %4425 = vmatprep.subr.bf16.mxu1 %v4656_v5  ;;  %v4664_v11 = vld [vmem:[%s6611_s1 + $0x128] ss:$12 sps:$4 sm:$0xff]   ;;  %s4639_s13 = smul.u32 168, %s6665_s16  ;;  %v4665_v12 = vld [vmem:[%s6611_s1 + $0x120] ss:$12 sps:$4 sm:$0xff]  }
  0x10   : > { %v4666_v13 = vld [vmem:[%s6611_s1 + $0x10c] ss:$12 sps:$4 sm:$0xff]   ;;  %v4668_v14 = vld [vmem:[%s6611_s1 + $0x110] ss:$12 sps:$4 sm:$0xff]   ;;  %v4669_v15 = vld [vmem:[%s6611_s1 + $0x108] ss:$12 sps:$4 sm:$0xff]  }
  0x11   : > { %445 = vmatpush1.bf16.msra.mxu0 %v4657_v6  ;;  %s5067_s26 = scalar_lea.vmem %s6610_s0, %s4639_s13  ;;  %v4670_v16 = vld [vmem:[%s6611_s1 + $0xf4] ss:$12 sps:$4 sm:$0xff]   ;;  %v4672_v17 = vld [vmem:[%s6611_s1 + $0xf8] ss:$12 sps:$4 sm:$0xff]   ;;  %v4673_v20 = vld [vmem:[%s6611_s1 + $0xf0] ss:$12 sps:$4 sm:$0xff]   ;;  %s6524_s12 = scalar_lea.vmem %s6613_s3, %s4639_s13 }
  0x12   : > { %4426 = vmatpush3.bf16.msra.mxu1 %v4656_v5  ;;  %446 = vmatprep.subr.bf16.mxu0 %v4658_v7  ;;  %v5076_v18 = vld [vmem:[%s5067_s26 + $0x38] sm:$0xf]  ;;  %v5079_v19 = vld [vmem:[%s5067_s26 + $0x3c] sm:$0xf]  ;;  %v4676_v23 = vld [vmem:[%s6611_s1 + $0xe0] ss:$12 sps:$4 sm:$0xff]  }
  0x13   : > { %4427 = vmatprep.subr.bf16.mxu1 %v4660_v8  ;;  %v4674_v21 = vld [vmem:[%s6611_s1 + $0xdc] ss:$12 sps:$4 sm:$0xff]   ;;  %v3808_v22 = vcombine.low %v5076_v18, %v5079_v19  ;;  %v4677_v24 = vld [vmem:[%s6611_s1 + $0xd8] ss:$12 sps:$4 sm:$0xff]   ;;  %vm2650_vm0 = vsmask.f32 256 }
  0x14   : > { %v4678_v25 = vld [vmem:[%s6611_s1 + $0xc4] ss:$12 sps:$4 sm:$0xff]   ;;  %v4680_v26 = vld [vmem:[%s6611_s1 + $0xc8] ss:$12 sps:$4 sm:$0xff]   ;;  %vm2651_vm1 = vsmask.f32 4368 }
  0x15   : > { %447 = vmatpush1.bf16.msra.mxu0 %v4661_v9  ;;  %4439 = vmatprep.mubr.bf16.mxu1 %v3808_v22  ;;  %v5102_v27 = vld [vmem:[%s5067_s26 + $0x44] sm:$0xf]  ;;  %v4681_v29 = vld [vmem:[%s6611_s1 + $0xc0] ss:$12 sps:$4 sm:$0xff]   ;;  %v4686_v32 = vld [vmem:[%s6611_s1 + $0xb0] ss:$12 sps:$4 sm:$0xff]  }
  0x16   : > { %4428 = vmatpush3.bf16.msra.mxu1 %v4660_v8  ;;  %448 = vmatprep.subr.bf16.mxu0 %v4662_v10  ;;  %v3114_v28 = vshrl.u32 %v5102_v27, 16  ;;  %v5109_v30 = vld [vmem:[%s5067_s26 + $0x40] sm:$0xf]  ;;  %v4685_v31 = vld [vmem:[%s6611_s1 + $0xac] ss:$12 sps:$4 sm:$0xff]   ;;  %vm5149_vm2 = vmor %vm2650_vm0, %vm2651_vm1  ;;  %s4640_s24 = smul.u32 56, %s6665_s16 }
  0x17   : > { %4429 = vmatprep.subr.bf16.mxu1 %v4664_v11  ;;  %v4683_v34 = vld [vmem:[%s6611_s1 + $0xa8] ss:$12 sps:$4 sm:$0xff]   ;;  %v5124_v35 = vcombine.low %v5109_v30, %v5102_v27  ;;  %v4691_v38 = vld [vmem:[%s6611_s1 + $0x98] ss:$12 sps:$4 sm:$0xff]   ;;  %v5138_v41 = vld [vmem:[%s5067_s26 + $0x4c] sm:$0xf] }
  0x18   : > { %v5117_v33 = vrot.slane %v3114_v28, 7  ;;  %v4690_v36 = vld [vmem:[%s6611_s1 + $0x94] ss:$12 sps:$4 sm:$0xff]   ;;  %v5130_v37 = vld [vmem:[%s5067_s26 + $0x48] sm:$0xf]  ;;  %v3105_v6 = vshrl.u32 %v5109_v30, 16  ;;  %s5732_s8 = scalar_lea.vmem %s6614_s4, %s4640_s24 }
  0x19   : > { %449 = vmatpush1.bf16.msra.mxu0 %v4665_v12  ;;  %6622 = vst [vmem:[#allocation2_spill] sm:$0xff] %v5124_v35  ;;  %v3123_v39 = vshrl.u32 %v5130_v37, 16  ;;  %v3126_v40 = vshll.u32 %v5130_v37, 16  ;;  %v4688_v44 = vld [vmem:[%s6611_s1 + $0x90] ss:$12 sps:$4 sm:$0xff]   ;;  %v5158_v47 = vcombine.low %v5130_v37, %v5138_v41 }
  0x1a   : > { %4430 = vmatpush3.bf16.msra.mxu1 %v4664_v11  ;;  %450 = vmatprep.subr.bf16.mxu0 %v4666_v13  ;;  %v3121_v42 = vrot.slane %v5117_v33, 4  ;;  %v4694_v46 = vld [vmem:[%s6611_s1 + $0x7c] ss:$12 sps:$4 sm:$0xff]   ;;  %v5162_v49 = vld [vmem:[%s5067_s26 + $0x50] sm:$0x1]  ;;  %v5237_v12 = vrot.slane %v3105_v6, 7 }
  0x1b   : > { %4431 = vmatprep.subr.bf16.mxu1 %v4668_v14  ;;  %v5141_v43 = vrot.slane %v3123_v39, 7  ;;  %6625 = vst [vmem:[#allocation3_spill] sm:$0xff] %v5158_v47  ;;  %v4695_v50 = vld [vmem:[%s6611_s1 + $0x80] ss:$12 sps:$4 sm:$0xff]   ;;  %v3811_v52 = vcombine.low %v5162_v49, %v5162_v49  ;;  %v4692_v53 = vld [vmem:[%s6611_s1 + $0x78] ss:$12 sps:$4 sm:$0xff]  }
  0x1c   : > { %v4698_v54 = vld [vmem:[%s6611_s1 + $0x64] ss:$12 sps:$4 sm:$0xff]   ;;  %v4699_v55 = vld [vmem:[%s6611_s1 + $0x68] ss:$12 sps:$4 sm:$0xff]   ;;  %v212_v56 = vld [vmem:[%s5067_s26] sm:$0xf] }
  0x1d   : > { %451 = vmatpush1.bf16.msra.mxu0 %v4669_v15  ;;  %v3128_v48 = vor.u32 %v3126_v40, %v5141_v43  ;;  %v5186_v57 = vld [vmem:[%s5067_s26 + $0x4] sm:$0xf]  ;;  %v862_v58 = vmax.bf16 %v5076_v18, %v212_v56  ;;  %v4696_v60 = vld [vmem:[%s6611_s1 + $0x60] ss:$12 sps:$4 sm:$0xff]   ;;  %v4704_v62 = vld [vmem:[%s6611_s1 + $0x50] ss:$12 sps:$4 sm:$0xff]  }
  0x1e   : > { %4432 = vmatpush3.bf16.msra.mxu1 %v4668_v14  ;;  %452 = vmatprep.subr.bf16.mxu0 %v4670_v16  ;;  %v3836_v59 = vcombine.low %v212_v56, %v5186_v57  ;;  %v4703_v61 = vld [vmem:[%s6611_s1 + $0x4c] ss:$12 sps:$4 sm:$0xff]   ;;  %v4701_v63 = vld [vmem:[%s6611_s1 + $0x48] ss:$12 sps:$4 sm:$0xff]   ;;  %v4705_v3 = vld [vmem:[%s6611_s1 + $0x30] ss:$12 sps:$4 sm:$0xff]  }
  0x1f   : > { %4433 = vmatprep.subr.bf16.mxu1 %v4672_v17  ;;  %v5170_v51 = vsel %vm5149_vm2, %v3121_v42, %v3128_v48  ;;  %v4707_v0 = vld [vmem:[%s6611_s1 + $0x34] ss:$12 sps:$4 sm:$0xff]   ;;  %v4708_v1 = vld [vmem:[%s6611_s1 + $0x38] ss:$12 sps:$4 sm:$0xff]   ;;  %v4712_v4 = vld [vmem:[%s6611_s1 + $0x1c] ss:$12 sps:$4 sm:$0xff]  }
  0x20   : > { %v4713_v5 = vld [vmem:[%s6611_s1 + $0x20] ss:$12 sps:$4 sm:$0xff]   ;;  %v4710_v7 = vld [vmem:[%s6611_s1 + $0x18] ss:$12 sps:$4 sm:$0xff]   ;;  %v4717_v9 = vld [vmem:[%s6611_s1 + $0x8] ss:$12 sps:$4 sm:$0xff]  }
  0x21   : > { %453 = vmatpush1.bf16.msra.mxu0 %v4673_v20  ;;  %v4716_v8 = vld [vmem:[%s6611_s1 + $0x4] ss:$12 sps:$4 sm:$0xff]   ;;  %v5232_v10 = vld [vmem:[%s5067_s26 + $0x8] sm:$0xf]  ;;  %v5235_v11 = vld [vmem:[%s5067_s26 + $0xc] sm:$0xf] }
  0x22   : > { %4434 = vmatpush3.bf16.msra.mxu1 %v4672_v17  ;;  %454 = vmatprep.subr.bf16.mxu0 %v4674_v21  ;;  %v3117_v13 = vshll.u32 %v5102_v27, 16  ;;  %v4714_v14 = vld [vmem:[%s6611_s1] ss:$12 sps:$4 sm:$0xff]   ;;  %v4723_v16 = vld [vmem:[%s6611_s1 + $0x230] ss:$12 sps:$4 sm:$0xff]   ;;  %v3112_v20 = vrot.slane %v5237_v12, 4 }
  0x23   : > { %4435 = vmatprep.subr.bf16.mxu1 %v4676_v23  ;;  %v4722_v15 = vld [vmem:[%s6611_s1 + $0x22c] ss:$12 sps:$4 sm:$0xff]   ;;  %v5251_v17 = vld [vmem:[%s5067_s26 + $0x10] sm:$0xf]  ;;  %v5300_v39 = vld [vmem:[%s5067_s26 + $0x74] sm:$0xf] }
  0x24   : > { %v3864_v18 = vld [vmem:[%s5067_s26 + $0x70] sm:$0xf]  ;;  %v3119_v21 = vor.u32 %v3117_v13, %v5117_v33  ;;  %v4727_v28 = vld [vmem:[%s6611_s1 + $0x218] ss:$12 sps:$4 sm:$0xff]   ;;  %v4734_v48 = vld [vmem:[%s6611_s1 + $0x1e0] ss:$12 sps:$4 sm:$0xff]  }
  0x25   : > { %455 = vmatpush1.bf16.msra.mxu0 %v4677_v24  ;;  %v5263_v24 = vmax.bf16 %v3864_v18, %v862_v58  ;;  %v5287_v33 = vld [vmem:[%s5067_s26 + $0x18] sm:$0x1]  ;;  %v4736_v42 = vld [vmem:[%s6611_s1 + $0x1e4] ss:$12 sps:$4 sm:$0xff]   ;;  %v5334_v56 = vld [vmem:[%s5067_s26 + $0x1c] sm:$0xf] }
  0x26   : > { %4436 = vmatpush3.bf16.msra.mxu1 %v4676_v23  ;;  %456 = vmatprep.subr.bf16.mxu0 %v4678_v25  ;;  %v5261_v23 = vld [vmem:[%s5067_s26 + $0x14] sm:$0xf]  ;;  %v4730_v40 = vld [vmem:[%s6611_s1 + $0x1f8] ss:$12 sps:$4 sm:$0xff]   ;;  %v4742_v58 = vld [vmem:[%s6611_s1 + $0x1b0] ss:$12 sps:$4 sm:$0xff]  }
  0x27   : > { %4437 = vmatprep.subr.bf16.mxu1 %v4680_v26  ;;  %v4720_v25 = vld [vmem:[%s6611_s1 + $0x228] ss:$12 sps:$4 sm:$0xff]   ;;  %v4759_v6 = vld [vmem:[%s6611_s1 + $0x2f0] ss:$12 sps:$4 sm:$0xff]   ;;  %vm2326_vm3 = vsmask.f32 4352 }
  0x28   : > { %v4756_v13 = vld [vmem:[%s6611_s1 + $0x2e8] ss:$12 sps:$4 sm:$0xff]  }
  0x29   : > { %457 = vmatpush1.bf16.msra.mxu0 %v4681_v29  ;;  %v5276_v29 = vcombine.low %v5251_v17, %v5261_v23 }
  0x2a   : > { %4438 = vmatpush3.bf16.msra.mxu1 %v4680_v26  ;;  %727 = vmatprep.subr.bf16.mxu0 %v4685_v31  ;;  %v4726_v26 = vld [vmem:[%s6611_s1 + $0x214] ss:$12 sps:$4 sm:$0xff]   ;;  %v5281_v31 = vsel %vm5149_vm2, %v3112_v20, %v3119_v21  ;;  %v5402_v21 = vld [vmem:[%s5067_s26 + $0x88] sm:$0x1] }
  0x2b   : > { %4447 = vmatprep.subr.bf16.mxu1 %v4686_v32 }
  0x2c   : > { %475 = vmatmul.mubr.bf16.vlgmr.msra.gmra.mxu0 %v3808_v22  ;;  %v5258_v22 = vcombine.low %v5232_v10, %v5235_v11 }
  0x2d   : > { %4440 = vmatmul.mubr.bf16.vlgmr.msra.gmra.mxu1 %v5124_v35  ;;  %728 = vmatpush1.bf16.msra.mxu0 %v4683_v34  ;;  %v4732_v34 = vld [vmem:[%s6611_s1 + $0x1fc] ss:$12 sps:$4 sm:$0xff]  }
  0x2e   : > { %4448 = vmatpush3.bf16.msra.mxu1 %v4686_v32  ;;  %729 = vmatprep.subr.bf16.mxu0 %v4690_v36  ;;  %v4724_v32 = vld [vmem:[%s6611_s1 + $0x210] ss:$12 sps:$4 sm:$0xff]   ;;  %v4733_v36 = vld [vmem:[%s6611_s1 + $0x200] ss:$12 sps:$4 sm:$0xff]  }
  0x2f   : > { %4449 = vmatprep.subr.bf16.mxu1 %v4691_v38  ;;  %484 = vmatprep.mubr.bf16.mxu0 %v6615_v2 }
  0x30   : > { %4443 = vmatprep.mubr.bf16.mxu1 %v5158_v47 }
  0x31   : > { %730 = vmatpush1.bf16.msra.mxu0 %v4688_v44  ;;  %v4737_v44 = vld [vmem:[%s6611_s1 + $0x1e8] ss:$12 sps:$4 sm:$0xff]  }
  0x32   : > { %4450 = vmatpush3.bf16.msra.mxu1 %v4691_v38  ;;  %731 = vmatprep.subr.bf16.mxu0 %v4694_v46  ;;  %v3839_v38 = vcombine.low %v5287_v33, %v5287_v33  ;;  %v3903_v46 = vcombine.low %v3864_v18, %v5300_v39  ;;  %v4760_v18 = vld [vmem:[%s6611_s1 + $0x2d0] ss:$12 sps:$4 sm:$0xff]  }
  0x33   : > { %4451 = vmatprep.subr.bf16.mxu1 %v4695_v50 }
  0x34   : > { %485 = vmatmul.mubr.bf16.gmra.mxu0 %v5124_v35 }
  0x35   : > { %4444 = vmatmul.mubr.bf16.gmra.mxu1 %v3811_v52  ;;  %732 = vmatpush1.bf16.msra.mxu0 %v4692_v53  ;;  %v4738_v53 = vld [vmem:[%s6611_s1 + $0x1c8] ss:$12 sps:$4 sm:$0xff]  }
  0x36   : > { %4452 = vmatpush3.bf16.msra.mxu1 %v4695_v50  ;;  %733 = vmatprep.subr.bf16.mxu0 %v4698_v54  ;;  %v4740_v50 = vld [vmem:[%s6611_s1 + $0x1cc] ss:$12 sps:$4 sm:$0xff]   ;;  %v4744_v54 = vld [vmem:[%s6611_s1 + $0x1b4] ss:$12 sps:$4 sm:$0xff]  }
  0x37   : > { %4453 = vmatprep.subr.bf16.mxu1 %v4699_v55  ;;  %494 = vmatprep.mubr.bf16.mxu0 %v6615_v2 }
  0x38   : > { %4463 = vmatprep.mubr.bf16.mxu1 %v3836_v59 }
  0x39   : > { %734 = vmatpush1.bf16.msra.mxu0 %v4696_v60 }
  0x3a   : > { %4454 = vmatpush3.bf16.msra.mxu1 %v4699_v55  ;;  %735 = vmatprep.subr.bf16.mxu0 %v4703_v61  ;;  %v4745_v55 = vld [vmem:[%s6611_s1 + $0x1b8] ss:$12 sps:$4 sm:$0xff]   ;;  %v4749_v61 = vld [vmem:[%s6611_s1 + $0x1a0] ss:$12 sps:$4 sm:$0xff]  }
  0x3b   : > { %4455 = vmatprep.subr.bf16.mxu1 %v4704_v62 }
  0x3c   : > { %495 = vmatmul.mubr.bf16.gmra.mxu0 %v5158_v47 }
  0x3d   : > { %736 = vmatpush1.bf16.msra.mxu0 %v4701_v63  ;;  %504 = vmatprep.mubr.bf16.mxu0 %v6615_v2  ;;  %v4752_v63 = vld [vmem:[%s6611_s1 + $0x184] ss:$12 sps:$4 sm:$0xff]  }
  0x3e   : > { %4456 = vmatpush3.bf16.msra.mxu1 %v4704_v62  ;;  %737 = vmatprep.subr.bf16.mxu0 %v4707_v0  ;;  %v4746_v62 = vld [vmem:[%s6611_s1 + $0x198] ss:$12 sps:$4 sm:$0xff]   ;;  %v4753_v0 = vld [vmem:[%s6611_s1 + $0x188] ss:$12 sps:$4 sm:$0xff]  }
  0x3f   : > { %4457 = vmatprep.subr.bf16.mxu1 %v4708_v1 }
  0x41   : > { %738 = vmatpush1.bf16.msra.mxu0 %v4705_v3  ;;  %v5361_v3 = vld [vmem:[%s5067_s26 + $0x78] sm:$0xf] }
  0x42   : > { %4458 = vmatpush3.bf16.msra.mxu1 %v4708_v1  ;;  %739 = vmatprep.subr.bf16.mxu0 %v4712_v4  ;;  %v4750_v1 = vld [vmem:[%s6611_s1 + $0x180] ss:$12 sps:$4 sm:$0xff]   ;;  %v5364_v4 = vld [vmem:[%s5067_s26 + $0x7c] sm:$0xf] }
  0x43   : > { %4459 = vmatprep.subr.bf16.mxu1 %v4713_v5 }
  0x44   : > { %505 = vmatmul.mubr.bf16.gmra.mxu0 %v3811_v52  ;;  %v4741_v52 = vld [vmem:[%s6611_s1 + $0x1d0] ss:$12 sps:$4 sm:$0xff]  }
  0x45   : > { %740 = vmatpush1.bf16.msra.mxu0 %v4710_v7  ;;  %759 = vmatprep.mubr.bf16.mxu0 %v6615_v2  ;;  %v5374_v7 = vld [vmem:[%s5067_s26 + $0x80] sm:$0xf] }
  0x46   : > { %4460 = vmatpush3.bf16.msra.mxu1 %v4713_v5  ;;  %741 = vmatprep.subr.bf16.mxu0 %v4716_v8  ;;  %v4758_v5 = vld [vmem:[%s6611_s1 + $0x2ec] ss:$12 sps:$4 sm:$0xff]   ;;  %v5378_v8 = vcombine.low %v5361_v3, %v5364_v4 }
  0x47   : > { %4461 = vmatprep.subr.bf16.mxu1 %v4717_v9 }
  0x49   : > { %742 = vmatpush1.bf16.msra.mxu0 %v4714_v14  ;;  %v4762_v14 = vld [vmem:[%s6611_s1 + $0x2d4] ss:$12 sps:$4 sm:$0xff]  }
  0x4a   : > { %4462 = vmatpush3.bf16.msra.mxu1 %v4717_v9  ;;  %1060 = vmatprep.subr.bf16.mxu0 %v4722_v15  ;;  %v5381_v9 = vld [vmem:[%s5067_s26 + $0x84] sm:$0xf] }
  0x4b   : > { %4471 = vmatprep.subr.bf16.mxu1 %v4723_v16  ;;  %v4763_v15 = vld [vmem:[%s6611_s1 + $0x2d8] ss:$12 sps:$4 sm:$0xff]   ;;  %v5398_v20 = vcombine.low %v5374_v7, %v5381_v9 }
  0x4c   : > { %760 = vmatmul.mubr.bf16.vlgmr.msra.gmra.mxu0 %v3836_v59  ;;  %v4748_v59 = vld [vmem:[%s6611_s1 + $0x19c] ss:$12 sps:$4 sm:$0xff]  }
  0x4d   : > { %4464 = vmatmul.mubr.bf16.vlgmr.msra.gmra.mxu1 %v5258_v22  ;;  %1061 = vmatpush1.bf16.msra.mxu0 %v4720_v25  ;;  %v3132_v25 = vshrl.u32 %v5138_v41, 16 }
  0x4e   : > { %4472 = vmatpush3.bf16.msra.mxu1 %v4723_v16  ;;  %1062 = vmatprep.subr.bf16.mxu0 %v4726_v26  ;;  %v3096_v16 = vshrl.u32 %v5079_v19, 16  ;;  %v4768_v26 = vld [vmem:[%s6611_s1 + $0x2bc] ss:$12 sps:$4 sm:$0xff]  }
  0x4f   : > { %4473 = vmatprep.subr.bf16.mxu1 %v4727_v28  ;;  %769 = vmatprep.mubr.bf16.mxu0 %v6615_v2 }
  0x50   : > { %4467 = vmatprep.mubr.bf16.mxu1 %v5276_v29 }
  0x51   : > { %1063 = vmatpush1.bf16.msra.mxu0 %v4724_v32  ;;  %v5411_v32 = vrot.slane %v3096_v16, 7 }
  0x52   : > { %4474 = vmatpush3.bf16.msra.mxu1 %v4727_v28  ;;  %1064 = vmatprep.subr.bf16.mxu0 %v4732_v34  ;;  %v4769_v28 = vld [vmem:[%s6611_s1 + $0x2c0] ss:$12 sps:$4 sm:$0xff]   ;;  %v2677_v34 = vshrl.u32 %v5235_v11, 16 }
  0x53   : > { %4475 = vmatprep.subr.bf16.mxu1 %v4733_v36 }
  0x54   : > { %770 = vmatmul.mubr.bf16.gmra.mxu0 %v5258_v22 }
  0x55   : > { %4468 = vmatmul.mubr.bf16.gmra.mxu1 %v3839_v38  ;;  %1065 = vmatpush1.bf16.msra.mxu0 %v4730_v40  ;;  %v5420_v40 = vcombine.low %v5402_v21, %v5402_v21 }
  0x56   : > { %4476 = vmatpush3.bf16.msra.mxu1 %v4733_v36  ;;  %1066 = vmatprep.subr.bf16.mxu0 %v4736_v42  ;;  %v3108_v36 = vshll.u32 %v5109_v30, 16  ;;  %v5423_v42 = vld [vmem:[%s5067_s26 + $0x20] sm:$0xf] }
  0x57   : > { %4477 = vmatprep.subr.bf16.mxu1 %v4737_v44  ;;  %779 = vmatprep.mubr.bf16.mxu0 %v6615_v2 }
  0x58   : > { %4487 = vmatprep.mubr.bf16.mxu1 %v3903_v46 }
  0x59   : > { %1067 = vmatpush1.bf16.msra.mxu0 %v4734_v48  ;;  %v4766_v48 = vld [vmem:[%s6611_s1 + $0x2b8] ss:$12 sps:$4 sm:$0xff]  }
  0x5a   : > { %4478 = vmatpush3.bf16.msra.mxu1 %v4737_v44  ;;  %1068 = vmatprep.subr.bf16.mxu0 %v4740_v50  ;;  %v5425_v44 = vrot.slane %v3132_v25, 7  ;;  %v3563_v25 = vshll.u32 %v5374_v7, 16  ;;  %v3934_v50 = vld [vmem:[%s5067_s26 + $0x28] sm:$0xf] }
  0x5b   : > { %4479 = vmatprep.subr.bf16.mxu1 %v4741_v52 }
  0x5c   : > { %780 = vmatmul.mubr.bf16.gmra.mxu0 %v5276_v29 }
  0x5d   : > { %1069 = vmatpush1.bf16.msra.mxu0 %v4738_v53  ;;  %789 = vmatprep.mubr.bf16.mxu0 %v6615_v2  ;;  %v4772_v53 = vld [vmem:[%s6611_s1 + $0x2a4] ss:$12 sps:$4 sm:$0xff]  }
  0x5e   : > { %4480 = vmatpush3.bf16.msra.mxu1 %v4741_v52  ;;  %1070 = vmatprep.subr.bf16.mxu0 %v4744_v54  ;;  %v4773_v54 = vld [vmem:[%s6611_s1 + $0x2a8] ss:$12 sps:$4 sm:$0xff]  }
  0x5f   : > { %4481 = vmatprep.subr.bf16.mxu1 %v4745_v55 }
  0x61   : > { %1071 = vmatpush1.bf16.msra.mxu0 %v4742_v58  ;;  %v3533_v58 = vshrl.u32 %v5300_v39, 16 }
  0x62   : > { %4482 = vmatpush3.bf16.msra.mxu1 %v4745_v55  ;;  %1072 = vmatprep.subr.bf16.mxu0 %v4748_v59  ;;  %v3560_v59 = vshrl.u32 %v5374_v7, 16 }
  0x63   : > { %4483 = vmatprep.subr.bf16.mxu1 %v4749_v61  ;;  %v5465_v16 = vrot.slane %v3533_v58, 7  ;;  %v3130_v58 = vrot.slane %v5141_v43, 4  ;;  %v3542_v43 = vshrl.u32 %v5361_v3, 16 }
  0x64   : > { %790 = vmatmul.mubr.bf16.gmra.mxu0 %v3839_v38  ;;  %v3551_v38 = vshrl.u32 %v5364_v4, 16 }
  0x65   : > { %1073 = vmatpush1.bf16.msra.mxu0 %v4746_v62  ;;  %1092 = vmatprep.mubr.bf16.mxu0 %v6615_v2 }
  0x66   : > { %4484 = vmatpush3.bf16.msra.mxu1 %v4749_v61  ;;  %1074 = vmatprep.subr.bf16.mxu0 %v4752_v63  ;;  %v5444_v61 = vcombine.low %v5334_v56, %v5423_v42  ;;  %v5446_v62 = vrot.slane %v3551_v38, 7  ;;  %v3554_v63 = vshll.u32 %v5364_v4, 16  ;;  %v868_v38 = vmax.bf16 %v5162_v49, %v5287_v33 }
  0x67   : > { %4485 = vmatprep.subr.bf16.mxu1 %v4753_v0  ;;  %v866_v49 = vmax.bf16 %v5130_v37, %v5251_v17  ;;  %v3572_v37 = vshll.u32 %v5381_v9, 16 }
  0x68   : > { %v5526_v55 = vor.u32 %v3554_v63, %v5446_v62  ;;  %v5529_v52 = vmax.bf16 %v5402_v21, %v868_v38  ;;  %v3544_v21 = vrot.slane %v3542_v43, 7  ;;  %v4788_v38 = vld [vmem:[%s6611_s1 + $0x244] ss:$12 sps:$4 sm:$0xff]  }
  0x69   : > { %1075 = vmatpush1.bf16.msra.mxu0 %v4750_v1  ;;  %v2659_v1 = vshrl.u32 %v5186_v57, 16 }
  0x6a   : > { %4486 = vmatpush3.bf16.msra.mxu1 %v4753_v0  ;;  %1414 = vmatprep.subr.bf16.mxu0 %v4758_v5  ;;  %v4770_v0 = vld [vmem:[%s6611_s1 + $0x2a0] ss:$12 sps:$4 sm:$0xff]   ;;  %v2668_v5 = vshrl.u32 %v5232_v10, 16 }
  0x6b   : > { %4495 = vmatprep.subr.bf16.mxu1 %v4759_v6  ;;  %v5492_v33 = vrot.slane %v2659_v1, 7  ;;  %v4778_v1 = vld [vmem:[%s6611_s1 + $0x270] ss:$12 sps:$4 sm:$0xff]  }
  0x6c   : > { %1093 = vmatmul.mubr.bf16.vlgmr.msra.gmra.mxu0 %v3903_v46  ;;  %v3135_v46 = vshll.u32 %v5138_v41, 16  ;;  %v5494_v60 = vrot.slane %v2668_v5, 7  ;;  %v4784_v5 = vld [vmem:[%s6611_s1 + $0x25c] ss:$12 sps:$4 sm:$0xff]  }
  0x6d   : > { %4488 = vmatmul.mubr.bf16.vlgmr.msra.gmra.mxu1 %v5378_v8  ;;  %1415 = vmatpush1.bf16.msra.mxu0 %v4756_v13  ;;  %v4776_v13 = vld [vmem:[%s6611_s1 + $0x28c] ss:$12 sps:$4 sm:$0xff]  }
  0x6e   : > { %4496 = vmatpush3.bf16.msra.mxu1 %v4759_v6  ;;  %1416 = vmatprep.subr.bf16.mxu0 %v4762_v14  ;;  %v864_v6 = vmax.bf16 %v5109_v30, %v5232_v10  ;;  %v4777_v14 = vld [vmem:[%s6611_s1 + $0x290] ss:$12 sps:$4 sm:$0xff]  }
  0x6f   : > { %4497 = vmatprep.subr.bf16.mxu1 %v4763_v15  ;;  %1102 = vmatprep.mubr.bf16.mxu0 %v6615_v2 }
  0x70   : > { %4491 = vmatprep.mubr.bf16.mxu1 %v5398_v20 }
  0x71   : > { %1417 = vmatpush1.bf16.msra.mxu0 %v4760_v18  ;;  %v5467_v18 = vrot.slane %v3560_v59, 7  ;;  %v3558_v59 = vrot.slane %v5446_v62, 4 }
  0x72   : > { %4498 = vmatpush3.bf16.msra.mxu1 %v4763_v15  ;;  %1418 = vmatprep.subr.bf16.mxu0 %v4768_v26  ;;  %v3137_v15 = vor.u32 %v3135_v46, %v5425_v44  ;;  %v3569_v26 = vshrl.u32 %v5381_v9, 16  ;;  %v4774_v46 = vld [vmem:[%s6611_s1 + $0x288] ss:$12 sps:$4 sm:$0xff]  }
  0x73   : > { %4499 = vmatprep.subr.bf16.mxu1 %v4769_v28 }
  0x74   : > { %1103 = vmatmul.mubr.bf16.gmra.mxu0 %v5378_v8 }
  0x75   : > { %4492 = vmatmul.mubr.bf16.gmra.mxu1 %v5420_v40  ;;  %1419 = vmatpush1.bf16.msra.mxu0 %v4766_v48  ;;  %v4780_v48 = vld [vmem:[%s6611_s1 + $0x274] ss:$12 sps:$4 sm:$0xff]  }
  0x76   : > { %4500 = vmatpush3.bf16.msra.mxu1 %v4769_v28  ;;  %1420 = vmatprep.subr.bf16.mxu0 %v4772_v53  ;;  %v865_v28 = vmax.bf16 %v5102_v27, %v5235_v11  ;;  %v863_v53 = vmax.bf16 %v5079_v19, %v5186_v57  ;;  %v4781_v27 = vld [vmem:[%s6611_s1 + $0x278] ss:$12 sps:$4 sm:$0xff]   ;;  %v2671_v19 = vshll.u32 %v5232_v10, 16  ;;  %v5500_v57 = vsel %vm5149_vm2, %v3130_v58, %v3137_v15 }
  0x77   : > { %4501 = vmatprep.subr.bf16.mxu1 %v4773_v54  ;;  %1112 = vmatprep.mubr.bf16.mxu0 %v6615_v2  ;;  %v867_v10 = vmax.bf16 %v5138_v41, %v5261_v23  ;;  %v3933_v58 = vld [vmem:[%s5067_s26 + $0x24] sm:$0xf]  ;;  %v3110_v41 = vor.u32 %v3108_v36, %v5237_v12  ;;  %v2675_v12 = vrot.slane %v5494_v60, 4  ;;  %v3103_v36 = vrot.slane %v5411_v32, 4 }
  0x78   : > { %4511 = vmatprep.mubr.bf16.mxu1 %v5444_v61  ;;  %v1217_v15 = vmax.bf16 %v5300_v39, %v863_v53  ;;  %v5533_v39 = vmax.bf16 %v5374_v7, %v866_v49  ;;  %v2673_v30 = vor.u32 %v2671_v19, %v5494_v60  ;;  %v4782_v7 = vld [vmem:[%s6611_s1 + $0x258] ss:$12 sps:$4 sm:$0xff]   ;;  %v2680_v53 = vshll.u32 %v5235_v11, 16 }
  0x79   : > { %1421 = vmatpush1.bf16.msra.mxu0 %v4770_v0  ;;  %v5503_v0 = vrot.slane %v3569_v26, 7  ;;  %v1219_v26 = vmax.bf16 %v5364_v4, %v865_v28  ;;  %v2666_v4 = vrot.slane %v5492_v33, 4  ;;  %v5548_v63 = vmax.bf16 %v5381_v9, %v867_v10 }
  0x7a   : > { %4502 = vmatpush3.bf16.msra.mxu1 %v4773_v54  ;;  %1422 = vmatprep.subr.bf16.mxu0 %v4776_v13  ;;  %v3565_v54 = vor.u32 %v3563_v25, %v5467_v18  ;;  %v4785_v13 = vld [vmem:[%s6611_s1 + $0x260] ss:$12 sps:$4 sm:$0xff]   ;;  %v1218_v25 = vmax.bf16 %v5361_v3, %v864_v6  ;;  %v1571_v9 = vmax.bf16 %v5423_v42, %v1217_v15  ;;  %v3999_v42 = vld [vmem:[%s5067_s26 + $0x58] sm:$0xf] }
  0x7b   : > { %4503 = vmatprep.subr.bf16.mxu1 %v4777_v14  ;;  %v5551_v6 = vld [vmem:[%s5067_s26 + $0x2c] sm:$0xf]  ;;  %v5555_v28 = vor.u32 %v3572_v37, %v5503_v0  ;;  %v5576_v19 = vcombine.low %v3933_v58, %v3934_v50  ;;  %v5579_v37 = vld [vmem:[%s5067_s26 + $0x34] sm:$0x1]  ;;  %v2674_v11 = vsel %vm5149_vm2, %v2666_v4, %v2673_v30  ;;  %v5608_v4 = vld [vmem:[%s5067_s26 + $0x60] sm:$0xf] }
  0x7c   : > { %1113 = vmatmul.mubr.bf16.gmra.mxu0 %v5398_v20  ;;  %v5541_v62 = vsel %vm5149_vm2, %v3558_v59, %v3565_v54  ;;  %v6626_v59 = vshrl.u32 %v5251_v17, 16  ;;  %v1572_v43 = vmax.bf16 %v3933_v58, %v1218_v25  ;;  %v1573_v54 = vmax.bf16 %v3934_v50, %v1219_v26  ;;  %v4786_v50 = vld [vmem:[%s6611_s1 + $0x240] ss:$12 sps:$4 sm:$0xff]   ;;  %v5601_v25 = vld [vmem:[%s5067_s26 + $0x5c] sm:$0xf] }
  0x7d   : > { %1423 = vmatpush1.bf16.msra.mxu0 %v4774_v46  ;;  %1122 = vmatprep.mubr.bf16.mxu0 %v6615_v2  ;;  %v5563_v46 = vld [vmem:[%s6611_s1 + $0x248] ss:$12 sps:$4 sm:$0xff]   ;;  %v4794_v58 = vld [vmem:[%s6611_s1 + $0x3ac] ss:$12 sps:$4 sm:$0xff]  }
  0x7e   : > { %4504 = vmatpush3.bf16.msra.mxu1 %v4777_v14  ;;  %1424 = vmatprep.subr.bf16.mxu0 %v4780_v48  ;;  %v3545_v14 = vshll.u32 %v5361_v3, 16  ;;  %v5567_v48 = vld [vmem:[%s5067_s26 + $0x30] sm:$0xf]  ;;  %v2679_v3 = vrot.slane %v2677_v34, 7  ;;  %v5574_v49 = vrot.slane %v6626_v59, 7  ;;  %v5586_v34 = vsel %vm5149_vm2, %v3103_v36, %v3110_v41 }
  0x7f   : > { %4505 = vmatprep.subr.bf16.mxu1 %v4781_v27  ;;  %v5594_v10 = vcombine.low %v5551_v6, %v5567_v48  ;;  %v1925_v41 = vmax.bf16 %v3999_v42, %v1571_v9  ;;  %v5614_v59 = vld [vmem:[%s5067_s26 + $0x54] sm:$0xf] }
  0x80   : > { %v3547_v26 = vor.u32 %v3545_v14, %v3544_v21  ;;  %v2682_v30 = vor.u32 %v2680_v53, %v2679_v3  ;;  %v2684_v36 = vrot.slane %v2679_v3, 4  ;;  %v6628_v14 = vshrl.u32 %v5261_v23, 16 }
  0x81   : > { %1425 = vmatpush1.bf16.msra.mxu0 %v4778_v1  ;;  %v3549_v1 = vrot.slane %v3544_v21, 4  ;;  %v1927_v21 = vmax.bf16 %v5608_v4, %v1573_v54  ;;  %v2698_v53 = vshll.u32 %v5261_v23, 16  ;;  %v2336_v3 = vshrl.u32 %v5258_v22, 16 }
  0x82   : > { %4506 = vmatpush3.bf16.msra.mxu1 %v4781_v27  ;;  %1426 = vmatprep.subr.bf16.mxu0 %v4784_v5  ;;  %v3540_v27 = vrot.slane %v5465_v16, 4  ;;  %v1574_v5 = vmax.bf16 %v5551_v6, %v5533_v39  ;;  %v6627_v39 = vshll.u32 %v5251_v17, 16  ;;  %v5620_v9 = vrot.slane %v6628_v14, 7  ;;  %v4795_v17 = vld [vmem:[%s6611_s1 + $0x3b0] ss:$12 sps:$4 sm:$0xff]  }
  0x83   : > { %4507 = vmatprep.subr.bf16.mxu1 %v4785_v13  ;;  %v2339_v23 = vshll.u32 %v5258_v22, 16  ;;  %v2348_v22 = vshll.u32 %v5276_v29, 16  ;;  %v5655_v14 = vld [vmem:[%s6611_s1 + $0x398] ss:$12 sps:$4 sm:$0xff]   ;;  %v2693_v35 = vrot.slane %v5574_v49, 4 }
  0x84   : > { %1123 = vmatmul.mubr.bf16.gmra.mxu0 %v5420_v40  ;;  %v2691_v6 = vor.u32 %v6627_v39, %v5574_v49  ;;  %v1926_v40 = vmax.bf16 %v5601_v25, %v1572_v43  ;;  %v5640_v43 = vld [vmem:[%s5067_s26 + $0x90] sm:$0xf]  ;;  %v3548_v54 = vsel %vm5149_vm2, %v3540_v27, %v3547_v26  ;;  %v4798_v39 = vld [vmem:[%s6611_s1 + $0x394] ss:$12 sps:$4 sm:$0xff]   ;;  %v5661_v27 = vld [vmem:[%s5067_s26 + $0x64] sm:$0xf]  ;;  %v2683_v26 = vsel %vm5149_vm2, %v2675_v12, %v2682_v30 }
  0x85   : > { %1427 = vmatpush1.bf16.msra.mxu0 %v4782_v7  ;;  %v1576_v7 = vmax.bf16 %v5579_v37, %v5529_v52  ;;  %1446 = vmatprep.mubr.bf16.mxu0 %v6615_v2  ;;  %v3557_v52 = vsel %vm5149_vm2, %v3549_v1, %v5526_v55  ;;  %v5658_v2 = vcombine.low %v5614_v59, %v3999_v42  ;;  %v5665_v1 = vld [vmem:[%s5067_s26 + $0x94] sm:$0xf]  ;;  %v5678_v42 = vld [vmem:[%s5067_s26 + $0x68] sm:$0xf]  ;;  %v5686_v30 = vld [vmem:[%s5067_s26 + $0x6c] sm:$0x1] }
  0x86   : > { %4508 = vmatpush3.bf16.msra.mxu1 %v4785_v13  ;;  %1428 = vmatprep.subr.bf16.mxu0 %v4788_v38  ;;  %v5629_v13 = vcombine.low %v5579_v37, %v5579_v37  ;;  %v4792_v38 = vld [vmem:[%s6611_s1 + $0x3a8] ss:$12 sps:$4 sm:$0xff]   ;;  %v2345_v37 = vshrl.u32 %v5276_v29, 16  ;;  %v2279_v55 = vmax.bf16 %v5640_v43, %v1925_v41  ;;  %6629 = vst [vmem:[#allocation4_spill] sm:$0xff] %v5665_v1  ;;  %v5668_v29 = vld [vmem:[%s5067_s26 + $0x98] sm:$0xf] }
  0x87   : > { %4509 = vmatprep.subr.bf16.mxu1 %v5563_v46  ;;  %v2692_v15 = vsel %vm5149_vm2, %v2684_v36, %v2691_v6  ;;  %v2280_v41 = vmax.bf16 %v5665_v1, %v1926_v40  ;;  %v2281_v47 = vmax.bf16 %v5668_v29, %v1927_v21  ;;  %v2700_v60 = vor.u32 %v2698_v53, %v5620_v9 }
  0x88   : > { %v1928_v12 = vmax.bf16 %v5661_v27, %v1574_v5  ;;  %v2720_v36 = vmax.bf16 %v2674_v11, %v2279_v55  ;;  %v2341_v6 = vrot.slane %v2339_v23, 4  ;;  %v2347_v1 = vrot.slane %v2345_v37, 3  ;;  %v4804_v11 = vld [vmem:[%s6611_s1 + $0x37c] ss:$12 sps:$4 sm:$0xff]   ;;  %v4805_v5 = vld [vmem:[%s6611_s1 + $0x380] ss:$12 sps:$4 sm:$0xff]  }
  0x89   : > { %1429 = vmatpush1.bf16.msra.mxu0 %v4786_v50  ;;  %v2338_v50 = vrot.slane %v2336_v3, 3  ;;  %v2721_v40 = vmax.bf16 %v2683_v26, %v2280_v41  ;;  %v2722_v21 = vmax.bf16 %v2692_v15, %v2281_v47  ;;  %v2350_v49 = vrot.slane %v2348_v22, 4  ;;  %v4809_v55 = vld [vmem:[%s6611_s1 + $0x368] ss:$12 sps:$4 sm:$0xff]  }
  0x8a   : > { %4510 = vmatpush3.bf16.msra.mxu1 %v5563_v46  ;;  %1768 = vmatprep.subr.bf16.mxu0 %v4794_v58  ;;  %v4796_v46 = vld [vmem:[%s6611_s1 + $0x390] ss:$12 sps:$4 sm:$0xff]   ;;  %v6630_v58 = vmax.bf16 %v5567_v48, %v5548_v63  ;;  %v5707_v15 = vmax.bf16 %v5686_v30, %v1576_v7  ;;  %v2702_v53 = vrot.slane %v5620_v9, 4  ;;  %v2701_v23 = vsel %vm5149_vm2, %v2693_v35, %v2700_v60  ;;  %v5718_v7 = vld [vmem:[%s5067_s26 + $0x18] sm:$0xf] }
  0x8b   : > { %4519 = vmatprep.subr.bf16.mxu1 %v4795_v17  ;;  %v3158_v3 = vmax.bf16 %v5281_v31, %v2721_v40  ;;  %v3139_v63 = vrot.slane %v5425_v44, 4  ;;  %v3159_v48 = vmax.bf16 %v5170_v51, %v2722_v21  ;;  %v3567_v9 = vrot.slane %v5467_v18, 4  ;;  %v4802_v35 = vld [vmem:[%s6611_s1 + $0x378] ss:$12 sps:$4 sm:$0xff]   ;;  %v5735_v18 = vld [vmem:[%s5067_s26 + $0x9c] sm:$0xf] }
  0x8c   : > { %1447 = vmatmul.mubr.bf16.vlgmr.msra.gmra.mxu0 %v5444_v61  ;;  %v5704_v47 = vmax.bf16 %v5678_v42, %v6630_v58  ;;  %v3157_v61 = vmax.bf16 %v5586_v34, %v2720_v36  ;;  %v6631_v31 = vmov 0   ;;  %v5741_v37 = vor.u32 %v2341_v6, %v2338_v50  ;;  %v5756_v36 = vld [vmem:[%s5067_s26 + $0x50] sm:$0xf] }
  0x8d   : > { %4512 = vmatmul.mubr.bf16.vlgmr.msra.gmra.mxu1 %v5576_v19  ;;  %1769 = vmatpush1.bf16.msra.mxu0 %v4792_v38  ;;  %v3595_v51 = vmax.bf16 %v3557_v52, %v3158_v3  ;;  %v5738_v38 = vld [vmem:[%s5067_s26 + $0xa0] sm:$0xf]  ;;  %v5743_v22 = vor.u32 %v2350_v49, %v2347_v1  ;;  %v2282_v26 = vmax.bf16 %v5735_v18, %v1928_v12  ;;  %v2707_v60 = vshll.u32 %v5718_v7, 16  ;;  %v5759_v1 = vld [vmem:[%s5067_s26 + $0x88] sm:$0xf] }
  0x8e   : > { %4520 = vmatpush3.bf16.msra.mxu1 %v4795_v17  ;;  %1770 = vmatprep.subr.bf16.mxu0 %v4798_v39  ;;  %v3594_v34 = vmax.bf16 %v3548_v54, %v3157_v61  ;;  %v3576_v17 = vrot.slane %v5503_v0, 4  ;;  %v2704_v54 = vshrl.u32 %v5718_v7, 16  ;;  %v4808_v39 = vld [vmem:[%s6611_s1 + $0x364] ss:$12 sps:$4 sm:$0xff]   ;;  %v2283_v41 = vmax.bf16 %v5738_v38, %v5704_v47 }
  0x8f   : > { %4521 = vmatprep.subr.bf16.mxu1 %v5655_v14  ;;  %1456 = vmatprep.mubr.bf16.mxu0 %v6631_v31  ;;  %v3661_v50 = vunpack.c.l.bf16 %v3595_v51  ;;  %v3141_v40 = vshrl.u32 %v5756_v36, 16  ;;  %v3144_v21 = vshll.u32 %v5756_v36, 16  ;;  %v5765_v12 = vld [vmem:[%s5067_s26 + $0xa4] sm:$0x1]  ;;  %v2723_v49 = vmax.bf16 %v2701_v23, %v2282_v26 }
  0x90   : > { %4515 = vmatprep.mubr.bf16.mxu1 %v5594_v10  ;;  %v3660_v52 = vunpack.c.l.bf16 %v3594_v34  ;;  %v2706_v6 = vrot.slane %v2704_v54, 7  ;;  %v3578_v58 = vshrl.u32 %v5759_v1, 16  ;;  %v3581_v47 = vshll.u32 %v5759_v1, 16 }
  0x91   : > { %1771 = vmatpush1.bf16.msra.mxu0 %v4796_v46  ;;  %v3596_v46 = vmax.bf16 %v5541_v62, %v3159_v48  ;;  %3668 = vst [vmem:[%s5732_s8 + $0x10] sm:$0xff] %v3661_v50  ;;  %v3143_v61 = vrot.slane %v3141_v40, 7  ;;  %v3575_v3 = vsel %vm5149_vm2, %v3567_v9, %v5555_v28  ;;  %v2284_v34 = vmax.bf16 %v5765_v12, %v5707_v15  ;;  %v4806_v48 = vld [vmem:[%s6611_s1 + $0x360] ss:$12 sps:$4 sm:$0xff]  }
  0x92   : > { %4522 = vmatpush3.bf16.msra.mxu1 %v5655_v14  ;;  %1772 = vmatprep.subr.bf16.mxu0 %v4804_v11  ;;  %3667 = vst [vmem:[%s5732_s8 + $0x8] sm:$0xff] %v3660_v52  ;;  %v2709_v14 = vor.u32 %v2707_v60, %v2706_v6  ;;  %v3160_v11 = vmax.bf16 %v5500_v57, %v2723_v49  ;;  %v3580_v23 = vrot.slane %v3578_v58, 7  ;;  %v2711_v62 = vrot.slane %v2706_v6, 4  ;;  %v4812_v57 = vld [vmem:[%s6611_s1 + $0x34c] ss:$12 sps:$4 sm:$0xff]  }
  0x93   : > { %4523 = vmatprep.subr.bf16.mxu1 %v4805_v5  ;;  %v3662_v51 = vunpack.c.l.bf16 %v3596_v46  ;;  %v3146_v15 = vor.u32 %v3144_v21, %v3143_v61  ;;  %v3148_v9 = vrot.slane %v3143_v61, 4  ;;  %v4165_v60 = vcombine.low %v5718_v7, %v5718_v7  ;;  %v4817_v7 = vld [vmem:[%s6611_s1 + $0x338] ss:$12 sps:$4 sm:$0xff]   ;;  %v4814_v49 = vld [vmem:[%s6611_s1 + $0x330] ss:$12 sps:$4 sm:$0xff]  }
  0x94   : > { %1457 = vmatmul.mubr.bf16.gmra.mxu0 %v5576_v19  ;;  %v2710_v28 = vsel %vm5149_vm2, %v2702_v53, %v2709_v14  ;;  %v5788_v19 = vsel %vm2326_vm3, %v5741_v37, %v5743_v22  ;;  %v3583_v54 = vor.u32 %v3581_v47, %v3580_v23  ;;  %v3597_v53 = vmax.bf16 %v3575_v3, %v3160_v11  ;;  %v4820_v58 = vld [vmem:[%s6611_s1 + $0x31c] ss:$12 sps:$4 sm:$0xff]   ;;  %v4821_v46 = vld [vmem:[%s6611_s1 + $0x320] ss:$12 sps:$4 sm:$0xff]   ;;  %v4818_v61 = vld [vmem:[%s6611_s1 + $0x318] ss:$12 sps:$4 sm:$0xff]  }
  0x95   : > { %4516 = vmatmul.mubr.bf16.gmra.mxu1 %v5629_v13  ;;  %1773 = vmatpush1.bf16.msra.mxu0 %v4802_v35  ;;  %v2724_v35 = vmax.bf16 %v2710_v28, %v2283_v41  ;;  %3669 = vst [vmem:[%s5732_s8 + $0x18] sm:$0xff] %v3662_v51  ;;  %v2725_v52 = vmax.bf16 %v2711_v62, %v2284_v34  ;;  %v3585_v26 = vrot.slane %v3580_v23, 4  ;;  %v4810_v41 = vld [vmem:[%s6611_s1 + $0x348] ss:$12 sps:$4 sm:$0xff]   ;;  %v2357_v14 = vshll.u32 %v4165_v60, 16 }
  0x96   : > { %4524 = vmatpush3.bf16.msra.mxu1 %v4805_v5  ;;  %1774 = vmatprep.subr.bf16.mxu0 %v4808_v39  ;;  %v4813_v5 = vld [vmem:[%s6611_s1 + $0x350] ss:$12 sps:$4 sm:$0xff]   ;;  %v3147_v39 = vsel %vm5149_vm2, %v3139_v63, %v3146_v15  ;;  %v3584_v6 = vsel %vm5149_vm2, %v3576_v17, %v3583_v54  ;;  %v3663_v44 = vunpack.c.l.bf16 %v3597_v53  ;;  %v4816_v63 = vld [vmem:[%s6611_s1 + $0x334] ss:$12 sps:$4 sm:$0xff]   ;;  %v2354_v17 = vshrl.u32 %v4165_v60, 16 }
  0x97   : > { %4525 = vmatprep.subr.bf16.mxu1 %v4809_v55  ;;  %1466 = vmatprep.mubr.bf16.mxu0 %v6631_v31  ;;  %v3161_v50 = vmax.bf16 %v3147_v39, %v2724_v35  ;;  %v3162_v40 = vmax.bf16 %v3148_v9, %v2725_v52  ;;  %v2359_v3 = vrot.slane %v2357_v14, 4  ;;  %v4824_v34 = vld [vmem:[%s6611_s1 + $0x304] ss:$12 sps:$4 sm:$0xff]   ;;  %v4825_v11 = vld [vmem:[%s6611_s1 + $0x308] ss:$12 sps:$4 sm:$0xff]   ;;  %v4038_v28 = vcombine.low %v5601_v25, %v5608_v4 }
  0x98   : > { %4535 = vmatprep.mubr.bf16.mxu1 %v5658_v2  ;;  %3670 = vst [vmem:[%s5732_s8 + $0x20] sm:$0xff] %v3663_v44  ;;  %v4822_v51 = vld [vmem:[%s6611_s1 + $0x300] ss:$12 sps:$4 sm:$0xff]   ;;  %v4828_v15 = vld [vmem:[%s6611_s1 + $0x468] ss:$12 sps:$4 sm:$0xff]   ;;  %v4039_v25 = vcombine.low %v5661_v27, %v5678_v42 }
  0x99   : > { %1775 = vmatpush1.bf16.msra.mxu0 %v4806_v48  ;;  %v3598_v21 = vmax.bf16 %v3584_v6, %v3161_v50  ;;  %v3599_v0 = vmax.bf16 %v3585_v26, %v3162_v40  ;;  %v4830_v62 = vld [vmem:[%s6611_s1 + $0x46c] ss:$12 sps:$4 sm:$0xff]   ;;  %v4832_v4 = vld [vmem:[%s6611_s1 + $0x450] ss:$12 sps:$4 sm:$0xff]   ;;  %v2285_v26 = vld [vmem:[%s5067_s26] sm:$0x8]  ;;  %v4287_v6 = vcombine.low %v5759_v1, %v5759_v1 }
  0x9a   : > { %4526 = vmatpush3.bf16.msra.mxu1 %v4809_v55  ;;  %1776 = vmatprep.subr.bf16.mxu0 %v4812_v57  ;;  %v4835_v9 = vld [vmem:[%s6611_s1 + $0x458] ss:$12 sps:$4 sm:$0xff]   ;;  %v4840_v57 = vld [vmem:[%s6611_s1 + $0x43c] ss:$12 sps:$4 sm:$0xff]   ;;  %v5888_v27 = vld [vmem:[%s5067_s26 + $0x8c] sm:$0xf] }
  0x9b   : > { %4527 = vmatprep.subr.bf16.mxu1 %v4813_v5  ;;  %v3664_v55 = vunpack.c.l.bf16 %v3598_v21  ;;  %v3665_v47 = vunpack.c.l.bf16 %v3599_v0  ;;  %v4838_v42 = vld [vmem:[%s6611_s1 + $0x438] ss:$12 sps:$4 sm:$0xff]   ;;  %v4842_v54 = vld [vmem:[%s6611_s1 + $0x420] ss:$12 sps:$4 sm:$0xff]   ;;  %v5904_v53 = vcombine.low %v5888_v27, %v5640_v43  ;;  %v4849_v52 = vld [vmem:[%s6611_s1 + $0x410] ss:$12 sps:$4 sm:$0xff]   ;;  %v6632_v21 = vmax.bf16 %v5334_v56, %v5263_v24 }
  0x9c   : > { %1467 = vmatmul.mubr.bf16.gmra.mxu0 %v5594_v10  ;;  %v5832_v10 = vrot.slane %v2354_v17, 3  ;;  %v4844_v35 = vld [vmem:[%s6611_s1 + $0x424] ss:$12 sps:$4 sm:$0xff]   ;;  %v4848_v39 = vld [vmem:[%s6611_s1 + $0x40c] ss:$12 sps:$4 sm:$0xff]   ;;  %v2654_v43 = vshrl.u32 %v2285_v26, 16 }
  0x9d   : > { %1777 = vmatpush1.bf16.msra.mxu0 %v4810_v41  ;;  %3671 = vst [vmem:[%s5732_s8 + $0x28] sm:$0xff] %v3664_v55  ;;  %1476 = vmatprep.mubr.bf16.mxu0 %v6631_v31  ;;  %3672 = vst [vmem:[%s5732_s8 + $0x30] sm:$0x1] %v3665_v47  ;;  %v4968_v60 = vld [vmem:[%s5067_s26 + $0x4] sm:$0xf]  ;;  %v1924_v1 = vmax.bf16 %v5614_v59, %v6632_v21  ;;  %v3225_v47 = vshll.u32 %v5398_v20, 16 }
  0x9e   : > { %4528 = vmatpush3.bf16.msra.mxu1 %v4813_v5  ;;  %1778 = vmatprep.subr.bf16.mxu0 %v4816_v63  ;;  %v2360_v23 = vor.u32 %v2359_v3, %v5832_v10  ;;  %v4841_v5 = vld [vmem:[%s6611_s1 + $0x440] ss:$12 sps:$4 sm:$0xff]   ;;  %v2662_v41 = vshll.u32 %v4968_v60, 16  ;;  %v4846_v50 = vld [vmem:[%s6611_s1 + $0x408] ss:$12 sps:$4 sm:$0xff]   ;;  %v4190_v17 = vrot.slane %v2654_v43, 11 }
  0x9f   : > { %4529 = vmatprep.subr.bf16.mxu1 %v4817_v7  ;;  %v5923_v44 = vld [vmem:[%s5067_s26 + $0x3c] sm:$0xf]  ;;  %v4852_v40 = vld [vmem:[%s6611_s1 + $0x3f4] ss:$12 sps:$4 sm:$0xff]   ;;  %v5937_v0 = vld [vmem:[%s5067_s26 + $0x38] sm:$0x8] }
  0xa0   : > { %v5853_v48 = vsel %vm2326_vm3, %v5743_v22, %v2360_v23  ;;  %v4834_v22 = vld [vmem:[%s6611_s1 + $0x454] ss:$12 sps:$4 sm:$0xff]   ;;  %v3099_v63 = vshll.u32 %v5923_v44, 16  ;;  %v2664_v55 = vor.u32 %v2662_v41, %v5492_v33  ;;  %v4850_v24 = vld [vmem:[%s6611_s1 + $0x3f0] ss:$12 sps:$4 sm:$0xff]   ;;  %v3234_v23 = vshll.u32 %v4287_v6, 16 }
  0xa1   : > { %1779 = vmatpush1.bf16.msra.mxu0 %v4814_v49  ;;  %v3091_v49 = vshrl.u32 %v5937_v0, 16  ;;  %v4970_v14 = vld [vmem:[%s5067_s26 + $0x74] sm:$0xf]  ;;  %v4856_v56 = vld [vmem:[%s6611_s1 + $0x3dc] ss:$12 sps:$4 sm:$0xff]  }
  0xa2   : > { %4530 = vmatpush3.bf16.msra.mxu1 %v4817_v7  ;;  %1780 = vmatprep.subr.bf16.mxu0 %v4820_v58  ;;  %v4853_v7 = vld [vmem:[%s6611_s1 + $0x3f8] ss:$12 sps:$4 sm:$0xff]   ;;  %v3222_v58 = vshrl.u32 %v5398_v20, 16  ;;  %v4857_v33 = vld [vmem:[%s6611_s1 + $0x3e0] ss:$12 sps:$4 sm:$0xff]   ;;  %v2278_v20 = vmax.bf16 %v5888_v27, %v1924_v1  ;;  %v2665_v3 = vsel %vm5149_vm2, %v4190_v17, %v2664_v55 }
  0xa3   : > { %4531 = vmatprep.subr.bf16.mxu1 %v4821_v46  ;;  %v4854_v59 = vld [vmem:[%s6611_s1 + $0x3d8] ss:$12 sps:$4 sm:$0xff]   ;;  %v4252_v27 = vld [vmem:[%s5067_s26 + $0x70] sm:$0x8]  ;;  %v4864_v21 = vld [vmem:[%s6611_s1 + $0x528] ss:$12 sps:$4 sm:$0xff]  }
  0xa4   : > { %1477 = vmatmul.mubr.bf16.gmra.mxu0 %v5629_v13  ;;  %v4831_v13 = vld [vmem:[%s6611_s1 + $0x470] ss:$12 sps:$4 sm:$0xff]  }
  0xa5   : > { %1781 = vmatpush1.bf16.msra.mxu0 %v4818_v61  ;;  %1800 = vmatprep.mubr.bf16.mxu0 %v6631_v31  ;;  %v3536_v61 = vshll.u32 %v4970_v14, 16 }
  0xa6   : > { %4532 = vmatpush3.bf16.msra.mxu1 %v4821_v46  ;;  %1782 = vmatprep.subr.bf16.mxu0 %v4824_v34  ;;  %v3231_v46 = vshrl.u32 %v4287_v6, 16  ;;  %v4251_v34 = vrot.slane %v3091_v49, 11  ;;  %v6633_v6 = vld [vmem:[#allocation4_spill] sm:$0xff] }
  0xa7   : > { %4533 = vmatprep.subr.bf16.mxu1 %v4825_v11 }
  0xa9   : > { %1783 = vmatpush1.bf16.msra.mxu0 %v4822_v51  ;;  %v4860_v51 = vld [vmem:[%s6611_s1 + $0x3c4] ss:$12 sps:$4 sm:$0xff]  }
  0xaa   : > { %4534 = vmatpush3.bf16.msra.mxu1 %v4825_v11  ;;  %2122 = vmatprep.subr.bf16.mxu0 %v4830_v62  ;;  %v3101_v11 = vor.u32 %v3099_v63, %v5411_v32  ;;  %v3224_v62 = vrot.slane %v3222_v58, 3  ;;  %v4861_v32 = vld [vmem:[%s6611_s1 + $0x3c8] ss:$12 sps:$4 sm:$0xff]   ;;  %v4105_v63 = vcombine.low %v6633_v6, %v5668_v29  ;;  %v4871_v58 = vld [vmem:[%s6611_s1 + $0x518] ss:$12 sps:$4 sm:$0xff]  }
  0xab   : > { %4543 = vmatprep.subr.bf16.mxu1 %v4831_v13  ;;  %v4870_v29 = vld [vmem:[%s6611_s1 + $0x514] ss:$12 sps:$4 sm:$0xff]  }
  0xac   : > { %1801 = vmatmul.mubr.bf16.vlgmr.msra.gmra.mxu0 %v5658_v2  ;;  %v5885_v2 = vcombine.low %v5686_v30, %v5686_v30  ;;  %v4845_v30 = vld [vmem:[%s6611_s1 + $0x428] ss:$12 sps:$4 sm:$0xff]  }
  0xad   : > { %4536 = vmatmul.mubr.bf16.vlgmr.msra.gmra.mxu1 %v4038_v28  ;;  %2123 = vmatpush1.bf16.msra.mxu0 %v4828_v15  ;;  %v3213_v15 = vshrl.u32 %v5378_v8, 16 }
  0xae   : > { %4544 = vmatpush3.bf16.msra.mxu1 %v4831_v13  ;;  %2124 = vmatprep.subr.bf16.mxu0 %v4834_v22  ;;  %v3227_v13 = vrot.slane %v3225_v47, 4  ;;  %v3216_v22 = vshll.u32 %v5378_v8, 16 }
  0xaf   : > { %4545 = vmatprep.subr.bf16.mxu1 %v4835_v9  ;;  %1810 = vmatprep.mubr.bf16.mxu0 %v6631_v31 }
  0xb0   : > { %4539 = vmatprep.mubr.bf16.mxu1 %v4039_v25 }
  0xb1   : > { %2125 = vmatpush1.bf16.msra.mxu0 %v4832_v4  ;;  %v3102_v4 = vsel %vm5149_vm2, %v4251_v34, %v3101_v11  ;;  %v4881_v34 = vld [vmem:[%s6611_s1 + $0x4e8] ss:$12 sps:$4 sm:$0xff]   ;;  %v4878_v11 = vld [vmem:[%s6611_s1 + $0x4e0] ss:$12 sps:$4 sm:$0xff]  }
  0xb2   : > { %4546 = vmatpush3.bf16.msra.mxu1 %v4835_v9  ;;  %2126 = vmatprep.subr.bf16.mxu0 %v4840_v57  ;;  %v2719_v9 = vmax.bf16 %v2665_v3, %v2278_v20  ;;  %v3538_v57 = vor.u32 %v3536_v61, %v5465_v16  ;;  %v4880_v3 = vld [vmem:[%s6611_s1 + $0x4e4] ss:$12 sps:$4 sm:$0xff]  }
  0xb3   : > { %4547 = vmatprep.subr.bf16.mxu1 %v4841_v5 }
  0xb4   : > { %1811 = vmatmul.mubr.bf16.gmra.mxu0 %v4038_v28  ;;  %v5964_v28 = vrot.slane %v3231_v46, 3  ;;  %v3156_v16 = vmax.bf16 %v3102_v4, %v2719_v9  ;;  %v4106_v46 = vcombine.low %v5735_v18, %v5738_v38  ;;  %v4876_v18 = vld [vmem:[%s6611_s1 + $0x4fc] ss:$12 sps:$4 sm:$0xff]   ;;  %v4877_v38 = vld [vmem:[%s6611_s1 + $0x500] ss:$12 sps:$4 sm:$0xff]  }
  0xb5   : > { %4540 = vmatmul.mubr.bf16.gmra.mxu1 %v5885_v2  ;;  %2127 = vmatpush1.bf16.msra.mxu0 %v4838_v42  ;;  %v5976_v42 = vor.u32 %v3227_v13, %v3224_v62  ;;  %v4888_v62 = vld [vmem:[%s6611_s1 + $0x4b4] ss:$12 sps:$4 sm:$0xff]   ;;  %v4889_v13 = vld [vmem:[%s6611_s1 + $0x4b8] ss:$12 sps:$4 sm:$0xff]  }
  0xb6   : > { %4548 = vmatpush3.bf16.msra.mxu1 %v4841_v5  ;;  %2128 = vmatprep.subr.bf16.mxu0 %v4844_v35  ;;  %v4164_v5 = vcombine.low %v2285_v26, %v4968_v60  ;;  %v4858_v35 = vld [vmem:[%s6611_s1 + $0x3c0] ss:$12 sps:$4 sm:$0xff]   ;;  %v4867_v26 = vld [vmem:[%s6611_s1 + $0x530] ss:$12 sps:$4 sm:$0xff]   ;;  %v4890_v9 = vld [vmem:[%s6611_s1 + $0x498] ss:$12 sps:$4 sm:$0xff]  }
  0xb7   : > { %4549 = vmatprep.subr.bf16.mxu1 %v4845_v30  ;;  %1820 = vmatprep.mubr.bf16.mxu0 %v6631_v31  ;;  %v4897_v4 = vld [vmem:[%s6611_s1 + $0x488] ss:$12 sps:$4 sm:$0xff]  }
  0xb8   : > { %4559 = vmatprep.mubr.bf16.mxu1 %v5904_v53 }
  0xb9   : > { %2129 = vmatpush1.bf16.msra.mxu0 %v4842_v54  ;;  %v3215_v54 = vrot.slane %v3213_v15, 3  ;;  %v4886_v15 = vld [vmem:[%s6611_s1 + $0x4b0] ss:$12 sps:$4 sm:$0xff]  }
  0xba   : > { %4550 = vmatpush3.bf16.msra.mxu1 %v4845_v30  ;;  %2130 = vmatprep.subr.bf16.mxu0 %v4848_v39  ;;  %v4286_v30 = vcombine.low %v4252_v27, %v4970_v14  ;;  %v3218_v39 = vrot.slane %v3216_v22, 4  ;;  %v4892_v22 = vld [vmem:[%s6611_s1 + $0x49c] ss:$12 sps:$4 sm:$0xff]  }
  0xbb   : > { %4551 = vmatprep.subr.bf16.mxu1 %v4849_v52 }
  0xbc   : > { %1821 = vmatmul.mubr.bf16.gmra.mxu0 %v4039_v25  ;;  %v3236_v25 = vrot.slane %v3234_v23, 4  ;;  %v3205_v60 = vshrl.u32 %v4286_v30, 16  ;;  %v3208_v41 = vshll.u32 %v4286_v30, 16  ;;  %v5998_v55 = vor.u32 %v3218_v39, %v3215_v54  ;;  %v4884_v23 = vld [vmem:[%s6611_s1 + $0x4cc] ss:$12 sps:$4 sm:$0xff]  }
  0xbd   : > { %2131 = vmatpush1.bf16.msra.mxu0 %v4846_v50  ;;  %1830 = vmatprep.mubr.bf16.mxu0 %v6631_v31  ;;  %v4899_v39 = vld [vmem:[%s6611_s1 + $0x5e8] ss:$12 sps:$4 sm:$0xff]  }
  0xbe   : > { %4552 = vmatpush3.bf16.msra.mxu1 %v4849_v52  ;;  %2132 = vmatprep.subr.bf16.mxu0 %v4852_v40  ;;  %v3237_v8 = vor.u32 %v3236_v25, %v5964_v28  ;;  %v3528_v52 = vshrl.u32 %v4252_v27, 16  ;;  %v2328_v40 = vshrl.u32 %v4164_v5, 16  ;;  %v3207_v1 = vrot.slane %v3205_v60, 3  ;;  %v4896_v25 = vld [vmem:[%s6611_s1 + $0x484] ss:$12 sps:$4 sm:$0xff]  }
  0xbf   : > { %4553 = vmatprep.subr.bf16.mxu1 %v4853_v7  ;;  %v3210_v17 = vrot.slane %v3208_v41, 4  ;;  %v4901_v27 = vld [vmem:[%s6611_s1 + $0x5ec] ss:$12 sps:$4 sm:$0xff]  }
  0xc0   : > { %v5990_v43 = vsel %vm2326_vm3, %v5976_v42, %v3237_v8  ;;  %v4312_v50 = vrot.slane %v3528_v52, 11  ;;  %v2330_v45 = vrot.slane %v2328_v40, 3  ;;  %v4902_v8 = vld [vmem:[%s6611_s1 + $0x5f0] ss:$12 sps:$4 sm:$0xff]   ;;  %v4905_v52 = vld [vmem:[%s6611_s1 + $0x5d4] ss:$12 sps:$4 sm:$0xff]  }
  0xc1   : > { %2133 = vmatpush1.bf16.msra.mxu0 %v4850_v24  ;;  %v3211_v14 = vor.u32 %v3210_v17, %v3207_v1 }
  0xc2   : > { %4554 = vmatpush3.bf16.msra.mxu1 %v4853_v7  ;;  %2134 = vmatprep.subr.bf16.mxu0 %v4856_v56  ;;  %v2331_v7 = vshll.u32 %v4164_v5, 16  ;;  %v3539_v49 = vsel %vm5149_vm2, %v4312_v50, %v3538_v57  ;;  %v4868_v56 = vld [vmem:[%s6611_s1 + $0x510] ss:$12 sps:$4 sm:$0xff]   ;;  %v4225_v57 = vcombine.low %v5937_v0, %v5923_v44  ;;  %v4894_v5 = vld [vmem:[%s6611_s1 + $0x480] ss:$12 sps:$4 sm:$0xff]  }
  0xc3   : > { %4555 = vmatprep.subr.bf16.mxu1 %v4857_v33  ;;  %v3593_v47 = vmax.bf16 %v3539_v49, %v3156_v16  ;;  %v6634_v0 = vld [vmem:[#allocation2_spill] sm:$0xff] }
  0xc4   : > { %1831 = vmatmul.mubr.bf16.gmra.mxu0 %v5885_v2  ;;  %v4866_v2 = vld [vmem:[%s6611_s1 + $0x52c] ss:$12 sps:$4 sm:$0xff]   ;;  %v2333_v61 = vrot.slane %v2331_v7, 4  ;;  %v2771_v44 = vshll.u32 %v4225_v57, 16  ;;  %v2776_v30 = vshrl.u32 %v6634_v0, 16  ;;  %v2779_v54 = vshll.u32 %v6634_v0, 16 }
  0xc5   : > { %2135 = vmatpush1.bf16.msra.mxu0 %v4854_v59  ;;  %2154 = vmatprep.mubr.bf16.mxu0 %v6631_v31  ;;  %v3659_v24 = vunpack.c.l.bf16 %v3593_v47  ;;  %v4874_v59 = vld [vmem:[%s6611_s1 + $0x4f8] ss:$12 sps:$4 sm:$0xff]   ;;  %v4910_v7 = vld [vmem:[%s6611_s1 + $0x5bc] ss:$12 sps:$4 sm:$0xff]  }
  0xc6   : > { %4556 = vmatpush3.bf16.msra.mxu1 %v4857_v33  ;;  %2136 = vmatprep.subr.bf16.mxu0 %v4860_v51  ;;  %v6016_v33 = vsel %vm2326_vm3, %v3211_v14, %v5998_v55  ;;  %v2334_v20 = vor.u32 %v2333_v61, %v2330_v45  ;;  %v4885_v51 = vld [vmem:[%s6611_s1 + $0x4d0] ss:$12 sps:$4 sm:$0xff]   ;;  %v4906_v16 = vld [vmem:[%s6611_s1 + $0x5d8] ss:$12 sps:$4 sm:$0xff]   ;;  %v2773_v41 = vrot.slane %v2771_v44, 4  ;;  %v2778_v50 = vrot.slane %v2776_v30, 3 }
  0xc7   : > { %4557 = vmatprep.subr.bf16.mxu1 %v4861_v32  ;;  %3666 = vst [vmem:[%s5732_s8] sm:$0xff] %v3659_v24  ;;  %v2781_v6 = vrot.slane %v2779_v54, 4  ;;  %v4908_v47 = vld [vmem:[%s6611_s1 + $0x5b8] ss:$12 sps:$4 sm:$0xff]   ;;  %v4915_v45 = vld [vmem:[%s6611_s1 + $0x5a8] ss:$12 sps:$4 sm:$0xff]  }
  0xc8   : > { %v4914_v14 = vld [vmem:[%s6611_s1 + $0x5a4] ss:$12 sps:$4 sm:$0xff]   ;;  %v4931_v0 = vld [vmem:[%s6611_s1 + $0x548] ss:$12 sps:$4 sm:$0xff]  }
  0xc9   : > { %2137 = vmatpush1.bf16.msra.mxu0 %v4858_v35  ;;  %v2768_v35 = vshrl.u32 %v4225_v57, 16  ;;  %v4930_v44 = vld [vmem:[%s6611_s1 + $0x544] ss:$12 sps:$4 sm:$0xff]  }
  0xca   : > { %4558 = vmatpush3.bf16.msra.mxu1 %v4861_v32  ;;  %2494 = vmatprep.subr.bf16.mxu0 %v4866_v2  ;;  %v4893_v32 = vld [vmem:[%s6611_s1 + $0x4a0] ss:$12 sps:$4 sm:$0xff]  }
  0xcb   : > { %4567 = vmatprep.subr.bf16.mxu1 %v4867_v26  ;;  %v2770_v60 = vrot.slane %v2768_v35, 3 }
  0xcc   : > { %2155 = vmatmul.mubr.bf16.vlgmr.msra.gmra.mxu0 %v5904_v53  ;;  %v4107_v53 = vcombine.low %v5765_v12, %v5765_v12  ;;  %v2343_v12 = vsel %vm2326_vm3, %v2334_v20, %v5741_v37  ;;  %v4882_v37 = vld [vmem:[%s6611_s1 + $0x4c8] ss:$12 sps:$4 sm:$0xff]   ;;  %v4919_v20 = vld [vmem:[%s6611_s1 + $0x590] ss:$12 sps:$4 sm:$0xff]  }
  0xcd   : > { %4560 = vmatmul.mubr.bf16.vlgmr.msra.gmra.mxu1 %v4105_v63  ;;  %2495 = vmatpush1.bf16.msra.mxu0 %v4864_v21  ;;  %v4911_v21 = vld [vmem:[%s6611_s1 + $0x5c0] ss:$12 sps:$4 sm:$0xff]  }
  0xce   : > { %4568 = vmatpush3.bf16.msra.mxu1 %v4867_v26  ;;  %2496 = vmatprep.subr.bf16.mxu0 %v4870_v29  ;;  %v2774_v29 = vor.u32 %v2773_v41, %v2770_v60  ;;  %v4935_v41 = vld [vmem:[%s6611_s1 + $0x6ac] ss:$12 sps:$4 sm:$0xff]  }
  0xcf   : > { %4569 = vmatprep.subr.bf16.mxu1 %v4871_v58  ;;  %2164 = vmatprep.mubr.bf16.mxu0 %v6631_v31 }
  0xd0   : > { %4563 = vmatprep.mubr.bf16.mxu1 %v4106_v46 }
  0xd1   : > { %2497 = vmatpush1.bf16.msra.mxu0 %v4868_v56 }
  0xd2   : > { %4570 = vmatpush3.bf16.msra.mxu1 %v4871_v58  ;;  %2498 = vmatprep.subr.bf16.mxu0 %v4876_v18  ;;  %v6124_v58 = vor.u32 %v2781_v6, %v2778_v50 }
  0xd3   : > { %4571 = vmatprep.subr.bf16.mxu1 %v4877_v38 }
  0xd4   : > { %2165 = vmatmul.mubr.bf16.gmra.mxu0 %v4105_v63  ;;  %v4903_v63 = vld [vmem:[%s6611_s1 + $0x5d0] ss:$12 sps:$4 sm:$0xff]   ;;  %v6147_v18 = vsel %vm2326_vm3, %v2774_v29, %v6124_v58 }
  0xd5   : > { %4564 = vmatmul.mubr.bf16.gmra.mxu1 %v4107_v53  ;;  %2499 = vmatpush1.bf16.msra.mxu0 %v4874_v59 }
  0xd6   : > { %4572 = vmatpush3.bf16.msra.mxu1 %v4877_v38  ;;  %2500 = vmatprep.subr.bf16.mxu0 %v4880_v3  ;;  %v4912_v38 = vld [vmem:[%s6611_s1 + $0x5a0] ss:$12 sps:$4 sm:$0xff]  }
  0xd7   : > { %4573 = vmatprep.subr.bf16.mxu1 %v4881_v34  ;;  %2174 = vmatprep.mubr.bf16.mxu0 %v6631_v31 }
  0xd8   : > { %4583 = vmatprep.mubr.bf16.mxu1 %v2343_v12 }
  0xd9   : > { %2501 = vmatpush1.bf16.msra.mxu0 %v4878_v11 }
  0xda   : > { %4574 = vmatpush3.bf16.msra.mxu1 %v4881_v34  ;;  %2502 = vmatprep.subr.bf16.mxu0 %v4884_v23  ;;  %v4922_v23 = vld [vmem:[%s6611_s1 + $0x574] ss:$12 sps:$4 sm:$0xff]  }
  0xdb   : > { %4575 = vmatprep.subr.bf16.mxu1 %v4885_v51 }
  0xdc   : > { %2175 = vmatmul.mubr.bf16.gmra.mxu0 %v4106_v46 }
  0xdd   : > { %2503 = vmatpush1.bf16.msra.mxu0 %v4882_v37  ;;  %2184 = vmatprep.mubr.bf16.mxu0 %v6631_v31 }
  0xde   : > { %4576 = vmatpush3.bf16.msra.mxu1 %v4885_v51  ;;  %2504 = vmatprep.subr.bf16.mxu0 %v4888_v62  ;;  %v4923_v51 = vld [vmem:[%s6611_s1 + $0x578] ss:$12 sps:$4 sm:$0xff]   ;;  %v4226_v62 = vcombine.low %v5756_v36, %v5756_v36  ;;  %v4927_v36 = vld [vmem:[%s6611_s1 + $0x560] ss:$12 sps:$4 sm:$0xff]  }
  0xdf   : > { %4577 = vmatprep.subr.bf16.mxu1 %v4889_v13 }
  0xe0   : > { %v2797_v57 = vshll.u32 %v4226_v62, 16 }
  0xe1   : > { %2505 = vmatpush1.bf16.msra.mxu0 %v4886_v15  ;;  %v6635_v15 = vld [vmem:[#allocation3_spill] sm:$0xff] }
  0xe2   : > { %4578 = vmatpush3.bf16.msra.mxu1 %v4889_v13  ;;  %2506 = vmatprep.subr.bf16.mxu0 %v4892_v22  ;;  %v4920_v13 = vld [vmem:[%s6611_s1 + $0x570] ss:$12 sps:$4 sm:$0xff]   ;;  %v2785_v22 = vshrl.u32 %v6635_v15, 16 }
  0xe3   : > { %4579 = vmatprep.subr.bf16.mxu1 %v4893_v32 }
  0xe4   : > { %2185 = vmatmul.mubr.bf16.gmra.mxu0 %v4107_v53 }
  0xe5   : > { %2507 = vmatpush1.bf16.msra.mxu0 %v4890_v9  ;;  %2526 = vmatprep.mubr.bf16.mxu0 %v6631_v31 }
  0xe6   : > { %4580 = vmatpush3.bf16.msra.mxu1 %v4893_v32  ;;  %2508 = vmatprep.subr.bf16.mxu0 %v4896_v25  ;;  %v2788_v32 = vshll.u32 %v6635_v15, 16 }
  0xe7   : > { %4581 = vmatprep.subr.bf16.mxu1 %v4897_v4 }
  0xe9   : > { %2509 = vmatpush1.bf16.msra.mxu0 %v4894_v5  ;;  %v4924_v5 = vld [vmem:[%s6611_s1 + $0x558] ss:$12 sps:$4 sm:$0xff]  }
  0xea   : > { %4582 = vmatpush3.bf16.msra.mxu1 %v4897_v4  ;;  %2934 = vmatprep.subr.bf16.mxu0 %v4901_v27  ;;  %v2794_v4 = vshrl.u32 %v4226_v62, 16  ;;  %v2787_v27 = vrot.slane %v2785_v22, 3 }
  0xeb   : > { %4591 = vmatprep.subr.bf16.mxu1 %v4902_v8 }
  0xec   : > { %v6100_v2 = vpop.f32.mrf.mxu0  ;;  %2527 = vmatmul.mubr.bf16.vlgmr.msra.gmra.mxu0 %v2343_v12  ;;  %v4916_v12 = vld [vmem:[%s6611_s1 + $0x588] ss:$12 sps:$4 sm:$0xff]   ;;  %v6212_v54 = vrot.slane %v2794_v4, 3 }
  0xed   : > { %4584 = vmatmul.mubr.bf16.vlgmr.msra.gmra.mxu1 %v5788_v19  ;;  %v6103_v26 = vpop.f32.mrf.mxu1  ;;  %2935 = vmatpush1.bf16.msra.mxu0 %v4899_v39  ;;  %v2799_v39 = vrot.slane %v2797_v57, 4 }
  0xee   : > { %4592 = vmatpush3.bf16.msra.mxu1 %v4902_v8  ;;  %v6108_v40 = vpop.f32.mrf.mxu0  ;;  %2936 = vmatprep.subr.bf16.mxu0 %v4905_v52  ;;  %v2790_v8 = vrot.slane %v2788_v32, 4  ;;  %v4928_v52 = vld [vmem:[%s6611_s1 + $0x540] ss:$12 sps:$4 sm:$0xff]  }
  0xef   : > { %4593 = vmatprep.subr.bf16.mxu1 %v4906_v16  ;;  %v6116_v1 = vpop.f32.mrf.mxu1  ;;  %2536 = vmatprep.mubr.bf16.mxu0 %v6631_v31 }
  0xf0   : > { %4587 = vmatprep.mubr.bf16.mxu1 %v5853_v48  ;;  %v6120_v17 = vpop.f32.mrf.mxu0 }
  0xf1   : > { %v6122_v49 = vpop.f32.mrf.mxu1  ;;  %2937 = vmatpush1.bf16.msra.mxu0 %v4903_v63  ;;  %v2800_v63 = vor.u32 %v2799_v39, %v6212_v54 }
  0xf2   : > { %4594 = vmatpush3.bf16.msra.mxu1 %v4906_v16  ;;  %v6129_v46 = vpop.f32.mrf.mxu0  ;;  %2938 = vmatprep.subr.bf16.mxu0 %v4910_v7  ;;  %v2791_v16 = vor.u32 %v2790_v8, %v2787_v27 }
  0xf3   : > { %4595 = vmatprep.subr.bf16.mxu1 %v4911_v21  ;;  %v6137_v61 = vpop.f32.mrf.mxu1 }
  0xf4   : > { %v6139_v24 = vpop.f32.mrf.mxu0  ;;  %2537 = vmatmul.mubr.bf16.gmra.mxu0 %v5788_v19  ;;  %v4918_v19 = vld [vmem:[%s6611_s1 + $0x58c] ss:$12 sps:$4 sm:$0xff]   ;;  %v2792_v7 = vsel %vm2326_vm3, %v6124_v58, %v2791_v16  ;;  %v6242_v58 = vsel %vm2326_vm3, %v2791_v16, %v2800_v63 }
  0xf5   : > { %4588 = vmatmul.mubr.bf16.gmra.mxu1 %v5832_v10  ;;  %v6143_v56 = vpop.f32.mrf.mxu1  ;;  %2939 = vmatpush1.bf16.msra.mxu0 %v4908_v47  ;;  %v4939_v47 = vld [vmem:[%s6611_s1 + $0x694] ss:$12 sps:$4 sm:$0xff]  }
  0xf6   : > { %4596 = vmatpush3.bf16.msra.mxu1 %v4911_v21  ;;  %v6152_v53 = vpop.f32.mrf.mxu0  ;;  %2940 = vmatprep.subr.bf16.mxu0 %v4914_v14  ;;  %v4933_v21 = vld [vmem:[%s6611_s1 + $0x6a8] ss:$12 sps:$4 sm:$0xff]   ;;  %v4940_v14 = vld [vmem:[%s6611_s1 + $0x698] ss:$12 sps:$4 sm:$0xff]  }
  0xf7   : > { %4597 = vmatprep.subr.bf16.mxu1 %v4915_v45  ;;  %v6160_v59 = vpop.f32.mrf.mxu1  ;;  %2546 = vmatprep.mubr.bf16.mxu0 %v6631_v31 }
  0xf8   : > { %4607 = vmatprep.mubr.bf16.mxu1 %v6147_v18  ;;  %v6164_v3 = vpop.f32.mrf.mxu0 }
  0xf9   : > { %v4446_v34 = vpop.f32.mrf.mxu1  ;;  %2941 = vmatpush1.bf16.msra.mxu0 %v4912_v38 }
  0xfa   : > { %4598 = vmatpush3.bf16.msra.mxu1 %v4915_v45  ;;  %v6169_v11 = vpop.f32.mrf.mxu0  ;;  %2942 = vmatprep.subr.bf16.mxu0 %v4918_v19  ;;  %v4937_v34 = vld [vmem:[%s6611_s1 + $0x690] ss:$12 sps:$4 sm:$0xff]  }
  0xfb   : > { %4599 = vmatprep.subr.bf16.mxu1 %v4919_v20  ;;  %v6226_v6 = vpop.f32.mrf.mxu1 }
  0xfc   : > { %v6177_v37 = vpop.f32.mrf.mxu0  ;;  %2547 = vmatmul.mubr.bf16.gmra.mxu0 %v5853_v48  ;;  %v4926_v48 = vld [vmem:[%s6611_s1 + $0x55c] ss:$12 sps:$4 sm:$0xff]  }
  0xfd   : > { %2943 = vmatpush1.bf16.msra.mxu0 %v4916_v12  ;;  %2556 = vmatprep.mubr.bf16.mxu0 %v6631_v31 }
  0xfe   : > { %4600 = vmatpush3.bf16.msra.mxu1 %v4919_v20  ;;  %v6187_v9 = vpop.f32.mrf.mxu0  ;;  %2944 = vmatprep.subr.bf16.mxu0 %v4922_v23 }
  0xff   : > { %4601 = vmatprep.subr.bf16.mxu1 %v4923_v51 }
 0x100   : > { %v6196_v25 = vpop.f32.mrf.mxu0 }
 0x101   : > { %2945 = vmatpush1.bf16.msra.mxu0 %v4920_v13 }
 0x102   : > { %4602 = vmatpush3.bf16.msra.mxu1 %v4923_v51  ;;  %v6201_v35 = vpop.f32.mrf.mxu0  ;;  %2946 = vmatprep.subr.bf16.mxu0 %v4926_v48  ;;  %v4948_v48 = vld [vmem:[%s6611_s1 + $0x664] ss:$12 sps:$4 sm:$0xff]  }
 0x103   : > { %4603 = vmatprep.subr.bf16.mxu1 %v4927_v36 }
 0x104   : > { %v6209_v30 = vpop.f32.mrf.mxu0  ;;  %2557 = vmatmul.mubr.bf16.gmra.mxu0 %v5832_v10  ;;  %v4936_v10 = vld [vmem:[%s6611_s1 + $0x6b0] ss:$12 sps:$4 sm:$0xff]  }
 0x105   : > { %2947 = vmatpush1.bf16.msra.mxu0 %v4924_v5  ;;  %2966 = vmatprep.mubr.bf16.mxu0 %v6631_v31 }
 0x106   : > { %4604 = vmatpush3.bf16.msra.mxu1 %v4927_v36  ;;  %v6217_v60 = vpop.f32.mrf.mxu0  ;;  %2948 = vmatprep.subr.bf16.mxu0 %v4930_v44  ;;  %v4952_v44 = vld [vmem:[%s6611_s1 + $0x64c] ss:$12 sps:$4 sm:$0xff]  }
 0x107   : > { %4605 = vmatprep.subr.bf16.mxu1 %v4931_v0 }
 0x108   : > { %v510_v50 = vpop.f32.mrf.mxu0 }
 0x109   : > { %2949 = vmatpush1.bf16.msra.mxu0 %v4928_v52  ;;  %v4957_v50 = vld [vmem:[%s6611_s1 + $0x638] ss:$12 sps:$4 sm:$0xff]  }
 0x10a   : > { %4606 = vmatpush3.bf16.msra.mxu1 %v4931_v0  ;;  %v511_v29 = vpop.f32.mrf.mxu0  ;;  %3371 = vmatprep.subr.bf16.mxu0 %v4935_v41  ;;  %v4950_v41 = vld [vmem:[%s6611_s1 + $0x648] ss:$12 sps:$4 sm:$0xff]  }
 0x10b   : > { %4615 = vmatprep.subr.bf16.mxu1 %v4936_v10  ;;  %v4954_v29 = vld [vmem:[%s6611_s1 + $0x630] ss:$12 sps:$4 sm:$0xff]  }
 0x10c   : > { %v761_v45 = vpop.f32.mrf.mxu0  ;;  %2967 = vmatmul.mubr.bf16.vlgmr.msra.gmra.mxu0 %v6147_v18  ;;  %v4944_v18 = vld [vmem:[%s6611_s1 + $0x67c] ss:$12 sps:$4 sm:$0xff]  }
 0x10d   : > { %v4465_v38 = vpop.f32.mrf.mxu1  ;;  %4608 = vmatmul.mubr.bf16.vlgmr.msra.gmra.mxu1 %v2792_v7  ;;  %v6245_v19 = vadd.f32 %v761_v45, %v6100_v2  ;;  %3372 = vmatpush1.bf16.msra.mxu0 %v4933_v21  ;;  %v4945_v2 = vld [vmem:[%s6611_s1 + $0x680] ss:$12 sps:$4 sm:$0xff]  }
 0x10e   : > { %v6248_v20 = vadd.f32 %v4465_v38, %v6103_v26  ;;  %4616 = vmatpush3.bf16.msra.mxu1 %v4936_v10  ;;  %v763_v12 = vpop.f32.mrf.mxu0  ;;  %3373 = vmatprep.subr.bf16.mxu0 %v4939_v47  ;;  %v4958_v38 = vld [vmem:[%s6611_s1 + $0x618] ss:$12 sps:$4 sm:$0xff]  }
 0x10f   : > { %v832_v23 = vpop.f32.mrf.mxu1  ;;  %4617 = vmatprep.subr.bf16.mxu1 %v4940_v14  ;;  %v6260_v26 = vadd.f32 %v763_v12, %v6108_v40  ;;  %2976 = vmatprep.mubr.bf16.mxu0 %v6631_v31  ;;  %v4942_v40 = vld [vmem:[%s6611_s1 + $0x678] ss:$12 sps:$4 sm:$0xff]  }
 0x110   : > { %v6263_v51 = vadd.f32 %v832_v23, %v6116_v1  ;;  %4611 = vmatprep.mubr.bf16.mxu1 %v6242_v58  ;;  %v765_v62 = vpop.f32.mrf.mxu0 }
 0x111   : > { %v4466_v13 = vpop.f32.mrf.mxu1  ;;  %v6268_v15 = vadd.f32 %v765_v62, %v6120_v17  ;;  %3374 = vmatpush1.bf16.msra.mxu0 %v4937_v34  ;;  %v4949_v17 = vld [vmem:[%s6611_s1 + $0x668] ss:$12 sps:$4 sm:$0xff]  }
 0x112   : > { %v6271_v22 = vadd.f32 %v4466_v13, %v6122_v49  ;;  %4618 = vmatpush3.bf16.msra.mxu1 %v4940_v14  ;;  %v767_v1 = vpop.f32.mrf.mxu0  ;;  %3375 = vmatprep.subr.bf16.mxu0 %v4944_v18  ;;  %v4965_v34 = vld [vmem:[%s6611_s1 + $0x608] ss:$12 sps:$4 sm:$0xff]   ;;  %v4962_v18 = vld [vmem:[%s6611_s1 + $0x600] ss:$12 sps:$4 sm:$0xff]  }
 0x113   : > { %v835_v32 = vpop.f32.mrf.mxu1  ;;  %4619 = vmatprep.subr.bf16.mxu1 %v4945_v2  ;;  %v6283_v49 = vadd.f32 %v767_v1, %v6129_v46  ;;  %v4946_v46 = vld [vmem:[%s6611_s1 + $0x660] ss:$12 sps:$4 sm:$0xff]  }
 0x114   : > { %v6286_v36 = vadd.f32 %v835_v32, %v6137_v61  ;;  %v771_v4 = vpop.f32.mrf.mxu0  ;;  %2977 = vmatmul.mubr.bf16.gmra.mxu0 %v2792_v7 }
 0x115   : > { %v4469_v57 = vpop.f32.mrf.mxu1  ;;  %4612 = vmatmul.mubr.bf16.gmra.mxu1 %v6212_v54  ;;  %v6290_v5 = vadd.f32 %v771_v4, %v6139_v24  ;;  %3376 = vmatpush1.bf16.msra.mxu0 %v4942_v40  ;;  %v4953_v24 = vld [vmem:[%s6611_s1 + $0x650] ss:$12 sps:$4 sm:$0xff]  }
 0x116   : > { %v6293_v27 = vadd.f32 %v4469_v57, %v6143_v56  ;;  %4620 = vmatpush3.bf16.msra.mxu1 %v4945_v2  ;;  %v773_v8 = vpop.f32.mrf.mxu0  ;;  %3377 = vmatprep.subr.bf16.mxu0 %v4948_v48 }
 0x117   : > { %v848_v61 = vpop.f32.mrf.mxu1  ;;  %4621 = vmatprep.subr.bf16.mxu1 %v4949_v17  ;;  %v6305_v56 = vadd.f32 %v773_v8, %v6152_v53  ;;  %2986 = vmatprep.mubr.bf16.mxu0 %v6631_v31 }
 0x118   : > { %v6308_v0 = vadd.f32 %v848_v61, %v6160_v59  ;;  %4631 = vmatprep.mubr.bf16.mxu1 %v6016_v33  ;;  %v775_v39 = vpop.f32.mrf.mxu0  ;;  %v4956_v59 = vld [vmem:[%s6611_s1 + $0x634] ss:$12 sps:$4 sm:$0xff]  }
 0x119   : > { %v4470_v52 = vpop.f32.mrf.mxu1  ;;  %v6313_v16 = vadd.f32 %v775_v39, %v6164_v3  ;;  %3378 = vmatpush1.bf16.msra.mxu0 %v4946_v46 }
 0x11a   : > { %4622 = vmatpush3.bf16.msra.mxu1 %v4949_v17  ;;  %v777_v53 = vpop.f32.mrf.mxu0  ;;  %3379 = vmatprep.subr.bf16.mxu0 %v4952_v44 }
 0x11b   : > { %v851_v10 = vpop.f32.mrf.mxu1  ;;  %4623 = vmatprep.subr.bf16.mxu1 %v4953_v24  ;;  %v6325_v3 = vadd.f32 %v777_v53, %v6169_v11  ;;  %v4960_v11 = vld [vmem:[%s6611_s1 + $0x61c] ss:$12 sps:$4 sm:$0xff]  }
 0x11c   : > { %v6328_v63 = vadd.f32 %v851_v10, %v6226_v6  ;;  %v781_v7 = vpop.f32.mrf.mxu0  ;;  %2987 = vmatmul.mubr.bf16.gmra.mxu0 %v6242_v58  ;;  %v4961_v6 = vld [vmem:[%s6611_s1 + $0x620] ss:$12 sps:$4 sm:$0xff]  }
 0x11d   : > { %v6332_v21 = vadd.f32 %v781_v7, %v6177_v37  ;;  %3380 = vmatpush1.bf16.msra.mxu0 %v4950_v41  ;;  %2996 = vmatprep.mubr.bf16.mxu0 %v6631_v31 }
 0x11e   : > { %4624 = vmatpush3.bf16.msra.mxu1 %v4953_v24  ;;  %v783_v47 = vpop.f32.mrf.mxu0  ;;  %3381 = vmatprep.subr.bf16.mxu0 %v4956_v59 }
 0x11f   : > { %4625 = vmatprep.subr.bf16.mxu1 %v4957_v50  ;;  %v6344_v37 = vadd.f32 %v783_v47, %v6187_v9  ;;  %v4964_v9 = vld [vmem:[%s6611_s1 + $0x604] ss:$12 sps:$4 sm:$0xff]  }
 0x120   : > { %v785_v14 = vpop.f32.mrf.mxu0 }
 0x121   : > { %v6348_v45 = vadd.f32 %v785_v14, %v6196_v25  ;;  %3382 = vmatpush1.bf16.msra.mxu0 %v4954_v29 }
 0x122   : > { %4626 = vmatpush3.bf16.msra.mxu1 %v4957_v50  ;;  %v787_v58 = vpop.f32.mrf.mxu0  ;;  %3383 = vmatprep.subr.bf16.mxu0 %v4960_v11 }
 0x123   : > { %4627 = vmatprep.subr.bf16.mxu1 %v4961_v6  ;;  %v6360_v25 = vadd.f32 %v787_v58, %v6201_v35 }
 0x124   : > { %v791_v12 = vpop.f32.mrf.mxu0  ;;  %2997 = vmatmul.mubr.bf16.gmra.mxu0 %v6212_v54 }
 0x125   : > { %v6364_v23 = vadd.f32 %v791_v12, %v6209_v30  ;;  %3384 = vmatpush1.bf16.msra.mxu0 %v4958_v38  ;;  %3403 = vmatprep.mubr.bf16.mxu0 %v6631_v31  ;;  %v3229_v30 = vsel %vm2326_vm3, %v5998_v55, %v5976_v42 }
 0x126   : > { %4628 = vmatpush3.bf16.msra.mxu1 %v4961_v6  ;;  %v793_v2 = vpop.f32.mrf.mxu0  ;;  %3385 = vmatprep.subr.bf16.mxu0 %v4964_v9 }
 0x127   : > { %4629 = vmatprep.subr.bf16.mxu1 %v4965_v34  ;;  %v794_v62 = vadd.f32 %v793_v2, %v6217_v60 }
 0x128   : > { %v795_v35 = vpop.f32.mrf.mxu0 }
 0x129   : > { %3386 = vmatpush1.bf16.msra.mxu0 %v4962_v18 }
 0x12a   : > { %4630 = vmatpush3.bf16.msra.mxu1 %v4965_v34  ;;  %v796_v54 = vpop.f32.mrf.mxu0 }
 0x12c   : > { %v1094_v13 = vpop.f32.mrf.mxu0  ;;  %3404 = vmatmul.mubr.bf16.vlgmr.msra.gmra.mxu0 %v6016_v33 }
 0x12d   : > { %v4489_v40 = vpop.f32.mrf.mxu1  ;;  %4632 = vmatmul.mubr.bf16.vlgmr.msra.gmra.mxu1 %v3229_v30  ;;  %v1195_v1 = vadd.f32 %v1094_v13, %v6245_v19  ;;  %3413 = vmatprep.mubr.bf16.mxu0 %v6631_v31 }
 0x12e   : > { %v1203_v32 = vadd.f32 %v4489_v40, %v6248_v20  ;;  %4635 = vmatprep.mubr.bf16.mxu1 %v5990_v43  ;;  %v1096_v60 = vpop.f32.mrf.mxu0 }
 0x12f   : > { %v1165_v48 = vpop.f32.mrf.mxu1  ;;  %v1196_v17 = vadd.f32 %v1096_v60, %v6260_v26 }
 0x130   : > { %v1197_v42 = vadd.f32 %v1165_v48, %v6263_v51  ;;  %v1098_v55 = vpop.f32.mrf.mxu0 }
 0x131   : > { %v4490_v4 = vpop.f32.mrf.mxu1  ;;  %v1198_v57 = vadd.f32 %v1098_v55, %v6268_v15 }
 0x132   : > { %v1206_v33 = vadd.f32 %v4490_v4, %v6271_v22  ;;  %v1100_v46 = vpop.f32.mrf.mxu0 }
 0x133   : > { %v1168_v19 = vpop.f32.mrf.mxu1  ;;  %v1199_v20 = vadd.f32 %v1100_v46, %v6283_v49 }
 0x134   : > { %v1200_v8 = vadd.f32 %v1168_v19, %v6286_v36  ;;  %v1104_v61 = vpop.f32.mrf.mxu0  ;;  %3414 = vmatmul.mubr.bf16.gmra.mxu0 %v3229_v30 }
 0x135   : > { %v4493_v44 = vpop.f32.mrf.mxu1  ;;  %4636 = vmatmul.mubr.bf16.gmra.mxu1 %v5964_v28  ;;  %v1201_v26 = vadd.f32 %v1104_v61, %v6290_v5  ;;  %3423 = vmatprep.mubr.bf16.mxu0 %v6631_v31 }
 0x136   : > { %v1215_v51 = vadd.f32 %v4493_v44, %v6293_v27  ;;  %v1106_v15 = vpop.f32.mrf.mxu0 }
 0x137   : > { %v1181_v24 = vpop.f32.mrf.mxu1  ;;  %v1202_v22 = vadd.f32 %v1106_v15, %v6305_v56 }
 0x138   : > { %v1209_v39 = vadd.f32 %v1181_v24, %v6308_v0  ;;  %v1108_v49 = vpop.f32.mrf.mxu0 }
 0x139   : > { %v4494_v52 = vpop.f32.mrf.mxu1  ;;  %v1204_v36 = vadd.f32 %v1108_v49, %v6313_v16 }
 0x13a   : > { %v1110_v41 = vpop.f32.mrf.mxu0 }
 0x13b   : > { %v1184_v53 = vpop.f32.mrf.mxu1  ;;  %v1205_v10 = vadd.f32 %v1110_v41, %v6325_v3 }
 0x13c   : > { %v1212_v5 = vadd.f32 %v1184_v53, %v6328_v63  ;;  %v1114_v59 = vpop.f32.mrf.mxu0  ;;  %3424 = vmatmul.mubr.bf16.gmra.mxu0 %v5990_v43 }
 0x13d   : > { %v1207_v27 = vadd.f32 %v1114_v59, %v6332_v21  ;;  %3433 = vmatprep.mubr.bf16.mxu0 %v6631_v31 }
 0x13e   : > { %v1116_v56 = vpop.f32.mrf.mxu0 }
 0x13f   : > { %v1208_v0 = vadd.f32 %v1116_v56, %v6344_v37 }
 0x140   : > { %v1118_v50 = vpop.f32.mrf.mxu0 }
 0x141   : > { %v1210_v7 = vadd.f32 %v1118_v50, %v6348_v45 }
 0x142   : > { %v1120_v16 = vpop.f32.mrf.mxu0 }
 0x143   : > { %v1211_v29 = vadd.f32 %v1120_v16, %v6360_v25 }
 0x144   : > { %v1124_v47 = vpop.f32.mrf.mxu0  ;;  %3434 = vmatmul.mubr.bf16.gmra.mxu0 %v5964_v28 }
 0x145   : > { %v1213_v3 = vadd.f32 %v1124_v47, %v6364_v23 }
 0x146   : > { %v1126_v63 = vpop.f32.mrf.mxu0 }
 0x147   : > { %v1214_v43 = vadd.f32 %v1126_v63, %v794_v62 }
 0x148   : > { %v1128_v11 = vpop.f32.mrf.mxu0 }
 0x14a   : > { %v1129_v21 = vpop.f32.mrf.mxu0 }
 0x14c   : > { %v1448_v6 = vpop.f32.mrf.mxu0 }
 0x14d   : > { %v4513_v31 = vpop.f32.mrf.mxu1  ;;  %v1549_v14 = vadd.f32 %v1448_v6, %v1195_v1 }
 0x14e   : > { %v1557_v38 = vadd.f32 %v4513_v31, %v1203_v32  ;;  %v1450_v37 = vpop.f32.mrf.mxu0 }
 0x14f   : > { %v1519_v58 = vpop.f32.mrf.mxu1  ;;  %v1550_v9 = vadd.f32 %v1450_v37, %v1196_v17 }
 0x150   : > { %v1551_v45 = vadd.f32 %v1519_v58, %v1197_v42  ;;  %v1452_v34 = vpop.f32.mrf.mxu0 }
 0x151   : > { %v4514_v12 = vpop.f32.mrf.mxu1  ;;  %v1552_v25 = vadd.f32 %v1452_v34, %v1198_v57 }
 0x152   : > { %v1560_v18 = vadd.f32 %v4514_v12, %v1206_v33  ;;  %v1454_v2 = vpop.f32.mrf.mxu0 }
 0x153   : > { %v1522_v28 = vpop.f32.mrf.mxu1  ;;  %v1553_v35 = vadd.f32 %v1454_v2, %v1199_v20 }
 0x154   : > { %v1554_v23 = vadd.f32 %v1522_v28, %v1200_v8  ;;  %v1458_v30 = vpop.f32.mrf.mxu0 }
 0x155   : > { %v4517_v62 = vpop.f32.mrf.mxu1  ;;  %v1555_v54 = vadd.f32 %v1458_v30, %v1201_v26 }
 0x156   : > { %v1569_v13 = vadd.f32 %v4517_v62, %v1215_v51  ;;  %v1460_v40 = vpop.f32.mrf.mxu0 }
 0x157   : > { %v1535_v60 = vpop.f32.mrf.mxu1  ;;  %v1556_v1 = vadd.f32 %v1460_v40, %v1202_v22 }
 0x158   : > { %v1563_v32 = vadd.f32 %v1535_v60, %v1209_v39  ;;  %v1462_v48 = vpop.f32.mrf.mxu0 }
 0x159   : > { %v4518_v55 = vpop.f32.mrf.mxu1  ;;  %v1558_v17 = vadd.f32 %v1462_v48, %v1204_v36 }
 0x15a   : > { %v1464_v42 = vpop.f32.mrf.mxu0 }
 0x15b   : > { %v1538_v4 = vpop.f32.mrf.mxu1  ;;  %v1559_v46 = vadd.f32 %v1464_v42, %v1205_v10 }
 0x15c   : > { %v1566_v57 = vadd.f32 %v1538_v4, %v1212_v5  ;;  %v1468_v33 = vpop.f32.mrf.mxu0 }
 0x15d   : > { %v1561_v19 = vadd.f32 %v1468_v33, %v1207_v27 }
 0x15e   : > { %v1470_v61 = vpop.f32.mrf.mxu0 }
 0x15f   : > { %v1562_v20 = vadd.f32 %v1470_v61, %v1208_v0 }
 0x160   : > { %v1472_v8 = vpop.f32.mrf.mxu0 }
 0x161   : > { %v1564_v44 = vadd.f32 %v1472_v8, %v1210_v7 }
 0x162   : > { %v1474_v15 = vpop.f32.mrf.mxu0 }
 0x163   : > { %v1565_v26 = vadd.f32 %v1474_v15, %v1211_v29 }
 0x164   : > { %v1478_v51 = vpop.f32.mrf.mxu0 }
 0x165   : > { %v1567_v24 = vadd.f32 %v1478_v51, %v1213_v3 }
 0x166   : > { %v1480_v49 = vpop.f32.mrf.mxu0 }
 0x167   : > { %v1568_v22 = vadd.f32 %v1480_v49, %v1214_v43 }
 0x168   : > { %v1482_v39 = vpop.f32.mrf.mxu0 }
 0x16a   : > { %v1483_v52 = vpop.f32.mrf.mxu0 }
 0x16c   : > { %v1802_v41 = vpop.f32.mrf.mxu0 }
 0x16d   : > { %v4537_v36 = vpop.f32.mrf.mxu1  ;;  %v1903_v53 = vadd.f32 %v1802_v41, %v1549_v14 }
 0x16e   : > { %v1911_v59 = vadd.f32 %v4537_v36, %v1557_v38  ;;  %v1804_v10 = vpop.f32.mrf.mxu0 }
 0x16f   : > { %v1873_v5 = vpop.f32.mrf.mxu1  ;;  %v1904_v56 = vadd.f32 %v1804_v10, %v1550_v9 }
 0x170   : > { %v1905_v27 = vadd.f32 %v1873_v5, %v1551_v45  ;;  %v1806_v50 = vpop.f32.mrf.mxu0 }
 0x171   : > { %v4538_v0 = vpop.f32.mrf.mxu1  ;;  %v1906_v16 = vadd.f32 %v1806_v50, %v1552_v25 }
 0x172   : > { %v1914_v7 = vadd.f32 %v4538_v0, %v1560_v18  ;;  %v1808_v47 = vpop.f32.mrf.mxu0 }
 0x173   : > { %v1876_v29 = vpop.f32.mrf.mxu1  ;;  %v1907_v63 = vadd.f32 %v1808_v47, %v1553_v35 }
 0x174   : > { %v1908_v3 = vadd.f32 %v1876_v29, %v1554_v23  ;;  %v1812_v11 = vpop.f32.mrf.mxu0 }
 0x175   : > { %v4541_v43 = vpop.f32.mrf.mxu1  ;;  %v1909_v21 = vadd.f32 %v1812_v11, %v1555_v54 }
 0x176   : > { %v1923_v6 = vadd.f32 %v4541_v43, %v1569_v13  ;;  %v1814_v31 = vpop.f32.mrf.mxu0 }
 0x177   : > { %v1889_v37 = vpop.f32.mrf.mxu1  ;;  %v1910_v14 = vadd.f32 %v1814_v31, %v1556_v1 }
 0x178   : > { %v1917_v38 = vadd.f32 %v1889_v37, %v1563_v32  ;;  %v1816_v58 = vpop.f32.mrf.mxu0 }
 0x179   : > { %v4542_v34 = vpop.f32.mrf.mxu1  ;;  %v1912_v9 = vadd.f32 %v1816_v58, %v1558_v17 }
 0x17a   : > { %v1818_v45 = vpop.f32.mrf.mxu0 }
 0x17b   : > { %v1892_v12 = vpop.f32.mrf.mxu1  ;;  %v1913_v2 = vadd.f32 %v1818_v45, %v1559_v46 }
 0x17c   : > { %v1920_v25 = vadd.f32 %v1892_v12, %v1566_v57  ;;  %v1822_v18 = vpop.f32.mrf.mxu0 }
 0x17d   : > { %v1915_v28 = vadd.f32 %v1822_v18, %v1561_v19 }
 0x17e   : > { %v1824_v30 = vpop.f32.mrf.mxu0 }
 0x17f   : > { %v1916_v35 = vadd.f32 %v1824_v30, %v1562_v20 }
 0x180   : > { %v1826_v23 = vpop.f32.mrf.mxu0 }
 0x181   : > { %v1918_v62 = vadd.f32 %v1826_v23, %v1564_v44 }
 0x182   : > { %v1828_v40 = vpop.f32.mrf.mxu0 }
 0x183   : > { %v1919_v54 = vadd.f32 %v1828_v40, %v1565_v26 }
 0x184   : > { %v1832_v13 = vpop.f32.mrf.mxu0 }
 0x185   : > { %v1921_v60 = vadd.f32 %v1832_v13, %v1567_v24 }
 0x186   : > { %v1834_v48 = vpop.f32.mrf.mxu0 }
 0x187   : > { %v1922_v1 = vadd.f32 %v1834_v48, %v1568_v22 }
 0x188   : > { %v1836_v32 = vpop.f32.mrf.mxu0 }
 0x18a   : > { %v1837_v55 = vpop.f32.mrf.mxu0 }
 0x18c   : > { %v2156_v42 = vpop.f32.mrf.mxu0 }
 0x18d   : > { %v4561_v17 = vpop.f32.mrf.mxu1  ;;  %v6402_v4 = vadd.f32 %v2156_v42, %v1903_v53 }
 0x18e   : > { %v6404_v46 = vadd.f32 %v4561_v17, %v1911_v59  ;;  %v2158_v57 = vpop.f32.mrf.mxu0 }
 0x18f   : > { %v2227_v33 = vpop.f32.mrf.mxu1  ;;  %v6406_v19 = vadd.f32 %v2158_v57, %v1904_v56 }
 0x190   : > { %v6408_v61 = vadd.f32 %v2227_v33, %v1905_v27  ;;  %v2160_v20 = vpop.f32.mrf.mxu0 }
 0x191   : > { %v4562_v8 = vpop.f32.mrf.mxu1  ;;  %v6410_v44 = vadd.f32 %v2160_v20, %v1906_v16 }
 0x192   : > { %v6412_v15 = vadd.f32 %v4562_v8, %v1914_v7  ;;  %v2162_v26 = vpop.f32.mrf.mxu0 }
 0x193   : > { %v2230_v51 = vpop.f32.mrf.mxu1  ;;  %v6414_v24 = vadd.f32 %v2162_v26, %v1907_v63 }
 0x194   : > { %v6416_v49 = vadd.f32 %v2230_v51, %v1908_v3  ;;  %v2166_v22 = vpop.f32.mrf.mxu0 }
 0x195   : > { %v4565_v39 = vpop.f32.mrf.mxu1  ;;  %v6418_v52 = vadd.f32 %v2166_v22, %v1909_v21 }
 0x196   : > { %v6420_v41 = vadd.f32 %v4565_v39, %v1923_v6  ;;  %v2168_v36 = vpop.f32.mrf.mxu0 }
 0x197   : > { %v2243_v53 = vpop.f32.mrf.mxu1  ;;  %v6422_v59 = vadd.f32 %v2168_v36, %v1910_v14 }
 0x198   : > { %v6424_v10 = vadd.f32 %v2243_v53, %v1917_v38  ;;  %v2170_v5 = vpop.f32.mrf.mxu0 }
 0x199   : > { %v4566_v56 = vpop.f32.mrf.mxu1  ;;  %v6426_v27 = vadd.f32 %v2170_v5, %v1912_v9 }
 0x19a   : > { %v2172_v50 = vpop.f32.mrf.mxu0 }
 0x19b   : > { %v2246_v0 = vpop.f32.mrf.mxu1  ;;  %v6428_v16 = vadd.f32 %v2172_v50, %v1913_v2 }
 0x19c   : > { %v6430_v7 = vadd.f32 %v2246_v0, %v1920_v25  ;;  %v2176_v47 = vpop.f32.mrf.mxu0 }
 0x19d   : > { %v6432_v29 = vadd.f32 %v2176_v47, %v1915_v28 }
 0x19e   : > { %v2178_v63 = vpop.f32.mrf.mxu0 }
 0x19f   : > { %v6434_v3 = vadd.f32 %v2178_v63, %v1916_v35 }
 0x1a0   : > { %v2180_v11 = vpop.f32.mrf.mxu0 }
 0x1a1   : > { %v6436_v43 = vadd.f32 %v2180_v11, %v1918_v62 }
 0x1a2   : > { %v2182_v21 = vpop.f32.mrf.mxu0 }
 0x1a3   : > { %6636 = vst [vmem:[#allocation4_spill] sm:$0xff] %v6436_v43  ;;  %v6438_v6 = vadd.f32 %v2182_v21, %v1919_v54 }
 0x1a4   : > { %v2186_v31 = vpop.f32.mrf.mxu0 }
 0x1a5   : > { %6637 = vst [vmem:[#allocation2_spill] sm:$0xff] %v6438_v6  ;;  %v6440_v37 = vadd.f32 %v2186_v31, %v1921_v60 }
 0x1a6   : > { %v2188_v14 = vpop.f32.mrf.mxu0 }
 0x1a7   : > { %6638 = vst [vmem:[#allocation3_spill] sm:$0xff] %v6440_v37  ;;  %v6442_v38 = vadd.f32 %v2188_v14, %v1922_v1 }
 0x1a8   : > { %v2190_v58 = vpop.f32.mrf.mxu0 }
 0x1a9   : > { %6639 = vst [vmem:[#allocation5_spill] sm:$0xff] %v6442_v38  ;;  %v3602_v58 = vlaneseq }
 0x1aa   : > { %v2191_v34 = vpop.f32.mrf.mxu0 }
 0x1ac   : > { %v2528_v9 = vpop.f32.mrf.mxu0 }
 0x1ad   : > { %v4585_v45 = vpop.f32.mrf.mxu1  ;;  %v2629_v6 = vadd.f32 %v2528_v9, %v6402_v4 }
 0x1ae   : > { %v2530_v12 = vpop.f32.mrf.mxu0 }
 0x1af   : > { %v2599_v2 = vpop.f32.mrf.mxu1 }
 0x1b0   : > { %v2532_v25 = vpop.f32.mrf.mxu0 }
 0x1b1   : > { %v4586_v18 = vpop.f32.mrf.mxu1 }
 0x1b2   : > { %v6444_v28 = vpop.f32.mrf.mxu0  ;;  %v2640_v4 = vadd.f32 %v4586_v18, %v6412_v15 }
 0x1b3   : > { %v6446_v30 = vpop.f32.mrf.mxu1 }
 0x1b4   : > { %v6448_v35 = vpop.f32.mrf.mxu0 }
 0x1b5   : > { %v6450_v23 = vpop.f32.mrf.mxu1 }
 0x1b6   : > { %v6452_v62 = vpop.f32.mrf.mxu0  ;;  %v2649_v18 = vadd.f32 %v6450_v23, %v6420_v41 }
 0x1b7   : > { %v6454_v40 = vpop.f32.mrf.mxu1 }
 0x1b8   : > { %v6456_v54 = vpop.f32.mrf.mxu0  ;;  %v2643_v41 = vadd.f32 %v6454_v40, %v6424_v10 }
 0x1b9   : > { %v4590_v13 = vpop.f32.mrf.mxu1 }
 0x1ba   : > { %v6458_v60 = vpop.f32.mrf.mxu0 }
 0x1bb   : > { %v6472_v33 = vpop.f32.mrf.mxu1 }
 0x1bc   : > { %v6460_v48 = vpop.f32.mrf.mxu0 }
 0x1be   : > { %v6462_v1 = vpop.f32.mrf.mxu0 }
 0x1c0   : > { %v6464_v32 = vpop.f32.mrf.mxu0 }
 0x1c1   : > { %6640 = vst [vmem:[#allocation6_spill] sm:$0xff] %v6464_v32  ;;  %v2631_v32 = vadd.f32 %v2599_v2, %v6408_v61  ;;  %v2634_v61 = vadd.f32 %v6446_v30, %v6416_v49  ;;  %v2635_v49 = vadd.f32 %v6448_v35, %v6418_v52  ;;  %v2636_v52 = vadd.f32 %v6452_v62, %v6422_v59 }
 0x1c2   : > { %v6466_v55 = vpop.f32.mrf.mxu0  ;;  %v2638_v59 = vadd.f32 %v6456_v54, %v6426_v27  ;;  %v2646_v27 = vadd.f32 %v6472_v33, %v6430_v7 }
 0x1c3   : > { %6641 = vst [vmem:[#allocation7_spill] sm:$0xff] %v6466_v55 }
 0x1c4   : > { %v6468_v42 = vpop.f32.mrf.mxu0 }
 0x1c5   : > { %6642 = vst [vmem:[#allocation8_spill] sm:$0xff] %v6468_v42 }
 0x1c6   : > { %v6470_v17 = vpop.f32.mrf.mxu0 }
 0x1c7   : > { %6643 = vst [vmem:[#allocation9_spill] sm:$0xff] %v6470_v17 }
 0x1c8   : > { %v2562_v57 = vpop.f32.mrf.mxu0 }
 0x1c9   : > { %v3603_v57 = vshrl.u32 %v3602_v58, 7 }
 0x1ca   : > { %v2563_v20 = vpop.f32.mrf.mxu0 }
 0x1cb   : > { %v3604_v38 = vsub.s32 0, %v3603_v57  ;;  %v3612_v42 = vsub.s32 2, %v3603_v57  ;;  %v3608_v55 = vsub.s32 1, %v3603_v57 }
 0x1cc   : > { %v2968_v8 = vpop.f32.mrf.mxu0 }
 0x1cd   : > { %v4609_v26 = vpop.f32.mrf.mxu1  ;;  %v3069_v43 = vadd.f32 %v2968_v8, %v2629_v6 }
 0x1ce   : > { %v2970_v51 = vpop.f32.mrf.mxu0 }
 0x1cf   : > { %v3039_v22 = vpop.f32.mrf.mxu1 }
 0x1d0   : > { %v2972_v39 = vpop.f32.mrf.mxu0 }
 0x1d1   : > { %v4610_v36 = vpop.f32.mrf.mxu1 }
 0x1d2   : > { %v2974_v53 = vpop.f32.mrf.mxu0 }
 0x1d3   : > { %v3042_v5 = vpop.f32.mrf.mxu1 }
 0x1d4   : > { %v6474_v56 = vpop.f32.mrf.mxu0  ;;  %v3074_v30 = vadd.f32 %v3042_v5, %v2634_v61  ;;  %v2642_v61 = vadd.f32 %v6462_v1, %v6434_v3 }
 0x1d5   : > { %v6476_v50 = vpop.f32.mrf.mxu1  ;;  %v3075_v35 = vadd.f32 %v6474_v56, %v2635_v49 }
 0x1d6   : > { %v6478_v0 = vpop.f32.mrf.mxu0  ;;  %v3089_v23 = vadd.f32 %v6476_v50, %v2649_v18 }
 0x1d7   : > { %v6480_v47 = vpop.f32.mrf.mxu1  ;;  %v3076_v10 = vadd.f32 %v6478_v0, %v2636_v52 }
 0x1d8   : > { %v6482_v63 = vpop.f32.mrf.mxu0  ;;  %v3083_v62 = vadd.f32 %v6480_v47, %v2643_v41  ;;  %v6657_v41 = vld [vmem:[#allocation3_spill] sm:$0xff] }
 0x1d9   : > { %v4614_v11 = vpop.f32.mrf.mxu1  ;;  %v3078_v54 = vadd.f32 %v6482_v63, %v2638_v59 }
 0x1da   : > { %v6484_v21 = vpop.f32.mrf.mxu0  ;;  %v3600_v11 = vld [vmem:[%s6612_s2] sm:$0x7] }
 0x1db   : > { %v6505_v58 = vrot.slane %v3600_v11, %v3604_v38  ;;  %v3071_v38 = vadd.f32 %v3039_v22, %v2631_v32 }
 0x1dc   : > { %v6486_v31 = vpop.f32.mrf.mxu0 }
 0x1dd   : > { %6644 = vst [vmem:[#allocation10_spill] sm:$0xff] %v6486_v31 }
 0x1de   : > { %v6488_v14 = vpop.f32.mrf.mxu0 }
 0x1df   : > { %6645 = vst [vmem:[#allocation11_spill] sm:$0xff] %v6488_v14  ;;  %v2637_v14 = vadd.f32 %v4585_v45, %v6404_v46  ;;  %v6513_v45 = vrot.slane %v3600_v11, %v3608_v55 }
 0x1e0   : > { %v6490_v34 = vpop.f32.mrf.mxu0 }
 0x1e1   : > { %6646 = vst [vmem:[#allocation12_spill] sm:$0xff] %v6490_v34  ;;  %v6503_v34 = vpop.f32.mrf.mxu1  ;;  %v3077_v31 = vadd.f32 %v4609_v26, %v2637_v14 }
 0x1e2   : > { %v6492_v13 = vpop.f32.mrf.mxu0  ;;  %v3086_v63 = vadd.f32 %v6503_v34, %v2646_v27 }
 0x1e3   : > { %6647 = vst [vmem:[#allocation13_spill] sm:$0xff] %v6492_v13 }
 0x1e4   : > { %v6494_v20 = vpop.f32.mrf.mxu0 }
 0x1e5   : > { %6648 = vst [vmem:[#allocation14_spill] sm:$0xff] %v6494_v20  ;;  %v6507_v20 = vrot.slane %v3600_v11, %v3612_v42 }
 0x1e6   : > { %v6496_v17 = vpop.f32.mrf.mxu0 }
 0x1e7   : > { %6649 = vst [vmem:[#allocation15_spill] sm:$0xff] %v6496_v17  ;;  %v2630_v17 = vadd.f32 %v2530_v12, %v6406_v19  ;;  %v2633_v19 = vadd.f32 %v6444_v28, %v6414_v24  ;;  %v3080_v12 = vadd.f32 %v4610_v36, %v2640_v4  ;;  %v2639_v4 = vadd.f32 %v6458_v60, %v6428_v16 }
 0x1e8   : > { %v3002_v37 = vpop.f32.mrf.mxu0  ;;  %v2641_v16 = vadd.f32 %v6460_v48, %v6432_v29  ;;  %v6650_v29 = vld [vmem:[#allocation10_spill] sm:$0xff] }
 0x1e9   : > { %v2632_v37 = vadd.f32 %v2532_v25, %v6410_v44  ;;  %v3073_v28 = vadd.f32 %v2974_v53, %v2633_v19  ;;  %v3079_v7 = vadd.f32 %v6484_v21, %v2639_v4 }
 0x1ea   : > { %v3003_v13 = vpop.f32.mrf.mxu0  ;;  %v3081_v48 = vadd.f32 %v6650_v29, %v2641_v16 }
 0x1eb   : > { %v3070_v13 = vadd.f32 %v2970_v51, %v2630_v17  ;;  %v3072_v6 = vadd.f32 %v2972_v39, %v2632_v37 }
 0x1ec   : > { %v3405_v9 = vpop.f32.mrf.mxu0 }
 0x1ed   : > { %v4633_v46 = vpop.f32.mrf.mxu1  ;;  %v3506_v57 = vadd.f32 %v3405_v9, %v3069_v43 }
 0x1ee   : > { %v3514_v42 = vadd.f32 %v4633_v46, %v3077_v31  ;;  %v3407_v44 = vpop.f32.mrf.mxu0 }
 0x1ef   : > { %v3476_v15 = vpop.f32.mrf.mxu1  ;;  %v3617_v43 = vadd.f32 %v6505_v58, %v3506_v57  ;;  %v3507_v24 = vadd.f32 %v3407_v44, %v3070_v13 }
 0x1f0   : > { %v3625_v2 = vadd.f32 %v6507_v20, %v3514_v42  ;;  %v3508_v25 = vadd.f32 %v3476_v15, %v3071_v38  ;;  %v3409_v32 = vpop.f32.mrf.mxu0  ;;  %v6651_v15 = vld [vmem:[#allocation4_spill] sm:$0xff] }
 0x1f1   : > { %v4634_v55 = vpop.f32.mrf.mxu1  ;;  %3638 = vst [vmem:[%s6524_s12] sm:$0xff] %v3617_v43  ;;  %v3618_v17 = vadd.f32 %v6513_v45, %v3507_v24  ;;  %v3509_v26 = vadd.f32 %v3409_v32, %v3072_v6  ;;  %v6652_v43 = vld [vmem:[#allocation6_spill] sm:$0xff]  ;;  %v6655_v32 = vld [vmem:[#allocation7_spill] sm:$0xff] }
 0x1f2   : > { %3646 = vst [vmem:[%s6524_s12 + $0x40] sm:$0xff] %v3625_v2  ;;  %v3619_v8 = vadd.f32 %v6507_v20, %v3508_v25  ;;  %v3517_v51 = vadd.f32 %v4634_v55, %v3080_v12  ;;  %v3411_v22 = vpop.f32.mrf.mxu0  ;;  %v2644_v2 = vadd.f32 %v6652_v43, %v6651_v15  ;;  %v6653_v25 = vld [vmem:[#allocation11_spill] sm:$0xff] }
 0x1f3   : > { %v3479_v39 = vpop.f32.mrf.mxu1  ;;  %3639 = vst [vmem:[%s6524_s12 + $0x8] sm:$0xff] %v3618_v17  ;;  %v3620_v36 = vadd.f32 %v6505_v58, %v3509_v26  ;;  %v3510_v5 = vadd.f32 %v3411_v22, %v3073_v28  ;;  %v3082_v49 = vadd.f32 %v6653_v25, %v2642_v61  ;;  %v6656_v17 = vld [vmem:[#allocation12_spill] sm:$0xff]  ;;  %v6659_v22 = vld [vmem:[#allocation13_spill] sm:$0xff] }
 0x1f4   : > { %3640 = vst [vmem:[%s6524_s12 + $0x10] sm:$0xff] %v3619_v8  ;;  %v3628_v53 = vadd.f32 %v6507_v20, %v3517_v51  ;;  %v3511_v31 = vadd.f32 %v3479_v39, %v3074_v30  ;;  %v3415_v40 = vpop.f32.mrf.mxu0  ;;  %v6654_v30 = vld [vmem:[#allocation2_spill] sm:$0xff]  ;;  %v3084_v8 = vadd.f32 %v6656_v17, %v2644_v2 }
 0x1f5   : > { %v4637_v56 = vpop.f32.mrf.mxu1  ;;  %3641 = vst [vmem:[%s6524_s12 + $0x18] sm:$0xff] %v3620_v36  ;;  %v3621_v50 = vadd.f32 %v6513_v45, %v3510_v5  ;;  %v3512_v11 = vadd.f32 %v3415_v40, %v3075_v35  ;;  %v2645_v55 = vadd.f32 %v6655_v32, %v6654_v30  ;;  %v6658_v35 = vld [vmem:[#allocation8_spill] sm:$0xff]  ;;  %v6660_v5 = vld [vmem:[#allocation5_spill] sm:$0xff] }
 0x1f6   : > { %3649 = vst [vmem:[%s6524_s12 + $0x58] sm:$0xff] %v3628_v53  ;;  %v3622_v14 = vadd.f32 %v6507_v20, %v3511_v31  ;;  %v3526_v37 = vadd.f32 %v4637_v56, %v3089_v23  ;;  %v3417_v0 = vpop.f32.mrf.mxu0  ;;  %v2647_v23 = vadd.f32 %v6658_v35, %v6657_v41  ;;  %v6661_v31 = vld [vmem:[#allocation9_spill] sm:$0xff] }
 0x1f7   : > { %v3492_v47 = vpop.f32.mrf.mxu1  ;;  %3642 = vst [vmem:[%s6524_s12 + $0x20] sm:$0xff] %v3621_v50  ;;  %v3623_v9 = vadd.f32 %v6505_v58, %v3512_v11  ;;  %v3513_v13 = vadd.f32 %v3417_v0, %v3076_v10  ;;  %v2648_v59 = vadd.f32 %v6661_v31, %v6660_v5  ;;  %v6662_v10 = vld [vmem:[#allocation14_spill] sm:$0xff] }
 0x1f8   : > { %3643 = vst [vmem:[%s6524_s12 + $0x28] sm:$0xff] %v3622_v14  ;;  %v3637_v46 = vadd.f32 %v6507_v20, %v3526_v37  ;;  %v3520_v38 = vadd.f32 %v3492_v47, %v3083_v62  ;;  %v3419_v60 = vpop.f32.mrf.mxu0  ;;  %v3087_v62 = vadd.f32 %v6662_v10, %v2647_v23  ;;  %v6663_v14 = vld [vmem:[#allocation15_spill] sm:$0xff] }
 0x1f9   : > { %v4638_v33 = vpop.f32.mrf.mxu1  ;;  %3644 = vst [vmem:[%s6524_s12 + $0x30] sm:$0xff] %v3623_v9  ;;  %v3624_v57 = vadd.f32 %v6513_v45, %v3513_v13  ;;  %v3515_v19 = vadd.f32 %v3419_v60, %v3078_v54  ;;  %v3088_v11 = vadd.f32 %v6663_v14, %v2648_v59 }
 0x1fa   : > { %3658 = vst [vmem:[%s6524_s12 + $0xa0] sm:$0x1] %v3637_v46  ;;  %v3631_v42 = vadd.f32 %v6507_v20, %v3520_v38  ;;  %v3421_v6 = vpop.f32.mrf.mxu0 }
 0x1fb   : > { %v3495_v12 = vpop.f32.mrf.mxu1  ;;  %3645 = vst [vmem:[%s6524_s12 + $0x38] sm:$0xff] %v3624_v57  ;;  %v3626_v21 = vadd.f32 %v6505_v58, %v3515_v19  ;;  %v3516_v34 = vadd.f32 %v3421_v6, %v3079_v7 }
 0x1fc   : > { %3652 = vst [vmem:[%s6524_s12 + $0x70] sm:$0xff] %v3631_v42  ;;  %v3523_v44 = vadd.f32 %v3495_v12, %v3086_v63  ;;  %v3425_v24 = vpop.f32.mrf.mxu0 }
 0x1fd   : > { %3647 = vst [vmem:[%s6524_s12 + $0x48] sm:$0xff] %v3626_v21  ;;  %v3627_v3 = vadd.f32 %v6513_v45, %v3516_v34  ;;  %v3518_v18 = vadd.f32 %v3425_v24, %v3081_v48 }
 0x1fe   : > { %v3634_v1 = vadd.f32 %v6507_v20, %v3523_v44  ;;  %v3427_v28 = vpop.f32.mrf.mxu0  ;;  %v3085_v20 = vadd.f32 %v6659_v22, %v2645_v55 }
 0x1ff   : > { %3648 = vst [vmem:[%s6524_s12 + $0x50] sm:$0xff] %v3627_v3  ;;  %v3629_v26 = vadd.f32 %v6505_v58, %v3518_v18  ;;  %v3519_v51 = vadd.f32 %v3427_v28, %v3082_v49 }
 0x200   : > { %3655 = vst [vmem:[%s6524_s12 + $0x88] sm:$0xff] %v3634_v1  ;;  %v3429_v52 = vpop.f32.mrf.mxu0 }
 0x201   : > { %3650 = vst [vmem:[%s6524_s12 + $0x60] sm:$0xff] %v3629_v26  ;;  %v3630_v39 = vadd.f32 %v6513_v45, %v3519_v51  ;;  %v3521_v36 = vadd.f32 %v3429_v52, %v3084_v8 }
 0x202   : > { %v3431_v53 = vpop.f32.mrf.mxu0 }
 0x203   : > { %3651 = vst [vmem:[%s6524_s12 + $0x68] sm:$0xff] %v3630_v39  ;;  %v3632_v40 = vadd.f32 %v6505_v58, %v3521_v36  ;;  %v3522_v56 = vadd.f32 %v3431_v53, %v3085_v20 }
 0x204   : > { %v3435_v50 = vpop.f32.mrf.mxu0 }
 0x205   : > { %3653 = vst [vmem:[%s6524_s12 + $0x78] sm:$0xff] %v3632_v40  ;;  %v3633_v37 = vadd.f32 %v6513_v45, %v3522_v56  ;;  %v3524_v4 = vadd.f32 %v3435_v50, %v3087_v62 }
 0x206   : > { %v3437_v27 = vpop.f32.mrf.mxu0 }
 0x207   : > { %3654 = vst [vmem:[%s6524_s12 + $0x80] sm:$0xff] %v3633_v37  ;;  %v3635_v54 = vadd.f32 %v6505_v58, %v3524_v4  ;;  %v3525_v0 = vadd.f32 %v3437_v27, %v3088_v11 }
 0x208   : > { %v3439_v47 = vpop.f32.mrf.mxu0 }
 0x209   : > { %3656 = vst [vmem:[%s6524_s12 + $0x90] sm:$0x1] %v3635_v54  ;;  %v3636_v9 = vadd.f32 %v6513_v45, %v3525_v0 }
 0x20a   : > { %v3440_v46 = vpop.f32.mrf.mxu0 }
 0x20b   : > { %3657 = vst [vmem:[%s6524_s12 + $0x98] sm:$0x1] %v3636_v9 }
 0x20c PF: > { %s15_s15 = sadd.s32 1, %s4977_s15  }
 0x20d   : > { %p12_p4 = scmp.ge.s32.totalorder %s15_s15, 4  }
 0x20f   :  { %14 = sbr.rel (!%p12_p4) target bundleno = 1 (0x1), region = 87 }

// kernel: inception_b_forward.13
= control target key start
LH: loop header
LB: loop body
LE: loop exit
PB: predicated region body
PF: predicated region fallthrough
CT: control target
= control target key end

     0   :  { %s5589_s15 = smov 0   ;;  %s6543_s0 = inlined_call_operand.vmem [shape: bf16[2,3,288,128], index: 0, kind: input, shape index: {}]   ;;  %s6544_s1 = inlined_call_operand.vmem [shape: bf16[9,128,128], index: 1, kind: input, shape index: {}]   ;;  %s6545_s2 = inlined_call_operand.vmem [shape: f32[256,128], index: 2, kind: input, shape index: {}]   ;;  %s6546_s3 = inlined_call_operand.vmem [shape: bf16[2,256,128], index: 3, kind: output, shape index: {0}]   ;;  %s6547_s4 = inlined_call_operand.vmem [shape: f32[2,1,128], index: 4, kind: output, shape index: {1}]  }
   0x1 LB: > { %s3961_s16 = sadd.s32 4294967295, %s5562_s15   ;;  %p3965_p0 = scmp.ge.s32.totalorder %s5562_s15, 1  ;;  %s5562_s15 = sphi %s5589_s15, %s15_s15  }
   0x2   : > { %p165_p1 = scmp.lt.s32.totalorder %s5562_s15, 3 }
   0x4   : > { %p166_p2 = pnand %p3965_p0, %p165_p1 }
   0x6   : > { %169 = sbr.rel (%p166_p2) target bundleno = 548 (0x224), region = 32 }
   0xb   : > { %v5340_v0 = vld [vmem:[%s6544_s1 + $0x78] sm:$0xff]   ;;  %p194_p3 = scmp.lt.s32.totalorder %s3961_s16, 1  ;;  %v5341_v1 = vld [vmem:[%s6544_s1 + $0x70] sm:$0xff]   ;;  %v5342_v2 = vld [vmem:[%s6544_s1 + $0x68] sm:$0xff]  }
   0xc   : > { %4883 = vmatprep.subr.bf16.mxu0 %v5340_v0  ;;  %5315 = vmatprep.subr.bf16.mxu1 %v5340_v0  ;;  %v5343_v3 = vld [vmem:[%s6544_s1 + $0x60] sm:$0xff]   ;;  %v5344_v6 = vld [vmem:[%s6544_s1 + $0x58] sm:$0xff]   ;;  %v5345_v7 = vld [vmem:[%s6544_s1 + $0x50] sm:$0xff]  }
   0xd   : > { %s6603_s16 = smov (!%p194_p3, %s3961_s16), 1  ;;  %4884 = vmatpush3.bf16.msra.mxu0 %v5340_v0  ;;  %5323 = vmatpush3.bf16.msra.mxu1 %v5340_v0  ;;  %v5346_v8 = vld [vmem:[%s6544_s1 + $0x48] sm:$0xff]   ;;  %v5347_v9 = vld [vmem:[%s6544_s1 + $0x40] sm:$0xff]   ;;  %v5352_v10 = vld [vmem:[%s6544_s1 + $0x38] sm:$0xff]  }
   0xe   : > { %4885 = vmatprep.subr.bf16.mxu0 %v5341_v1  ;;  %5316 = vmatprep.subr.bf16.mxu1 %v5341_v1  ;;  %s5331_s23 = smul.u32 432, %s6603_s16  ;;  %v5353_v12 = vld [vmem:[%s6544_s1 + $0xb8] sm:$0xff]   ;;  %v5354_v14 = vld [vmem:[%s6544_s1 + $0x30] sm:$0xff]   ;;  %v5360_v18 = vld [vmem:[%s6544_s1 + $0x28] sm:$0xff]   ;;  %s4539_s30 = sshll.u32 %s6603_s16, 7 }
   0xf   : > { %v5355_v15 = vld [vmem:[%s6544_s1 + $0xb0] sm:$0xff]   ;;  %v5361_v20 = vld [vmem:[%s6544_s1 + $0xa8] sm:$0xff]   ;;  %v5362_v22 = vld [vmem:[%s6544_s1 + $0x20] sm:$0xff]   ;;  %s6371_s11 = scalar_lea.vmem %s6546_s3, %s4539_s30 }
  0x10   : > { %s5612_s26 = scalar_lea.vmem %s6543_s0, %s5331_s23  ;;  %v5363_v23 = vld [vmem:[%s6544_s1 + $0xa0] sm:$0xff]   ;;  %v5368_v26 = vld [vmem:[%s6544_s1 + $0x18] sm:$0xff]   ;;  %v5370_v30 = vld [vmem:[%s6544_s1 + $0x10] sm:$0xff]  }
  0x11   : > { %4886 = vmatpush3.bf16.msra.mxu0 %v5341_v1  ;;  %5324 = vmatpush3.bf16.msra.mxu1 %v5341_v1  ;;  %v5348_v4 = vld [vmem:[%s5612_s26 + $0x90] sm:$0xff]   ;;  %v5350_v11 = vld [vmem:[%s5612_s26 + $0x98] sm:$0xff]   ;;  %v5356_v16 = vld [vmem:[%s5612_s26 + $0xa0] sm:$0xff]  }
  0x12   : > { %4887 = vmatprep.subr.bf16.mxu0 %v5342_v2  ;;  %5317 = vmatprep.subr.bf16.mxu1 %v5342_v2  ;;  %v5349_v5 = vld [vmem:[%s5612_s26 + $0xd0] sm:$0xff]   ;;  %v5351_v13 = vld [vmem:[%s5612_s26 + $0xd8] sm:$0xff]   ;;  %v5357_v17 = vld [vmem:[%s5612_s26 + $0xe0] sm:$0xff]  }
  0x13   : > { %4899 = vmatprep.mubr.bf16.mxu0 %v5348_v4  ;;  %4915 = vmatprep.mubr.bf16.mxu1 %v5349_v5  ;;  %v5358_v19 = vld [vmem:[%s5612_s26 + $0xa8] sm:$0xff]   ;;  %v5364_v24 = vld [vmem:[%s5612_s26 + $0xb0] sm:$0xff]   ;;  %v5366_v27 = vld [vmem:[%s5612_s26 + $0xb8] sm:$0xff]  }
  0x14   : > { %v5359_v21 = vld [vmem:[%s5612_s26 + $0xe8] sm:$0xff]   ;;  %v5365_v25 = vld [vmem:[%s5612_s26 + $0xf0] sm:$0xff]   ;;  %v5369_v28 = vld [vmem:[%s6544_s1 + $0x98] sm:$0xff]  }
  0x15   : > { %4888 = vmatpush3.bf16.msra.mxu0 %v5342_v2  ;;  %5325 = vmatpush3.bf16.msra.mxu1 %v5342_v2  ;;  %v5367_v29 = vld [vmem:[%s5612_s26 + $0xf8] sm:$0xff]   ;;  %v5371_v31 = vld [vmem:[%s6544_s1 + $0x90] sm:$0xff]   ;;  %v5372_v32 = vld [vmem:[%s5612_s26 + $0xc0] sm:$0xff]  }
  0x16   : > { %4889 = vmatprep.subr.bf16.mxu0 %v5343_v3  ;;  %5318 = vmatprep.subr.bf16.mxu1 %v5343_v3  ;;  %v5373_v33 = vld [vmem:[%s5612_s26 + $0x100] sm:$0xff]   ;;  %v5376_v34 = vld [vmem:[%s6544_s1 + $0x8] sm:$0xff]   ;;  %v5384_v42 = vld [vmem:[%s6544_s1 + $0xf8] sm:$0xff]  }
  0x17   : > { %v5374_v35 = vld [vmem:[%s5612_s26 + $0xc8] sm:$0xff]   ;;  %v5378_v38 = vld [vmem:[%s6544_s1] sm:$0xff]   ;;  %v5385_v44 = vld [vmem:[%s6544_s1 + $0x138] sm:$0xff]  }
  0x18   : > { %v5377_v36 = vld [vmem:[%s6544_s1 + $0x88] sm:$0xff]   ;;  %v5379_v39 = vld [vmem:[%s6544_s1 + $0x80] sm:$0xff]   ;;  %v5386_v46 = vld [vmem:[%s5612_s26 + $0x10] sm:$0xff]  }
  0x19   : > { %4890 = vmatpush3.bf16.msra.mxu0 %v5343_v3  ;;  %5326 = vmatpush3.bf16.msra.mxu1 %v5343_v3  ;;  %v5375_v37 = vld [vmem:[%s5612_s26 + $0x108] sm:$0xff]   ;;  %v5380_v40 = vld [vmem:[%s5612_s26] sm:$0xff]   ;;  %v5387_v47 = vld [vmem:[%s5612_s26 + $0x130] sm:$0xff]  }
  0x1a   : > { %4891 = vmatprep.subr.bf16.mxu0 %v5344_v6  ;;  %5319 = vmatprep.subr.bf16.mxu1 %v5344_v6  ;;  %v5381_v41 = vld [vmem:[%s5612_s26 + $0x120] sm:$0xff]   ;;  %v5382_v43 = vld [vmem:[%s5612_s26 + $0x8] sm:$0xff]   ;;  %v5390_v48 = vld [vmem:[%s6544_s1 + $0xf0] sm:$0xff]  }
  0x1b   : > { %v5383_v45 = vld [vmem:[%s5612_s26 + $0x128] sm:$0xff]   ;;  %v5391_v49 = vld [vmem:[%s6544_s1 + $0x130] sm:$0xff]   ;;  %v5388_v51 = vld [vmem:[%s5612_s26 + $0x18] sm:$0xff]  }
  0x1c   : > { %v5396_v50 = vld [vmem:[%s6544_s1 + $0xe8] sm:$0xff]   ;;  %v5389_v53 = vld [vmem:[%s5612_s26 + $0x138] sm:$0xff]   ;;  %v5392_v54 = vld [vmem:[%s5612_s26 + $0x20] sm:$0xff]  }
  0x1d   : > { %4892 = vmatpush3.bf16.msra.mxu0 %v5344_v6  ;;  %5327 = vmatpush3.bf16.msra.mxu1 %v5344_v6  ;;  %v5397_v52 = vld [vmem:[%s6544_s1 + $0x128] sm:$0xff]   ;;  %v5393_v55 = vld [vmem:[%s5612_s26 + $0x140] sm:$0xff]   ;;  %v5408_v60 = vld [vmem:[%s6544_s1 + $0xd8] sm:$0xff]  }
  0x1e   : > { %4893 = vmatprep.subr.bf16.mxu0 %v5345_v7  ;;  %5320 = vmatprep.subr.bf16.mxu1 %v5345_v7  ;;  %v5402_v56 = vld [vmem:[%s6544_s1 + $0xe0] sm:$0xff]   ;;  %v5394_v58 = vld [vmem:[%s5612_s26 + $0x28] sm:$0xff]   ;;  %v5409_v61 = vld [vmem:[%s6544_s1 + $0x118] sm:$0xff]  }
  0x1f   : > { %v5403_v57 = vld [vmem:[%s6544_s1 + $0x120] sm:$0xff]   ;;  %v5395_v59 = vld [vmem:[%s5612_s26 + $0x148] sm:$0xff]   ;;  %v5398_v62 = vld [vmem:[%s5612_s26 + $0x30] sm:$0xff]  }
  0x20   : > { %v5399_v63 = vld [vmem:[%s5612_s26 + $0x150] sm:$0xff]   ;;  %v5400_v2 = vld [vmem:[%s5612_s26 + $0x38] sm:$0xff]   ;;  %v5420_v4 = vld [vmem:[%s6544_s1 + $0xc8] sm:$0xff]  }
  0x21   : > { %4894 = vmatpush3.bf16.msra.mxu0 %v5345_v7  ;;  %5328 = vmatpush3.bf16.msra.mxu1 %v5345_v7  ;;  %v5414_v0 = vld [vmem:[%s6544_s1 + $0xd0] sm:$0xff]   ;;  %v5401_v3 = vld [vmem:[%s5612_s26 + $0x158] sm:$0xff]   ;;  %v5421_v5 = vld [vmem:[%s6544_s1 + $0x108] sm:$0xff]  }
  0x22   : > { %4895 = vmatprep.subr.bf16.mxu0 %v5346_v8  ;;  %5321 = vmatprep.subr.bf16.mxu1 %v5346_v8  ;;  %v5415_v1 = vld [vmem:[%s6544_s1 + $0x110] sm:$0xff]   ;;  %v5404_v6 = vld [vmem:[%s5612_s26 + $0x40] sm:$0xff]  }
  0x23   : > { %v5405_v7 = vld [vmem:[%s5612_s26 + $0x160] sm:$0xff]  }
  0x25   : > { %4896 = vmatpush3.bf16.msra.mxu0 %v5346_v8  ;;  %5329 = vmatpush3.bf16.msra.mxu1 %v5346_v8  ;;  %v5426_v8 = vld [vmem:[%s6544_s1 + $0xc0] sm:$0xff]  }
  0x26   : > { %4897 = vmatprep.subr.bf16.mxu0 %v5347_v9  ;;  %5322 = vmatprep.subr.bf16.mxu1 %v5347_v9 }
  0x29   : > { %4898 = vmatpush3.bf16.msra.mxu0 %v5347_v9  ;;  %5330 = vmatpush3.bf16.msra.mxu1 %v5347_v9  ;;  %v5427_v9 = vld [vmem:[%s6544_s1 + $0x100] sm:$0xff]  }
  0x2a   : > { %4931 = vmatprep.subr.bf16.mxu1 %v5352_v10  ;;  %4979 = vmatprep.subr.bf16.mxu0 %v5353_v12 }
  0x2c   : > { %4900 = vmatmul.mubr.bf16.vlgmr.msra.gmra.mxu0 %v5350_v11  ;;  %4916 = vmatmul.mubr.bf16.vlgmr.msra.gmra.mxu1 %v5351_v13  ;;  %v5407_v11 = vld [vmem:[%s5612_s26 + $0x168] sm:$0xff]   ;;  %v5433_v13 = vld [vmem:[%s6544_s1 + $0x1b8] sm:$0xff]  }
  0x2d   : > { %4932 = vmatpush3.bf16.msra.mxu1 %v5352_v10  ;;  %4980 = vmatpush3.bf16.msra.mxu0 %v5353_v12  ;;  %v5406_v10 = vld [vmem:[%s5612_s26 + $0x48] sm:$0xff]   ;;  %v5432_v12 = vld [vmem:[%s6544_s1 + $0x178] sm:$0xff]  }
  0x2e   : > { %4933 = vmatprep.subr.bf16.mxu1 %v5354_v14  ;;  %4981 = vmatprep.subr.bf16.mxu0 %v5355_v15 }
  0x2f   : > { %4903 = vmatprep.mubr.bf16.mxu0 %v5356_v16  ;;  %4919 = vmatprep.mubr.bf16.mxu1 %v5357_v17  ;;  %v5412_v16 = vld [vmem:[%s5612_s26 + $0x58] sm:$0xff]  }
  0x30   : > { %v5413_v17 = vld [vmem:[%s5612_s26 + $0x178] sm:$0xff]  }
  0x31   : > { %4934 = vmatpush3.bf16.msra.mxu1 %v5354_v14  ;;  %4982 = vmatpush3.bf16.msra.mxu0 %v5355_v15  ;;  %v5410_v14 = vld [vmem:[%s5612_s26 + $0x50] sm:$0xff]  }
  0x32   : > { %4935 = vmatprep.subr.bf16.mxu1 %v5360_v18  ;;  %4983 = vmatprep.subr.bf16.mxu0 %v5361_v20  ;;  %v5411_v15 = vld [vmem:[%s5612_s26 + $0x170] sm:$0xff]  }
  0x34   : > { %4904 = vmatmul.mubr.bf16.gmra.mxu0 %v5358_v19  ;;  %4920 = vmatmul.mubr.bf16.gmra.mxu1 %v5359_v21  ;;  %v5417_v19 = vld [vmem:[%s5612_s26 + $0x180] sm:$0xff]   ;;  %v5419_v21 = vld [vmem:[%s5612_s26 + $0x188] sm:$0xff]  }
  0x35   : > { %4936 = vmatpush3.bf16.msra.mxu1 %v5360_v18  ;;  %4984 = vmatpush3.bf16.msra.mxu0 %v5361_v20  ;;  %v5416_v18 = vld [vmem:[%s5612_s26 + $0x60] sm:$0xff]   ;;  %v5418_v20 = vld [vmem:[%s5612_s26 + $0x68] sm:$0xff]  }
  0x36   : > { %4937 = vmatprep.subr.bf16.mxu1 %v5362_v22  ;;  %4985 = vmatprep.subr.bf16.mxu0 %v5363_v23 }
  0x37   : > { %4907 = vmatprep.mubr.bf16.mxu0 %v5364_v24  ;;  %4923 = vmatprep.mubr.bf16.mxu1 %v5365_v25  ;;  %v5424_v24 = vld [vmem:[%s5612_s26 + $0x78] sm:$0xff]  }
  0x38   : > { %v5425_v25 = vld [vmem:[%s5612_s26 + $0x198] sm:$0xff]  }
  0x39   : > { %4938 = vmatpush3.bf16.msra.mxu1 %v5362_v22  ;;  %4986 = vmatpush3.bf16.msra.mxu0 %v5363_v23  ;;  %v5422_v22 = vld [vmem:[%s5612_s26 + $0x70] sm:$0xff]  }
  0x3a   : > { %4939 = vmatprep.subr.bf16.mxu1 %v5368_v26  ;;  %4987 = vmatprep.subr.bf16.mxu0 %v5369_v28  ;;  %v5423_v23 = vld [vmem:[%s5612_s26 + $0x190] sm:$0xff]  }
  0x3c   : > { %4908 = vmatmul.mubr.bf16.gmra.mxu0 %v5366_v27  ;;  %4924 = vmatmul.mubr.bf16.gmra.mxu1 %v5367_v29  ;;  %v5429_v27 = vld [vmem:[%s5612_s26 + $0x98] sm:$0xff]   ;;  %v5431_v29 = vld [vmem:[%s5612_s26 + $0xa0] sm:$0xff]  }
  0x3d   : > { %4940 = vmatpush3.bf16.msra.mxu1 %v5368_v26  ;;  %4988 = vmatpush3.bf16.msra.mxu0 %v5369_v28  ;;  %v5428_v26 = vld [vmem:[%s5612_s26 + $0x8] sm:$0xff]   ;;  %v5430_v28 = vld [vmem:[%s5612_s26 + $0x10] sm:$0xff]  }
  0x3e   : > { %4941 = vmatprep.subr.bf16.mxu1 %v5370_v30  ;;  %4989 = vmatprep.subr.bf16.mxu0 %v5371_v31 }
  0x3f   : > { %4911 = vmatprep.mubr.bf16.mxu0 %v5372_v32  ;;  %4927 = vmatprep.mubr.bf16.mxu1 %v5373_v33  ;;  %v5438_v32 = vld [vmem:[%s6544_s1 + $0x170] sm:$0xff]  }
  0x40   : > { %v5439_v33 = vld [vmem:[%s6544_s1 + $0x1b0] sm:$0xff]  }
  0x41   : > { %4942 = vmatpush3.bf16.msra.mxu1 %v5370_v30  ;;  %4990 = vmatpush3.bf16.msra.mxu0 %v5371_v31  ;;  %v5434_v30 = vld [vmem:[%s5612_s26 + $0x18] sm:$0xff]   ;;  %v5435_v31 = vld [vmem:[%s5612_s26 + $0xa8] sm:$0xff]  }
  0x42   : > { %4943 = vmatprep.subr.bf16.mxu1 %v5376_v34  ;;  %4991 = vmatprep.subr.bf16.mxu0 %v5377_v36 }
  0x44   : > { %4912 = vmatmul.mubr.bf16.gmra.mxu0 %v5374_v35  ;;  %4928 = vmatmul.mubr.bf16.gmra.mxu1 %v5375_v37  ;;  %v5436_v35 = vld [vmem:[%s5612_s26 + $0x20] sm:$0xff]   ;;  %v5437_v37 = vld [vmem:[%s5612_s26 + $0xb0] sm:$0xff]  }
  0x45   : > { %4944 = vmatpush3.bf16.msra.mxu1 %v5376_v34  ;;  %4992 = vmatpush3.bf16.msra.mxu0 %v5377_v36  ;;  %v5444_v34 = vld [vmem:[%s6544_s1 + $0x168] sm:$0xff]  }
  0x46   : > { %4945 = vmatprep.subr.bf16.mxu1 %v5378_v38  ;;  %4993 = vmatprep.subr.bf16.mxu0 %v5379_v39  ;;  %v5445_v36 = vld [vmem:[%s6544_s1 + $0x1a8] sm:$0xff]  }
  0x47   : > { %4947 = vmatprep.mubr.bf16.mxu1 %v5380_v40  ;;  %4995 = vmatprep.mubr.bf16.mxu0 %v5381_v41  ;;  %v5450_v40 = vld [vmem:[%s6544_s1 + $0x160] sm:$0xff]  }
  0x48   : > { %v5451_v41 = vld [vmem:[%s6544_s1 + $0x1a0] sm:$0xff]  }
  0x49   : > { %4946 = vmatpush3.bf16.msra.mxu1 %v5378_v38  ;;  %4994 = vmatpush3.bf16.msra.mxu0 %v5379_v39  ;;  %v5440_v38 = vld [vmem:[%s5612_s26 + $0x28] sm:$0xff]   ;;  %v5441_v39 = vld [vmem:[%s5612_s26 + $0xb8] sm:$0xff]  }
  0x4a   : > { %5027 = vmatprep.subr.bf16.mxu1 %v5384_v42  ;;  %5075 = vmatprep.subr.bf16.mxu0 %v5385_v44 }
  0x4c   : > { %4948 = vmatmul.mubr.bf16.vlgmr.msra.gmra.mxu1 %v5382_v43  ;;  %4996 = vmatmul.mubr.bf16.vlgmr.msra.gmra.mxu0 %v5383_v45  ;;  %v5443_v43 = vld [vmem:[%s5612_s26 + $0xc0] sm:$0xff]   ;;  %v5457_v45 = vld [vmem:[%s6544_s1 + $0x198] sm:$0xff]  }
  0x4d   : > { %5028 = vmatpush3.bf16.msra.mxu1 %v5384_v42  ;;  %5076 = vmatpush3.bf16.msra.mxu0 %v5385_v44  ;;  %v5442_v42 = vld [vmem:[%s5612_s26 + $0x30] sm:$0xff]   ;;  %v5456_v44 = vld [vmem:[%s6544_s1 + $0x158] sm:$0xff]  }
  0x4e   : > { %4951 = vmatprep.mubr.bf16.mxu1 %v5386_v46  ;;  %4999 = vmatprep.mubr.bf16.mxu0 %v5387_v47  ;;  %v5446_v46 = vld [vmem:[%s5612_s26 + $0x38] sm:$0xff]   ;;  %v5447_v47 = vld [vmem:[%s5612_s26 + $0xc8] sm:$0xff]  }
  0x4f   : > { %5029 = vmatprep.subr.bf16.mxu1 %v5390_v48  ;;  %5077 = vmatprep.subr.bf16.mxu0 %v5391_v49 }
  0x51   : > { %5030 = vmatpush3.bf16.msra.mxu1 %v5390_v48  ;;  %5078 = vmatpush3.bf16.msra.mxu0 %v5391_v49  ;;  %v5462_v48 = vld [vmem:[%s6544_s1 + $0x150] sm:$0xff]  }
  0x52   : > { %5031 = vmatprep.subr.bf16.mxu1 %v5396_v50  ;;  %5079 = vmatprep.subr.bf16.mxu0 %v5397_v52  ;;  %v5463_v49 = vld [vmem:[%s6544_s1 + $0x190] sm:$0xff]  }
  0x54   : > { %4952 = vmatmul.mubr.bf16.gmra.mxu1 %v5388_v51  ;;  %5000 = vmatmul.mubr.bf16.gmra.mxu0 %v5389_v53  ;;  %v5449_v51 = vld [vmem:[%s5612_s26 + $0xd0] sm:$0xff]   ;;  %v5469_v53 = vld [vmem:[%s6544_s1 + $0x188] sm:$0xff]  }
  0x55   : > { %4955 = vmatprep.mubr.bf16.mxu1 %v5392_v54  ;;  %5003 = vmatprep.mubr.bf16.mxu0 %v5393_v55  ;;  %v5452_v54 = vld [vmem:[%s5612_s26 + $0x48] sm:$0xff]   ;;  %v5453_v55 = vld [vmem:[%s5612_s26 + $0xd8] sm:$0xff]  }
  0x56   : > { %5032 = vmatpush3.bf16.msra.mxu1 %v5396_v50  ;;  %5080 = vmatpush3.bf16.msra.mxu0 %v5397_v52  ;;  %v5448_v50 = vld [vmem:[%s5612_s26 + $0x40] sm:$0xff]   ;;  %v5468_v52 = vld [vmem:[%s6544_s1 + $0x148] sm:$0xff]  }
  0x57   : > { %5033 = vmatprep.subr.bf16.mxu1 %v5402_v56  ;;  %5081 = vmatprep.subr.bf16.mxu0 %v5403_v57 }
  0x5a   : > { %5034 = vmatpush3.bf16.msra.mxu1 %v5402_v56  ;;  %5082 = vmatpush3.bf16.msra.mxu0 %v5403_v57  ;;  %v5474_v56 = vld [vmem:[%s6544_s1 + $0x140] sm:$0xff]  }
  0x5b   : > { %5035 = vmatprep.subr.bf16.mxu1 %v5408_v60  ;;  %5083 = vmatprep.subr.bf16.mxu0 %v5409_v61  ;;  %v5475_v57 = vld [vmem:[%s6544_s1 + $0x180] sm:$0xff]  }
  0x5c   : > { %4956 = vmatmul.mubr.bf16.gmra.mxu1 %v5394_v58  ;;  %5004 = vmatmul.mubr.bf16.gmra.mxu0 %v5395_v59  ;;  %v5454_v58 = vld [vmem:[%s5612_s26 + $0x50] sm:$0xff]   ;;  %v5455_v59 = vld [vmem:[%s5612_s26 + $0xe0] sm:$0xff]  }
  0x5d   : > { %4959 = vmatprep.mubr.bf16.mxu1 %v5398_v62  ;;  %5007 = vmatprep.mubr.bf16.mxu0 %v5399_v63  ;;  %v5458_v62 = vld [vmem:[%s5612_s26 + $0x58] sm:$0xff]   ;;  %v5459_v63 = vld [vmem:[%s5612_s26 + $0xe8] sm:$0xff]  }
  0x5e   : > { %5036 = vmatpush3.bf16.msra.mxu1 %v5408_v60  ;;  %5084 = vmatpush3.bf16.msra.mxu0 %v5409_v61  ;;  %v5480_v60 = vld [vmem:[%s6544_s1 + $0x1f8] sm:$0xff]  }
  0x5f   : > { %5037 = vmatprep.subr.bf16.mxu1 %v5414_v0  ;;  %5085 = vmatprep.subr.bf16.mxu0 %v5415_v1  ;;  %v5481_v61 = vld [vmem:[%s6544_s1 + $0x238] sm:$0xff]  }
  0x62   : > { %5038 = vmatpush3.bf16.msra.mxu1 %v5414_v0  ;;  %5086 = vmatpush3.bf16.msra.mxu0 %v5415_v1  ;;  %v5460_v0 = vld [vmem:[%s5612_s26 + $0x60] sm:$0xff]   ;;  %v5461_v1 = vld [vmem:[%s5612_s26 + $0xf0] sm:$0xff]  }
  0x63   : > { %5039 = vmatprep.subr.bf16.mxu1 %v5420_v4  ;;  %5087 = vmatprep.subr.bf16.mxu0 %v5421_v5 }
  0x64   : > { %4960 = vmatmul.mubr.bf16.gmra.mxu1 %v5400_v2  ;;  %5008 = vmatmul.mubr.bf16.gmra.mxu0 %v5401_v3  ;;  %v5464_v2 = vld [vmem:[%s5612_s26 + $0x68] sm:$0xff]   ;;  %v5465_v3 = vld [vmem:[%s5612_s26 + $0xf8] sm:$0xff]  }
  0x65   : > { %4963 = vmatprep.mubr.bf16.mxu1 %v5404_v6  ;;  %5011 = vmatprep.mubr.bf16.mxu0 %v5405_v7  ;;  %v5470_v6 = vld [vmem:[%s5612_s26 + $0x78] sm:$0xff]   ;;  %v5471_v7 = vld [vmem:[%s5612_s26 + $0x108] sm:$0xff]  }
  0x66   : > { %5040 = vmatpush3.bf16.msra.mxu1 %v5420_v4  ;;  %5088 = vmatpush3.bf16.msra.mxu0 %v5421_v5  ;;  %v5466_v4 = vld [vmem:[%s5612_s26 + $0x70] sm:$0xff]   ;;  %v5467_v5 = vld [vmem:[%s5612_s26 + $0x100] sm:$0xff]  }
  0x67   : > { %5041 = vmatprep.subr.bf16.mxu1 %v5426_v8  ;;  %5089 = vmatprep.subr.bf16.mxu0 %v5427_v9 }
  0x6a   : > { %5042 = vmatpush3.bf16.msra.mxu1 %v5426_v8  ;;  %5090 = vmatpush3.bf16.msra.mxu0 %v5427_v9  ;;  %v5472_v8 = vld [vmem:[%s5612_s26 + $0x80] sm:$0xff]   ;;  %v5473_v9 = vld [vmem:[%s5612_s26 + $0x110] sm:$0xff]  }
  0x6b   : > { %5123 = vmatprep.subr.bf16.mxu1 %v5432_v12  ;;  %5171 = vmatprep.subr.bf16.mxu0 %v5433_v13 }
  0x6c   : > { %4964 = vmatmul.mubr.bf16.gmra.mxu1 %v5406_v10  ;;  %5012 = vmatmul.mubr.bf16.gmra.mxu0 %v5407_v11  ;;  %v5476_v10 = vld [vmem:[%s5612_s26 + $0x128] sm:$0xff]   ;;  %v5477_v11 = vld [vmem:[%s5612_s26 + $0x10] sm:$0xff]  }
  0x6d   : > { %4967 = vmatprep.mubr.bf16.mxu1 %v5410_v14  ;;  %5015 = vmatprep.mubr.bf16.mxu0 %v5411_v15  ;;  %v5482_v14 = vld [vmem:[%s5612_s26 + $0x138] sm:$0xff]   ;;  %v5483_v15 = vld [vmem:[%s5612_s26 + $0x20] sm:$0xff]  }
  0x74   : > { %4968 = vmatmul.mubr.bf16.gmra.mxu1 %v5412_v16  ;;  %5016 = vmatmul.mubr.bf16.gmra.mxu0 %v5413_v17  ;;  %v5486_v16 = vld [vmem:[%s6544_s1 + $0x1f0] sm:$0xff]  }
  0x75   : > { %4971 = vmatprep.mubr.bf16.mxu1 %v5416_v18  ;;  %5019 = vmatprep.mubr.bf16.mxu0 %v5417_v19  ;;  %v5487_v17 = vld [vmem:[%s6544_s1 + $0x230] sm:$0xff]   ;;  %v5492_v18 = vld [vmem:[%s6544_s1 + $0x1e8] sm:$0xff]   ;;  %v5484_v19 = vld [vmem:[%s5612_s26 + $0x140] sm:$0xff]  }
  0x7c   : > { %4972 = vmatmul.mubr.bf16.gmra.mxu1 %v5418_v20  ;;  %5020 = vmatmul.mubr.bf16.gmra.mxu0 %v5419_v21  ;;  %v5493_v20 = vld [vmem:[%s6544_s1 + $0x228] sm:$0xff]  }
  0x7d   : > { %4975 = vmatprep.mubr.bf16.mxu1 %v5422_v22  ;;  %5023 = vmatprep.mubr.bf16.mxu0 %v5423_v23  ;;  %v5485_v21 = vld [vmem:[%s5612_s26 + $0x28] sm:$0xff]   ;;  %v5489_v23 = vld [vmem:[%s5612_s26 + $0x30] sm:$0xff]  }
  0x7e   : > { %v5488_v22 = vld [vmem:[%s5612_s26 + $0x148] sm:$0xff]  }
  0x84   : > { %4976 = vmatmul.mubr.bf16.gmra.mxu1 %v5424_v24  ;;  %5024 = vmatmul.mubr.bf16.gmra.mxu0 %v5425_v25  ;;  %v5498_v24 = vld [vmem:[%s6544_s1 + $0x1e0] sm:$0xff]  }
  0x85   : > { %5043 = vmatprep.mubr.bf16.mxu1 %v5428_v26  ;;  %5091 = vmatprep.mubr.bf16.mxu0 %v5429_v27  ;;  %v5499_v25 = vld [vmem:[%s6544_s1 + $0x220] sm:$0xff]   ;;  %v5490_v26 = vld [vmem:[%s5612_s26 + $0x150] sm:$0xff]   ;;  %v5491_v27 = vld [vmem:[%s5612_s26 + $0x38] sm:$0xff]  }
  0x8c   : > { %5044 = vmatmul.mubr.bf16.vlgmr.msra.gmra.mxu1 %v5430_v28  ;;  %5092 = vmatmul.mubr.bf16.vlgmr.msra.gmra.mxu0 %v5431_v29  ;;  %v5504_v28 = vld [vmem:[%s6544_s1 + $0x1d8] sm:$0xff]  }
  0x8d   : > { %5124 = vmatpush3.bf16.msra.mxu1 %v5432_v12  ;;  %5172 = vmatpush3.bf16.msra.mxu0 %v5433_v13  ;;  %v5478_v12 = vld [vmem:[%s5612_s26 + $0x130] sm:$0xff]   ;;  %v5479_v13 = vld [vmem:[%s5612_s26 + $0x18] sm:$0xff]  }
  0x8e   : > { %5047 = vmatprep.mubr.bf16.mxu1 %v5434_v30  ;;  %5095 = vmatprep.mubr.bf16.mxu0 %v5435_v31  ;;  %v5505_v29 = vld [vmem:[%s6544_s1 + $0x218] sm:$0xff]   ;;  %v5495_v31 = vld [vmem:[%s5612_s26 + $0x40] sm:$0xff]  }
  0x8f   : > { %5125 = vmatprep.subr.bf16.mxu1 %v5438_v32  ;;  %5173 = vmatprep.subr.bf16.mxu0 %v5439_v33  ;;  %v5494_v30 = vld [vmem:[%s5612_s26 + $0x158] sm:$0xff]  }
  0x91   : > { %5126 = vmatpush3.bf16.msra.mxu1 %v5438_v32  ;;  %5174 = vmatpush3.bf16.msra.mxu0 %v5439_v33  ;;  %v5510_v32 = vld [vmem:[%s6544_s1 + $0x1d0] sm:$0xff]  }
  0x92   : > { %5127 = vmatprep.subr.bf16.mxu1 %v5444_v34  ;;  %5175 = vmatprep.subr.bf16.mxu0 %v5445_v36  ;;  %v5511_v33 = vld [vmem:[%s6544_s1 + $0x210] sm:$0xff]  }
  0x94   : > { %5048 = vmatmul.mubr.bf16.gmra.mxu1 %v5436_v35  ;;  %5096 = vmatmul.mubr.bf16.gmra.mxu0 %v5437_v37  ;;  %v5497_v35 = vld [vmem:[%s5612_s26 + $0x48] sm:$0xff]  }
  0x95   : > { %5051 = vmatprep.mubr.bf16.mxu1 %v5440_v38  ;;  %5099 = vmatprep.mubr.bf16.mxu0 %v5441_v39  ;;  %v5517_v37 = vld [vmem:[%s6544_s1 + $0x208] sm:$0xff]   ;;  %v5501_v39 = vld [vmem:[%s5612_s26 + $0x50] sm:$0xff]  }
  0x96   : > { %5128 = vmatpush3.bf16.msra.mxu1 %v5444_v34  ;;  %5176 = vmatpush3.bf16.msra.mxu0 %v5445_v36  ;;  %v5496_v34 = vld [vmem:[%s5612_s26 + $0x160] sm:$0xff]   ;;  %v5516_v36 = vld [vmem:[%s6544_s1 + $0x1c8] sm:$0xff]  }
  0x97   : > { %5129 = vmatprep.subr.bf16.mxu1 %v5450_v40  ;;  %5177 = vmatprep.subr.bf16.mxu0 %v5451_v41  ;;  %v5500_v38 = vld [vmem:[%s5612_s26 + $0x168] sm:$0xff]  }
  0x9a   : > { %5130 = vmatpush3.bf16.msra.mxu1 %v5450_v40  ;;  %5178 = vmatpush3.bf16.msra.mxu0 %v5451_v41  ;;  %v5522_v40 = vld [vmem:[%s6544_s1 + $0x1c0] sm:$0xff]  }
  0x9b   : > { %5131 = vmatprep.subr.bf16.mxu1 %v5456_v44  ;;  %5179 = vmatprep.subr.bf16.mxu0 %v5457_v45  ;;  %v5523_v41 = vld [vmem:[%s6544_s1 + $0x200] sm:$0xff]  }
  0x9c   : > { %5052 = vmatmul.mubr.bf16.gmra.mxu1 %v5442_v42  ;;  %5100 = vmatmul.mubr.bf16.gmra.mxu0 %v5443_v43  ;;  %v5502_v42 = vld [vmem:[%s5612_s26 + $0x170] sm:$0xff]   ;;  %v5503_v43 = vld [vmem:[%s5612_s26 + $0x58] sm:$0xff]  }
  0x9d   : > { %5055 = vmatprep.mubr.bf16.mxu1 %v5446_v46  ;;  %5103 = vmatprep.mubr.bf16.mxu0 %v5447_v47 }
  0x9e   : > { %5132 = vmatpush3.bf16.msra.mxu1 %v5456_v44  ;;  %5180 = vmatpush3.bf16.msra.mxu0 %v5457_v45  ;;  %v5506_v44 = vld [vmem:[%s5612_s26 + $0x178] sm:$0xff]   ;;  %v5507_v45 = vld [vmem:[%s5612_s26 + $0x60] sm:$0xff]  }
  0x9f   : > { %5133 = vmatprep.subr.bf16.mxu1 %v5462_v48  ;;  %5181 = vmatprep.subr.bf16.mxu0 %v5463_v49 }
  0xa2   : > { %5134 = vmatpush3.bf16.msra.mxu1 %v5462_v48  ;;  %5182 = vmatpush3.bf16.msra.mxu0 %v5463_v49 }
  0xa3   : > { %5135 = vmatprep.subr.bf16.mxu1 %v5468_v52  ;;  %5183 = vmatprep.subr.bf16.mxu0 %v5469_v53 }
  0xa4   : > { %5056 = vmatmul.mubr.bf16.gmra.mxu1 %v5448_v50  ;;  %5104 = vmatmul.mubr.bf16.gmra.mxu0 %v5449_v51 }
  0xa5   : > { %5059 = vmatprep.mubr.bf16.mxu1 %v5452_v54  ;;  %5107 = vmatprep.mubr.bf16.mxu0 %v5453_v55  ;;  %v5512_v54 = vld [vmem:[%s5612_s26 + $0x188] sm:$0xff]   ;;  %v5513_v55 = vld [vmem:[%s5612_s26 + $0x70] sm:$0xff]  }
  0xa6   : > { %5136 = vmatpush3.bf16.msra.mxu1 %v5468_v52  ;;  %5184 = vmatpush3.bf16.msra.mxu0 %v5469_v53  ;;  %v5508_v52 = vld [vmem:[%s5612_s26 + $0x180] sm:$0xff]   ;;  %v5509_v53 = vld [vmem:[%s5612_s26 + $0x68] sm:$0xff]  }
  0xa7   : > { %5137 = vmatprep.subr.bf16.mxu1 %v5474_v56  ;;  %5185 = vmatprep.subr.bf16.mxu0 %v5475_v57 }
  0xaa   : > { %5138 = vmatpush3.bf16.msra.mxu1 %v5474_v56  ;;  %5186 = vmatpush3.bf16.msra.mxu0 %v5475_v57 }
  0xab   : > { %5219 = vmatprep.subr.bf16.mxu1 %v5480_v60  ;;  %5267 = vmatprep.subr.bf16.mxu0 %v5481_v61 }
  0xac   : > { %5060 = vmatmul.mubr.bf16.gmra.mxu1 %v5454_v58  ;;  %5108 = vmatmul.mubr.bf16.gmra.mxu0 %v5455_v59 }
  0xad   : > { %5063 = vmatprep.mubr.bf16.mxu1 %v5458_v62  ;;  %5111 = vmatprep.mubr.bf16.mxu0 %v5459_v63 }
  0xb4   : > { %5064 = vmatmul.mubr.bf16.gmra.mxu1 %v5460_v0  ;;  %5112 = vmatmul.mubr.bf16.gmra.mxu0 %v5461_v1  ;;  %v5514_v0 = vld [vmem:[%s5612_s26 + $0x190] sm:$0xff]   ;;  %v5515_v1 = vld [vmem:[%s5612_s26 + $0x78] sm:$0xff]  }
  0xb5   : > { %5067 = vmatprep.mubr.bf16.mxu1 %v5464_v2  ;;  %5115 = vmatprep.mubr.bf16.mxu0 %v5465_v3  ;;  %v5518_v2 = vld [vmem:[%s5612_s26 + $0x198] sm:$0xff]   ;;  %v5519_v3 = vld [vmem:[%s5612_s26 + $0x80] sm:$0xff]  }
  0xbc   : > { %5068 = vmatmul.mubr.bf16.gmra.mxu1 %v5466_v4  ;;  %5116 = vmatmul.mubr.bf16.gmra.mxu0 %v5467_v5 }
  0xbd   : > { %5071 = vmatprep.mubr.bf16.mxu1 %v5470_v6  ;;  %5119 = vmatprep.mubr.bf16.mxu0 %v5471_v7 }
  0xc4   : > { %5072 = vmatmul.mubr.bf16.gmra.mxu1 %v5472_v8  ;;  %5120 = vmatmul.mubr.bf16.gmra.mxu0 %v5473_v9 }
  0xc5   : > { %5139 = vmatprep.mubr.bf16.mxu1 %v5476_v10  ;;  %5187 = vmatprep.mubr.bf16.mxu0 %v5477_v11 }
  0xcc   : > { %5140 = vmatmul.mubr.bf16.vlgmr.msra.gmra.mxu1 %v5478_v12  ;;  %5188 = vmatmul.mubr.bf16.vlgmr.msra.gmra.mxu0 %v5479_v13  ;;  %v5520_v12 = vld [vmem:[%s5612_s26 + $0x1a0] sm:$0xff]   ;;  %v5521_v13 = vld [vmem:[%s5612_s26 + $0x88] sm:$0xff]  }
  0xcd   : > { %5220 = vmatpush3.bf16.msra.mxu1 %v5480_v60  ;;  %5268 = vmatpush3.bf16.msra.mxu0 %v5481_v61 }
  0xce   : > { %5143 = vmatprep.mubr.bf16.mxu1 %v5482_v14  ;;  %5191 = vmatprep.mubr.bf16.mxu0 %v5483_v15  ;;  %v5524_v14 = vld [vmem:[%s5612_s26 + $0xa0] sm:$0xff]   ;;  %v5525_v15 = vld [vmem:[%s5612_s26 + $0x130] sm:$0xff]  }
  0xcf   : > { %5221 = vmatprep.subr.bf16.mxu1 %v5486_v16  ;;  %5269 = vmatprep.subr.bf16.mxu0 %v5487_v17 }
  0xd1   : > { %5222 = vmatpush3.bf16.msra.mxu1 %v5486_v16  ;;  %5270 = vmatpush3.bf16.msra.mxu0 %v5487_v17 }
  0xd2   : > { %5223 = vmatprep.subr.bf16.mxu1 %v5492_v18  ;;  %5271 = vmatprep.subr.bf16.mxu0 %v5493_v20 }
  0xd4   : > { %5144 = vmatmul.mubr.bf16.gmra.mxu1 %v5484_v19  ;;  %5192 = vmatmul.mubr.bf16.gmra.mxu0 %v5485_v21 }
  0xd5   : > { %5147 = vmatprep.mubr.bf16.mxu1 %v5488_v22  ;;  %5195 = vmatprep.mubr.bf16.mxu0 %v5489_v23 }
  0xd6   : > { %5224 = vmatpush3.bf16.msra.mxu1 %v5492_v18  ;;  %5272 = vmatpush3.bf16.msra.mxu0 %v5493_v20 }
  0xd7   : > { %5225 = vmatprep.subr.bf16.mxu1 %v5498_v24  ;;  %5273 = vmatprep.subr.bf16.mxu0 %v5499_v25 }
  0xda   : > { %5226 = vmatpush3.bf16.msra.mxu1 %v5498_v24  ;;  %5274 = vmatpush3.bf16.msra.mxu0 %v5499_v25  ;;  %v5526_v24 = vld [vmem:[%s5612_s26 + $0xa8] sm:$0xff]   ;;  %v5527_v25 = vld [vmem:[%s5612_s26 + $0x138] sm:$0xff]  }
  0xdb   : > { %5227 = vmatprep.subr.bf16.mxu1 %v5504_v28  ;;  %5275 = vmatprep.subr.bf16.mxu0 %v5505_v29 }
  0xdc   : > { %5148 = vmatmul.mubr.bf16.gmra.mxu1 %v5490_v26  ;;  %5196 = vmatmul.mubr.bf16.gmra.mxu0 %v5491_v27  ;;  %v5528_v26 = vld [vmem:[%s5612_s26 + $0xb0] sm:$0xff]   ;;  %v5529_v27 = vld [vmem:[%s5612_s26 + $0x140] sm:$0xff]  }
  0xdd   : > { %5151 = vmatprep.mubr.bf16.mxu1 %v5494_v30  ;;  %5199 = vmatprep.mubr.bf16.mxu0 %v5495_v31 }
  0xde   : > { %5228 = vmatpush3.bf16.msra.mxu1 %v5504_v28  ;;  %5276 = vmatpush3.bf16.msra.mxu0 %v5505_v29 }
  0xdf   : > { %5229 = vmatprep.subr.bf16.mxu1 %v5510_v32  ;;  %5277 = vmatprep.subr.bf16.mxu0 %v5511_v33 }
  0xe2   : > { %5230 = vmatpush3.bf16.msra.mxu1 %v5510_v32  ;;  %5278 = vmatpush3.bf16.msra.mxu0 %v5511_v33 }
  0xe3   : > { %5231 = vmatprep.subr.bf16.mxu1 %v5516_v36  ;;  %5279 = vmatprep.subr.bf16.mxu0 %v5517_v37 }
  0xe4   : > { %5152 = vmatmul.mubr.bf16.gmra.mxu1 %v5496_v34  ;;  %5200 = vmatmul.mubr.bf16.gmra.mxu0 %v5497_v35 }
  0xe5   : > { %5155 = vmatprep.mubr.bf16.mxu1 %v5500_v38  ;;  %5203 = vmatprep.mubr.bf16.mxu0 %v5501_v39  ;;  %v5530_v39 = vld [vmem:[%s5612_s26 + $0xb8] sm:$0xff]  }
  0xe6   : > { %5232 = vmatpush3.bf16.msra.mxu1 %v5516_v36  ;;  %5280 = vmatpush3.bf16.msra.mxu0 %v5517_v37 }
  0xe7   : > { %5233 = vmatprep.subr.bf16.mxu1 %v5522_v40  ;;  %5281 = vmatprep.subr.bf16.mxu0 %v5523_v41 }
  0xea   : > { %5234 = vmatpush3.bf16.msra.mxu1 %v5522_v40  ;;  %5282 = vmatpush3.bf16.msra.mxu0 %v5523_v41  ;;  %v5531_v40 = vld [vmem:[%s5612_s26 + $0x148] sm:$0xff]  }
  0xec   : > { %v5923_v46 = vpop.f32.mrf.mxu0  ;;  %v5925_v47 = vpop.f32.mrf.mxu1  ;;  %5156 = vmatmul.mubr.bf16.gmra.mxu1 %v5502_v42  ;;  %5204 = vmatmul.mubr.bf16.gmra.mxu0 %v5503_v43  ;;  %v5532_v43 = vld [vmem:[%s5612_s26 + $0xc0] sm:$0xff]  }
  0xed   : > { %5159 = vmatprep.mubr.bf16.mxu1 %v5506_v44  ;;  %5207 = vmatprep.mubr.bf16.mxu0 %v5507_v45  ;;  %v5533_v44 = vld [vmem:[%s5612_s26 + $0x150] sm:$0xff]  }
  0xee   : > { %v5927_v48 = vpop.f32.mrf.mxu0  ;;  %v5929_v49 = vpop.f32.mrf.mxu1 }
  0xf0   : > { %v5931_v50 = vpop.f32.mrf.mxu0  ;;  %v5933_v51 = vpop.f32.mrf.mxu1 }
  0xf2   : > { %v5939_v56 = vpop.f32.mrf.mxu0  ;;  %v5941_v57 = vpop.f32.mrf.mxu1 }
  0xf4   : > { %v5943_v58 = vpop.f32.mrf.mxu0  ;;  %v5945_v59 = vpop.f32.mrf.mxu1  ;;  %5160 = vmatmul.mubr.bf16.gmra.mxu1 %v5508_v52  ;;  %5208 = vmatmul.mubr.bf16.gmra.mxu0 %v5509_v53 }
  0xf5   : > { %5163 = vmatprep.mubr.bf16.mxu1 %v5512_v54  ;;  %5211 = vmatprep.mubr.bf16.mxu0 %v5513_v55 }
  0xf6   : > { %v5947_v60 = vpop.f32.mrf.mxu0  ;;  %v5949_v61 = vpop.f32.mrf.mxu1 }
  0xf8   : > { %v5951_v62 = vpop.f32.mrf.mxu0  ;;  %v5953_v63 = vpop.f32.mrf.mxu1 }
  0xfa   : > { %v5959_v4 = vpop.f32.mrf.mxu0  ;;  %v5961_v5 = vpop.f32.mrf.mxu1 }
  0xfc   : > { %v5963_v6 = vpop.f32.mrf.mxu0  ;;  %v5965_v7 = vpop.f32.mrf.mxu1  ;;  %5164 = vmatmul.mubr.bf16.gmra.mxu1 %v5514_v0  ;;  %5212 = vmatmul.mubr.bf16.gmra.mxu0 %v5515_v1 }
  0xfd   : > { %5167 = vmatprep.mubr.bf16.mxu1 %v5518_v2  ;;  %5215 = vmatprep.mubr.bf16.mxu0 %v5519_v3 }
  0xfe   : > { %v5967_v8 = vpop.f32.mrf.mxu0  ;;  %v5969_v9 = vpop.f32.mrf.mxu1 }
 0x100   : > { %v5971_v10 = vpop.f32.mrf.mxu0  ;;  %v5973_v11 = vpop.f32.mrf.mxu1 }
 0x102   : > { %v5979_v16 = vpop.f32.mrf.mxu0  ;;  %v5981_v17 = vpop.f32.mrf.mxu1 }
 0x104   : > { %v5983_v18 = vpop.f32.mrf.mxu0  ;;  %v5985_v19 = vpop.f32.mrf.mxu1  ;;  %5168 = vmatmul.mubr.bf16.gmra.mxu1 %v5520_v12  ;;  %5216 = vmatmul.mubr.bf16.gmra.mxu0 %v5521_v13  ;;  %v5534_v13 = vld [vmem:[%s5612_s26 + $0xc8] sm:$0xff]  }
 0x105   : > { %5235 = vmatprep.mubr.bf16.mxu1 %v5524_v14  ;;  %5283 = vmatprep.mubr.bf16.mxu0 %v5525_v15  ;;  %v5535_v14 = vld [vmem:[%s5612_s26 + $0x158] sm:$0xff]  }
 0x106   : > { %v5987_v20 = vpop.f32.mrf.mxu0  ;;  %v5989_v21 = vpop.f32.mrf.mxu1 }
 0x108   : > { %v5991_v22 = vpop.f32.mrf.mxu0  ;;  %v5993_v23 = vpop.f32.mrf.mxu1 }
 0x10a   : > { %v5999_v28 = vpop.f32.mrf.mxu0  ;;  %v6001_v29 = vpop.f32.mrf.mxu1 }
 0x10c   : > { %v4949_v30 = vpop.f32.mrf.mxu1  ;;  %v4997_v31 = vpop.f32.mrf.mxu0  ;;  %5236 = vmatmul.mubr.bf16.vlgmr.msra.gmra.mxu1 %v5526_v24  ;;  %5284 = vmatmul.mubr.bf16.vlgmr.msra.gmra.mxu0 %v5527_v25  ;;  %v5536_v25 = vld [vmem:[%s5612_s26 + $0xd0] sm:$0xff]  }
 0x10d   : > { %v798_v32 = vadd.f32 %v4949_v30, %v5923_v46  ;;  %5239 = vmatprep.mubr.bf16.mxu1 %v5528_v26  ;;  %5287 = vmatprep.mubr.bf16.mxu0 %v5529_v27  ;;  %v5537_v26 = vld [vmem:[%s5612_s26 + $0x160] sm:$0xff]  }
 0x10e   : > { %v789_v33 = vpop.f32.mrf.mxu1  ;;  %v1144_v34 = vpop.f32.mrf.mxu0 }
 0x10f   : > { %v6004_v35 = vadd.f32 %v4997_v31, %v798_v32  ;;  %v790_v36 = vadd.f32 %v789_v33, %v5927_v48 }
 0x110   : > { %v4950_v37 = vpop.f32.mrf.mxu1  ;;  %v4998_v38 = vpop.f32.mrf.mxu0 }
 0x111   : > { %v6009_v41 = vadd.f32 %v1144_v34, %v790_v36  ;;  %v801_v42 = vadd.f32 %v4950_v37, %v5931_v50 }
 0x112   : > { %v792_v45 = vpop.f32.mrf.mxu1  ;;  %v1147_v46 = vpop.f32.mrf.mxu0 }
 0x113   : > { %v6014_v52 = vadd.f32 %v4998_v38, %v801_v42  ;;  %v793_v53 = vadd.f32 %v792_v45, %v5939_v56  ;;  %v5539_v42 = vld [vmem:[%s5612_s26 + $0x168] sm:$0xff]   ;;  %v5540_v45 = vld [vmem:[%s5612_s26 + $0xe0] sm:$0xff]  }
 0x114   : > { %v4953_v54 = vpop.f32.mrf.mxu1  ;;  %v5001_v48 = vpop.f32.mrf.mxu0  ;;  %5240 = vmatmul.mubr.bf16.gmra.mxu1 %v5530_v39  ;;  %5288 = vmatmul.mubr.bf16.gmra.mxu0 %v5531_v40  ;;  %v5538_v40 = vld [vmem:[%s5612_s26 + $0xd8] sm:$0xff]  }
 0x115   : > { %v6017_v55 = vadd.f32 %v1147_v46, %v793_v53  ;;  %v814_v50 = vadd.f32 %v4953_v54, %v5943_v58  ;;  %5243 = vmatprep.mubr.bf16.mxu1 %v5532_v43  ;;  %5291 = vmatprep.mubr.bf16.mxu0 %v5533_v44  ;;  %v5541_v46 = vld [vmem:[%s5612_s26 + $0x170] sm:$0xff]  }
 0x116   : > { %v805_v0 = vpop.f32.mrf.mxu1  ;;  %v1160_v1 = vpop.f32.mrf.mxu0 }
 0x117   : > { %v6020_v2 = vadd.f32 %v5001_v48, %v814_v50  ;;  %v806_v3 = vadd.f32 %v805_v0, %v5947_v60 }
 0x118   : > { %v4954_v56 = vpop.f32.mrf.mxu1  ;;  %v5002_v12 = vpop.f32.mrf.mxu0 }
 0x119   : > { %v6025_v15 = vadd.f32 %v1160_v1, %v806_v3  ;;  %v817_v24 = vadd.f32 %v4954_v56, %v5951_v62 }
 0x11a   : > { %v808_v27 = vpop.f32.mrf.mxu1  ;;  %v1163_v58 = vpop.f32.mrf.mxu0 }
 0x11b   : > { %v6030_v30 = vadd.f32 %v5002_v12, %v817_v24  ;;  %v809_v31 = vadd.f32 %v808_v27, %v5959_v4  ;;  %v5543_v24 = vld [vmem:[%s5612_s26 + $0x178] sm:$0xff]   ;;  %v5544_v27 = vld [vmem:[%s5612_s26 + $0xf0] sm:$0xff]  }
 0x11c   : > { %v4957_v32 = vpop.f32.mrf.mxu1  ;;  %v5005_v60 = vpop.f32.mrf.mxu0  ;;  %5244 = vmatmul.mubr.bf16.gmra.mxu1 %v5534_v13  ;;  %5292 = vmatmul.mubr.bf16.gmra.mxu0 %v5535_v14  ;;  %v5542_v14 = vld [vmem:[%s5612_s26 + $0xe8] sm:$0xff]  }
 0x11d   : > { %v6033_v33 = vadd.f32 %v1163_v58, %v809_v31  ;;  %v830_v62 = vadd.f32 %v4957_v32, %v5963_v6  ;;  %5247 = vmatprep.mubr.bf16.mxu1 %v5536_v25  ;;  %5295 = vmatprep.mubr.bf16.mxu0 %v5537_v26  ;;  %v5545_v58 = vld [vmem:[%s5612_s26 + $0x180] sm:$0xff]  }
 0x11e   : > { %v821_v34 = vpop.f32.mrf.mxu1  ;;  %v1176_v36 = vpop.f32.mrf.mxu0 }
 0x11f   : > { %v6036_v37 = vadd.f32 %v5005_v60, %v830_v62  ;;  %v822_v38 = vadd.f32 %v821_v34, %v5967_v8 }
 0x120   : > { %v4958_v4 = vpop.f32.mrf.mxu1  ;;  %v5006_v39 = vpop.f32.mrf.mxu0 }
 0x121   : > { %v6041_v43 = vadd.f32 %v1176_v36, %v822_v38  ;;  %v833_v44 = vadd.f32 %v4958_v4, %v5971_v10 }
 0x122   : > { %v824_v53 = vpop.f32.mrf.mxu1  ;;  %v1179_v6 = vpop.f32.mrf.mxu0 }
 0x123   : > { %v6046_v54 = vadd.f32 %v5006_v39, %v833_v44  ;;  %v825_v48 = vadd.f32 %v824_v53, %v5979_v16  ;;  %v5547_v44 = vld [vmem:[%s5612_s26 + $0x188] sm:$0xff]   ;;  %v5548_v53 = vld [vmem:[%s5612_s26 + $0x100] sm:$0xff]  }
 0x124   : > { %v4961_v50 = vpop.f32.mrf.mxu1  ;;  %v5009_v8 = vpop.f32.mrf.mxu0  ;;  %5248 = vmatmul.mubr.bf16.gmra.mxu1 %v5538_v40  ;;  %5296 = vmatmul.mubr.bf16.gmra.mxu0 %v5539_v42  ;;  %v5546_v42 = vld [vmem:[%s5612_s26 + $0xf8] sm:$0xff]  }
 0x125   : > { %v6049_v0 = vadd.f32 %v1179_v6, %v825_v48  ;;  %v846_v10 = vadd.f32 %v4961_v50, %v5983_v18  ;;  %5251 = vmatprep.mubr.bf16.mxu1 %v5540_v45  ;;  %5299 = vmatprep.mubr.bf16.mxu0 %v5541_v46  ;;  %v5549_v6 = vld [vmem:[%s5612_s26 + $0x190] sm:$0xff]  }
 0x126   : > { %v837_v1 = vpop.f32.mrf.mxu1  ;;  %v1192_v3 = vpop.f32.mrf.mxu0 }
 0x127   : > { %v6052_v56 = vadd.f32 %v5009_v8, %v846_v10  ;;  %v838_v12 = vadd.f32 %v837_v1, %v5987_v20 }
 0x128   : > { %v4962_v16 = vpop.f32.mrf.mxu1  ;;  %v5010_v13 = vpop.f32.mrf.mxu0 }
 0x129   : > { %v6057_v25 = vadd.f32 %v1192_v3, %v838_v12  ;;  %v849_v26 = vadd.f32 %v4962_v16, %v5991_v22 }
 0x12a   : > { %v840_v31 = vpop.f32.mrf.mxu1  ;;  %v1195_v18 = vpop.f32.mrf.mxu0 }
 0x12b   : > { %v6062_v32 = vadd.f32 %v5010_v13, %v849_v26  ;;  %v841_v60 = vadd.f32 %v840_v31, %v5999_v28  ;;  %v5551_v26 = vld [vmem:[%s5612_s26 + $0x198] sm:$0xff]   ;;  %v5552_v31 = vld [vmem:[%s5612_s26 + $0x110] sm:$0xff]  }
 0x12c   : > { %v4965_v62 = vpop.f32.mrf.mxu1  ;;  %v5013_v20 = vpop.f32.mrf.mxu0  ;;  %5252 = vmatmul.mubr.bf16.gmra.mxu1 %v5542_v14  ;;  %5300 = vmatmul.mubr.bf16.gmra.mxu0 %v5543_v24  ;;  %v5550_v24 = vld [vmem:[%s5612_s26 + $0x108] sm:$0xff]  }
 0x12d   : > { %v6065_v34 = vadd.f32 %v1195_v18, %v841_v60  ;;  %v862_v22 = vadd.f32 %v4965_v62, %v5925_v47  ;;  %5255 = vmatprep.mubr.bf16.mxu1 %v5544_v27  ;;  %5303 = vmatprep.mubr.bf16.mxu0 %v5545_v58  ;;  %v5553_v18 = vld [vmem:[%s5612_s26 + $0x1a0] sm:$0xff]  }
 0x12e   : > { %v853_v36 = vpop.f32.mrf.mxu1  ;;  %v1208_v38 = vpop.f32.mrf.mxu0 }
 0x12f   : > { %v6068_v4 = vadd.f32 %v5013_v20, %v862_v22  ;;  %v854_v39 = vadd.f32 %v853_v36, %v5929_v49 }
 0x130   : > { %v4966_v28 = vpop.f32.mrf.mxu1  ;;  %v5014_v40 = vpop.f32.mrf.mxu0 }
 0x131   : > { %v6073_v45 = vadd.f32 %v1208_v38, %v854_v39  ;;  %v865_v46 = vadd.f32 %v4966_v28, %v5933_v51 }
 0x132   : > { %v856_v48 = vpop.f32.mrf.mxu1  ;;  %v1211_v47 = vpop.f32.mrf.mxu0 }
 0x133   : > { %v6078_v50 = vadd.f32 %v5014_v40, %v865_v46  ;;  %v857_v8 = vadd.f32 %v856_v48, %v5941_v57  ;;  %v5555_v46 = vld [vmem:[%s5612_s26 + $0x1a8] sm:$0xff]  }
 0x134   : > { %v4969_v10 = vpop.f32.mrf.mxu1  ;;  %v5017_v49 = vpop.f32.mrf.mxu0  ;;  %5256 = vmatmul.mubr.bf16.gmra.mxu1 %v5546_v42  ;;  %5304 = vmatmul.mubr.bf16.gmra.mxu0 %v5547_v44 }
 0x135   : > { %v6081_v1 = vadd.f32 %v1211_v47, %v857_v8  ;;  %v878_v51 = vadd.f32 %v4969_v10, %v5945_v59  ;;  %5259 = vmatprep.mubr.bf16.mxu1 %v5548_v53  ;;  %5307 = vmatprep.mubr.bf16.mxu0 %v5549_v6 }
 0x136   : > { %v869_v3 = vpop.f32.mrf.mxu1  ;;  %v1224_v12 = vpop.f32.mrf.mxu0 }
 0x137   : > { %v6084_v16 = vadd.f32 %v5017_v49, %v878_v51  ;;  %v870_v13 = vadd.f32 %v869_v3, %v5949_v61 }
 0x138   : > { %v4970_v57 = vpop.f32.mrf.mxu1  ;;  %v5018_v14 = vpop.f32.mrf.mxu0 }
 0x139   : > { %v6089_v27 = vadd.f32 %v1224_v12, %v870_v13  ;;  %v881_v58 = vadd.f32 %v4970_v57, %v5953_v63 }
 0x13a   : > { %v872_v60 = vpop.f32.mrf.mxu1  ;;  %v1227_v59 = vpop.f32.mrf.mxu0 }
 0x13b   : > { %v6094_v62 = vadd.f32 %v5018_v14, %v881_v58  ;;  %v873_v20 = vadd.f32 %v872_v60, %v5961_v5  ;;  %v5554_v5 = vld [vmem:[%s5612_s26 + $0x118] sm:$0xff]   ;;  %s206_s26 = scalar_lea.vmem %s6547_s4, %s6603_s16 }
 0x13c   : > { %v4973_v22 = vpop.f32.mrf.mxu1  ;;  %v5021_v61 = vpop.f32.mrf.mxu0  ;;  %5260 = vmatmul.mubr.bf16.gmra.mxu1 %v5550_v24  ;;  %5308 = vmatmul.mubr.bf16.gmra.mxu0 %v5551_v26 }
 0x13d   : > { %v6097_v36 = vadd.f32 %v1227_v59, %v873_v20  ;;  %v894_v38 = vadd.f32 %v4973_v22, %v5965_v7  ;;  %5263 = vmatprep.mubr.bf16.mxu1 %v5552_v31  ;;  %5311 = vmatprep.mubr.bf16.mxu0 %v5553_v18 }
 0x13e   : > { %v885_v63 = vpop.f32.mrf.mxu1  ;;  %v1240_v39 = vpop.f32.mrf.mxu0 }
 0x13f   : > { %v6100_v28 = vadd.f32 %v5021_v61, %v894_v38  ;;  %v886_v40 = vadd.f32 %v885_v63, %v5969_v9 }
 0x140   : > { %v4974_v42 = vpop.f32.mrf.mxu1  ;;  %v5022_v44 = vpop.f32.mrf.mxu0 }
 0x141   : > { %v6105_v53 = vadd.f32 %v1240_v39, %v886_v40  ;;  %v897_v6 = vadd.f32 %v4974_v42, %v5973_v11 }
 0x142   : > { %v888_v48 = vpop.f32.mrf.mxu1  ;;  %v1243_v47 = vpop.f32.mrf.mxu0 }
 0x143   : > { %v6108_v8 = vadd.f32 %v5022_v44, %v897_v6  ;;  %v889_v7 = vadd.f32 %v888_v48, %v5981_v17 }
 0x144   : > { %v4977_v10 = vpop.f32.mrf.mxu1  ;;  %v5025_v49 = vpop.f32.mrf.mxu0  ;;  %5264 = vmatmul.mubr.bf16.gmra.mxu1 %v5554_v5  ;;  %5312 = vmatmul.mubr.bf16.gmra.mxu0 %v5555_v46 }
 0x145   : > { %v6111_v51 = vadd.f32 %v1243_v47, %v889_v7  ;;  %v910_v9 = vadd.f32 %v4977_v10, %v5985_v19 }
 0x146   : > { %v901_v3 = vpop.f32.mrf.mxu1  ;;  %v1256_v12 = vpop.f32.mrf.mxu0 }
 0x147   : > { %v6114_v13 = vadd.f32 %v5025_v49, %v910_v9  ;;  %v902_v11 = vadd.f32 %v901_v3, %v5989_v21 }
 0x148   : > { %v4978_v57 = vpop.f32.mrf.mxu1  ;;  %v5026_v14 = vpop.f32.mrf.mxu0 }
 0x149   : > { %v6117_v24 = vadd.f32 %v1256_v12, %v902_v11  ;;  %v913_v17 = vadd.f32 %v4978_v57, %v5993_v23 }
 0x14a   : > { %v904_v26 = vpop.f32.mrf.mxu1  ;;  %v1259_v58 = vpop.f32.mrf.mxu0 }
 0x14b   : > { %v6120_v31 = vadd.f32 %v5026_v14, %v913_v17  ;;  %v905_v18 = vadd.f32 %v904_v26, %v6001_v29 }
 0x14c   : > { %v5045_v60 = vpop.f32.mrf.mxu1  ;;  %v5093_v19 = vpop.f32.mrf.mxu0 }
 0x14d   : > { %v6123_v59 = vadd.f32 %v1259_v58, %v905_v18  ;;  %v1659_v20 = vadd.f32 %v5045_v60, %v6004_v35 }
 0x14e   : > { %v1530_v22 = vpop.f32.mrf.mxu1  ;;  %v1916_v21 = vpop.f32.mrf.mxu0 }
 0x14f   : > { %v6126_v61 = vadd.f32 %v5093_v19, %v1659_v20  ;;  %v1657_v38 = vadd.f32 %v1530_v22, %v6009_v41 }
 0x150   : > { %v5046_v63 = vpop.f32.mrf.mxu1  ;;  %v5094_v23 = vpop.f32.mrf.mxu0 }
 0x151   : > { %v6129_v39 = vadd.f32 %v1916_v21, %v1657_v38  ;;  %v1660_v40 = vadd.f32 %v5046_v63, %v6014_v52 }
 0x152   : > { %v1533_v42 = vpop.f32.mrf.mxu1  ;;  %v1919_v29 = vpop.f32.mrf.mxu0 }
 0x153   : > { %v6132_v44 = vadd.f32 %v5094_v23, %v1660_v40  ;;  %v1658_v5 = vadd.f32 %v1533_v42, %v6017_v55 }
 0x154   : > { %v5049_v46 = vpop.f32.mrf.mxu1  ;;  %v5097_v35 = vpop.f32.mrf.mxu0 }
 0x155   : > { %v6135_v6 = vadd.f32 %v1919_v29, %v1658_v5  ;;  %v1663_v48 = vadd.f32 %v5049_v46, %v6020_v2 }
 0x156   : > { %v1546_v47 = vpop.f32.mrf.mxu1  ;;  %v1932_v41 = vpop.f32.mrf.mxu0 }
 0x157   : > { %v6138_v7 = vadd.f32 %v5097_v35, %v1663_v48  ;;  %v1661_v10 = vadd.f32 %v1546_v47, %v6025_v15 }
 0x158   : > { %v5050_v49 = vpop.f32.mrf.mxu1  ;;  %v5098_v52 = vpop.f32.mrf.mxu0 }
 0x159   : > { %v6141_v9 = vadd.f32 %v1932_v41, %v1661_v10  ;;  %v1664_v3 = vadd.f32 %v5050_v49, %v6030_v30 }
 0x15a   : > { %v1549_v12 = vpop.f32.mrf.mxu1  ;;  %v1935_v55 = vpop.f32.mrf.mxu0 }
 0x15b   : > { %v6144_v11 = vadd.f32 %v5098_v52, %v1664_v3  ;;  %v1662_v57 = vadd.f32 %v1549_v12, %v6033_v33 }
 0x15c   : > { %v5053_v14 = vpop.f32.mrf.mxu1  ;;  %v5101_v2 = vpop.f32.mrf.mxu0 }
 0x15d   : > { %v6147_v17 = vadd.f32 %v1935_v55, %v1662_v57  ;;  %v1667_v26 = vadd.f32 %v5053_v14, %v6036_v37 }
 0x15e   : > { %v1562_v58 = vpop.f32.mrf.mxu1  ;;  %v1948_v15 = vpop.f32.mrf.mxu0 }
 0x15f   : > { %v6150_v18 = vadd.f32 %v5101_v2, %v1667_v26  ;;  %v1665_v60 = vadd.f32 %v1562_v58, %v6041_v43 }
 0x160   : > { %v5054_v19 = vpop.f32.mrf.mxu1  ;;  %v5102_v30 = vpop.f32.mrf.mxu0 }
 0x161   : > { %v6153_v20 = vadd.f32 %v1948_v15, %v1665_v60  ;;  %v1668_v22 = vadd.f32 %v5054_v19, %v6046_v54 }
 0x162   : > { %v1565_v21 = vpop.f32.mrf.mxu1  ;;  %v1951_v33 = vpop.f32.mrf.mxu0 }
 0x163   : > { %v6156_v38 = vadd.f32 %v5102_v30, %v1668_v22  ;;  %v1666_v63 = vadd.f32 %v1565_v21, %v6049_v0 }
 0x164   : > { %v5057_v23 = vpop.f32.mrf.mxu1  ;;  %v5105_v37 = vpop.f32.mrf.mxu0 }
 0x165   : > { %v6159_v40 = vadd.f32 %v1951_v33, %v1666_v63  ;;  %v1671_v42 = vadd.f32 %v5057_v23, %v6052_v56 }
 0x166   : > { %v1578_v29 = vpop.f32.mrf.mxu1  ;;  %v1964_v43 = vpop.f32.mrf.mxu0 }
 0x167   : > { %v6162_v5 = vadd.f32 %v5105_v37, %v1671_v42  ;;  %v1669_v46 = vadd.f32 %v1578_v29, %v6057_v25 }
 0x168   : > { %v5058_v35 = vpop.f32.mrf.mxu1  ;;  %v5106_v54 = vpop.f32.mrf.mxu0 }
 0x169   : > { %v6165_v48 = vadd.f32 %v1964_v43, %v1669_v46  ;;  %v1672_v47 = vadd.f32 %v5058_v35, %v6062_v32 }
 0x16a   : > { %v1581_v41 = vpop.f32.mrf.mxu1  ;;  %v1967_v0 = vpop.f32.mrf.mxu0 }
 0x16b   : > { %v6168_v10 = vadd.f32 %v5106_v54, %v1672_v47  ;;  %v1670_v49 = vadd.f32 %v1581_v41, %v6065_v34 }
 0x16c   : > { %v5061_v52 = vpop.f32.mrf.mxu1  ;;  %v5109_v56 = vpop.f32.mrf.mxu0 }
 0x16d   : > { %v6171_v3 = vadd.f32 %v1967_v0, %v1670_v49  ;;  %v1675_v12 = vadd.f32 %v5061_v52, %v6068_v4 }
 0x16e   : > { %v1594_v55 = vpop.f32.mrf.mxu1  ;;  %v1980_v25 = vpop.f32.mrf.mxu0 }
 0x16f   : > { %v6174_v57 = vadd.f32 %v5109_v56, %v1675_v12  ;;  %v1673_v14 = vadd.f32 %v1594_v55, %v6073_v45 }
 0x170   : > { %v5062_v2 = vpop.f32.mrf.mxu1  ;;  %v5110_v32 = vpop.f32.mrf.mxu0 }
 0x171   : > { %v6177_v26 = vadd.f32 %v1980_v25, %v1673_v14  ;;  %v1676_v58 = vadd.f32 %v5062_v2, %v6078_v50 }
 0x172   : > { %v1597_v15 = vpop.f32.mrf.mxu1  ;;  %v1983_v34 = vpop.f32.mrf.mxu0 }
 0x173   : > { %v6180_v60 = vadd.f32 %v5110_v32, %v1676_v58  ;;  %v1674_v19 = vadd.f32 %v1597_v15, %v6081_v1 }
 0x174   : > { %v5065_v30 = vpop.f32.mrf.mxu1  ;;  %v5113_v4 = vpop.f32.mrf.mxu0 }
 0x175   : > { %v6183_v22 = vadd.f32 %v1983_v34, %v1674_v19  ;;  %v1679_v21 = vadd.f32 %v5065_v30, %v6084_v16 }
 0x176   : > { %v1610_v33 = vpop.f32.mrf.mxu1  ;;  %v1996_v45 = vpop.f32.mrf.mxu0 }
 0x177   : > { %v6186_v63 = vadd.f32 %v5113_v4, %v1679_v21  ;;  %v1677_v23 = vadd.f32 %v1610_v33, %v6089_v27 }
 0x178   : > { %v5066_v37 = vpop.f32.mrf.mxu1  ;;  %v5114_v50 = vpop.f32.mrf.mxu0 }
 0x179   : > { %v6189_v42 = vadd.f32 %v1996_v45, %v1677_v23  ;;  %v1680_v29 = vadd.f32 %v5066_v37, %v6094_v62 }
 0x17a   : > { %v1613_v43 = vpop.f32.mrf.mxu1  ;;  %v1999_v1 = vpop.f32.mrf.mxu0 }
 0x17b   : > { %6548 = vst [vmem:[#allocation2_spill] sm:$0xff] %v6189_v42  ;;  %v6192_v46 = vadd.f32 %v5114_v50, %v1680_v29  ;;  %v1678_v35 = vadd.f32 %v1613_v43, %v6097_v36 }
 0x17c   : > { %v5069_v54 = vpop.f32.mrf.mxu1  ;;  %v5117_v16 = vpop.f32.mrf.mxu0 }
 0x17d   : > { %6549 = vst [vmem:[#allocation3_spill] sm:$0xff] %v6192_v46  ;;  %v6195_v47 = vadd.f32 %v1999_v1, %v1678_v35  ;;  %v1683_v41 = vadd.f32 %v5069_v54, %v6100_v28 }
 0x17e   : > { %v1626_v0 = vpop.f32.mrf.mxu1  ;;  %v2012_v27 = vpop.f32.mrf.mxu0 }
 0x17f   : > { %6550 = vst [vmem:[#allocation4_spill] sm:$0xff] %v6195_v47  ;;  %v6198_v49 = vadd.f32 %v5117_v16, %v1683_v41  ;;  %v1681_v52 = vadd.f32 %v1626_v0, %v6105_v53 }
 0x180   : > { %v5070_v56 = vpop.f32.mrf.mxu1  ;;  %v5118_v62 = vpop.f32.mrf.mxu0 }
 0x181   : > { %v6201_v12 = vadd.f32 %v2012_v27, %v1681_v52  ;;  %v1684_v55 = vadd.f32 %v5070_v56, %v6108_v8 }
 0x182   : > { %v1629_v25 = vpop.f32.mrf.mxu1  ;;  %v2015_v36 = vpop.f32.mrf.mxu0 }
 0x183   : > { %6551 = vst [vmem:[#allocation5_spill] sm:$0xff] %v6201_v12  ;;  %v6204_v14 = vadd.f32 %v5118_v62, %v1684_v55  ;;  %v1682_v2 = vadd.f32 %v1629_v25, %v6111_v51 }
 0x184   : > { %v5073_v32 = vpop.f32.mrf.mxu1  ;;  %v5121_v28 = vpop.f32.mrf.mxu0 }
 0x185   : > { %6552 = vst [vmem:[#allocation6_spill] sm:$0xff] %v6204_v14  ;;  %v6207_v58 = vadd.f32 %v2015_v36, %v1682_v2  ;;  %v1687_v15 = vadd.f32 %v5073_v32, %v6114_v13 }
 0x186   : > { %v1642_v34 = vpop.f32.mrf.mxu1  ;;  %v2028_v53 = vpop.f32.mrf.mxu0 }
 0x187   : > { %6553 = vst [vmem:[#allocation7_spill] sm:$0xff] %v6207_v58  ;;  %v6210_v19 = vadd.f32 %v5121_v28, %v1687_v15  ;;  %v1685_v30 = vadd.f32 %v1642_v34, %v6117_v24 }
 0x188   : > { %v5074_v4 = vpop.f32.mrf.mxu1  ;;  %v5122_v8 = vpop.f32.mrf.mxu0 }
 0x189   : > { %v6213_v21 = vadd.f32 %v2028_v53, %v1685_v30  ;;  %v1688_v33 = vadd.f32 %v5074_v4, %v6120_v31 }
 0x18a   : > { %v1645_v45 = vpop.f32.mrf.mxu1  ;;  %v2031_v51 = vpop.f32.mrf.mxu0 }
 0x18b   : > { %6554 = vst [vmem:[#allocation8_spill] sm:$0xff] %v6213_v21  ;;  %v6216_v23 = vadd.f32 %v5122_v8, %v1688_v33  ;;  %v1686_v37 = vadd.f32 %v1645_v45, %v6123_v59 }
 0x18c   : > { %v5141_v50 = vpop.f32.mrf.mxu1  ;;  %v5189_v13 = vpop.f32.mrf.mxu0 }
 0x18d   : > { %6555 = vst [vmem:[#allocation9_spill] sm:$0xff] %v6216_v23  ;;  %v6219_v29 = vadd.f32 %v2031_v51, %v1686_v37  ;;  %v2431_v43 = vadd.f32 %v5141_v50, %v6126_v61 }
 0x18e   : > { %v2302_v1 = vpop.f32.mrf.mxu1  ;;  %v2688_v24 = vpop.f32.mrf.mxu0 }
 0x18f   : > { %6556 = vst [vmem:[#allocation10_spill] sm:$0xff] %v6219_v29  ;;  %v6222_v35 = vadd.f32 %v5189_v13, %v2431_v43  ;;  %v2429_v54 = vadd.f32 %v2302_v1, %v6129_v39 }
 0x190   : > { %v6225_v16 = vpop.f32.mrf.mxu1  ;;  %v6227_v31 = vpop.f32.mrf.mxu0 }
 0x191   : > { %v6229_v41 = vadd.f32 %v2688_v24, %v2429_v54 }
 0x192   : > { %v6231_v0 = vpop.f32.mrf.mxu1  ;;  %v6233_v59 = vpop.f32.mrf.mxu0 }
 0x194   : > { %v5145_v27 = vpop.f32.mrf.mxu1  ;;  %v5193_v52 = vpop.f32.mrf.mxu0 }
 0x195   : > { %v2435_v61 = vadd.f32 %v5145_v27, %v6138_v7 }
 0x196   : > { %v6236_v56 = vpop.f32.mrf.mxu1  ;;  %v6238_v62 = vpop.f32.mrf.mxu0 }
 0x197   : > { %v6240_v55 = vadd.f32 %v5193_v52, %v2435_v61 }
 0x198   : > { %v6242_v39 = vpop.f32.mrf.mxu1  ;;  %v6244_v25 = vpop.f32.mrf.mxu0 }
 0x19a   : > { %v6246_v36 = vpop.f32.mrf.mxu1  ;;  %v6248_v2 = vpop.f32.mrf.mxu0 }
 0x19c   : > { %v5149_v32 = vpop.f32.mrf.mxu1  ;;  %v5197_v28 = vpop.f32.mrf.mxu0 }
 0x19d   : > { %v2439_v15 = vadd.f32 %v5149_v32, %v6150_v18 }
 0x19e   : > { %v6251_v34 = vpop.f32.mrf.mxu1  ;;  %v6253_v7 = vpop.f32.mrf.mxu0 }
 0x19f   : > { %v6255_v53 = vadd.f32 %v5197_v28, %v2439_v15 }
 0x1a0   : > { %v6257_v30 = vpop.f32.mrf.mxu1  ;;  %v6259_v4 = vpop.f32.mrf.mxu0 }
 0x1a2   : > { %v6261_v8 = vpop.f32.mrf.mxu1  ;;  %v6263_v33 = vpop.f32.mrf.mxu0 }
 0x1a4   : > { %v5153_v45 = vpop.f32.mrf.mxu1  ;;  %v5201_v51 = vpop.f32.mrf.mxu0 }
 0x1a5   : > { %v2443_v37 = vadd.f32 %v5153_v45, %v6162_v5 }
 0x1a6   : > { %v6266_v50 = vpop.f32.mrf.mxu1  ;;  %v6268_v18 = vpop.f32.mrf.mxu0 }
 0x1a7   : > { %v6270_v13 = vadd.f32 %v5201_v51, %v2443_v37 }
 0x1a8   : > { %v6272_v43 = vpop.f32.mrf.mxu1  ;;  %v6274_v1 = vpop.f32.mrf.mxu0 }
 0x1aa   : > { %v6276_v24 = vpop.f32.mrf.mxu1  ;;  %v6278_v54 = vpop.f32.mrf.mxu0 }
 0x1ac   : > { %v5157_v27 = vpop.f32.mrf.mxu1  ;;  %v5205_v52 = vpop.f32.mrf.mxu0 }
 0x1ad   : > { %v2447_v61 = vadd.f32 %v5157_v27, %v6174_v57 }
 0x1ae   : > { %v6281_v32 = vpop.f32.mrf.mxu1  ;;  %v6283_v5 = vpop.f32.mrf.mxu0 }
 0x1af   : > { %v6285_v28 = vadd.f32 %v5205_v52, %v2447_v61 }
 0x1b0   : > { %v6287_v15 = vpop.f32.mrf.mxu1  ;;  %v6289_v45 = vpop.f32.mrf.mxu0 }
 0x1b2   : > { %v6291_v51 = vpop.f32.mrf.mxu1  ;;  %v6293_v37 = vpop.f32.mrf.mxu0 }
 0x1b3   : > { %6557 = vst [vmem:[#allocation11_spill] sm:$0xff] %v6293_v37 }
 0x1b4   : > { %v5161_v29 = vpop.f32.mrf.mxu1  ;;  %v5209_v23 = vpop.f32.mrf.mxu0 }
 0x1b5   : > { %v2451_v21 = vadd.f32 %v5161_v29, %v6186_v63 }
 0x1b6   : > { %v6296_v58 = vpop.f32.mrf.mxu1  ;;  %v6298_v57 = vpop.f32.mrf.mxu0 }
 0x1b7   : > { %6558 = vst [vmem:[#allocation12_spill] sm:$0xff] %v6298_v57  ;;  %v6300_v27 = vadd.f32 %v5209_v23, %v2451_v21 }
 0x1b8   : > { %v6302_v52 = vpop.f32.mrf.mxu1  ;;  %v6304_v61 = vpop.f32.mrf.mxu0 }
 0x1b9   : > { %6559 = vst [vmem:[#allocation13_spill] sm:$0xff] %v6300_v27  ;;  %6560 = vst [vmem:[#allocation14_spill] sm:$0xff] %v6302_v52 }
 0x1ba   : > { %6561 = vst [vmem:[#allocation15_spill] sm:$0xff] %v6304_v61  ;;  %v6306_v14 = vpop.f32.mrf.mxu1  ;;  %v6308_v12 = vpop.f32.mrf.mxu0 }
 0x1bb   : > { %6562 = vst [vmem:[#allocation16_spill] sm:$0xff] %v6306_v14  ;;  %6563 = vst [vmem:[#allocation17_spill] sm:$0xff] %v6308_v12 }
 0x1bc   : > { %v5165_v47 = vpop.f32.mrf.mxu1  ;;  %v5213_v46 = vpop.f32.mrf.mxu0 }
 0x1bd   : > { %v2455_v37 = vadd.f32 %v5165_v47, %v6198_v49 }
 0x1be   : > { %v6311_v42 = vpop.f32.mrf.mxu1  ;;  %v6313_v63 = vpop.f32.mrf.mxu0 }
 0x1bf   : > { %v6315_v29 = vadd.f32 %v5213_v46, %v2455_v37 }
 0x1c0   : > { %v6317_v21 = vpop.f32.mrf.mxu1  ;;  %v6319_v23 = vpop.f32.mrf.mxu0 }
 0x1c1   : > { %6564 = vst [vmem:[#allocation18_spill] sm:$0xff] %v6315_v29  ;;  %6565 = vst [vmem:[#allocation19_spill] sm:$0xff] %v6317_v21 }
 0x1c2   : > { %6566 = vst [vmem:[#allocation20_spill] sm:$0xff] %v6319_v23  ;;  %v6321_v27 = vpop.f32.mrf.mxu1  ;;  %v6323_v61 = vpop.f32.mrf.mxu0 }
 0x1c3   : > { %6567 = vst [vmem:[#allocation21_spill] sm:$0xff] %v6321_v27  ;;  %6568 = vst [vmem:[#allocation22_spill] sm:$0xff] %v6323_v61  ;;  %v2432_v61 = vadd.f32 %v6225_v16, %v6132_v44 }
 0x1c4   : > { %v5169_v14 = vpop.f32.mrf.mxu1  ;;  %v5217_v12 = vpop.f32.mrf.mxu0 }
 0x1c5   : > { %v2459_v52 = vadd.f32 %v5169_v14, %v6210_v19  ;;  %v2430_v14 = vadd.f32 %v6231_v0, %v6135_v6  ;;  %v3621_v6 = vld [vmem:[%s6545_s2 + $0x10] sm:$0xff] }
 0x1c6   : > { %v6326_v57 = vpop.f32.mrf.mxu1  ;;  %v6328_v47 = vpop.f32.mrf.mxu0 }
 0x1c7   : > { %6569 = vst [vmem:[#allocation23_spill] sm:$0xff] %v6328_v47  ;;  %v6330_v49 = vadd.f32 %v5217_v12, %v2459_v52  ;;  %v2816_v44 = vadd.f32 %v6233_v59, %v2430_v14  ;;  %v2436_v59 = vadd.f32 %v6242_v39, %v6144_v11 }
 0x1c8   : > { %v6332_v46 = vpop.f32.mrf.mxu1  ;;  %v6334_v37 = vpop.f32.mrf.mxu0 }
 0x1c9   : > { %6570 = vst [vmem:[#allocation24_spill] sm:$0xff] %v6330_v49  ;;  %6571 = vst [vmem:[#allocation25_spill] sm:$0xff] %v6332_v46  ;;  %v2818_v49 = vadd.f32 %v6227_v31, %v2432_v61  ;;  %v3619_v61 = vld [vmem:[%s6545_s2] sm:$0xff] }
 0x1ca   : > { %6572 = vst [vmem:[#allocation26_spill] sm:$0xff] %v6334_v37  ;;  %v6336_v29 = vpop.f32.mrf.mxu1  ;;  %v6338_v23 = vpop.f32.mrf.mxu0 }
 0x1cb   : > { %6573 = vst [vmem:[#allocation27_spill] sm:$0xff] %v6336_v29  ;;  %6574 = vst [vmem:[#allocation28_spill] sm:$0xff] %v6338_v23  ;;  %v2433_v23 = vadd.f32 %v6236_v56, %v6141_v9 }
 0x1cc   : > { %v5237_v27 = vpop.f32.mrf.mxu1  ;;  %v5285_v21 = vpop.f32.mrf.mxu0 }
 0x1cd   : > { %v3203_v19 = vadd.f32 %v5237_v27, %v6222_v35  ;;  %v3622_v35 = vld [vmem:[%s6545_s2 + $0x18] sm:$0xff]  ;;  %v2819_v56 = vadd.f32 %v6238_v62, %v2433_v23 }
 0x1ce   : > { %v3074_v12 = vpop.f32.mrf.mxu1  ;;  %v3460_v52 = vpop.f32.mrf.mxu0 }
 0x1cf   : > { %v3201_v37 = vadd.f32 %v3074_v12, %v6229_v41  ;;  %v3589_v16 = vadd.f32 %v5285_v21, %v3203_v19 }
 0x1d0   : > { %v5238_v29 = vpop.f32.mrf.mxu1  ;;  %v5286_v46 = vpop.f32.mrf.mxu0 }
 0x1d1   : > { %v3204_v47 = vadd.f32 %v5238_v29, %v2818_v49  ;;  %v3587_v41 = vadd.f32 %v3460_v52, %v3201_v37  ;;  %v3620_v29 = vld [vmem:[%s6545_s2 + $0x8] sm:$0xff]  ;;  %v2434_v37 = vadd.f32 %v6246_v36, %v6147_v17  ;;  %v2822_v17 = vadd.f32 %v6244_v25, %v2436_v59 }
 0x1d2   : > { %v3077_v31 = vpop.f32.mrf.mxu1  ;;  %v3463_v0 = vpop.f32.mrf.mxu0  ;;  %v2437_v36 = vadd.f32 %v6251_v34, %v6153_v20  ;;  %v3625_v20 = vld [vmem:[%s6545_s2 + $0x30] sm:$0xff] }
 0x1d3   : > { %v3590_v27 = vadd.f32 %v5286_v46, %v3204_v47  ;;  %v3202_v9 = vadd.f32 %v3077_v31, %v2816_v44  ;;  %v3653_v47 = vadd.f32 %v3621_v6, %v3589_v16  ;;  %v3651_v23 = vadd.f32 %v3619_v61, %v3587_v41  ;;  %v3623_v41 = vld [vmem:[%s6545_s2 + $0x20] sm:$0xff] }
 0x1d4   : > { %v5241_v21 = vpop.f32.mrf.mxu1  ;;  %v5289_v49 = vpop.f32.mrf.mxu0  ;;  %v2820_v6 = vadd.f32 %v6248_v2, %v2434_v37  ;;  %v3626_v2 = vld [vmem:[%s6545_s2 + $0x38] sm:$0xff]  ;;  %v2823_v59 = vadd.f32 %v6253_v7, %v2437_v36  ;;  %v2440_v61 = vadd.f32 %v6257_v30, %v6156_v38  ;;  %v2441_v36 = vadd.f32 %v6266_v50, %v6165_v48  ;;  %v3629_v48 = vld [vmem:[%s6545_s2 + $0x50] sm:$0xff] }
 0x1d5   : > { %v3654_v46 = vadd.f32 %v3622_v35, %v3590_v27  ;;  %v3588_v14 = vadd.f32 %v3463_v0, %v3202_v9  ;;  %v3207_v11 = vadd.f32 %v5241_v21, %v6240_v55  ;;  %v3624_v21 = vld [vmem:[%s6545_s2 + $0x28] sm:$0xff] }
 0x1d6   : > { %v3090_v62 = vpop.f32.mrf.mxu1  ;;  %v3476_v39 = vpop.f32.mrf.mxu0 }
 0x1d7   : > { %v4580_v19 = vpack.c.bf16 %v3654_v46, %v3653_v47  ;;  %v3652_v12 = vadd.f32 %v3620_v29, %v3588_v14  ;;  %v3205_v52 = vadd.f32 %v3090_v62, %v2819_v56  ;;  %v3593_v0 = vadd.f32 %v5289_v49, %v3207_v11 }
 0x1d8   : > { %v5242_v44 = vpop.f32.mrf.mxu1  ;;  %v5290_v16 = vpop.f32.mrf.mxu0 }
 0x1d9   : > { %4652 = vst [vmem:[%s6371_s11 + $0x8] sm:$0xff] %v4580_v19   ;;  %v4575_v35 = vpack.c.bf16 %v3652_v12, %v3651_v23  ;;  %v3843_v31 = vadd.f32 %v3652_v12, %v3651_v23  ;;  %v3591_v55 = vadd.f32 %v3476_v39, %v3205_v52  ;;  %v3208_v27 = vadd.f32 %v5242_v44, %v2822_v17 }
 0x1da   : > { %v3093_v9 = vpop.f32.mrf.mxu1  ;;  %v3479_v56 = vpop.f32.mrf.mxu0  ;;  %v3657_v39 = vadd.f32 %v3625_v20, %v3593_v0  ;;  %v2826_v17 = vadd.f32 %v6259_v4, %v2440_v61 }
 0x1db   : > { %4576 = vst [vmem:[%s6371_s11] sm:$0xff] %v4575_v35   ;;  %v3844_v25 = vadd.f32 %v3843_v31, %v3653_v47  ;;  %v3206_v34 = vadd.f32 %v3093_v9, %v2820_v6  ;;  %v3594_v29 = vadd.f32 %v5290_v16, %v3208_v27  ;;  %v2438_v47 = vadd.f32 %v6261_v8, %v6159_v40  ;;  %v3627_v31 = vld [vmem:[%s6545_s2 + $0x40] sm:$0xff] }
 0x1dc   : > { %v5245_v49 = vpop.f32.mrf.mxu1  ;;  %v5293_v37 = vpop.f32.mrf.mxu0  ;;  %v3655_v14 = vadd.f32 %v3623_v41, %v3591_v55  ;;  %v2827_v27 = vadd.f32 %v6268_v18, %v2441_v36  ;;  %v2444_v9 = vadd.f32 %v6272_v43, %v6168_v10 }
 0x1dd   : > { %v3845_v11 = vadd.f32 %v3844_v25, %v3654_v46  ;;  %v3592_v62 = vadd.f32 %v3479_v56, %v3206_v34  ;;  %v3658_v23 = vadd.f32 %v3626_v2, %v3594_v29  ;;  %v3211_v7 = vadd.f32 %v5245_v49, %v6255_v53  ;;  %v3628_v25 = vld [vmem:[%s6545_s2 + $0x48] sm:$0xff] }
 0x1de   : > { %v3106_v19 = vpop.f32.mrf.mxu1  ;;  %v3492_v38 = vpop.f32.mrf.mxu0  ;;  %v2824_v44 = vadd.f32 %v6263_v33, %v2438_v47  ;;  %v3630_v33 = vld [vmem:[%s6545_s2 + $0x58] sm:$0xff]  ;;  %v2442_v34 = vadd.f32 %v6276_v24, %v6171_v3 }
 0x1df   : > { %v3846_v30 = vadd.f32 %v3845_v11, %v3655_v14  ;;  %v3656_v12 = vadd.f32 %v3624_v21, %v3592_v62  ;;  %v3209_v52 = vadd.f32 %v3106_v19, %v2823_v59  ;;  %v4590_v40 = vpack.c.bf16 %v3658_v23, %v3657_v39 }
 0x1e0   : > { %v5246_v8 = vpop.f32.mrf.mxu1  ;;  %v5294_v46 = vpop.f32.mrf.mxu0  ;;  %v3597_v53 = vadd.f32 %v5293_v37, %v3211_v7  ;;  %v2830_v11 = vadd.f32 %v6274_v1, %v2444_v9  ;;  %v2445_v62 = vadd.f32 %v6281_v32, %v6177_v26  ;;  %v3633_v26 = vld [vmem:[%s6545_s2 + $0x70] sm:$0xff] }
 0x1e1   : > { %v4585_v16 = vpack.c.bf16 %v3656_v12, %v3655_v14  ;;  %v3847_v6 = vadd.f32 %v3846_v30, %v3656_v12  ;;  %v3595_v35 = vadd.f32 %v3492_v38, %v3209_v52  ;;  %4654 = vst [vmem:[%s6371_s11 + $0x18] sm:$0xff] %v4590_v40   ;;  %v3212_v55 = vadd.f32 %v5246_v8, %v2826_v17  ;;  %v3631_v30 = vld [vmem:[%s6545_s2 + $0x60] sm:$0xff] }
 0x1e2   : > { %v3109_v0 = vpop.f32.mrf.mxu1  ;;  %v3495_v4 = vpop.f32.mrf.mxu0  ;;  %v3661_v21 = vadd.f32 %v3629_v48, %v3597_v53  ;;  %v2831_v36 = vadd.f32 %v6283_v5, %v2445_v62  ;;  %v2448_v40 = vadd.f32 %v6287_v15, %v6180_v60  ;;  %v3636_v62 = vld [vmem:[%s6545_s2 + $0x88] sm:$0xff] }
 0x1e3   : > { %4653 = vst [vmem:[%s6371_s11 + $0x10] sm:$0xff] %v4585_v16   ;;  %v3848_v41 = vadd.f32 %v3847_v6, %v3657_v39  ;;  %v3210_v50 = vadd.f32 %v3109_v0, %v2824_v44  ;;  %v3598_v56 = vadd.f32 %v5294_v46, %v3212_v55  ;;  %v3659_v59 = vadd.f32 %v3627_v31, %v3595_v35  ;;  %v3632_v46 = vld [vmem:[%s6545_s2 + $0x68] sm:$0xff] }
 0x1e4   : > { %v5249_v20 = vpop.f32.mrf.mxu1  ;;  %v5297_v2 = vpop.f32.mrf.mxu0  ;;  %v2446_v6 = vadd.f32 %v6291_v51, %v6183_v22 }
 0x1e5   : > { %v3849_v61 = vadd.f32 %v3848_v41, %v3658_v23  ;;  %v3596_v29 = vadd.f32 %v3495_v4, %v3210_v50  ;;  %v3662_v49 = vadd.f32 %v3630_v33, %v3598_v56  ;;  %v3215_v18 = vadd.f32 %v5249_v20, %v6270_v13  ;;  %v6575_v50 = vld [vmem:[#allocation2_spill] sm:$0xff]  ;;  %v6576_v56 = vld [vmem:[#allocation11_spill] sm:$0xff] }
 0x1e6   : > { %v3122_v37 = vpop.f32.mrf.mxu1  ;;  %v3508_v10 = vpop.f32.mrf.mxu0  ;;  %v2828_v23 = vadd.f32 %v6278_v54, %v2442_v34  ;;  %v3634_v54 = vld [vmem:[%s6545_s2 + $0x78] sm:$0xff]  ;;  %v2834_v33 = vadd.f32 %v6289_v45, %v2448_v40  ;;  %v6583_v40 = vld [vmem:[#allocation15_spill] sm:$0xff] }
 0x1e7   : > { %v3850_v43 = vadd.f32 %v3849_v61, %v3659_v59  ;;  %v3660_v47 = vadd.f32 %v3628_v25, %v3596_v29  ;;  %v3213_v14 = vadd.f32 %v3122_v37, %v2827_v27  ;;  %v4600_v3 = vpack.c.bf16 %v3662_v49, %v3661_v21  ;;  %v6577_v37 = vld [vmem:[#allocation12_spill] sm:$0xff] }
 0x1e8   : > { %v5250_v24 = vpop.f32.mrf.mxu1  ;;  %v5298_v39 = vpop.f32.mrf.mxu0  ;;  %v3601_v13 = vadd.f32 %v5297_v2, %v3215_v18  ;;  %v2449_v27 = vadd.f32 %v6296_v58, %v6575_v50  ;;  %v2832_v25 = vadd.f32 %v6576_v56, %v2446_v6  ;;  %v3637_v58 = vld [vmem:[%s6545_s2 + $0x90] sm:$0xff]  ;;  %v3642_v50 = vld [vmem:[%s6545_s2 + $0xb8] sm:$0xff] }
 0x1e9   : > { %v4595_v7 = vpack.c.bf16 %v3660_v47, %v3659_v59  ;;  %v3851_v19 = vadd.f32 %v3850_v43, %v3660_v47  ;;  %v3599_v38 = vadd.f32 %v3508_v10, %v3213_v14  ;;  %4656 = vst [vmem:[%s6371_s11 + $0x28] sm:$0xff] %v4600_v3   ;;  %v3216_v12 = vadd.f32 %v5250_v24, %v2830_v11  ;;  %v3635_v59 = vld [vmem:[%s6545_s2 + $0x80] sm:$0xff]  ;;  %v6578_v43 = vld [vmem:[#allocation3_spill] sm:$0xff] }
 0x1ea   : > { %v3125_v52 = vpop.f32.mrf.mxu1  ;;  %v3511_v1 = vpop.f32.mrf.mxu0  ;;  %v3665_v55 = vadd.f32 %v3633_v26, %v3601_v13  ;;  %v2835_v10 = vadd.f32 %v6577_v37, %v2449_v27  ;;  %v6579_v47 = vld [vmem:[#allocation14_spill] sm:$0xff] }
 0x1eb   : > { %4655 = vst [vmem:[%s6371_s11 + $0x20] sm:$0xff] %v4595_v7   ;;  %v3852_v17 = vadd.f32 %v3851_v19, %v3661_v21  ;;  %v3214_v32 = vadd.f32 %v3125_v52, %v2828_v23  ;;  %v3602_v8 = vadd.f32 %v5298_v39, %v3216_v12  ;;  %v3663_v35 = vadd.f32 %v3631_v30, %v3599_v38  ;;  %v6580_v39 = vld [vmem:[#allocation4_spill] sm:$0xff]  ;;  %v6582_v52 = vld [vmem:[#allocation13_spill] sm:$0xff] }
 0x1ec   : > { %v5253_v44 = vpop.f32.mrf.mxu1  ;;  %v5301_v16 = vpop.f32.mrf.mxu0  ;;  %v2452_v14 = vadd.f32 %v6579_v47, %v6578_v43  ;;  %v6581_v23 = vld [vmem:[#allocation16_spill] sm:$0xff] }
 0x1ed   : > { %v3853_v53 = vadd.f32 %v3852_v17, %v3662_v49  ;;  %v3600_v31 = vadd.f32 %v3511_v1, %v3214_v32  ;;  %v3666_v0 = vadd.f32 %v3634_v54, %v3602_v8  ;;  %v3219_v5 = vadd.f32 %v5253_v44, %v6285_v28  ;;  %v3638_v49 = vld [vmem:[%s6545_s2 + $0x98] sm:$0xff] }
 0x1ee   : > { %v3138_v4 = vpop.f32.mrf.mxu1  ;;  %v3524_v60 = vpop.f32.mrf.mxu0  ;;  %v2450_v7 = vadd.f32 %v6581_v23, %v6580_v39  ;;  %v2838_v8 = vadd.f32 %v6583_v40, %v2452_v14 }
 0x1ef   : > { %v3854_v15 = vadd.f32 %v3853_v53, %v3663_v35  ;;  %v3664_v41 = vadd.f32 %v3632_v46, %v3600_v31  ;;  %v3217_v48 = vadd.f32 %v3138_v4, %v2831_v36  ;;  %v4610_v22 = vpack.c.bf16 %v3666_v0, %v3665_v55  ;;  %v6584_v46 = vld [vmem:[#allocation5_spill] sm:$0xff] }
 0x1f0   : > { %v5254_v51 = vpop.f32.mrf.mxu1  ;;  %v5302_v9 = vpop.f32.mrf.mxu0  ;;  %v3605_v28 = vadd.f32 %v5301_v16, %v3219_v5  ;;  %v2453_v44 = vadd.f32 %v6311_v42, %v6584_v46  ;;  %v6585_v53 = vld [vmem:[#allocation17_spill] sm:$0xff]  ;;  %v3641_v42 = vld [vmem:[%s6545_s2 + $0xb0] sm:$0xff] }
 0x1f1   : > { %v4605_v20 = vpack.c.bf16 %v3664_v41, %v3663_v35  ;;  %v3855_v2 = vadd.f32 %v3854_v15, %v3664_v41  ;;  %v3603_v34 = vadd.f32 %v3524_v60, %v3217_v48  ;;  %4658 = vst [vmem:[%s6371_s11 + $0x38] sm:$0xff] %v4610_v22   ;;  %v3220_v61 = vadd.f32 %v5254_v51, %v2834_v33  ;;  %v3639_v60 = vld [vmem:[%s6545_s2 + $0xa0] sm:$0xff] }
 0x1f2   : > { %v3141_v29 = vpop.f32.mrf.mxu1  ;;  %v3527_v45 = vpop.f32.mrf.mxu0  ;;  %v3669_v30 = vadd.f32 %v3637_v58, %v3605_v28  ;;  %v2836_v31 = vadd.f32 %v6585_v53, %v2450_v7  ;;  %v2839_v22 = vadd.f32 %v6313_v63, %v2453_v44  ;;  %v6586_v51 = vld [vmem:[#allocation6_spill] sm:$0xff]  ;;  %v6588_v28 = vld [vmem:[#allocation7_spill] sm:$0xff]  ;;  %v6595_v44 = vld [vmem:[#allocation9_spill] sm:$0xff] }
 0x1f3   : > { %4657 = vst [vmem:[%s6371_s11 + $0x30] sm:$0xff] %v4605_v20   ;;  %v3856_v21 = vadd.f32 %v3855_v2, %v3665_v55  ;;  %v3218_v18 = vadd.f32 %v3141_v29, %v2832_v25  ;;  %v3606_v11 = vadd.f32 %v5302_v9, %v3220_v61  ;;  %v3667_v19 = vadd.f32 %v3635_v59, %v3603_v34  ;;  %v6587_v9 = vld [vmem:[#allocation19_spill] sm:$0xff]  ;;  %v6589_v59 = vld [vmem:[#allocation21_spill] sm:$0xff] }
 0x1f4   : > { %v5257_v3 = vpop.f32.mrf.mxu1  ;;  %v5305_v24 = vpop.f32.mrf.mxu0  ;;  %v2456_v56 = vadd.f32 %v6587_v9, %v6586_v51  ;;  %v3640_v20 = vld [vmem:[%s6545_s2 + $0xa8] sm:$0xff]  ;;  %v2454_v61 = vadd.f32 %v6589_v59, %v6588_v28  ;;  %v6601_v59 = vld [vmem:[#allocation28_spill] sm:$0xff] }
 0x1f5   : > { %v3857_v38 = vadd.f32 %v3856_v21, %v3666_v0  ;;  %v3604_v13 = vadd.f32 %v3527_v45, %v3218_v18  ;;  %v3670_v12 = vadd.f32 %v3638_v49, %v3606_v11  ;;  %v3223_v1 = vadd.f32 %v5257_v3, %v6582_v52  ;;  %v6590_v18 = vld [vmem:[#allocation18_spill] sm:$0xff]  ;;  %v6591_v11 = vld [vmem:[#allocation20_spill] sm:$0xff]  ;;  %v3644_v53 = vld [vmem:[%s6545_s2 + $0xc8] sm:$0xff] }
 0x1f6   : > { %v3154_v17 = vpop.f32.mrf.mxu1  ;;  %v3540_v26 = vpop.f32.mrf.mxu0  ;;  %v6592_v3 = vld [vmem:[#allocation8_spill] sm:$0xff] }
 0x1f7   : > { %v3858_v54 = vadd.f32 %v3857_v38, %v3667_v19  ;;  %v3668_v32 = vadd.f32 %v3636_v62, %v3604_v13  ;;  %v3221_v36 = vadd.f32 %v3154_v17, %v2835_v10  ;;  %v4620_v16 = vpack.c.bf16 %v3670_v12, %v3669_v30 }
 0x1f8   : > { %v5258_v6 = vpop.f32.mrf.mxu1  ;;  %v5306_v35 = vpop.f32.mrf.mxu0  ;;  %v3609_v4 = vadd.f32 %v5305_v24, %v3223_v1  ;;  %v2842_v62 = vadd.f32 %v6591_v11, %v2456_v56  ;;  %v2457_v24 = vadd.f32 %v6326_v57, %v6592_v3  ;;  %v3643_v1 = vld [vmem:[%s6545_s2 + $0xc0] sm:$0xff]  ;;  %v3645_v57 = vld [vmem:[%s6545_s2 + $0xd0] sm:$0xff] }
 0x1f9   : > { %v4615_v55 = vpack.c.bf16 %v3668_v32, %v3667_v19  ;;  %v3859_v0 = vadd.f32 %v3858_v54, %v3668_v32  ;;  %v3607_v5 = vadd.f32 %v3540_v26, %v3221_v36  ;;  %4660 = vst [vmem:[%s6371_s11 + $0x48] sm:$0xff] %v4620_v16   ;;  %v3224_v15 = vadd.f32 %v5258_v6, %v2838_v8  ;;  %v6593_v19 = vld [vmem:[#allocation22_spill] sm:$0xff]  ;;  %v3646_v36 = vld [vmem:[%s6545_s2 + $0xd8] sm:$0xff]  ;;  %v6594_v8 = vld [vmem:[#allocation23_spill] sm:$0xff] }
 0x1fa   : > { %v3157_v41 = vpop.f32.mrf.mxu1  ;;  %v3543_v48 = vpop.f32.mrf.mxu0  ;;  %v3673_v58 = vadd.f32 %v3641_v42, %v3609_v4  ;;  %v2840_v38 = vadd.f32 %v6593_v19, %v2454_v61  ;;  %v2843_v46 = vadd.f32 %v6594_v8, %v2457_v24  ;;  %v6596_v16 = vld [vmem:[#allocation25_spill] sm:$0xff]  ;;  %v6599_v42 = vld [vmem:[#allocation24_spill] sm:$0xff] }
 0x1fb   : > { %4659 = vst [vmem:[%s6371_s11 + $0x40] sm:$0xff] %v4615_v55   ;;  %v3860_v33 = vadd.f32 %v3859_v0, %v3669_v30  ;;  %v3222_v27 = vadd.f32 %v3157_v41, %v2836_v31  ;;  %v3610_v25 = vadd.f32 %v5306_v35, %v3224_v15  ;;  %v3671_v29 = vadd.f32 %v3639_v60, %v3607_v5  ;;  %v6597_v0 = vld [vmem:[#allocation10_spill] sm:$0xff]  ;;  %v6598_v5 = vld [vmem:[#allocation27_spill] sm:$0xff] }
 0x1fc   : > { %v5261_v2 = vpop.f32.mrf.mxu1  ;;  %v5309_v34 = vpop.f32.mrf.mxu0  ;;  %v2460_v6 = vadd.f32 %v6596_v16, %v6595_v44  ;;  %v2458_v4 = vadd.f32 %v6598_v5, %v6597_v0 }
 0x1fd   : > { %v3861_v45 = vadd.f32 %v3860_v33, %v3670_v12  ;;  %v3608_v21 = vadd.f32 %v3543_v48, %v3222_v27  ;;  %v3674_v49 = vadd.f32 %v3642_v50, %v3610_v25  ;;  %v3227_v63 = vadd.f32 %v5261_v2, %v6590_v18  ;;  %v6600_v25 = vld [vmem:[#allocation26_spill] sm:$0xff] }
 0x1fe   : > { %v3170_v37 = vpop.f32.mrf.mxu1  ;;  %v3556_v10 = vpop.f32.mrf.mxu0  ;;  %v2844_v61 = vadd.f32 %v6601_v59, %v2458_v4 }
 0x1ff   : > { %v3862_v43 = vadd.f32 %v3861_v45, %v3671_v29  ;;  %v3672_v47 = vadd.f32 %v3640_v20, %v3608_v21  ;;  %v3225_v14 = vadd.f32 %v3170_v37, %v2839_v22  ;;  %v4630_v39 = vpack.c.bf16 %v3674_v49, %v3673_v58 }
 0x200   : > { %v5262_v23 = vpop.f32.mrf.mxu1  ;;  %v5310_v7 = vpop.f32.mrf.mxu0  ;;  %v3613_v52 = vadd.f32 %v5309_v34, %v3227_v63  ;;  %v2846_v20 = vadd.f32 %v6600_v25, %v2460_v6 }
 0x201   : > { %v4625_v13 = vpack.c.bf16 %v3672_v47, %v3671_v29  ;;  %v3863_v30 = vadd.f32 %v3862_v43, %v3672_v47  ;;  %v3611_v12 = vadd.f32 %v3556_v10, %v3225_v14  ;;  %4662 = vst [vmem:[%s6371_s11 + $0x58] sm:$0xff] %v4630_v39   ;;  %v3228_v17 = vadd.f32 %v5262_v23, %v2842_v62  ;;  %v3649_v10 = vld [vmem:[%s6545_s2 + $0xf0] sm:$0xff]  ;;  %v3650_v43 = vld [vmem:[%s6545_s2 + $0xf8] sm:$0xff]  ;;  %v3648_v62 = vld [vmem:[%s6545_s2 + $0xe8] sm:$0xff] }
 0x202   : > { %v3173_v26 = vpop.f32.mrf.mxu1  ;;  %v3559_v54 = vpop.f32.mrf.mxu0  ;;  %v3677_v48 = vadd.f32 %v3645_v57, %v3613_v52 }
 0x203   : > { %4661 = vst [vmem:[%s6371_s11 + $0x50] sm:$0xff] %v4625_v13   ;;  %v3864_v32 = vadd.f32 %v3863_v30, %v3673_v58  ;;  %v3226_v40 = vadd.f32 %v3173_v26, %v2840_v38  ;;  %v3614_v35 = vadd.f32 %v5310_v7, %v3228_v17  ;;  %v3675_v60 = vadd.f32 %v3643_v1, %v3611_v12 }
 0x204   : > { %v5265_v31 = vpop.f32.mrf.mxu1  ;;  %v5313_v55 = vpop.f32.mrf.mxu0 }
 0x205   : > { %v3865_v15 = vadd.f32 %v3864_v32, %v3674_v49  ;;  %v3612_v41 = vadd.f32 %v3559_v54, %v3226_v40  ;;  %v3678_v33 = vadd.f32 %v3646_v36, %v3614_v35  ;;  %v3231_v50 = vadd.f32 %v5265_v31, %v6599_v42  ;;  %v3647_v49 = vld [vmem:[%s6545_s2 + $0xe0] sm:$0xff] }
 0x206   : > { %v3186_v27 = vpop.f32.mrf.mxu1  ;;  %v3572_v22 = vpop.f32.mrf.mxu0 }
 0x207   : > { %v3866_v51 = vadd.f32 %v3865_v15, %v3675_v60  ;;  %v3676_v9 = vadd.f32 %v3644_v53, %v3612_v41  ;;  %v3229_v56 = vadd.f32 %v3186_v27, %v2843_v46  ;;  %v4640_v2 = vpack.c.bf16 %v3678_v33, %v3677_v48 }
 0x208   : > { %v5266_v34 = vpop.f32.mrf.mxu1  ;;  %v5314_v28 = vpop.f32.mrf.mxu0  ;;  %v3617_v58 = vadd.f32 %v5313_v55, %v3231_v50 }
 0x209   : > { %v4635_v29 = vpack.c.bf16 %v3676_v9, %v3675_v60  ;;  %v3867_v45 = vadd.f32 %v3866_v51, %v3676_v9  ;;  %v3615_v21 = vadd.f32 %v3572_v22, %v3229_v56  ;;  %4664 = vst [vmem:[%s6371_s11 + $0x68] sm:$0xff] %v4640_v2   ;;  %v3232_v18 = vadd.f32 %v5266_v34, %v2846_v20 }
 0x20a   : > { %v3189_v63 = vpop.f32.mrf.mxu1  ;;  %v3575_v11 = vpop.f32.mrf.mxu0  ;;  %v3681_v23 = vadd.f32 %v3649_v10, %v3617_v58 }
 0x20b   : > { %4663 = vst [vmem:[%s6371_s11 + $0x60] sm:$0xff] %v4635_v29   ;;  %v3868_v37 = vadd.f32 %v3867_v45, %v3677_v48  ;;  %v3230_v47 = vadd.f32 %v3189_v63, %v2844_v61  ;;  %v3618_v14 = vadd.f32 %v5314_v28, %v3232_v18  ;;  %v3679_v3 = vadd.f32 %v3647_v49, %v3615_v21 }
 0x20d   : > { %v3869_v24 = vadd.f32 %v3868_v37, %v3678_v33  ;;  %v3616_v39 = vadd.f32 %v3575_v11, %v3230_v47  ;;  %v3682_v7 = vadd.f32 %v3650_v43, %v3618_v14 }
 0x20f   : > { %v3870_v19 = vadd.f32 %v3869_v24, %v3679_v3  ;;  %v3680_v38 = vadd.f32 %v3648_v62, %v3616_v39  ;;  %v4650_v13 = vpack.c.bf16 %v3682_v7, %v3681_v23 }
 0x211   : > { %v4645_v30 = vpack.c.bf16 %v3680_v38, %v3679_v3  ;;  %v3871_v12 = vadd.f32 %v3870_v19, %v3680_v38  ;;  %4666 = vst [vmem:[%s6371_s11 + $0x78] sm:$0xff] %v4650_v13  }
 0x213   : > { %4665 = vst [vmem:[%s6371_s11 + $0x70] sm:$0xff] %v4645_v30   ;;  %v3872_v52 = vadd.f32 %v3871_v12, %v3681_v23 }
 0x215   : > { %v3873_v1 = vadd.f32 %v3872_v52, %v3682_v7 }
 0x217   : > { %v3874_v17 = vrot.slane %v3873_v1, 4 }
 0x219   : > { %v3875_v26 = vadd.f32 %v3874_v17, %v3873_v1 }
 0x21b   : > { %v3876_v54 = vrot.slane %v3875_v26, 2 }
 0x21d   : > { %v3877_v32 = vadd.f32 %v3876_v54, %v3875_v26 }
 0x21f   : > { %v3878_v57 = vrot.slane %v3877_v32, 1 }
 0x221   : > { %v3879_v36 = vadd.f32 %v3878_v57, %v3877_v32 }
 0x223   : > { %3880 = vst [vmem:[%s206_s26] sm:$0x1] %v3879_v36 }
 0x224 PF: > { %s15_s15 = sadd.s32 1, %s5562_s15  }
 0x225   : > { %p12_p4 = scmp.ge.s32.totalorder %s15_s15, 4  }
 0x227   :  { %14 = sbr.rel (!%p12_p4) target bundleno = 1 (0x1), region = 84 }

// kernel: inception_b_forward.15
= control target key start
LH: loop header
LB: loop body
LE: loop exit
PB: predicated region body
PF: predicated region fallthrough
CT: control target
= control target key end

     0   :  { %s2537_s12 = smov 0   ;;  %s2905_s0 = inlined_call_operand.vmem [shape: bf16[2,6,56,128], index: 0, kind: input, shape index: {}]   ;;  %s2906_s1 = inlined_call_operand.vmem [shape: bf16[9,128,128], index: 1, kind: input, shape index: {}]   ;;  %s2907_s2 = inlined_call_operand.vmem [shape: f32[1,128], index: 2, kind: input, shape index: {}]   ;;  %s2908_s3 = inlined_call_operand.vmem [shape: f32[2,49,128], index: 3, kind: output, shape index: {}]  }
   0x1 LB: > { %s1778_s13 = sadd.s32 4294967295, %s2515_s12   ;;  %p1782_p0 = scmp.ge.s32.totalorder %s2515_s12, 1  ;;  %s2515_s12 = sphi %s2537_s12, %s13_s12  }
   0x2   : > { %p137_p1 = scmp.lt.s32.totalorder %s2515_s12, 3 }
   0x4   : > { %p138_p2 = pnand %p1782_p0, %p137_p1 }
   0x5   : > { %p161_p3 = scmp.lt.s32.totalorder (!%p138_p2), %s1778_s13, 1 }
   0x6   : > { %141 = sbr.rel (%p138_p2) target bundleno = 377 (0x179), region = 32 }
   0xb   : > { %v2407_v0 = vld [vmem:[%s2906_s1 + $0x78] sm:$0xff]   ;;  %v2409_v2 = vld [vmem:[%s2906_s1 + $0x70] sm:$0xff]   ;;  %v2411_v4 = vld [vmem:[%s2906_s1 + $0x68] sm:$0xff]   ;;  %s2910_s13 = smov (!%p161_p3, %s1778_s13), 1  ;;  %vm1177_vm0 = vsmask.f32 4352 }
   0xc   : > { %v2408_v1 = vld [vmem:[%s2906_s1 + $0x38] sm:$0xff]   ;;  %2165 = vmatprep.subr.bf16.mxu0 %v2407_v0  ;;  %v2410_v3 = vld [vmem:[%s2906_s1 + $0x30] sm:$0xff]   ;;  %v2412_v5 = vld [vmem:[%s2906_s1 + $0x28] sm:$0xff]   ;;  %s2397_s30 = smul.u32 168, %s2910_s13 }
   0xd   : > { %2189 = vmatprep.subr.bf16.mxu1 %v2408_v1  ;;  %2166 = vmatpush3.bf16.msra.mxu0 %v2407_v0  ;;  %v2413_v6 = vld [vmem:[%s2906_s1 + $0x60] sm:$0xff]   ;;  %v2415_v8 = vld [vmem:[%s2906_s1 + $0x58] sm:$0xff]   ;;  %v2417_v10 = vld [vmem:[%s2906_s1 + $0x50] sm:$0xff]   ;;  %s2398_s16 = smul.u32 56, %s2910_s13 }
   0xe   : > { %2190 = vmatpush3.bf16.msra.mxu1 %v2408_v1  ;;  %2167 = vmatprep.subr.bf16.mxu0 %v2409_v2  ;;  %v2414_v7 = vld [vmem:[%s2906_s1 + $0x20] sm:$0xff]   ;;  %v2416_v9 = vld [vmem:[%s2906_s1 + $0x18] sm:$0xff]   ;;  %s2581_s10 = scalar_lea.vmem %s2905_s0, %s2397_s30  ;;  %v2418_v13 = vld [vmem:[%s2906_s1 + $0x10] sm:$0xff]  }
   0xf   : > { %2191 = vmatprep.subr.bf16.mxu1 %v2410_v3  ;;  %v1785_v11 = vld [vmem:[%s2581_s10 + $0x38] sm:$0xf]  ;;  %v2588_v12 = vld [vmem:[%s2581_s10 + $0x3c] sm:$0xf]  ;;  %v172_v15 = vld [vmem:[%s2581_s10] sm:$0xf]  ;;  %s170_s13 = scalar_lea.vmem %s2908_s3, %s2398_s16 }
  0x10   : > { %v1808_v14 = vcombine.low %v1785_v11, %v2588_v12  ;;  %v2596_v16 = vld [vmem:[%s2581_s10 + $0x4] sm:$0xf]  ;;  %v2419_v18 = vld [vmem:[%s2906_s1 + $0x48] sm:$0xff]   ;;  %v2429_v23 = vld [vmem:[%s2906_s1 + $0xb8] sm:$0xff]  }
  0x11   : > { %2168 = vmatpush3.bf16.msra.mxu0 %v2409_v2  ;;  %v1820_v17 = vcombine.low %v172_v15, %v2596_v16  ;;  %v2420_v19 = vld [vmem:[%s2906_s1 + $0x8] sm:$0xff]   ;;  %v2421_v20 = vld [vmem:[%s2906_s1 + $0x40] sm:$0xff]   ;;  %v2430_v24 = vld [vmem:[%s2906_s1 + $0xf8] sm:$0xff]  }
  0x12   : > { %2192 = vmatpush3.bf16.msra.mxu1 %v2410_v3  ;;  %2169 = vmatprep.subr.bf16.mxu0 %v2411_v4  ;;  %v2422_v21 = vld [vmem:[%s2906_s1] sm:$0xff]   ;;  %v2621_v25 = vld [vmem:[%s2581_s10 + $0x8] sm:$0xff]   ;;  %v2431_v26 = vld [vmem:[%s2906_s1 + $0xb0] sm:$0xff]  }
  0x13   : > { %2193 = vmatprep.subr.bf16.mxu1 %v2412_v5  ;;  %2181 = vmatprep.mubr.bf16.mxu0 %v1808_v14  ;;  %v2612_v22 = vld [vmem:[%s2581_s10 + $0x40] sm:$0xff]   ;;  %v2432_v27 = vld [vmem:[%s2906_s1 + $0xf0] sm:$0xff]   ;;  %v2630_v28 = vld [vmem:[%s2581_s10 + $0x48] sm:$0xff]   ;;  %v1187_v0 = vshrl.u32 %v2621_v25, 16 }
  0x14   : > { %2205 = vmatprep.mubr.bf16.mxu1 %v1820_v17  ;;  %v2634_v29 = vld [vmem:[%s2581_s10 + $0x10] sm:$0xff]   ;;  %v2433_v30 = vld [vmem:[%s2906_s1 + $0xa8] sm:$0xff]   ;;  %v2442_v33 = vld [vmem:[%s2581_s10 + $0x18] ss:$0 sps:$4 sm:$0x11]   ;;  %v1370_v56 = vshrl.u32 %v2612_v22, 16 }
  0x15   : > { %2170 = vmatpush3.bf16.msra.mxu0 %v2411_v4  ;;  %v2441_v31 = vld [vmem:[%s2581_s10 + $0x50] ss:$0 sps:$4 sm:$0x11]   ;;  %v2434_v32 = vld [vmem:[%s2906_s1 + $0xe8] sm:$0xff]   ;;  %v2435_v34 = vld [vmem:[%s2906_s1 + $0xa0] sm:$0xff]   ;;  %v1373_v58 = vshll.u32 %v2612_v22, 16 }
  0x16   : > { %2194 = vmatpush3.bf16.msra.mxu1 %v2412_v5  ;;  %2171 = vmatprep.subr.bf16.mxu0 %v2413_v6  ;;  %v2436_v35 = vld [vmem:[%s2906_s1 + $0xe0] sm:$0xff]   ;;  %v1832_v36 = vld [vmem:[%s2581_s10 + $0x70] sm:$0xf]  ;;  %v2655_v37 = vld [vmem:[%s2581_s10 + $0x74] sm:$0xf]  ;;  %v1190_v4 = vshll.u32 %v2621_v25, 16 }
  0x17   : > { %2195 = vmatprep.subr.bf16.mxu1 %v2414_v7  ;;  %v2437_v38 = vld [vmem:[%s2906_s1 + $0x98] sm:$0xff]   ;;  %v1855_v39 = vcombine.low %v1832_v36, %v2655_v37  ;;  %v2443_v43 = vld [vmem:[%s2906_s1 + $0x90] sm:$0xff]   ;;  %v1152_v45 = vld [vmem:[%s2581_s10] sm:$0x8]  ;;  %v1379_v14 = vshrl.u32 %v2630_v28, 16  ;;  %v1382_v17 = vshll.u32 %v2630_v28, 16 }
  0x18   : > { %v2451_v40 = vld [vmem:[%s2581_s10 + $0x1c] sm:$0xff]   ;;  %v1998_v42 = vld [vmem:[%s2581_s10 + $0x38] sm:$0x8]  ;;  %v2444_v44 = vld [vmem:[%s2906_s1 + $0xd0] sm:$0xff]   ;;  %v1988_v48 = vcombine.low %v1152_v45, %v2596_v16 }
  0x19   : > { %2172 = vmatpush3.bf16.msra.mxu0 %v2413_v6  ;;  %v2438_v41 = vld [vmem:[%s2906_s1 + $0xd8] sm:$0xff]   ;;  %v2016_v46 = vcombine.low %v1998_v42, %v2588_v12  ;;  %v2445_v47 = vld [vmem:[%s2906_s1 + $0x88] sm:$0xff]   ;;  %v2447_v52 = vld [vmem:[%s2906_s1 + $0x80] sm:$0xff]  }
  0x1a   : > { %2196 = vmatpush3.bf16.msra.mxu1 %v2414_v7  ;;  %2173 = vmatprep.subr.bf16.mxu0 %v2415_v8  ;;  %v2446_v49 = vld [vmem:[%s2906_s1 + $0xc8] sm:$0xff]   ;;  %v1179_v53 = vshrl.u32 %v1988_v48, 16  ;;  %v2448_v54 = vld [vmem:[%s2906_s1 + $0xc0] sm:$0xff]   ;;  %v1182_v55 = vshll.u32 %v1988_v48, 16  ;;  %v2694_v60 = vld [vmem:[%s2581_s10 + $0x78] sm:$0xff]   ;;  %v2718_v7 = vrot.slane %v1370_v56, 3 }
  0x1b   : > { %2197 = vmatprep.subr.bf16.mxu1 %v2416_v9  ;;  %v1362_v50 = vshrl.u32 %v2016_v46, 16  ;;  %v1365_v51 = vshll.u32 %v2016_v46, 16  ;;  %v2454_v61 = vld [vmem:[%s2906_s1 + $0x138] sm:$0xff]   ;;  %v2453_v1 = vld [vmem:[%s2581_s10 + $0x24] sm:$0xff]   ;;  %v2456_v3 = vld [vmem:[%s2906_s1 + $0x130] sm:$0xff]  }
  0x1c   : > { %v2699_v62 = vrot.slane %v1179_v53, 3  ;;  %v2455_v63 = vld [vmem:[%s2906_s1 + $0x178] sm:$0xff]   ;;  %v2706_v2 = vrot.slane %v1182_v55, 4  ;;  %v2457_v5 = vld [vmem:[%s2906_s1 + $0x170] sm:$0xff]   ;;  %v2716_v6 = vld [vmem:[%s2581_s10 + $0x80] sm:$0xff]  }
  0x1d   : > { %2174 = vmatpush3.bf16.msra.mxu0 %v2415_v8  ;;  %v2688_v57 = vrot.slane %v1362_v50, 3  ;;  %v2691_v59 = vrot.slane %v1365_v51, 4  ;;  %v2462_v8 = vld [vmem:[%s2581_s10 + $0x2c] sm:$0xff]   ;;  %v2459_v11 = vld [vmem:[%s2581_s10 + $0x88] ss:$0 sps:$4 sm:$0x11]  }
  0x1e   : > { %2198 = vmatpush3.bf16.msra.mxu1 %v2416_v9  ;;  %2175 = vmatprep.subr.bf16.mxu0 %v2417_v10  ;;  %v2722_v9 = vrot.slane %v1187_v0, 3  ;;  %v2460_v12 = vld [vmem:[%s2906_s1 + $0x128] sm:$0xff]   ;;  %v2463_v16 = vld [vmem:[%s2581_s10 + $0x34] ss:$0 sps:$4 sm:$0x11]   ;;  %v1562_v36 = vshrl.u32 %v2716_v6, 16  ;;  %v1185_v48 = vor.u32 %v2706_v2, %v2699_v62 }
  0x1f   : > { %2199 = vmatprep.subr.bf16.mxu1 %v2418_v13  ;;  %v2461_v15 = vld [vmem:[%s2906_s1 + $0x168] sm:$0xff]   ;;  %v2479_v2 = vld [vmem:[%s2906_s1 + $0x1f8] sm:$0xff]  }
  0x20   : > { %v2470_v46 = vld [vmem:[%s2906_s1 + $0x108] sm:$0xff]  }
  0x21   : > { %2176 = vmatpush3.bf16.msra.mxu0 %v2417_v10  ;;  %v2026_v10 = vld [vmem:[%s2581_s10 + $0x70] sm:$0x8] }
  0x22   : > { %2200 = vmatpush3.bf16.msra.mxu1 %v2418_v13  ;;  %2177 = vmatprep.subr.bf16.mxu0 %v2419_v18  ;;  %v1192_v13 = vrot.slane %v1190_v4, 4  ;;  %v2477_v4 = vld [vmem:[%s2581_s10 + $0x94] sm:$0xff]  }
  0x23   : > { %2201 = vmatprep.subr.bf16.mxu1 %v2420_v19 }
  0x24   : > { %v1193_v50 = vor.u32 %v1192_v13, %v2722_v9  ;;  %v2484_v9 = vld [vmem:[%s2906_s1 + $0x1a8] sm:$0xff]   ;;  %v2488_v13 = vld [vmem:[%s2906_s1 + $0x1a0] sm:$0xff]  }
  0x25   : > { %2178 = vmatpush3.bf16.msra.mxu0 %v2419_v18  ;;  %v1196_v18 = vshrl.u32 %v2634_v29, 16 }
  0x26   : > { %2202 = vmatpush3.bf16.msra.mxu1 %v2420_v19  ;;  %2179 = vmatprep.subr.bf16.mxu0 %v2421_v20  ;;  %v1199_v19 = vshll.u32 %v2634_v29, 16 }
  0x27   : > { %2203 = vmatprep.subr.bf16.mxu1 %v2422_v21 }
  0x29   : > { %2180 = vmatpush3.bf16.msra.mxu0 %v2421_v20  ;;  %v2044_v20 = vcombine.low %v2026_v10, %v2655_v37  ;;  %v1565_v37 = vshll.u32 %v2716_v6, 16  ;;  %v2485_v10 = vld [vmem:[%s2906_s1 + $0x1e8] sm:$0xff]  }
  0x2a   : > { %2204 = vmatpush3.bf16.msra.mxu1 %v2422_v21  ;;  %2213 = vmatprep.subr.bf16.mxu0 %v2429_v23  ;;  %v2464_v21 = vld [vmem:[%s2906_s1 + $0x120] sm:$0xff]  }
  0x2b   : > { %2237 = vmatprep.subr.bf16.mxu1 %v2430_v24  ;;  %v1567_v45 = vrot.slane %v1565_v37, 4 }
  0x2c   : > { %2182 = vmatmul.mubr.bf16.vlgmr.msra.gmra.mxu0 %v2612_v22  ;;  %v2465_v22 = vld [vmem:[%s2906_s1 + $0x160] sm:$0xff]  }
  0x2d   : > { %2206 = vmatmul.mubr.bf16.vlgmr.msra.gmra.mxu1 %v2621_v25  ;;  %2214 = vmatpush3.bf16.msra.mxu0 %v2429_v23  ;;  %v1375_v23 = vrot.slane %v1373_v58, 4  ;;  %v2474_v25 = vld [vmem:[%s2581_s10 + $0x54] sm:$0xff]   ;;  %v2472_v58 = vld [vmem:[%s2906_s1 + $0x100] sm:$0xff]  }
  0x2e   : > { %2238 = vmatpush3.bf16.msra.mxu1 %v2430_v24  ;;  %2215 = vmatprep.subr.bf16.mxu0 %v2431_v26  ;;  %v1381_v24 = vrot.slane %v1379_v14, 3  ;;  %v2489_v14 = vld [vmem:[%s2906_s1 + $0x1e0] sm:$0xff]  }
  0x2f   : > { %2239 = vmatprep.subr.bf16.mxu1 %v2432_v27  ;;  %2185 = vmatprep.mubr.bf16.mxu0 %v2630_v28  ;;  %v1198_v28 = vrot.slane %v1196_v18, 3  ;;  %v1376_v51 = vor.u32 %v1375_v23, %v2718_v7  ;;  %v2482_v7 = vld [vmem:[%s2581_s10 + $0x64] sm:$0xff]   ;;  %v2493_v18 = vld [vmem:[%s2906_s1 + $0x1d0] sm:$0xff]  }
  0x30   : > { %2209 = vmatprep.mubr.bf16.mxu1 %v2634_v29  ;;  %v1201_v29 = vrot.slane %v1199_v19, 4  ;;  %v2500_v19 = vld [vmem:[%s2581_s10 + $0x18] ss:$0 sps:$4 sm:$0xff]  }
  0x31   : > { %2216 = vmatpush3.bf16.msra.mxu0 %v2431_v26  ;;  %v1384_v26 = vrot.slane %v1382_v17, 4  ;;  %v2492_v17 = vld [vmem:[%s2906_s1 + $0x190] sm:$0xff]   ;;  %v1205_v23 = vshrl.u32 %v2500_v19, 16 }
  0x32   : > { %2240 = vmatpush3.bf16.msra.mxu1 %v2432_v27  ;;  %2217 = vmatprep.subr.bf16.mxu0 %v2433_v30  ;;  %v2475_v27 = vld [vmem:[%s2581_s10 + $0x8c] sm:$0xff]  }
  0x33   : > { %2241 = vmatprep.subr.bf16.mxu1 %v2434_v32  ;;  %v2777_v53 = vor.u32 %v1384_v26, %v1381_v24  ;;  %v1208_v24 = vshll.u32 %v2500_v19, 16 }
  0x34   : > { %2186 = vmatmul.mubr.bf16.gmra.mxu0 %v2441_v31  ;;  %v2466_v31 = vld [vmem:[%s2906_s1 + $0x118] sm:$0xff]  }
  0x35   : > { %2218 = vmatpush3.bf16.msra.mxu0 %v2433_v30  ;;  %2210 = vmatmul.mubr.bf16.gmra.mxu1 %v2442_v33  ;;  %v1545_v30 = vshrl.u32 %v2044_v20, 16  ;;  %v2467_v33 = vld [vmem:[%s2906_s1 + $0x158] sm:$0xff]   ;;  %v2795_v62 = vsel %vm1177_vm0, %v1376_v51, %v2777_v53 }
  0x36   : > { %2242 = vmatpush3.bf16.msra.mxu1 %v2434_v32  ;;  %2219 = vmatprep.subr.bf16.mxu0 %v2435_v34  ;;  %v1548_v32 = vshll.u32 %v2044_v20, 16  ;;  %v2502_v20 = vld [vmem:[%s2581_s10 + $0x50] ss:$0 sps:$4 sm:$0xff]  }
  0x37   : > { %2243 = vmatprep.subr.bf16.mxu1 %v2436_v35  ;;  %2229 = vmatprep.mubr.bf16.mxu0 %v1855_v39  ;;  %v1547_v39 = vrot.slane %v1545_v30, 3  ;;  %v1391_v26 = vshll.u32 %v2502_v20, 16  ;;  %v1210_v30 = vrot.slane %v1208_v24, 4 }
  0x38   : > { %2253 = vmatprep.mubr.bf16.mxu1 %v2451_v40  ;;  %v2469_v40 = vld [vmem:[%s2906_s1 + $0x150] sm:$0xff]  }
  0x39   : > { %2220 = vmatpush3.bf16.msra.mxu0 %v2435_v34  ;;  %v1553_v34 = vshrl.u32 %v2694_v60, 16 }
  0x3a   : > { %2244 = vmatpush3.bf16.msra.mxu1 %v2436_v35  ;;  %2221 = vmatprep.subr.bf16.mxu0 %v2437_v38  ;;  %v1556_v35 = vshll.u32 %v2694_v60, 16 }
  0x3b   : > { %2245 = vmatprep.subr.bf16.mxu1 %v2438_v41  ;;  %v1555_v42 = vrot.slane %v1553_v34, 3  ;;  %v2498_v34 = vld [vmem:[%s2906_s1 + $0x238] sm:$0xff]  }
  0x3d   : > { %2222 = vmatpush3.bf16.msra.mxu0 %v2437_v38  ;;  %v2468_v38 = vld [vmem:[%s2906_s1 + $0x110] sm:$0xff]  }
  0x3e   : > { %2246 = vmatpush3.bf16.msra.mxu1 %v2438_v41  ;;  %2223 = vmatprep.subr.bf16.mxu0 %v2443_v43  ;;  %v1550_v41 = vrot.slane %v1548_v32, 4  ;;  %v1393_v32 = vrot.slane %v1391_v26, 4 }
  0x3f   : > { %2247 = vmatprep.subr.bf16.mxu1 %v2444_v44 }
  0x41   : > { %2224 = vmatpush3.bf16.msra.mxu0 %v2443_v43  ;;  %v1558_v43 = vrot.slane %v1556_v35, 4 }
  0x42   : > { %2248 = vmatpush3.bf16.msra.mxu1 %v2444_v44  ;;  %2225 = vmatprep.subr.bf16.mxu0 %v2445_v47  ;;  %v1564_v44 = vrot.slane %v1562_v36, 3 }
  0x43   : > { %2249 = vmatprep.subr.bf16.mxu1 %v2446_v49  ;;  %v1559_v55 = vor.u32 %v1558_v43, %v1555_v42 }
  0x44   : > { %v2779_v56 = vor.u32 %v1567_v45, %v1564_v44  ;;  %v2501_v44 = vld [vmem:[%s2906_s1 + $0x228] sm:$0xff]  }
  0x45   : > { %2226 = vmatpush3.bf16.msra.mxu0 %v2445_v47  ;;  %v2471_v47 = vld [vmem:[%s2906_s1 + $0x148] sm:$0xff]  }
  0x46   : > { %2250 = vmatpush3.bf16.msra.mxu1 %v2446_v49  ;;  %2227 = vmatprep.subr.bf16.mxu0 %v2447_v52  ;;  %v1368_v49 = vor.u32 %v2691_v59, %v2688_v57  ;;  %v2473_v57 = vld [vmem:[%s2906_s1 + $0x140] sm:$0xff]   ;;  %v1194_v59 = vsel %vm1177_vm0, %v1185_v48, %v1193_v50  ;;  %v2802_v0 = vsel %vm1177_vm0, %v1559_v55, %v2779_v56  ;;  %v2504_v48 = vld [vmem:[%s2906_s1 + $0x218] sm:$0xff]  }
  0x47   : > { %2251 = vmatprep.subr.bf16.mxu1 %v2448_v54 }
  0x49   : > { %2228 = vmatpush3.bf16.msra.mxu0 %v2447_v52  ;;  %v2775_v52 = vor.u32 %v1201_v29, %v1198_v28  ;;  %v2497_v28 = vld [vmem:[%s2906_s1 + $0x1c0] sm:$0xff]   ;;  %v1207_v29 = vrot.slane %v1205_v23, 3 }
  0x4a   : > { %2252 = vmatpush3.bf16.msra.mxu1 %v2448_v54  ;;  %2261 = vmatprep.subr.bf16.mxu0 %v2454_v61  ;;  %v1551_v54 = vor.u32 %v1550_v41, %v1547_v39  ;;  %v2499_v39 = vld [vmem:[%s2906_s1 + $0x230] sm:$0xff]  }
  0x4b   : > { %2285 = vmatprep.subr.bf16.mxu1 %v2455_v63  ;;  %v1211_v35 = vor.u32 %v1210_v30, %v1207_v29 }
  0x4c   : > { %2230 = vmatmul.mubr.bf16.vlgmr.msra.gmra.mxu0 %v2694_v60  ;;  %v1377_v60 = vsel %vm1177_vm0, %v1368_v49, %v1376_v51  ;;  %v2505_v49 = vld [vmem:[%s2906_s1 + $0x210] sm:$0xff]   ;;  %v2507_v51 = vld [vmem:[%s2906_s1 + $0x200] sm:$0xff]  }
  0x4d   : > { %2254 = vmatmul.mubr.bf16.vlgmr.msra.gmra.mxu1 %v2453_v1  ;;  %2262 = vmatpush3.bf16.msra.mxu0 %v2454_v61  ;;  %v2791_v61 = vsel %vm1177_vm0, %v1193_v50, %v2775_v52  ;;  %v2478_v1 = vld [vmem:[%s2906_s1 + $0x1b8] sm:$0xff]   ;;  %v2506_v50 = vld [vmem:[%s2906_s1 + $0x208] sm:$0xff]  }
  0x4e   : > { %2286 = vmatpush3.bf16.msra.mxu1 %v2455_v63  ;;  %2263 = vmatprep.subr.bf16.mxu0 %v2456_v3  ;;  %v2798_v63 = vsel %vm1177_vm0, %v1551_v54, %v1559_v55 }
  0x4f   : > { %2287 = vmatprep.subr.bf16.mxu1 %v2457_v5  ;;  %2233 = vmatprep.mubr.bf16.mxu0 %v2716_v6  ;;  %v2481_v6 = vld [vmem:[%s2906_s1 + $0x1f0] sm:$0xff]  }
  0x50   : > { %2257 = vmatprep.mubr.bf16.mxu1 %v2462_v8  ;;  %v2486_v8 = vld [vmem:[%s2581_s10 + $0x9c] sm:$0xff]  }
  0x51   : > { %2264 = vmatpush3.bf16.msra.mxu0 %v2456_v3  ;;  %v2476_v3 = vld [vmem:[%s2581_s10 + $0x5c] sm:$0xff]  }
  0x52   : > { %2288 = vmatpush3.bf16.msra.mxu1 %v2457_v5  ;;  %2265 = vmatprep.subr.bf16.mxu0 %v2460_v12  ;;  %v2480_v5 = vld [vmem:[%s2906_s1 + $0x1b0] sm:$0xff]  }
  0x53   : > { %2289 = vmatprep.subr.bf16.mxu1 %v2461_v15 }
  0x54   : > { %2234 = vmatmul.mubr.bf16.gmra.mxu0 %v2459_v11  ;;  %v2483_v11 = vld [vmem:[%s2581_s10 + $0x6c] ss:$0 sps:$4 sm:$0x11]  }
  0x55   : > { %2266 = vmatpush3.bf16.msra.mxu0 %v2460_v12  ;;  %2258 = vmatmul.mubr.bf16.gmra.mxu1 %v2463_v16  ;;  %v2487_v12 = vld [vmem:[%s2581_s10 + $0xa4] ss:$0 sps:$4 sm:$0x11]   ;;  %v2491_v16 = vld [vmem:[%s2906_s1 + $0x1d8] sm:$0xff]  }
  0x56   : > { %2290 = vmatpush3.bf16.msra.mxu1 %v2461_v15  ;;  %2267 = vmatprep.subr.bf16.mxu0 %v2464_v21  ;;  %v2490_v15 = vld [vmem:[%s2906_s1 + $0x198] sm:$0xff]  }
  0x57   : > { %2291 = vmatprep.subr.bf16.mxu1 %v2465_v22  ;;  %2277 = vmatprep.mubr.bf16.mxu0 %v2474_v25  ;;  %v1388_v25 = vshrl.u32 %v2502_v20, 16 }
  0x58   : > { %2301 = vmatprep.mubr.bf16.mxu1 %v2475_v27  ;;  %v2496_v27 = vld [vmem:[%s2906_s1 + $0x180] sm:$0xff]  }
  0x59   : > { %2268 = vmatpush3.bf16.msra.mxu0 %v2464_v21  ;;  %v2494_v21 = vld [vmem:[%s2906_s1 + $0x188] sm:$0xff]  }
  0x5a   : > { %2292 = vmatpush3.bf16.msra.mxu1 %v2465_v22  ;;  %2269 = vmatprep.subr.bf16.mxu0 %v2466_v31  ;;  %v2495_v22 = vld [vmem:[%s2906_s1 + $0x1c8] sm:$0xff]  }
  0x5b   : > { %2293 = vmatprep.subr.bf16.mxu1 %v2467_v33 }
  0x5d   : > { %2270 = vmatpush3.bf16.msra.mxu0 %v2466_v31  ;;  %v1390_v31 = vrot.slane %v1388_v25, 3 }
  0x5e   : > { %2294 = vmatpush3.bf16.msra.mxu1 %v2467_v33  ;;  %2271 = vmatprep.subr.bf16.mxu0 %v2468_v38  ;;  %v2508_v33 = vld [vmem:[%s2581_s10 + $0x88] ss:$0 sps:$4 sm:$0xff]  }
  0x5f   : > { %2295 = vmatprep.subr.bf16.mxu1 %v2469_v40  ;;  %v1394_v36 = vor.u32 %v1393_v32, %v1390_v31  ;;  %v1571_v37 = vshrl.u32 %v2508_v33, 16 }
  0x61   : > { %2272 = vmatpush3.bf16.msra.mxu0 %v2468_v38  ;;  %v1574_v38 = vshll.u32 %v2508_v33, 16  ;;  %v1395_v41 = vsel %vm1177_vm0, %v2777_v53, %v1394_v36  ;;  %v1573_v42 = vrot.slane %v1571_v37, 3 }
  0x62   : > { %2296 = vmatpush3.bf16.msra.mxu1 %v2469_v40  ;;  %2273 = vmatprep.subr.bf16.mxu0 %v2470_v46  ;;  %v1212_v40 = vsel %vm1177_vm0, %v2775_v52, %v1211_v35 }
  0x63   : > { %2297 = vmatprep.subr.bf16.mxu1 %v2471_v47  ;;  %v1576_v43 = vrot.slane %v1574_v38, 4 }
  0x65   : > { %2274 = vmatpush3.bf16.msra.mxu0 %v2470_v46  ;;  %v1577_v45 = vor.u32 %v1576_v43, %v1573_v42  ;;  %v2503_v46 = vld [vmem:[%s2906_s1 + $0x220] sm:$0xff]  }
  0x66   : > { %2298 = vmatpush3.bf16.msra.mxu1 %v2471_v47  ;;  %2275 = vmatprep.subr.bf16.mxu0 %v2472_v58 }
  0x67   : > { %2299 = vmatprep.subr.bf16.mxu1 %v2473_v57  ;;  %v1578_v47 = vsel %vm1177_vm0, %v2779_v56, %v1577_v45 }
  0x69   : > { %2276 = vmatpush3.bf16.msra.mxu0 %v2472_v58 }
  0x6a   : > { %2300 = vmatpush3.bf16.msra.mxu1 %v2473_v57  ;;  %2309 = vmatprep.subr.bf16.mxu0 %v2478_v1 }
  0x6b   : > { %2333 = vmatprep.subr.bf16.mxu1 %v2479_v2 }
  0x6c   : > { %2278 = vmatmul.mubr.bf16.vlgmr.msra.gmra.mxu0 %v2476_v3 }
  0x6d   : > { %2302 = vmatmul.mubr.bf16.vlgmr.msra.gmra.mxu1 %v2477_v4  ;;  %2310 = vmatpush3.bf16.msra.mxu0 %v2478_v1 }
  0x6e   : > { %2334 = vmatpush3.bf16.msra.mxu1 %v2479_v2  ;;  %2311 = vmatprep.subr.bf16.mxu0 %v2480_v5 }
  0x6f   : > { %2335 = vmatprep.subr.bf16.mxu1 %v2481_v6  ;;  %2281 = vmatprep.mubr.bf16.mxu0 %v2482_v7 }
  0x70   : > { %2305 = vmatprep.mubr.bf16.mxu1 %v2486_v8 }
  0x71   : > { %2312 = vmatpush3.bf16.msra.mxu0 %v2480_v5 }
  0x72   : > { %2336 = vmatpush3.bf16.msra.mxu1 %v2481_v6  ;;  %2313 = vmatprep.subr.bf16.mxu0 %v2484_v9 }
  0x73   : > { %2337 = vmatprep.subr.bf16.mxu1 %v2485_v10 }
  0x74   : > { %2282 = vmatmul.mubr.bf16.gmra.mxu0 %v2483_v11 }
  0x75   : > { %2314 = vmatpush3.bf16.msra.mxu0 %v2484_v9  ;;  %2306 = vmatmul.mubr.bf16.gmra.mxu1 %v2487_v12 }
  0x76   : > { %2338 = vmatpush3.bf16.msra.mxu1 %v2485_v10  ;;  %2315 = vmatprep.subr.bf16.mxu0 %v2488_v13 }
  0x77   : > { %2339 = vmatprep.subr.bf16.mxu1 %v2489_v14  ;;  %2325 = vmatprep.mubr.bf16.mxu0 %v1194_v59 }
  0x78   : > { %2349 = vmatprep.mubr.bf16.mxu1 %v1377_v60 }
  0x79   : > { %2316 = vmatpush3.bf16.msra.mxu0 %v2488_v13 }
  0x7a   : > { %2340 = vmatpush3.bf16.msra.mxu1 %v2489_v14  ;;  %2317 = vmatprep.subr.bf16.mxu0 %v2490_v15 }
  0x7b   : > { %2341 = vmatprep.subr.bf16.mxu1 %v2491_v16 }
  0x7d   : > { %2318 = vmatpush3.bf16.msra.mxu0 %v2490_v15 }
  0x7e   : > { %2342 = vmatpush3.bf16.msra.mxu1 %v2491_v16  ;;  %2319 = vmatprep.subr.bf16.mxu0 %v2492_v17 }
  0x7f   : > { %2343 = vmatprep.subr.bf16.mxu1 %v2493_v18 }
  0x81   : > { %2320 = vmatpush3.bf16.msra.mxu0 %v2492_v17 }
  0x82   : > { %2344 = vmatpush3.bf16.msra.mxu1 %v2493_v18  ;;  %2321 = vmatprep.subr.bf16.mxu0 %v2494_v21 }
  0x83   : > { %2345 = vmatprep.subr.bf16.mxu1 %v2495_v22 }
  0x85   : > { %2322 = vmatpush3.bf16.msra.mxu0 %v2494_v21 }
  0x86   : > { %2346 = vmatpush3.bf16.msra.mxu1 %v2495_v22  ;;  %2323 = vmatprep.subr.bf16.mxu0 %v2496_v27 }
  0x87   : > { %2347 = vmatprep.subr.bf16.mxu1 %v2497_v28 }
  0x89   : > { %2324 = vmatpush3.bf16.msra.mxu0 %v2496_v27 }
  0x8a   : > { %2348 = vmatpush3.bf16.msra.mxu1 %v2497_v28  ;;  %2357 = vmatprep.subr.bf16.mxu0 %v2498_v34 }
  0x8b   : > { %2381 = vmatprep.subr.bf16.mxu1 %v2498_v34 }
  0x8c   : > { %2326 = vmatmul.mubr.bf16.vlgmr.msra.gmra.mxu0 %v2791_v61 }
  0x8d   : > { %2350 = vmatmul.mubr.bf16.vlgmr.msra.gmra.mxu1 %v2795_v62  ;;  %2358 = vmatpush3.bf16.msra.mxu0 %v2498_v34 }
  0x8e   : > { %2389 = vmatpush3.bf16.msra.mxu1 %v2498_v34  ;;  %2359 = vmatprep.subr.bf16.mxu0 %v2499_v39 }
  0x8f   : > { %2382 = vmatprep.subr.bf16.mxu1 %v2499_v39  ;;  %2329 = vmatprep.mubr.bf16.mxu0 %v1212_v40 }
  0x90   : > { %2353 = vmatprep.mubr.bf16.mxu1 %v1395_v41 }
  0x91   : > { %2360 = vmatpush3.bf16.msra.mxu0 %v2499_v39 }
  0x92   : > { %2390 = vmatpush3.bf16.msra.mxu1 %v2499_v39  ;;  %2361 = vmatprep.subr.bf16.mxu0 %v2501_v44 }
  0x93   : > { %2383 = vmatprep.subr.bf16.mxu1 %v2501_v44 }
  0x94   : > { %2330 = vmatmul.mubr.bf16.gmra.mxu0 %v1207_v29 }
  0x95   : > { %2362 = vmatpush3.bf16.msra.mxu0 %v2501_v44  ;;  %2354 = vmatmul.mubr.bf16.gmra.mxu1 %v1390_v31 }
  0x96   : > { %2391 = vmatpush3.bf16.msra.mxu1 %v2501_v44  ;;  %2363 = vmatprep.subr.bf16.mxu0 %v2503_v46 }
  0x97   : > { %2384 = vmatprep.subr.bf16.mxu1 %v2503_v46  ;;  %2373 = vmatprep.mubr.bf16.mxu0 %v2798_v63 }
  0x98   : > { %2377 = vmatprep.mubr.bf16.mxu1 %v1578_v47 }
  0x99   : > { %2364 = vmatpush3.bf16.msra.mxu0 %v2503_v46 }
  0x9a   : > { %2392 = vmatpush3.bf16.msra.mxu1 %v2503_v46  ;;  %2365 = vmatprep.subr.bf16.mxu0 %v2504_v48 }
  0x9b   : > { %2385 = vmatprep.subr.bf16.mxu1 %v2504_v48 }
  0x9d   : > { %2366 = vmatpush3.bf16.msra.mxu0 %v2504_v48 }
  0x9e   : > { %2393 = vmatpush3.bf16.msra.mxu1 %v2504_v48  ;;  %2367 = vmatprep.subr.bf16.mxu0 %v2505_v49 }
  0x9f   : > { %2386 = vmatprep.subr.bf16.mxu1 %v2505_v49 }
  0xa1   : > { %2368 = vmatpush3.bf16.msra.mxu0 %v2505_v49 }
  0xa2   : > { %2394 = vmatpush3.bf16.msra.mxu1 %v2505_v49  ;;  %2369 = vmatprep.subr.bf16.mxu0 %v2506_v50 }
  0xa3   : > { %2387 = vmatprep.subr.bf16.mxu1 %v2506_v50 }
  0xa5   : > { %2370 = vmatpush3.bf16.msra.mxu0 %v2506_v50 }
  0xa6   : > { %2395 = vmatpush3.bf16.msra.mxu1 %v2506_v50  ;;  %2371 = vmatprep.subr.bf16.mxu0 %v2507_v51 }
  0xa7   : > { %2388 = vmatprep.subr.bf16.mxu1 %v2507_v51 }
  0xa9   : > { %2372 = vmatpush3.bf16.msra.mxu0 %v2507_v51 }
  0xaa   : > { %2396 = vmatpush3.bf16.msra.mxu1 %v2507_v51 }
  0xac   : > { %2374 = vmatmul.mubr.bf16.vlgmr.msra.gmra.mxu0 %v2802_v0 }
  0xad   : > { %2378 = vmatmul.mubr.bf16.vlgmr.msra.gmra.mxu1 %v1573_v42 }
  0xec   : > { %v2183_v52 = vpop.f32.mrf.mxu0 }
  0xed   : > { %v2207_v53 = vpop.f32.mrf.mxu1 }
  0xee   : > { %v467_v54 = vadd.f32 %v2207_v53, %v2183_v52  ;;  %v324_v55 = vpop.f32.mrf.mxu0 }
  0xef   : > { %v458_v56 = vpop.f32.mrf.mxu1 }
  0xf0   : > { %v459_v58 = vadd.f32 %v458_v56, %v324_v55  ;;  %v2184_v57 = vpop.f32.mrf.mxu0 }
  0xf1   : > { %v2208_v59 = vpop.f32.mrf.mxu1 }
  0xf2   : > { %v470_v60 = vadd.f32 %v2208_v59, %v2184_v57  ;;  %v327_v61 = vpop.f32.mrf.mxu0 }
  0xf3   : > { %v461_v62 = vpop.f32.mrf.mxu1 }
  0xf4   : > { %v462_v63 = vadd.f32 %v461_v62, %v327_v61  ;;  %v2187_v1 = vpop.f32.mrf.mxu0 }
  0xf5   : > { %v2211_v2 = vpop.f32.mrf.mxu1 }
  0xf6   : > { %v483_v3 = vadd.f32 %v2211_v2, %v2187_v1  ;;  %v340_v4 = vpop.f32.mrf.mxu0 }
  0xf7   : > { %v474_v5 = vpop.f32.mrf.mxu1 }
  0xf8   : > { %v475_v6 = vadd.f32 %v474_v5, %v340_v4  ;;  %v2188_v0 = vpop.f32.mrf.mxu0 }
  0xf9   : > { %v2212_v7 = vpop.f32.mrf.mxu1 }
  0xfa   : > { %v343_v8 = vpop.f32.mrf.mxu0 }
  0xfb   : > { %v477_v9 = vpop.f32.mrf.mxu1 }
  0xfc   : > { %v478_v10 = vadd.f32 %v477_v9, %v343_v8 }
 0x10c   : > { %v2231_v11 = vpop.f32.mrf.mxu0 }
 0x10d   : > { %v649_v12 = vadd.f32 %v2231_v11, %v467_v54  ;;  %v2255_v13 = vpop.f32.mrf.mxu1 }
 0x10e   : > { %v617_v14 = vpop.f32.mrf.mxu0 }
 0x10f   : > { %v815_v15 = vadd.f32 %v2255_v13, %v649_v12  ;;  %v647_v16 = vadd.f32 %v617_v14, %v459_v58  ;;  %v783_v17 = vpop.f32.mrf.mxu1 }
 0x110   : > { %v2232_v18 = vpop.f32.mrf.mxu0 }
 0x111   : > { %v813_v19 = vadd.f32 %v783_v17, %v647_v16  ;;  %v650_v20 = vadd.f32 %v2232_v18, %v470_v60  ;;  %v2256_v21 = vpop.f32.mrf.mxu1 }
 0x112   : > { %v620_v22 = vpop.f32.mrf.mxu0 }
 0x113   : > { %v816_v23 = vadd.f32 %v2256_v21, %v650_v20  ;;  %v648_v24 = vadd.f32 %v620_v22, %v462_v63  ;;  %v786_v25 = vpop.f32.mrf.mxu1 }
 0x114   : > { %v2235_v26 = vpop.f32.mrf.mxu0 }
 0x115   : > { %v814_v27 = vadd.f32 %v786_v25, %v648_v24  ;;  %v653_v28 = vadd.f32 %v2235_v26, %v483_v3  ;;  %v2259_v29 = vpop.f32.mrf.mxu1 }
 0x116   : > { %v633_v30 = vpop.f32.mrf.mxu0 }
 0x117   : > { %v651_v31 = vadd.f32 %v633_v30, %v475_v6  ;;  %v819_v32 = vadd.f32 %v2259_v29, %v653_v28  ;;  %v799_v33 = vpop.f32.mrf.mxu1 }
 0x118   : > { %v2236_v34 = vpop.f32.mrf.mxu0 }
 0x119   : > { %v817_v35 = vadd.f32 %v799_v33, %v651_v31  ;;  %v2260_v36 = vpop.f32.mrf.mxu1 }
 0x11a   : > { %v636_v37 = vpop.f32.mrf.mxu0 }
 0x11b   : > { %v802_v38 = vpop.f32.mrf.mxu1  ;;  %v652_v0 = vadd.f32 %v636_v37, %v478_v10 }
 0x11d   : > { %v818_v13 = vadd.f32 %v802_v38, %v652_v0 }
 0x12c   : > { %v2279_v39 = vpop.f32.mrf.mxu0 }
 0x12d   : > { %v2303_v40 = vpop.f32.mrf.mxu1  ;;  %v981_v6 = vadd.f32 %v2279_v39, %v815_v15 }
 0x12e   : > { %v949_v41 = vpop.f32.mrf.mxu0 }
 0x12f   : > { %v1115_v42 = vpop.f32.mrf.mxu1  ;;  %v979_v8 = vadd.f32 %v949_v41, %v813_v19  ;;  %v1147_v11 = vadd.f32 %v2303_v40, %v981_v6 }
 0x130   : > { %v2280_v43 = vpop.f32.mrf.mxu0 }
 0x131   : > { %v2304_v44 = vpop.f32.mrf.mxu1  ;;  %v982_v12 = vadd.f32 %v2280_v43, %v816_v23  ;;  %v1145_v16 = vadd.f32 %v1115_v42, %v979_v8 }
 0x132   : > { %v952_v45 = vpop.f32.mrf.mxu0 }
 0x133   : > { %v1118_v46 = vpop.f32.mrf.mxu1  ;;  %v980_v17 = vadd.f32 %v952_v45, %v814_v27  ;;  %v1148_v24 = vadd.f32 %v2304_v44, %v982_v12  ;;  %v2054_v27 = vld [vmem:[%s2907_s2] ss:$0 sm:$0xff] }
 0x134   : > { %v2283_v47 = vpop.f32.mrf.mxu0 }
 0x135   : > { %v2307_v48 = vpop.f32.mrf.mxu1  ;;  %v985_v7 = vadd.f32 %v2283_v47, %v819_v32  ;;  %v1146_v10 = vadd.f32 %v1118_v46, %v980_v17 }
 0x136   : > { %v965_v49 = vpop.f32.mrf.mxu0 }
 0x137   : > { %v1131_v50 = vpop.f32.mrf.mxu1  ;;  %v983_v9 = vadd.f32 %v965_v49, %v817_v35  ;;  %v1151_v14 = vadd.f32 %v2307_v48, %v985_v7 }
 0x138   : > { %v2284_v51 = vpop.f32.mrf.mxu0 }
 0x139   : > { %v2308_v52 = vpop.f32.mrf.mxu1  ;;  %v1149_v20 = vadd.f32 %v1131_v50, %v983_v9 }
 0x13a   : > { %v968_v53 = vpop.f32.mrf.mxu0 }
 0x13b   : > { %v1134_v54 = vpop.f32.mrf.mxu1  ;;  %v984_v21 = vadd.f32 %v968_v53, %v818_v13 }
 0x13d   : > { %v1150_v30 = vadd.f32 %v1134_v54, %v984_v21 }
 0x14c   : > { %v2327_v55 = vpop.f32.mrf.mxu0 }
 0x14d   : > { %v2351_v56 = vpop.f32.mrf.mxu1  ;;  %v1331_v18 = vadd.f32 %v2327_v55, %v1147_v11 }
 0x14e   : > { %v1299_v58 = vpop.f32.mrf.mxu0 }
 0x14f   : > { %v1482_v57 = vpop.f32.mrf.mxu1  ;;  %v1329_v25 = vadd.f32 %v1299_v58, %v1145_v16  ;;  %v1514_v15 = vadd.f32 %v2351_v56, %v1331_v18 }
 0x150   : > { %v2328_v59 = vpop.f32.mrf.mxu0 }
 0x151   : > { %v2352_v60 = vpop.f32.mrf.mxu1  ;;  %v1332_v19 = vadd.f32 %v2328_v59, %v1148_v24  ;;  %v1512_v32 = vadd.f32 %v1482_v57, %v1329_v25 }
 0x152   : > { %v1302_v61 = vpop.f32.mrf.mxu0 }
 0x153   : > { %v1485_v62 = vpop.f32.mrf.mxu1  ;;  %v1330_v33 = vadd.f32 %v1302_v61, %v1146_v10  ;;  %v1515_v40 = vadd.f32 %v2352_v60, %v1332_v19 }
 0x154   : > { %v2331_v63 = vpop.f32.mrf.mxu0 }
 0x155   : > { %v2355_v1 = vpop.f32.mrf.mxu1  ;;  %v1335_v22 = vadd.f32 %v2331_v63, %v1151_v14  ;;  %v1513_v47 = vadd.f32 %v1485_v62, %v1330_v33 }
 0x156   : > { %v1315_v2 = vpop.f32.mrf.mxu0 }
 0x157   : > { %v1498_v3 = vpop.f32.mrf.mxu1  ;;  %v1333_v26 = vadd.f32 %v1315_v2, %v1149_v20  ;;  %v1518_v31 = vadd.f32 %v2355_v1, %v1335_v22 }
 0x158   : > { %v2332_v4 = vpop.f32.mrf.mxu0 }
 0x159   : > { %v2356_v5 = vpop.f32.mrf.mxu1  ;;  %v1516_v36 = vadd.f32 %v1498_v3, %v1333_v26 }
 0x15a   : > { %v1318_v28 = vpop.f32.mrf.mxu0 }
 0x15b   : > { %v1501_v29 = vpop.f32.mrf.mxu1  ;;  %v1334_v37 = vadd.f32 %v1318_v28, %v1150_v30 }
 0x15d   : > { %v1517_v51 = vadd.f32 %v1501_v29, %v1334_v37 }
 0x16c   : > { %v2375_v23 = vpop.f32.mrf.mxu0 }
 0x16d   : > { %v1697_v34 = vadd.f32 %v2375_v23, %v1514_v15  ;;  %v2379_v35 = vpop.f32.mrf.mxu1 }
 0x16e   : > { %v1701_v38 = vadd.f32 %v2379_v35, %v1518_v31  ;;  %v1665_v39 = vpop.f32.mrf.mxu0 }
 0x16f   : > { %v1711_v41 = vadd.f32 %v2054_v27, %v1697_v34  ;;  %v1695_v42 = vadd.f32 %v1665_v39, %v1512_v32  ;;  %v1681_v43 = vpop.f32.mrf.mxu1 }
 0x170   : > { %v1715_v44 = vadd.f32 %v2054_v27, %v1701_v38  ;;  %v1699_v45 = vadd.f32 %v1681_v43, %v1516_v36  ;;  %v2376_v46 = vpop.f32.mrf.mxu0 }
 0x171   : > { %1718 = vst [vmem:[%s170_s13 + $0x10] sm:$0xff] %v1711_v41  ;;  %v1709_v48 = vadd.f32 %v2054_v27, %v1695_v42  ;;  %v1698_v49 = vadd.f32 %v2376_v46, %v1515_v40  ;;  %v2380_v50 = vpop.f32.mrf.mxu1 }
 0x172   : > { %1722 = vst [vmem:[%s170_s13 + $0x30] sm:$0x1] %v1715_v44  ;;  %v1713_v52 = vadd.f32 %v2054_v27, %v1699_v45  ;;  %v1668_v53 = vpop.f32.mrf.mxu0 }
 0x173   : > { %1716 = vst [vmem:[%s170_s13] sm:$0xff] %v1709_v48  ;;  %v1712_v54 = vadd.f32 %v2054_v27, %v1698_v49  ;;  %v1696_v55 = vadd.f32 %v1668_v53, %v1513_v47  ;;  %v1684_v56 = vpop.f32.mrf.mxu1 }
 0x174   : > { %1720 = vst [vmem:[%s170_s13 + $0x20] sm:$0xff] %v1713_v52  ;;  %v1700_v58 = vadd.f32 %v1684_v56, %v1517_v51 }
 0x175   : > { %1719 = vst [vmem:[%s170_s13 + $0x18] sm:$0xff] %v1712_v54  ;;  %v1710_v57 = vadd.f32 %v2054_v27, %v1696_v55 }
 0x176   : > { %v1714_v59 = vadd.f32 %v2054_v27, %v1700_v58 }
 0x177   : > { %1717 = vst [vmem:[%s170_s13 + $0x8] sm:$0xff] %v1710_v57 }
 0x178   : > { %1721 = vst [vmem:[%s170_s13 + $0x28] sm:$0xff] %v1714_v59 }
 0x179 PF: > { %s13_s12 = sadd.s32 1, %s2515_s12  }
 0x17a   : > { %p10_p4 = scmp.ge.s32.totalorder %s13_s12, 4  }
 0x17c   :  { %12 = sbr.rel (!%p10_p4) target bundleno = 1 (0x1), region = 75 }

</bundles_post_ra>
